<compile_context>
chip_gen: v7x
topology: tpu7x:2x2x1
jax: 0.10.0
libtpu: 0.0.40
codegen_flags: <defaults>
</compile_context>

<pallas_src>
import jax
import jax.numpy as jnp
from jax.experimental import pallas as pl
from jax.experimental.pallas import tpu as pltpu


def _make_slice_kernel(C, D, Hg, z_scale, z_off):
    """Kernel closed over static channel/depth/grid sizes and the guide->depth affine."""

    def kernel(grid_ref, wy_ref, wx_ref, guide_ref, o_ref, t1_ref):
        # grid_ref : (1, D*C*Hg, Wg)  depth-major bilateral-grid slab of batch n
        # wy_ref   : (TH, Hg)         y tent weights of this row tile (static)
        # wx_ref   : (Wg, W)          x tent weights (static, shared by all tiles)
        # guide_ref: (1, 1, TH, W)    guide-map tile
        # o_ref    : (1, C, TH, W)    output coefficient tile (NCHW layout)
        # t1_ref   : VMEM scratch (D*C*Hg, W): x-interpolated slab of batch n

        # 1) x-interp (MXU): row-tile invariant -> compute once per batch element
        #    and keep it VMEM-resident for every row tile of that batch.
        @pl.when(pl.program_id(1) == 0)
        def _():
            t1_ref[...] = jnp.dot(grid_ref[0], wx_ref[...],
                                  preferred_element_type=jnp.float32)

        wy = wy_ref[...]                                  # (TH, Hg)
        iz = guide_ref[0, 0] * z_scale + z_off            # (TH, W) unnormalized depth
        # grid_sample's two-corner depth lerp with zeros padding: per-depth tent
        # weights, computed once per tile (reused by every channel).
        wz = [jnp.maximum(0.0, 1.0 - jnp.abs(iz - float(d))) for d in range(D)]

        # 2+3) y-interp (MXU) fused with z-interp (VPU) per (channel, depth):
        #      no (C*D, TH, W) intermediate, no broadcasted wy operand, and each
        #      channel's (TH, W) accumulator is stored straight into NCHW.
        for c in range(C):
            acc = None
            for d in range(D):                            # D, C are small & static
                row0 = (d * C + c) * Hg
                slab = t1_ref[pl.ds(row0, Hg), :]         # (Hg, W)
                yd = jnp.dot(wy, slab, preferred_element_type=jnp.float32)  # (TH, W)
                term = yd * wz[d]
                acc = term if acc is None else acc + term
            o_ref[0, c, :, :] = acc

    return kernel


def _tent_matrix(out_size, in_size, align_corners):
    """(out_size, in_size) matrix of 1-D grid_sample weights.

    Row p is max(0, 1 - |pos(p) - cell|): at most two non-zeros (the two bilinear
    corners); out-of-range corners get weight 0, reproducing padding_mode='zeros'.
    """
    denom = max(out_size - 1, 1)  # guard degenerate H==1 / W==1 (torch would NaN)
    coord = (jnp.arange(out_size, dtype=jnp.float32) / denom) * 2.0 - 1.0
    if align_corners:
        pos = (coord + 1.0) * 0.5 * (in_size - 1)
    else:
        pos = ((coord + 1.0) * in_size - 1.0) * 0.5
    cell = jnp.arange(in_size, dtype=jnp.float32)
    return jnp.maximum(0.0, 1.0 - jnp.abs(pos[:, None] - cell[None, :]))


def bilateral_slice(bilateral_grid, guidemap, *, tile_h=None, align_corners=False):
    """Pallas equivalent of Slice.forward(bilateral_grid, guidemap) -> (N, C, H, W)."""
    bilateral_grid = bilateral_grid.astype(jnp.float32)
    guidemap = guidemap.astype(jnp.float32)

    N, C, D, Hg, Wg = bilateral_grid.shape
    Ng, Cg, H, W = guidemap.shape
    assert Ng == N and Cg == 1

    if tile_h is None:
        # Large row tiles amortize per-step overhead; fall back to a full-H tile.
        tile_h = next((t for t in (256, 128, 64, 32, 16, 8) if H % t == 0), H)
    # TODO(synk): pad/mask a remainder row tile instead of requiring divisibility.
    assert H % tile_h == 0, "H must be a multiple of tile_h"

    # Static spatial tent-weight matrices (the meshgrid part of Slice.forward).
    wy = _tent_matrix(H, Hg, align_corners)          # (H, Hg)
    wx = _tent_matrix(W, Wg, align_corners).T        # (Wg, W)  lane-dense along W
    if align_corners:
        z_scale, z_off = (D - 1) / 2.0, (D - 1) / 2.0
    else:
        z_scale, z_off = D / 2.0, D / 2.0 - 0.5

    # Depth-major flatten (tiny, one-time XLA relayout of the small grid) so the
    # per-batch x-interp lands in a row order the kernel can slice statically:
    # row (d*C + c)*Hg + hg  <->  bilateral_grid[n, c, d, hg, :].
    grid_t = jnp.transpose(bilateral_grid, (0, 2, 1, 3, 4)).reshape(N, D * C * Hg, Wg)

    return pl.pallas_call(
        _make_slice_kernel(C, D, Hg, z_scale, z_off),
        out_shape=jax.ShapeDtypeStruct((N, C, H, W), jnp.float32),
        grid=(N, H // tile_h),
        in_specs=[
            # Grid slab of batch n: block index constant along the inner row-tile
            # axis -> DMA'd once per batch element, stays VMEM-resident.
            pl.BlockSpec((1, D * C * Hg, Wg), lambda n, i: (n, 0, 0)),
            pl.BlockSpec((tile_h, Hg), lambda n, i: (i, 0)),
            pl.BlockSpec((Wg, W), lambda n, i: (0, 0)),
            pl.BlockSpec((1, 1, tile_h, W), lambda n, i: (n, 0, i, 0)),
        ],
        out_specs=pl.BlockSpec((1, C, tile_h, W), lambda n, i: (n, 0, i, 0)),
        scratch_shapes=[pltpu.VMEM((D * C * Hg, W), jnp.float32)],
        compiler_params=pltpu.CompilerParams(
            # Inner axis must be "arbitrary" (once-per-batch scratch init); the
            # batch axis stays "parallel" so v7x can shard across its 2 TCs.
            dimension_semantics=("parallel", "arbitrary"),
            vmem_limit_bytes=64 * 1024 * 1024),
    )(grid_t, wy, wx, guidemap)


def slice_reference(bilateral_grid, guidemap, align_corners=False):
    """Pure-JAX gather-based trilinear grid_sample reference (zeros padding)."""
    bilateral_grid = bilateral_grid.astype(jnp.float32)
    guidemap = guidemap.astype(jnp.float32)
    N, C, D, Hg, Wg = bilateral_grid.shape
    _, _, H, W = guidemap.shape

    def unnorm(coord, size):
        if align_corners:
            return (coord + 1.0) * 0.5 * (size - 1)
        return ((coord + 1.0) * size - 1.0) * 0.5

    hg = (jnp.arange(H, dtype=jnp.float32) / (H - 1)) * 2.0 - 1.0
    wg = (jnp.arange(W, dtype=jnp.float32) / (W - 1)) * 2.0 - 1.0
    iy = jnp.broadcast_to(unnorm(hg, Hg)[None, :, None], (N, H, W))
    ix = jnp.broadcast_to(unnorm(wg, Wg)[None, None, :], (N, H, W))
    iz = unnorm(guidemap[:, 0], D)                               # (N, H, W)

    x0, y0, z0 = jnp.floor(ix), jnp.floor(iy), jnp.floor(iz)
    bg = jnp.transpose(bilateral_grid, (0, 2, 3, 4, 1))          # (N, D, Hg, Wg, C)
    nidx = jnp.arange(N)[:, None, None]

    def corner(zc, yc, xc, wgt):
        inb = ((zc >= 0) & (zc <= D - 1) & (yc >= 0) & (yc <= Hg - 1)
               & (xc >= 0) & (xc <= Wg - 1))
        zi = jnp.clip(zc, 0, D - 1).astype(jnp.int32)
        yi = jnp.clip(yc, 0, Hg - 1).astype(jnp.int32)
        xi = jnp.clip(xc, 0, Wg - 1).astype(jnp.int32)
        val = bg[nidx, zi, yi, xi]                               # (N, H, W, C)
        return val * (wgt * inb.astype(jnp.float32))[..., None]

    out = jnp.zeros((N, H, W, C), jnp.float32)
    for dz in (0.0, 1.0):
        for dy in (0.0, 1.0):
            for dx in (0.0, 1.0):
                zc, yc, xc = z0 + dz, y0 + dy, x0 + dx
                w = ((1.0 - jnp.abs(iz - zc)) * (1.0 - jnp.abs(iy - yc))
                     * (1.0 - jnp.abs(ix - xc)))
                out = out + corner(zc, yc, xc, w)
    return jnp.transpose(out, (0, 3, 1, 2))                      # (N, C, H, W)


if __name__ == "__main__":
    key = jax.random.PRNGKey(0)
    k_grid, k_guide = jax.random.split(key)

    # Small HDRNet-like shapes: 12-channel coeff grid, depth 8, 16x16 grid cells,
    # sliced up to a 64x128 guide image, batch 2.
    N, C, D, Hg, Wg = 2, 12, 8, 16, 16
    H, W = 64, 128

    bilateral_grid = jax.random.normal(k_grid, (N, C, D, Hg, Wg), jnp.float32)
    # Guide values mostly in [-1, 1], with some overshoot to exercise the
    # zeros-padding path of grid_sample.
    guidemap = jax.random.uniform(k_guide, (N, 1, H, W), jnp.float32,
                                  minval=-1.2, maxval=1.2)

    out = bilateral_slice(bilateral_grid, guidemap)
    out = jax.block_until_ready(out)

    ref = slice_reference(bilateral_grid, guidemap)
    assert out.shape == (N, C, H, W)
    err = float(jnp.max(jnp.abs(out - ref)))
    assert err < 1e-4, f"max abs error {err}"
    print("KERNEL_OK")
</pallas_src>

<mosaic_0001>
module attributes {stable_mosaic.version = 11 : i64} {
  func.func @kernel(%arg0: i32, %arg1: i32, %arg2: memref<1x1536x16xf32, #tpu.memory_space<vmem>>, %arg3: memref<64x16xf32, #tpu.memory_space<vmem>>, %arg4: memref<16x128xf32, #tpu.memory_space<vmem>>, %arg5: memref<1x1x64x128xf32, #tpu.memory_space<vmem>>, %arg6: memref<1x12x64x128xf32, #tpu.memory_space<vmem>>, %arg7: memref<1536x128xf32, #tpu.memory_space<vmem>>) attributes {dimension_semantics = [#tpu.dimension_semantics<parallel>, #tpu.dimension_semantics<arbitrary>], iteration_bounds = array<i64: 2, 1>, scalar_prefetch = 0 : i64, scratch_operands = 1 : i64, tpu.core_type = #tpu.core_type<tc>, window_params = [{transform_indices = @transform_0, window_bounds = array<i64: 1, 1536, 16>}, {transform_indices = @transform_1, window_bounds = array<i64: 64, 16>}, {pipeline_mode = #tpu.pipeline_mode<synchronous>, transform_indices = @transform_2, window_bounds = array<i64: 16, 128>}, {transform_indices = @transform_3, window_bounds = array<i64: 1, 1, 64, 128>}, {transform_indices = @transform_4, window_bounds = array<i64: 1, 12, 64, 128>}]} {
    %c0_i32 = arith.constant 0 : i32
    %0 = arith.cmpi eq, %arg1, %c0_i32 : i32
    %1 = arith.extui %0 : i1 to i32
    %c0_i32_0 = arith.constant 0 : i32
    %2 = arith.cmpi ne, %1, %c0_i32_0 : i32
    scf.if %2 {
      %c0_261 = arith.constant 0 : index
      %c0_262 = arith.constant 0 : index
      %c0_263 = arith.constant 0 : index
      %474 = vector.load %arg2[%c0_261, %c0_262, %c0_263] : memref<1x1536x16xf32, #tpu.memory_space<vmem>>, vector<1x1536x16xf32>
      %475 = vector.shape_cast %474 : vector<1x1536x16xf32> to vector<1536x16xf32>
      %c0_264 = arith.constant 0 : index
      %c0_265 = arith.constant 0 : index
      %476 = vector.load %arg4[%c0_264, %c0_265] : memref<16x128xf32, #tpu.memory_space<vmem>>, vector<16x128xf32>
      %cst_266 = arith.constant dense<0.000000e+00> : vector<1536x128xf32>
      %477 = tpu.matmul %475, %476, %cst_266 {dimension_numbers = #tpu.dot_dimension_numbers<[1], [0], [0], [1], [0, 0, 1, 1], [], []>} : vector<1536x16xf32>, vector<16x128xf32>, vector<1536x128xf32> -> vector<1536x128xf32>
      %c0_267 = arith.constant 0 : index
      %c0_268 = arith.constant 0 : index
      %478 = vector.load %arg7[%c0_267, %c0_268] : memref<1536x128xf32, #tpu.memory_space<vmem>>, vector<1536x128xf32>
      tpu.vector_store %arg7[%c0_267, %c0_268], %477 {strides = array<i32>} : memref<1536x128xf32, #tpu.memory_space<vmem>>, vector<1536x128xf32>,
    } else {
    }
    %c0 = arith.constant 0 : index
    %c0_1 = arith.constant 0 : index
    %3 = vector.load %arg3[%c0, %c0_1] : memref<64x16xf32, #tpu.memory_space<vmem>>, vector<64x16xf32>
    %c0_2 = arith.constant 0 : index
    %c0_3 = arith.constant 0 : index
    %c0_4 = arith.constant 0 : index
    %c0_5 = arith.constant 0 : index
    %4 = vector.load %arg5[%c0_2, %c0_3, %c0_4, %c0_5] : memref<1x1x64x128xf32, #tpu.memory_space<vmem>>, vector<1x1x64x128xf32>
    %5 = vector.shape_cast %4 : vector<1x1x64x128xf32> to vector<64x128xf32>
    %cst = arith.constant 4.000000e+00 : f32
    %6 = vector.broadcast %cst : f32 to vector<64x128xf32>
    %7 = arith.mulf %5, %6 : vector<64x128xf32>
    %cst_6 = arith.constant 3.500000e+00 : f32
    %8 = vector.broadcast %cst_6 : f32 to vector<64x128xf32>
    %9 = arith.addf %7, %8 : vector<64x128xf32>
    %cst_7 = arith.constant 0.000000e+00 : f32
    %10 = vector.broadcast %cst_7 : f32 to vector<64x128xf32>
    %11 = arith.subf %9, %10 : vector<64x128xf32>
    %12 = math.absf %11 : vector<64x128xf32>
    %cst_8 = arith.constant 1.000000e+00 : f32
    %13 = vector.broadcast %cst_8 : f32 to vector<64x128xf32>
    %14 = arith.subf %13, %12 : vector<64x128xf32>
    %cst_9 = arith.constant 0.000000e+00 : f32
    %15 = vector.broadcast %cst_9 : f32 to vector<64x128xf32>
    %16 = arith.maximumf %15, %14 : vector<64x128xf32>
    %cst_10 = arith.constant 1.000000e+00 : f32
    %17 = vector.broadcast %cst_10 : f32 to vector<64x128xf32>
    %18 = arith.subf %9, %17 : vector<64x128xf32>
    %19 = math.absf %18 : vector<64x128xf32>
    %cst_11 = arith.constant 1.000000e+00 : f32
    %20 = vector.broadcast %cst_11 : f32 to vector<64x128xf32>
    %21 = arith.subf %20, %19 : vector<64x128xf32>
    %cst_12 = arith.constant 0.000000e+00 : f32
    %22 = vector.broadcast %cst_12 : f32 to vector<64x128xf32>
    %23 = arith.maximumf %22, %21 : vector<64x128xf32>
    %cst_13 = arith.constant 2.000000e+00 : f32
    %24 = vector.broadcast %cst_13 : f32 to vector<64x128xf32>
    %25 = arith.subf %9, %24 : vector<64x128xf32>
    %26 = math.absf %25 : vector<64x128xf32>
    %cst_14 = arith.constant 1.000000e+00 : f32
    %27 = vector.broadcast %cst_14 : f32 to vector<64x128xf32>
    %28 = arith.subf %27, %26 : vector<64x128xf32>
    %cst_15 = arith.constant 0.000000e+00 : f32
    %29 = vector.broadcast %cst_15 : f32 to vector<64x128xf32>
    %30 = arith.maximumf %29, %28 : vector<64x128xf32>
    %cst_16 = arith.constant 3.000000e+00 : f32
    %31 = vector.broadcast %cst_16 : f32 to vector<64x128xf32>
    %32 = arith.subf %9, %31 : vector<64x128xf32>
    %33 = math.absf %32 : vector<64x128xf32>
    %cst_17 = arith.constant 1.000000e+00 : f32
    %34 = vector.broadcast %cst_17 : f32 to vector<64x128xf32>
    %35 = arith.subf %34, %33 : vector<64x128xf32>
    %cst_18 = arith.constant 0.000000e+00 : f32
    %36 = vector.broadcast %cst_18 : f32 to vector<64x128xf32>
    %37 = arith.maximumf %36, %35 : vector<64x128xf32>
    %cst_19 = arith.constant 4.000000e+00 : f32
    %38 = vector.broadcast %cst_19 : f32 to vector<64x128xf32>
    %39 = arith.subf %9, %38 : vector<64x128xf32>
    %40 = math.absf %39 : vector<64x128xf32>
    %cst_20 = arith.constant 1.000000e+00 : f32
    %41 = vector.broadcast %cst_20 : f32 to vector<64x128xf32>
    %42 = arith.subf %41, %40 : vector<64x128xf32>
    %cst_21 = arith.constant 0.000000e+00 : f32
    %43 = vector.broadcast %cst_21 : f32 to vector<64x128xf32>
    %44 = arith.maximumf %43, %42 : vector<64x128xf32>
    %cst_22 = arith.constant 5.000000e+00 : f32
    %45 = vector.broadcast %cst_22 : f32 to vector<64x128xf32>
    %46 = arith.subf %9, %45 : vector<64x128xf32>
    %47 = math.absf %46 : vector<64x128xf32>
    %cst_23 = arith.constant 1.000000e+00 : f32
    %48 = vector.broadcast %cst_23 : f32 to vector<64x128xf32>
    %49 = arith.subf %48, %47 : vector<64x128xf32>
    %cst_24 = arith.constant 0.000000e+00 : f32
    %50 = vector.broadcast %cst_24 : f32 to vector<64x128xf32>
    %51 = arith.maximumf %50, %49 : vector<64x128xf32>
    %cst_25 = arith.constant 6.000000e+00 : f32
    %52 = vector.broadcast %cst_25 : f32 to vector<64x128xf32>
    %53 = arith.subf %9, %52 : vector<64x128xf32>
    %54 = math.absf %53 : vector<64x128xf32>
    %cst_26 = arith.constant 1.000000e+00 : f32
    %55 = vector.broadcast %cst_26 : f32 to vector<64x128xf32>
    %56 = arith.subf %55, %54 : vector<64x128xf32>
    %cst_27 = arith.constant 0.000000e+00 : f32
    %57 = vector.broadcast %cst_27 : f32 to vector<64x128xf32>
    %58 = arith.maximumf %57, %56 : vector<64x128xf32>
    %cst_28 = arith.constant 7.000000e+00 : f32
    %59 = vector.broadcast %cst_28 : f32 to vector<64x128xf32>
    %60 = arith.subf %9, %59 : vector<64x128xf32>
    %61 = math.absf %60 : vector<64x128xf32>
    %cst_29 = arith.constant 1.000000e+00 : f32
    %62 = vector.broadcast %cst_29 : f32 to vector<64x128xf32>
    %63 = arith.subf %62, %61 : vector<64x128xf32>
    %cst_30 = arith.constant 0.000000e+00 : f32
    %64 = vector.broadcast %cst_30 : f32 to vector<64x128xf32>
    %65 = arith.maximumf %64, %63 : vector<64x128xf32>
    %c0_31 = arith.constant 0 : index
    %c0_32 = arith.constant 0 : index
    %66 = vector.load %arg7[%c0_31, %c0_32] : memref<1536x128xf32, #tpu.memory_space<vmem>>, vector<16x128xf32>
    %cst_33 = arith.constant dense<0.000000e+00> : vector<64x128xf32>
    %67 = tpu.matmul %3, %66, %cst_33 {dimension_numbers = #tpu.dot_dimension_numbers<[1], [0], [0], [1], [0, 0, 1, 1], [], []>} : vector<64x16xf32>, vector<16x128xf32>, vector<64x128xf32> -> vector<64x128xf32>
    %68 = arith.mulf %67, %16 : vector<64x128xf32>
    %c192 = arith.constant 192 : index
    %c0_34 = arith.constant 0 : index
    %69 = vector.load %arg7[%c192, %c0_34] : memref<1536x128xf32, #tpu.memory_space<vmem>>, vector<16x128xf32>
    %cst_35 = arith.constant dense<0.000000e+00> : vector<64x128xf32>
    %70 = tpu.matmul %3, %69, %cst_35 {dimension_numbers = #tpu.dot_dimension_numbers<[1], [0], [0], [1], [0, 0, 1, 1], [], []>} : vector<64x16xf32>, vector<16x128xf32>, vector<64x128xf32> -> vector<64x128xf32>
    %71 = arith.mulf %70, %23 : vector<64x128xf32>
    %72 = arith.addf %68, %71 : vector<64x128xf32>
    %c384 = arith.constant 384 : index
    %c0_36 = arith.constant 0 : index
    %73 = vector.load %arg7[%c384, %c0_36] : memref<1536x128xf32, #tpu.memory_space<vmem>>, vector<16x128xf32>
    %cst_37 = arith.constant dense<0.000000e+00> : vector<64x128xf32>
    %74 = tpu.matmul %3, %73, %cst_37 {dimension_numbers = #tpu.dot_dimension_numbers<[1], [0], [0], [1], [0, 0, 1, 1], [], []>} : vector<64x16xf32>, vector<16x128xf32>, vector<64x128xf32> -> vector<64x128xf32>
    %75 = arith.mulf %74, %30 : vector<64x128xf32>
    %76 = arith.addf %72, %75 : vector<64x128xf32>
    %c576 = arith.constant 576 : index
    %c0_38 = arith.constant 0 : index
    %77 = vector.load %arg7[%c576, %c0_38] : memref<1536x128xf32, #tpu.memory_space<vmem>>, vector<16x128xf32>
    %cst_39 = arith.constant dense<0.000000e+00> : vector<64x128xf32>
    %78 = tpu.matmul %3, %77, %cst_39 {dimension_numbers = #tpu.dot_dimension_numbers<[1], [0], [0], [1], [0, 0, 1, 1], [], []>} : vector<64x16xf32>, vector<16x128xf32>, vector<64x128xf32> -> vector<64x128xf32>
    %79 = arith.mulf %78, %37 : vector<64x128xf32>
    %80 = arith.addf %76, %79 : vector<64x128xf32>
    %c768 = arith.constant 768 : index
    %c0_40 = arith.constant 0 : index
    %81 = vector.load %arg7[%c768, %c0_40] : memref<1536x128xf32, #tpu.memory_space<vmem>>, vector<16x128xf32>
    %cst_41 = arith.constant dense<0.000000e+00> : vector<64x128xf32>
    %82 = tpu.matmul %3, %81, %cst_41 {dimension_numbers = #tpu.dot_dimension_numbers<[1], [0], [0], [1], [0, 0, 1, 1], [], []>} : vector<64x16xf32>, vector<16x128xf32>, vector<64x128xf32> -> vector<64x128xf32>
    %83 = arith.mulf %82, %44 : vector<64x128xf32>
    %84 = arith.addf %80, %83 : vector<64x128xf32>
    %c960 = arith.constant 960 : index
    %c0_42 = arith.constant 0 : index
    %85 = vector.load %arg7[%c960, %c0_42] : memref<1536x128xf32, #tpu.memory_space<vmem>>, vector<16x128xf32>
    %cst_43 = arith.constant dense<0.000000e+00> : vector<64x128xf32>
    %86 = tpu.matmul %3, %85, %cst_43 {dimension_numbers = #tpu.dot_dimension_numbers<[1], [0], [0], [1], [0, 0, 1, 1], [], []>} : vector<64x16xf32>, vector<16x128xf32>, vector<64x128xf32> -> vector<64x128xf32>
    %87 = arith.mulf %86, %51 : vector<64x128xf32>
    %88 = arith.addf %84, %87 : vector<64x128xf32>
    %c1152 = arith.constant 1152 : index
    %c0_44 = arith.constant 0 : index
    %89 = vector.load %arg7[%c1152, %c0_44] : memref<1536x128xf32, #tpu.memory_space<vmem>>, vector<16x128xf32>
    %cst_45 = arith.constant dense<0.000000e+00> : vector<64x128xf32>
    %90 = tpu.matmul %3, %89, %cst_45 {dimension_numbers = #tpu.dot_dimension_numbers<[1], [0], [0], [1], [0, 0, 1, 1], [], []>} : vector<64x16xf32>, vector<16x128xf32>, vector<64x128xf32> -> vector<64x128xf32>
    %91 = arith.mulf %90, %58 : vector<64x128xf32>
    %92 = arith.addf %88, %91 : vector<64x128xf32>
    %c1344 = arith.constant 1344 : index
    %c0_46 = arith.constant 0 : index
    %93 = vector.load %arg7[%c1344, %c0_46] : memref<1536x128xf32, #tpu.memory_space<vmem>>, vector<16x128xf32>
    %cst_47 = arith.constant dense<0.000000e+00> : vector<64x128xf32>
    %94 = tpu.matmul %3, %93, %cst_47 {dimension_numbers = #tpu.dot_dimension_numbers<[1], [0], [0], [1], [0, 0, 1, 1], [], []>} : vector<64x16xf32>, vector<16x128xf32>, vector<64x128xf32> -> vector<64x128xf32>
    %95 = arith.mulf %94, %65 : vector<64x128xf32>
    %96 = arith.addf %92, %95 : vector<64x128xf32>
    %c0_48 = arith.constant 0 : index
    %c0_49 = arith.constant 0 : index
    %c0_50 = arith.constant 0 : index
    %c0_51 = arith.constant 0 : index
    %97 = vector.load %arg6[%c0_48, %c0_49, %c0_50, %c0_51] : memref<1x12x64x128xf32, #tpu.memory_space<vmem>>, vector<1x1x64x128xf32>
    %98 = vector.shape_cast %97 : vector<1x1x64x128xf32> to vector<64x128xf32>
    %99 = vector.shape_cast %96 : vector<64x128xf32> to vector<1x1x64x128xf32>
    tpu.vector_store %arg6[%c0_48, %c0_49, %c0_50, %c0_51], %99 {strides = array<i32>} : memref<1x12x64x128xf32, #tpu.memory_space<vmem>>, vector<1x1x64x128xf32>,
    %c16 = arith.constant 16 : index
    %c0_52 = arith.constant 0 : index
    %100 = vector.load %arg7[%c16, %c0_52] : memref<1536x128xf32, #tpu.memory_space<vmem>>, vector<16x128xf32>
    %cst_53 = arith.constant dense<0.000000e+00> : vector<64x128xf32>
    %101 = tpu.matmul %3, %100, %cst_53 {dimension_numbers = #tpu.dot_dimension_numbers<[1], [0], [0], [1], [0, 0, 1, 1], [], []>} : vector<64x16xf32>, vector<16x128xf32>, vector<64x128xf32> -> vector<64x128xf32>
    %102 = arith.mulf %101, %16 : vector<64x128xf32>
    %c208 = arith.constant 208 : index
    %c0_54 = arith.constant 0 : index
    %103 = vector.load %arg7[%c208, %c0_54] : memref<1536x128xf32, #tpu.memory_space<vmem>>, vector<16x128xf32>
    %cst_55 = arith.constant dense<0.000000e+00> : vector<64x128xf32>
    %104 = tpu.matmul %3, %103, %cst_55 {dimension_numbers = #tpu.dot_dimension_numbers<[1], [0], [0], [1], [0, 0, 1, 1], [], []>} : vector<64x16xf32>, vector<16x128xf32>, vector<64x128xf32> -> vector<64x128xf32>
    %105 = arith.mulf %104, %23 : vector<64x128xf32>
    %106 = arith.addf %102, %105 : vector<64x128xf32>
    %c400 = arith.constant 400 : index
    %c0_56 = arith.constant 0 : index
    %107 = vector.load %arg7[%c400, %c0_56] : memref<1536x128xf32, #tpu.memory_space<vmem>>, vector<16x128xf32>
    %cst_57 = arith.constant dense<0.000000e+00> : vector<64x128xf32>
    %108 = tpu.matmul %3, %107, %cst_57 {dimension_numbers = #tpu.dot_dimension_numbers<[1], [0], [0], [1], [0, 0, 1, 1], [], []>} : vector<64x16xf32>, vector<16x128xf32>, vector<64x128xf32> -> vector<64x128xf32>
    %109 = arith.mulf %108, %30 : vector<64x128xf32>
    %110 = arith.addf %106, %109 : vector<64x128xf32>
    %c592 = arith.constant 592 : index
    %c0_58 = arith.constant 0 : index
    %111 = vector.load %arg7[%c592, %c0_58] : memref<1536x128xf32, #tpu.memory_space<vmem>>, vector<16x128xf32>
    %cst_59 = arith.constant dense<0.000000e+00> : vector<64x128xf32>
    %112 = tpu.matmul %3, %111, %cst_59 {dimension_numbers = #tpu.dot_dimension_numbers<[1], [0], [0], [1], [0, 0, 1, 1], [], []>} : vector<64x16xf32>, vector<16x128xf32>, vector<64x128xf32> -> vector<64x128xf32>
    %113 = arith.mulf %112, %37 : vector<64x128xf32>
    %114 = arith.addf %110, %113 : vector<64x128xf32>
    %c784 = arith.constant 784 : index
    %c0_60 = arith.constant 0 : index
    %115 = vector.load %arg7[%c784, %c0_60] : memref<1536x128xf32, #tpu.memory_space<vmem>>, vector<16x128xf32>
    %cst_61 = arith.constant dense<0.000000e+00> : vector<64x128xf32>
    %116 = tpu.matmul %3, %115, %cst_61 {dimension_numbers = #tpu.dot_dimension_numbers<[1], [0], [0], [1], [0, 0, 1, 1], [], []>} : vector<64x16xf32>, vector<16x128xf32>, vector<64x128xf32> -> vector<64x128xf32>
    %117 = arith.mulf %116, %44 : vector<64x128xf32>
    %118 = arith.addf %114, %117 : vector<64x128xf32>
    %c976 = arith.constant 976 : index
    %c0_62 = arith.constant 0 : index
    %119 = vector.load %arg7[%c976, %c0_62] : memref<1536x128xf32, #tpu.memory_space<vmem>>, vector<16x128xf32>
    %cst_63 = arith.constant dense<0.000000e+00> : vector<64x128xf32>
    %120 = tpu.matmul %3, %119, %cst_63 {dimension_numbers = #tpu.dot_dimension_numbers<[1], [0], [0], [1], [0, 0, 1, 1], [], []>} : vector<64x16xf32>, vector<16x128xf32>, vector<64x128xf32> -> vector<64x128xf32>
    %121 = arith.mulf %120, %51 : vector<64x128xf32>
    %122 = arith.addf %118, %121 : vector<64x128xf32>
    %c1168 = arith.constant 1168 : index
    %c0_64 = arith.constant 0 : index
    %123 = vector.load %arg7[%c1168, %c0_64] : memref<1536x128xf32, #tpu.memory_space<vmem>>, vector<16x128xf32>
    %cst_65 = arith.constant dense<0.000000e+00> : vector<64x128xf32>
    %124 = tpu.matmul %3, %123, %cst_65 {dimension_numbers = #tpu.dot_dimension_numbers<[1], [0], [0], [1], [0, 0, 1, 1], [], []>} : vector<64x16xf32>, vector<16x128xf32>, vector<64x128xf32> -> vector<64x128xf32>
    %125 = arith.mulf %124, %58 : vector<64x128xf32>
    %126 = arith.addf %122, %125 : vector<64x128xf32>
    %c1360 = arith.constant 1360 : index
    %c0_66 = arith.constant 0 : index
    %127 = vector.load %arg7[%c1360, %c0_66] : memref<1536x128xf32, #tpu.memory_space<vmem>>, vector<16x128xf32>
    %cst_67 = arith.constant dense<0.000000e+00> : vector<64x128xf32>
    %128 = tpu.matmul %3, %127, %cst_67 {dimension_numbers = #tpu.dot_dimension_numbers<[1], [0], [0], [1], [0, 0, 1, 1], [], []>} : vector<64x16xf32>, vector<16x128xf32>, vector<64x128xf32> -> vector<64x128xf32>
    %129 = arith.mulf %128, %65 : vector<64x128xf32>
    %130 = arith.addf %126, %129 : vector<64x128xf32>
    %c0_68 = arith.constant 0 : index
    %c1 = arith.constant 1 : index
    %c0_69 = arith.constant 0 : index
    %c0_70 = arith.constant 0 : index
    %131 = vector.load %arg6[%c0_68, %c1, %c0_69, %c0_70] : memref<1x12x64x128xf32, #tpu.memory_space<vmem>>, vector<1x1x64x128xf32>
    %132 = vector.shape_cast %131 : vector<1x1x64x128xf32> to vector<64x128xf32>
    %133 = vector.shape_cast %130 : vector<64x128xf32> to vector<1x1x64x128xf32>
    tpu.vector_store %arg6[%c0_68, %c1, %c0_69, %c0_70], %133 {strides = array<i32>} : memref<1x12x64x128xf32, #tpu.memory_space<vmem>>, vector<1x1x64x128xf32>,
    %c32 = arith.constant 32 : index
    %c0_71 = arith.constant 0 : index
    %134 = vector.load %arg7[%c32, %c0_71] : memref<1536x128xf32, #tpu.memory_space<vmem>>, vector<16x128xf32>
    %cst_72 = arith.constant dense<0.000000e+00> : vector<64x128xf32>
    %135 = tpu.matmul %3, %134, %cst_72 {dimension_numbers = #tpu.dot_dimension_numbers<[1], [0], [0], [1], [0, 0, 1, 1], [], []>} : vector<64x16xf32>, vector<16x128xf32>, vector<64x128xf32> -> vector<64x128xf32>
    %136 = arith.mulf %135, %16 : vector<64x128xf32>
    %c224 = arith.constant 224 : index
    %c0_73 = arith.constant 0 : index
    %137 = vector.load %arg7[%c224, %c0_73] : memref<1536x128xf32, #tpu.memory_space<vmem>>, vector<16x128xf32>
    %cst_74 = arith.constant dense<0.000000e+00> : vector<64x128xf32>
    %138 = tpu.matmul %3, %137, %cst_74 {dimension_numbers = #tpu.dot_dimension_numbers<[1], [0], [0], [1], [0, 0, 1, 1], [], []>} : vector<64x16xf32>, vector<16x128xf32>, vector<64x128xf32> -> vector<64x128xf32>
    %139 = arith.mulf %138, %23 : vector<64x128xf32>
    %140 = arith.addf %136, %139 : vector<64x128xf32>
    %c416 = arith.constant 416 : index
    %c0_75 = arith.constant 0 : index
    %141 = vector.load %arg7[%c416, %c0_75] : memref<1536x128xf32, #tpu.memory_space<vmem>>, vector<16x128xf32>
    %cst_76 = arith.constant dense<0.000000e+00> : vector<64x128xf32>
    %142 = tpu.matmul %3, %141, %cst_76 {dimension_numbers = #tpu.dot_dimension_numbers<[1], [0], [0], [1], [0, 0, 1, 1], [], []>} : vector<64x16xf32>, vector<16x128xf32>, vector<64x128xf32> -> vector<64x128xf32>
    %143 = arith.mulf %142, %30 : vector<64x128xf32>
    %144 = arith.addf %140, %143 : vector<64x128xf32>
    %c608 = arith.constant 608 : index
    %c0_77 = arith.constant 0 : index
    %145 = vector.load %arg7[%c608, %c0_77] : memref<1536x128xf32, #tpu.memory_space<vmem>>, vector<16x128xf32>
    %cst_78 = arith.constant dense<0.000000e+00> : vector<64x128xf32>
    %146 = tpu.matmul %3, %145, %cst_78 {dimension_numbers = #tpu.dot_dimension_numbers<[1], [0], [0], [1], [0, 0, 1, 1], [], []>} : vector<64x16xf32>, vector<16x128xf32>, vector<64x128xf32> -> vector<64x128xf32>
    %147 = arith.mulf %146, %37 : vector<64x128xf32>
    %148 = arith.addf %144, %147 : vector<64x128xf32>
    %c800 = arith.constant 800 : index
    %c0_79 = arith.constant 0 : index
    %149 = vector.load %arg7[%c800, %c0_79] : memref<1536x128xf32, #tpu.memory_space<vmem>>, vector<16x128xf32>
    %cst_80 = arith.constant dense<0.000000e+00> : vector<64x128xf32>
    %150 = tpu.matmul %3, %149, %cst_80 {dimension_numbers = #tpu.dot_dimension_numbers<[1], [0], [0], [1], [0, 0, 1, 1], [], []>} : vector<64x16xf32>, vector<16x128xf32>, vector<64x128xf32> -> vector<64x128xf32>
    %151 = arith.mulf %150, %44 : vector<64x128xf32>
    %152 = arith.addf %148, %151 : vector<64x128xf32>
    %c992 = arith.constant 992 : index
    %c0_81 = arith.constant 0 : index
    %153 = vector.load %arg7[%c992, %c0_81] : memref<1536x128xf32, #tpu.memory_space<vmem>>, vector<16x128xf32>
    %cst_82 = arith.constant dense<0.000000e+00> : vector<64x128xf32>
    %154 = tpu.matmul %3, %153, %cst_82 {dimension_numbers = #tpu.dot_dimension_numbers<[1], [0], [0], [1], [0, 0, 1, 1], [], []>} : vector<64x16xf32>, vector<16x128xf32>, vector<64x128xf32> -> vector<64x128xf32>
    %155 = arith.mulf %154, %51 : vector<64x128xf32>
    %156 = arith.addf %152, %155 : vector<64x128xf32>
    %c1184 = arith.constant 1184 : index
    %c0_83 = arith.constant 0 : index
    %157 = vector.load %arg7[%c1184, %c0_83] : memref<1536x128xf32, #tpu.memory_space<vmem>>, vector<16x128xf32>
    %cst_84 = arith.constant dense<0.000000e+00> : vector<64x128xf32>
    %158 = tpu.matmul %3, %157, %cst_84 {dimension_numbers = #tpu.dot_dimension_numbers<[1], [0], [0], [1], [0, 0, 1, 1], [], []>} : vector<64x16xf32>, vector<16x128xf32>, vector<64x128xf32> -> vector<64x128xf32>
    %159 = arith.mulf %158, %58 : vector<64x128xf32>
    %160 = arith.addf %156, %159 : vector<64x128xf32>
    %c1376 = arith.constant 1376 : index
    %c0_85 = arith.constant 0 : index
    %161 = vector.load %arg7[%c1376, %c0_85] : memref<1536x128xf32, #tpu.memory_space<vmem>>, vector<16x128xf32>
    %cst_86 = arith.constant dense<0.000000e+00> : vector<64x128xf32>
    %162 = tpu.matmul %3, %161, %cst_86 {dimension_numbers = #tpu.dot_dimension_numbers<[1], [0], [0], [1], [0, 0, 1, 1], [], []>} : vector<64x16xf32>, vector<16x128xf32>, vector<64x128xf32> -> vector<64x128xf32>
    %163 = arith.mulf %162, %65 : vector<64x128xf32>
    %164 = arith.addf %160, %163 : vector<64x128xf32>
    %c0_87 = arith.constant 0 : index
    %c2 = arith.constant 2 : index
    %c0_88 = arith.constant 0 : index
    %c0_89 = arith.constant 0 : index
    %165 = vector.load %arg6[%c0_87, %c2, %c0_88, %c0_89] : memref<1x12x64x128xf32, #tpu.memory_space<vmem>>, vector<1x1x64x128xf32>
    %166 = vector.shape_cast %165 : vector<1x1x64x128xf32> to vector<64x128xf32>
    %167 = vector.shape_cast %164 : vector<64x128xf32> to vector<1x1x64x128xf32>
    tpu.vector_store %arg6[%c0_87, %c2, %c0_88, %c0_89], %167 {strides = array<i32>} : memref<1x12x64x128xf32, #tpu.memory_space<vmem>>, vector<1x1x64x128xf32>,
    %c48 = arith.constant 48 : index
    %c0_90 = arith.constant 0 : index
    %168 = vector.load %arg7[%c48, %c0_90] : memref<1536x128xf32, #tpu.memory_space<vmem>>, vector<16x128xf32>
    %cst_91 = arith.constant dense<0.000000e+00> : vector<64x128xf32>
    %169 = tpu.matmul %3, %168, %cst_91 {dimension_numbers = #tpu.dot_dimension_numbers<[1], [0], [0], [1], [0, 0, 1, 1], [], []>} : vector<64x16xf32>, vector<16x128xf32>, vector<64x128xf32> -> vector<64x128xf32>
    %170 = arith.mulf %169, %16 : vector<64x128xf32>
    %c240 = arith.constant 240 : index
    %c0_92 = arith.constant 0 : index
    %171 = vector.load %arg7[%c240, %c0_92] : memref<1536x128xf32, #tpu.memory_space<vmem>>, vector<16x128xf32>
    %cst_93 = arith.constant dense<0.000000e+00> : vector<64x128xf32>
    %172 = tpu.matmul %3, %171, %cst_93 {dimension_numbers = #tpu.dot_dimension_numbers<[1], [0], [0], [1], [0, 0, 1, 1], [], []>} : vector<64x16xf32>, vector<16x128xf32>, vector<64x128xf32> -> vector<64x128xf32>
    %173 = arith.mulf %172, %23 : vector<64x128xf32>
    %174 = arith.addf %170, %173 : vector<64x128xf32>
    %c432 = arith.constant 432 : index
    %c0_94 = arith.constant 0 : index
    %175 = vector.load %arg7[%c432, %c0_94] : memref<1536x128xf32, #tpu.memory_space<vmem>>, vector<16x128xf32>
    %cst_95 = arith.constant dense<0.000000e+00> : vector<64x128xf32>
    %176 = tpu.matmul %3, %175, %cst_95 {dimension_numbers = #tpu.dot_dimension_numbers<[1], [0], [0], [1], [0, 0, 1, 1], [], []>} : vector<64x16xf32>, vector<16x128xf32>, vector<64x128xf32> -> vector<64x128xf32>
    %177 = arith.mulf %176, %30 : vector<64x128xf32>
    %178 = arith.addf %174, %177 : vector<64x128xf32>
    %c624 = arith.constant 624 : index
    %c0_96 = arith.constant 0 : index
    %179 = vector.load %arg7[%c624, %c0_96] : memref<1536x128xf32, #tpu.memory_space<vmem>>, vector<16x128xf32>
    %cst_97 = arith.constant dense<0.000000e+00> : vector<64x128xf32>
    %180 = tpu.matmul %3, %179, %cst_97 {dimension_numbers = #tpu.dot_dimension_numbers<[1], [0], [0], [1], [0, 0, 1, 1], [], []>} : vector<64x16xf32>, vector<16x128xf32>, vector<64x128xf32> -> vector<64x128xf32>
    %181 = arith.mulf %180, %37 : vector<64x128xf32>
    %182 = arith.addf %178, %181 : vector<64x128xf32>
    %c816 = arith.constant 816 : index
    %c0_98 = arith.constant 0 : index
    %183 = vector.load %arg7[%c816, %c0_98] : memref<1536x128xf32, #tpu.memory_space<vmem>>, vector<16x128xf32>
    %cst_99 = arith.constant dense<0.000000e+00> : vector<64x128xf32>
    %184 = tpu.matmul %3, %183, %cst_99 {dimension_numbers = #tpu.dot_dimension_numbers<[1], [0], [0], [1], [0, 0, 1, 1], [], []>} : vector<64x16xf32>, vector<16x128xf32>, vector<64x128xf32> -> vector<64x128xf32>
    %185 = arith.mulf %184, %44 : vector<64x128xf32>
    %186 = arith.addf %182, %185 : vector<64x128xf32>
    %c1008 = arith.constant 1008 : index
    %c0_100 = arith.constant 0 : index
    %187 = vector.load %arg7[%c1008, %c0_100] : memref<1536x128xf32, #tpu.memory_space<vmem>>, vector<16x128xf32>
    %cst_101 = arith.constant dense<0.000000e+00> : vector<64x128xf32>
    %188 = tpu.matmul %3, %187, %cst_101 {dimension_numbers = #tpu.dot_dimension_numbers<[1], [0], [0], [1], [0, 0, 1, 1], [], []>} : vector<64x16xf32>, vector<16x128xf32>, vector<64x128xf32> -> vector<64x128xf32>
    %189 = arith.mulf %188, %51 : vector<64x128xf32>
    %190 = arith.addf %186, %189 : vector<64x128xf32>
    %c1200 = arith.constant 1200 : index
    %c0_102 = arith.constant 0 : index
    %191 = vector.load %arg7[%c1200, %c0_102] : memref<1536x128xf32, #tpu.memory_space<vmem>>, vector<16x128xf32>
    %cst_103 = arith.constant dense<0.000000e+00> : vector<64x128xf32>
    %192 = tpu.matmul %3, %191, %cst_103 {dimension_numbers = #tpu.dot_dimension_numbers<[1], [0], [0], [1], [0, 0, 1, 1], [], []>} : vector<64x16xf32>, vector<16x128xf32>, vector<64x128xf32> -> vector<64x128xf32>
    %193 = arith.mulf %192, %58 : vector<64x128xf32>
    %194 = arith.addf %190, %193 : vector<64x128xf32>
    %c1392 = arith.constant 1392 : index
    %c0_104 = arith.constant 0 : index
    %195 = vector.load %arg7[%c1392, %c0_104] : memref<1536x128xf32, #tpu.memory_space<vmem>>, vector<16x128xf32>
    %cst_105 = arith.constant dense<0.000000e+00> : vector<64x128xf32>
    %196 = tpu.matmul %3, %195, %cst_105 {dimension_numbers = #tpu.dot_dimension_numbers<[1], [0], [0], [1], [0, 0, 1, 1], [], []>} : vector<64x16xf32>, vector<16x128xf32>, vector<64x128xf32> -> vector<64x128xf32>
    %197 = arith.mulf %196, %65 : vector<64x128xf32>
    %198 = arith.addf %194, %197 : vector<64x128xf32>
    %c0_106 = arith.constant 0 : index
    %c3 = arith.constant 3 : index
    %c0_107 = arith.constant 0 : index
    %c0_108 = arith.constant 0 : index
    %199 = vector.load %arg6[%c0_106, %c3, %c0_107, %c0_108] : memref<1x12x64x128xf32, #tpu.memory_space<vmem>>, vector<1x1x64x128xf32>
    %200 = vector.shape_cast %199 : vector<1x1x64x128xf32> to vector<64x128xf32>
    %201 = vector.shape_cast %198 : vector<64x128xf32> to vector<1x1x64x128xf32>
    tpu.vector_store %arg6[%c0_106, %c3, %c0_107, %c0_108], %201 {strides = array<i32>} : memref<1x12x64x128xf32, #tpu.memory_space<vmem>>, vector<1x1x64x128xf32>,
    %c64 = arith.constant 64 : index
    %c0_109 = arith.constant 0 : index
    %202 = vector.load %arg7[%c64, %c0_109] : memref<1536x128xf32, #tpu.memory_space<vmem>>, vector<16x128xf32>
    %cst_110 = arith.constant dense<0.000000e+00> : vector<64x128xf32>
    %203 = tpu.matmul %3, %202, %cst_110 {dimension_numbers = #tpu.dot_dimension_numbers<[1], [0], [0], [1], [0, 0, 1, 1], [], []>} : vector<64x16xf32>, vector<16x128xf32>, vector<64x128xf32> -> vector<64x128xf32>
    %204 = arith.mulf %203, %16 : vector<64x128xf32>
    %c256 = arith.constant 256 : index
    %c0_111 = arith.constant 0 : index
    %205 = vector.load %arg7[%c256, %c0_111] : memref<1536x128xf32, #tpu.memory_space<vmem>>, vector<16x128xf32>
    %cst_112 = arith.constant dense<0.000000e+00> : vector<64x128xf32>
    %206 = tpu.matmul %3, %205, %cst_112 {dimension_numbers = #tpu.dot_dimension_numbers<[1], [0], [0], [1], [0, 0, 1, 1], [], []>} : vector<64x16xf32>, vector<16x128xf32>, vector<64x128xf32> -> vector<64x128xf32>
    %207 = arith.mulf %206, %23 : vector<64x128xf32>
    %208 = arith.addf %204, %207 : vector<64x128xf32>
    %c448 = arith.constant 448 : index
    %c0_113 = arith.constant 0 : index
    %209 = vector.load %arg7[%c448, %c0_113] : memref<1536x128xf32, #tpu.memory_space<vmem>>, vector<16x128xf32>
    %cst_114 = arith.constant dense<0.000000e+00> : vector<64x128xf32>
    %210 = tpu.matmul %3, %209, %cst_114 {dimension_numbers = #tpu.dot_dimension_numbers<[1], [0], [0], [1], [0, 0, 1, 1], [], []>} : vector<64x16xf32>, vector<16x128xf32>, vector<64x128xf32> -> vector<64x128xf32>
    %211 = arith.mulf %210, %30 : vector<64x128xf32>
    %212 = arith.addf %208, %211 : vector<64x128xf32>
    %c640 = arith.constant 640 : index
    %c0_115 = arith.constant 0 : index
    %213 = vector.load %arg7[%c640, %c0_115] : memref<1536x128xf32, #tpu.memory_space<vmem>>, vector<16x128xf32>
    %cst_116 = arith.constant dense<0.000000e+00> : vector<64x128xf32>
    %214 = tpu.matmul %3, %213, %cst_116 {dimension_numbers = #tpu.dot_dimension_numbers<[1], [0], [0], [1], [0, 0, 1, 1], [], []>} : vector<64x16xf32>, vector<16x128xf32>, vector<64x128xf32> -> vector<64x128xf32>
    %215 = arith.mulf %214, %37 : vector<64x128xf32>
    %216 = arith.addf %212, %215 : vector<64x128xf32>
    %c832 = arith.constant 832 : index
    %c0_117 = arith.constant 0 : index
    %217 = vector.load %arg7[%c832, %c0_117] : memref<1536x128xf32, #tpu.memory_space<vmem>>, vector<16x128xf32>
    %cst_118 = arith.constant dense<0.000000e+00> : vector<64x128xf32>
    %218 = tpu.matmul %3, %217, %cst_118 {dimension_numbers = #tpu.dot_dimension_numbers<[1], [0], [0], [1], [0, 0, 1, 1], [], []>} : vector<64x16xf32>, vector<16x128xf32>, vector<64x128xf32> -> vector<64x128xf32>
    %219 = arith.mulf %218, %44 : vector<64x128xf32>
    %220 = arith.addf %216, %219 : vector<64x128xf32>
    %c1024 = arith.constant 1024 : index
    %c0_119 = arith.constant 0 : index
    %221 = vector.load %arg7[%c1024, %c0_119] : memref<1536x128xf32, #tpu.memory_space<vmem>>, vector<16x128xf32>
    %cst_120 = arith.constant dense<0.000000e+00> : vector<64x128xf32>
    %222 = tpu.matmul %3, %221, %cst_120 {dimension_numbers = #tpu.dot_dimension_numbers<[1], [0], [0], [1], [0, 0, 1, 1], [], []>} : vector<64x16xf32>, vector<16x128xf32>, vector<64x128xf32> -> vector<64x128xf32>
    %223 = arith.mulf %222, %51 : vector<64x128xf32>
    %224 = arith.addf %220, %223 : vector<64x128xf32>
    %c1216 = arith.constant 1216 : index
    %c0_121 = arith.constant 0 : index
    %225 = vector.load %arg7[%c1216, %c0_121] : memref<1536x128xf32, #tpu.memory_space<vmem>>, vector<16x128xf32>
    %cst_122 = arith.constant dense<0.000000e+00> : vector<64x128xf32>
    %226 = tpu.matmul %3, %225, %cst_122 {dimension_numbers = #tpu.dot_dimension_numbers<[1], [0], [0], [1], [0, 0, 1, 1], [], []>} : vector<64x16xf32>, vector<16x128xf32>, vector<64x128xf32> -> vector<64x128xf32>
    %227 = arith.mulf %226, %58 : vector<64x128xf32>
    %228 = arith.addf %224, %227 : vector<64x128xf32>
    %c1408 = arith.constant 1408 : index
    %c0_123 = arith.constant 0 : index
    %229 = vector.load %arg7[%c1408, %c0_123] : memref<1536x128xf32, #tpu.memory_space<vmem>>, vector<16x128xf32>
    %cst_124 = arith.constant dense<0.000000e+00> : vector<64x128xf32>
    %230 = tpu.matmul %3, %229, %cst_124 {dimension_numbers = #tpu.dot_dimension_numbers<[1], [0], [0], [1], [0, 0, 1, 1], [], []>} : vector<64x16xf32>, vector<16x128xf32>, vector<64x128xf32> -> vector<64x128xf32>
    %231 = arith.mulf %230, %65 : vector<64x128xf32>
    %232 = arith.addf %228, %231 : vector<64x128xf32>
    %c0_125 = arith.constant 0 : index
    %c4 = arith.constant 4 : index
    %c0_126 = arith.constant 0 : index
    %c0_127 = arith.constant 0 : index
    %233 = vector.load %arg6[%c0_125, %c4, %c0_126, %c0_127] : memref<1x12x64x128xf32, #tpu.memory_space<vmem>>, vector<1x1x64x128xf32>
    %234 = vector.shape_cast %233 : vector<1x1x64x128xf32> to vector<64x128xf32>
    %235 = vector.shape_cast %232 : vector<64x128xf32> to vector<1x1x64x128xf32>
    tpu.vector_store %arg6[%c0_125, %c4, %c0_126, %c0_127], %235 {strides = array<i32>} : memref<1x12x64x128xf32, #tpu.memory_space<vmem>>, vector<1x1x64x128xf32>,
    %c80 = arith.constant 80 : index
    %c0_128 = arith.constant 0 : index
    %236 = vector.load %arg7[%c80, %c0_128] : memref<1536x128xf32, #tpu.memory_space<vmem>>, vector<16x128xf32>
    %cst_129 = arith.constant dense<0.000000e+00> : vector<64x128xf32>
    %237 = tpu.matmul %3, %236, %cst_129 {dimension_numbers = #tpu.dot_dimension_numbers<[1], [0], [0], [1], [0, 0, 1, 1], [], []>} : vector<64x16xf32>, vector<16x128xf32>, vector<64x128xf32> -> vector<64x128xf32>
    %238 = arith.mulf %237, %16 : vector<64x128xf32>
    %c272 = arith.constant 272 : index
    %c0_130 = arith.constant 0 : index
    %239 = vector.load %arg7[%c272, %c0_130] : memref<1536x128xf32, #tpu.memory_space<vmem>>, vector<16x128xf32>
    %cst_131 = arith.constant dense<0.000000e+00> : vector<64x128xf32>
    %240 = tpu.matmul %3, %239, %cst_131 {dimension_numbers = #tpu.dot_dimension_numbers<[1], [0], [0], [1], [0, 0, 1, 1], [], []>} : vector<64x16xf32>, vector<16x128xf32>, vector<64x128xf32> -> vector<64x128xf32>
    %241 = arith.mulf %240, %23 : vector<64x128xf32>
    %242 = arith.addf %238, %241 : vector<64x128xf32>
    %c464 = arith.constant 464 : index
    %c0_132 = arith.constant 0 : index
    %243 = vector.load %arg7[%c464, %c0_132] : memref<1536x128xf32, #tpu.memory_space<vmem>>, vector<16x128xf32>
    %cst_133 = arith.constant dense<0.000000e+00> : vector<64x128xf32>
    %244 = tpu.matmul %3, %243, %cst_133 {dimension_numbers = #tpu.dot_dimension_numbers<[1], [0], [0], [1], [0, 0, 1, 1], [], []>} : vector<64x16xf32>, vector<16x128xf32>, vector<64x128xf32> -> vector<64x128xf32>
    %245 = arith.mulf %244, %30 : vector<64x128xf32>
    %246 = arith.addf %242, %245 : vector<64x128xf32>
    %c656 = arith.constant 656 : index
    %c0_134 = arith.constant 0 : index
    %247 = vector.load %arg7[%c656, %c0_134] : memref<1536x128xf32, #tpu.memory_space<vmem>>, vector<16x128xf32>
    %cst_135 = arith.constant dense<0.000000e+00> : vector<64x128xf32>
    %248 = tpu.matmul %3, %247, %cst_135 {dimension_numbers = #tpu.dot_dimension_numbers<[1], [0], [0], [1], [0, 0, 1, 1], [], []>} : vector<64x16xf32>, vector<16x128xf32>, vector<64x128xf32> -> vector<64x128xf32>
    %249 = arith.mulf %248, %37 : vector<64x128xf32>
    %250 = arith.addf %246, %249 : vector<64x128xf32>
    %c848 = arith.constant 848 : index
    %c0_136 = arith.constant 0 : index
    %251 = vector.load %arg7[%c848, %c0_136] : memref<1536x128xf32, #tpu.memory_space<vmem>>, vector<16x128xf32>
    %cst_137 = arith.constant dense<0.000000e+00> : vector<64x128xf32>
    %252 = tpu.matmul %3, %251, %cst_137 {dimension_numbers = #tpu.dot_dimension_numbers<[1], [0], [0], [1], [0, 0, 1, 1], [], []>} : vector<64x16xf32>, vector<16x128xf32>, vector<64x128xf32> -> vector<64x128xf32>
    %253 = arith.mulf %252, %44 : vector<64x128xf32>
    %254 = arith.addf %250, %253 : vector<64x128xf32>
    %c1040 = arith.constant 1040 : index
    %c0_138 = arith.constant 0 : index
    %255 = vector.load %arg7[%c1040, %c0_138] : memref<1536x128xf32, #tpu.memory_space<vmem>>, vector<16x128xf32>
    %cst_139 = arith.constant dense<0.000000e+00> : vector<64x128xf32>
    %256 = tpu.matmul %3, %255, %cst_139 {dimension_numbers = #tpu.dot_dimension_numbers<[1], [0], [0], [1], [0, 0, 1, 1], [], []>} : vector<64x16xf32>, vector<16x128xf32>, vector<64x128xf32> -> vector<64x128xf32>
    %257 = arith.mulf %256, %51 : vector<64x128xf32>
    %258 = arith.addf %254, %257 : vector<64x128xf32>
    %c1232 = arith.constant 1232 : index
    %c0_140 = arith.constant 0 : index
    %259 = vector.load %arg7[%c1232, %c0_140] : memref<1536x128xf32, #tpu.memory_space<vmem>>, vector<16x128xf32>
    %cst_141 = arith.constant dense<0.000000e+00> : vector<64x128xf32>
    %260 = tpu.matmul %3, %259, %cst_141 {dimension_numbers = #tpu.dot_dimension_numbers<[1], [0], [0], [1], [0, 0, 1, 1], [], []>} : vector<64x16xf32>, vector<16x128xf32>, vector<64x128xf32> -> vector<64x128xf32>
    %261 = arith.mulf %260, %58 : vector<64x128xf32>
    %262 = arith.addf %258, %261 : vector<64x128xf32>
    %c1424 = arith.constant 1424 : index
    %c0_142 = arith.constant 0 : index
    %263 = vector.load %arg7[%c1424, %c0_142] : memref<1536x128xf32, #tpu.memory_space<vmem>>, vector<16x128xf32>
    %cst_143 = arith.constant dense<0.000000e+00> : vector<64x128xf32>
    %264 = tpu.matmul %3, %263, %cst_143 {dimension_numbers = #tpu.dot_dimension_numbers<[1], [0], [0], [1], [0, 0, 1, 1], [], []>} : vector<64x16xf32>, vector<16x128xf32>, vector<64x128xf32> -> vector<64x128xf32>
    %265 = arith.mulf %264, %65 : vector<64x128xf32>
    %266 = arith.addf %262, %265 : vector<64x128xf32>
    %c0_144 = arith.constant 0 : index
    %c5 = arith.constant 5 : index
    %c0_145 = arith.constant 0 : index
    %c0_146 = arith.constant 0 : index
    %267 = vector.load %arg6[%c0_144, %c5, %c0_145, %c0_146] : memref<1x12x64x128xf32, #tpu.memory_space<vmem>>, vector<1x1x64x128xf32>
    %268 = vector.shape_cast %267 : vector<1x1x64x128xf32> to vector<64x128xf32>
    %269 = vector.shape_cast %266 : vector<64x128xf32> to vector<1x1x64x128xf32>
    tpu.vector_store %arg6[%c0_144, %c5, %c0_145, %c0_146], %269 {strides = array<i32>} : memref<1x12x64x128xf32, #tpu.memory_space<vmem>>, vector<1x1x64x128xf32>,
    %c96 = arith.constant 96 : index
    %c0_147 = arith.constant 0 : index
    %270 = vector.load %arg7[%c96, %c0_147] : memref<1536x128xf32, #tpu.memory_space<vmem>>, vector<16x128xf32>
    %cst_148 = arith.constant dense<0.000000e+00> : vector<64x128xf32>
    %271 = tpu.matmul %3, %270, %cst_148 {dimension_numbers = #tpu.dot_dimension_numbers<[1], [0], [0], [1], [0, 0, 1, 1], [], []>} : vector<64x16xf32>, vector<16x128xf32>, vector<64x128xf32> -> vector<64x128xf32>
    %272 = arith.mulf %271, %16 : vector<64x128xf32>
    %c288 = arith.constant 288 : index
    %c0_149 = arith.constant 0 : index
    %273 = vector.load %arg7[%c288, %c0_149] : memref<1536x128xf32, #tpu.memory_space<vmem>>, vector<16x128xf32>
    %cst_150 = arith.constant dense<0.000000e+00> : vector<64x128xf32>
    %274 = tpu.matmul %3, %273, %cst_150 {dimension_numbers = #tpu.dot_dimension_numbers<[1], [0], [0], [1], [0, 0, 1, 1], [], []>} : vector<64x16xf32>, vector<16x128xf32>, vector<64x128xf32> -> vector<64x128xf32>
    %275 = arith.mulf %274, %23 : vector<64x128xf32>
    %276 = arith.addf %272, %275 : vector<64x128xf32>
    %c480 = arith.constant 480 : index
    %c0_151 = arith.constant 0 : index
    %277 = vector.load %arg7[%c480, %c0_151] : memref<1536x128xf32, #tpu.memory_space<vmem>>, vector<16x128xf32>
    %cst_152 = arith.constant dense<0.000000e+00> : vector<64x128xf32>
    %278 = tpu.matmul %3, %277, %cst_152 {dimension_numbers = #tpu.dot_dimension_numbers<[1], [0], [0], [1], [0, 0, 1, 1], [], []>} : vector<64x16xf32>, vector<16x128xf32>, vector<64x128xf32> -> vector<64x128xf32>
    %279 = arith.mulf %278, %30 : vector<64x128xf32>
    %280 = arith.addf %276, %279 : vector<64x128xf32>
    %c672 = arith.constant 672 : index
    %c0_153 = arith.constant 0 : index
    %281 = vector.load %arg7[%c672, %c0_153] : memref<1536x128xf32, #tpu.memory_space<vmem>>, vector<16x128xf32>
    %cst_154 = arith.constant dense<0.000000e+00> : vector<64x128xf32>
    %282 = tpu.matmul %3, %281, %cst_154 {dimension_numbers = #tpu.dot_dimension_numbers<[1], [0], [0], [1], [0, 0, 1, 1], [], []>} : vector<64x16xf32>, vector<16x128xf32>, vector<64x128xf32> -> vector<64x128xf32>
    %283 = arith.mulf %282, %37 : vector<64x128xf32>
    %284 = arith.addf %280, %283 : vector<64x128xf32>
    %c864 = arith.constant 864 : index
    %c0_155 = arith.constant 0 : index
    %285 = vector.load %arg7[%c864, %c0_155] : memref<1536x128xf32, #tpu.memory_space<vmem>>, vector<16x128xf32>
    %cst_156 = arith.constant dense<0.000000e+00> : vector<64x128xf32>
    %286 = tpu.matmul %3, %285, %cst_156 {dimension_numbers = #tpu.dot_dimension_numbers<[1], [0], [0], [1], [0, 0, 1, 1], [], []>} : vector<64x16xf32>, vector<16x128xf32>, vector<64x128xf32> -> vector<64x128xf32>
    %287 = arith.mulf %286, %44 : vector<64x128xf32>
    %288 = arith.addf %284, %287 : vector<64x128xf32>
    %c1056 = arith.constant 1056 : index
    %c0_157 = arith.constant 0 : index
    %289 = vector.load %arg7[%c1056, %c0_157] : memref<1536x128xf32, #tpu.memory_space<vmem>>, vector<16x128xf32>
    %cst_158 = arith.constant dense<0.000000e+00> : vector<64x128xf32>
    %290 = tpu.matmul %3, %289, %cst_158 {dimension_numbers = #tpu.dot_dimension_numbers<[1], [0], [0], [1], [0, 0, 1, 1], [], []>} : vector<64x16xf32>, vector<16x128xf32>, vector<64x128xf32> -> vector<64x128xf32>
    %291 = arith.mulf %290, %51 : vector<64x128xf32>
    %292 = arith.addf %288, %291 : vector<64x128xf32>
    %c1248 = arith.constant 1248 : index
    %c0_159 = arith.constant 0 : index
    %293 = vector.load %arg7[%c1248, %c0_159] : memref<1536x128xf32, #tpu.memory_space<vmem>>, vector<16x128xf32>
    %cst_160 = arith.constant dense<0.000000e+00> : vector<64x128xf32>
    %294 = tpu.matmul %3, %293, %cst_160 {dimension_numbers = #tpu.dot_dimension_numbers<[1], [0], [0], [1], [0, 0, 1, 1], [], []>} : vector<64x16xf32>, vector<16x128xf32>, vector<64x128xf32> -> vector<64x128xf32>
    %295 = arith.mulf %294, %58 : vector<64x128xf32>
    %296 = arith.addf %292, %295 : vector<64x128xf32>
    %c1440 = arith.constant 1440 : index
    %c0_161 = arith.constant 0 : index
    %297 = vector.load %arg7[%c1440, %c0_161] : memref<1536x128xf32, #tpu.memory_space<vmem>>, vector<16x128xf32>
    %cst_162 = arith.constant dense<0.000000e+00> : vector<64x128xf32>
    %298 = tpu.matmul %3, %297, %cst_162 {dimension_numbers = #tpu.dot_dimension_numbers<[1], [0], [0], [1], [0, 0, 1, 1], [], []>} : vector<64x16xf32>, vector<16x128xf32>, vector<64x128xf32> -> vector<64x128xf32>
    %299 = arith.mulf %298, %65 : vector<64x128xf32>
    %300 = arith.addf %296, %299 : vector<64x128xf32>
    %c0_163 = arith.constant 0 : index
    %c6 = arith.constant 6 : index
    %c0_164 = arith.constant 0 : index
    %c0_165 = arith.constant 0 : index
    %301 = vector.load %arg6[%c0_163, %c6, %c0_164, %c0_165] : memref<1x12x64x128xf32, #tpu.memory_space<vmem>>, vector<1x1x64x128xf32>
    %302 = vector.shape_cast %301 : vector<1x1x64x128xf32> to vector<64x128xf32>
    %303 = vector.shape_cast %300 : vector<64x128xf32> to vector<1x1x64x128xf32>
    tpu.vector_store %arg6[%c0_163, %c6, %c0_164, %c0_165], %303 {strides = array<i32>} : memref<1x12x64x128xf32, #tpu.memory_space<vmem>>, vector<1x1x64x128xf32>,
    %c112 = arith.constant 112 : index
    %c0_166 = arith.constant 0 : index
    %304 = vector.load %arg7[%c112, %c0_166] : memref<1536x128xf32, #tpu.memory_space<vmem>>, vector<16x128xf32>
    %cst_167 = arith.constant dense<0.000000e+00> : vector<64x128xf32>
    %305 = tpu.matmul %3, %304, %cst_167 {dimension_numbers = #tpu.dot_dimension_numbers<[1], [0], [0], [1], [0, 0, 1, 1], [], []>} : vector<64x16xf32>, vector<16x128xf32>, vector<64x128xf32> -> vector<64x128xf32>
    %306 = arith.mulf %305, %16 : vector<64x128xf32>
    %c304 = arith.constant 304 : index
    %c0_168 = arith.constant 0 : index
    %307 = vector.load %arg7[%c304, %c0_168] : memref<1536x128xf32, #tpu.memory_space<vmem>>, vector<16x128xf32>
    %cst_169 = arith.constant dense<0.000000e+00> : vector<64x128xf32>
    %308 = tpu.matmul %3, %307, %cst_169 {dimension_numbers = #tpu.dot_dimension_numbers<[1], [0], [0], [1], [0, 0, 1, 1], [], []>} : vector<64x16xf32>, vector<16x128xf32>, vector<64x128xf32> -> vector<64x128xf32>
    %309 = arith.mulf %308, %23 : vector<64x128xf32>
    %310 = arith.addf %306, %309 : vector<64x128xf32>
    %c496 = arith.constant 496 : index
    %c0_170 = arith.constant 0 : index
    %311 = vector.load %arg7[%c496, %c0_170] : memref<1536x128xf32, #tpu.memory_space<vmem>>, vector<16x128xf32>
    %cst_171 = arith.constant dense<0.000000e+00> : vector<64x128xf32>
    %312 = tpu.matmul %3, %311, %cst_171 {dimension_numbers = #tpu.dot_dimension_numbers<[1], [0], [0], [1], [0, 0, 1, 1], [], []>} : vector<64x16xf32>, vector<16x128xf32>, vector<64x128xf32> -> vector<64x128xf32>
    %313 = arith.mulf %312, %30 : vector<64x128xf32>
    %314 = arith.addf %310, %313 : vector<64x128xf32>
    %c688 = arith.constant 688 : index
    %c0_172 = arith.constant 0 : index
    %315 = vector.load %arg7[%c688, %c0_172] : memref<1536x128xf32, #tpu.memory_space<vmem>>, vector<16x128xf32>
    %cst_173 = arith.constant dense<0.000000e+00> : vector<64x128xf32>
    %316 = tpu.matmul %3, %315, %cst_173 {dimension_numbers = #tpu.dot_dimension_numbers<[1], [0], [0], [1], [0, 0, 1, 1], [], []>} : vector<64x16xf32>, vector<16x128xf32>, vector<64x128xf32> -> vector<64x128xf32>
    %317 = arith.mulf %316, %37 : vector<64x128xf32>
    %318 = arith.addf %314, %317 : vector<64x128xf32>
    %c880 = arith.constant 880 : index
    %c0_174 = arith.constant 0 : index
    %319 = vector.load %arg7[%c880, %c0_174] : memref<1536x128xf32, #tpu.memory_space<vmem>>, vector<16x128xf32>
    %cst_175 = arith.constant dense<0.000000e+00> : vector<64x128xf32>
    %320 = tpu.matmul %3, %319, %cst_175 {dimension_numbers = #tpu.dot_dimension_numbers<[1], [0], [0], [1], [0, 0, 1, 1], [], []>} : vector<64x16xf32>, vector<16x128xf32>, vector<64x128xf32> -> vector<64x128xf32>
    %321 = arith.mulf %320, %44 : vector<64x128xf32>
    %322 = arith.addf %318, %321 : vector<64x128xf32>
    %c1072 = arith.constant 1072 : index
    %c0_176 = arith.constant 0 : index
    %323 = vector.load %arg7[%c1072, %c0_176] : memref<1536x128xf32, #tpu.memory_space<vmem>>, vector<16x128xf32>
    %cst_177 = arith.constant dense<0.000000e+00> : vector<64x128xf32>
    %324 = tpu.matmul %3, %323, %cst_177 {dimension_numbers = #tpu.dot_dimension_numbers<[1], [0], [0], [1], [0, 0, 1, 1], [], []>} : vector<64x16xf32>, vector<16x128xf32>, vector<64x128xf32> -> vector<64x128xf32>
    %325 = arith.mulf %324, %51 : vector<64x128xf32>
    %326 = arith.addf %322, %325 : vector<64x128xf32>
    %c1264 = arith.constant 1264 : index
    %c0_178 = arith.constant 0 : index
    %327 = vector.load %arg7[%c1264, %c0_178] : memref<1536x128xf32, #tpu.memory_space<vmem>>, vector<16x128xf32>
    %cst_179 = arith.constant dense<0.000000e+00> : vector<64x128xf32>
    %328 = tpu.matmul %3, %327, %cst_179 {dimension_numbers = #tpu.dot_dimension_numbers<[1], [0], [0], [1], [0, 0, 1, 1], [], []>} : vector<64x16xf32>, vector<16x128xf32>, vector<64x128xf32> -> vector<64x128xf32>
    %329 = arith.mulf %328, %58 : vector<64x128xf32>
    %330 = arith.addf %326, %329 : vector<64x128xf32>
    %c1456 = arith.constant 1456 : index
    %c0_180 = arith.constant 0 : index
    %331 = vector.load %arg7[%c1456, %c0_180] : memref<1536x128xf32, #tpu.memory_space<vmem>>, vector<16x128xf32>
    %cst_181 = arith.constant dense<0.000000e+00> : vector<64x128xf32>
    %332 = tpu.matmul %3, %331, %cst_181 {dimension_numbers = #tpu.dot_dimension_numbers<[1], [0], [0], [1], [0, 0, 1, 1], [], []>} : vector<64x16xf32>, vector<16x128xf32>, vector<64x128xf32> -> vector<64x128xf32>
    %333 = arith.mulf %332, %65 : vector<64x128xf32>
    %334 = arith.addf %330, %333 : vector<64x128xf32>
    %c0_182 = arith.constant 0 : index
    %c7 = arith.constant 7 : index
    %c0_183 = arith.constant 0 : index
    %c0_184 = arith.constant 0 : index
    %335 = vector.load %arg6[%c0_182, %c7, %c0_183, %c0_184] : memref<1x12x64x128xf32, #tpu.memory_space<vmem>>, vector<1x1x64x128xf32>
    %336 = vector.shape_cast %335 : vector<1x1x64x128xf32> to vector<64x128xf32>
    %337 = vector.shape_cast %334 : vector<64x128xf32> to vector<1x1x64x128xf32>
    tpu.vector_store %arg6[%c0_182, %c7, %c0_183, %c0_184], %337 {strides = array<i32>} : memref<1x12x64x128xf32, #tpu.memory_space<vmem>>, vector<1x1x64x128xf32>,
    %c128 = arith.constant 128 : index
    %c0_185 = arith.constant 0 : index
    %338 = vector.load %arg7[%c128, %c0_185] : memref<1536x128xf32, #tpu.memory_space<vmem>>, vector<16x128xf32>
    %cst_186 = arith.constant dense<0.000000e+00> : vector<64x128xf32>
    %339 = tpu.matmul %3, %338, %cst_186 {dimension_numbers = #tpu.dot_dimension_numbers<[1], [0], [0], [1], [0, 0, 1, 1], [], []>} : vector<64x16xf32>, vector<16x128xf32>, vector<64x128xf32> -> vector<64x128xf32>
    %340 = arith.mulf %339, %16 : vector<64x128xf32>
    %c320 = arith.constant 320 : index
    %c0_187 = arith.constant 0 : index
    %341 = vector.load %arg7[%c320, %c0_187] : memref<1536x128xf32, #tpu.memory_space<vmem>>, vector<16x128xf32>
    %cst_188 = arith.constant dense<0.000000e+00> : vector<64x128xf32>
    %342 = tpu.matmul %3, %341, %cst_188 {dimension_numbers = #tpu.dot_dimension_numbers<[1], [0], [0], [1], [0, 0, 1, 1], [], []>} : vector<64x16xf32>, vector<16x128xf32>, vector<64x128xf32> -> vector<64x128xf32>
    %343 = arith.mulf %342, %23 : vector<64x128xf32>
    %344 = arith.addf %340, %343 : vector<64x128xf32>
    %c512 = arith.constant 512 : index
    %c0_189 = arith.constant 0 : index
    %345 = vector.load %arg7[%c512, %c0_189] : memref<1536x128xf32, #tpu.memory_space<vmem>>, vector<16x128xf32>
    %cst_190 = arith.constant dense<0.000000e+00> : vector<64x128xf32>
    %346 = tpu.matmul %3, %345, %cst_190 {dimension_numbers = #tpu.dot_dimension_numbers<[1], [0], [0], [1], [0, 0, 1, 1], [], []>} : vector<64x16xf32>, vector<16x128xf32>, vector<64x128xf32> -> vector<64x128xf32>
    %347 = arith.mulf %346, %30 : vector<64x128xf32>
    %348 = arith.addf %344, %347 : vector<64x128xf32>
    %c704 = arith.constant 704 : index
    %c0_191 = arith.constant 0 : index
    %349 = vector.load %arg7[%c704, %c0_191] : memref<1536x128xf32, #tpu.memory_space<vmem>>, vector<16x128xf32>
    %cst_192 = arith.constant dense<0.000000e+00> : vector<64x128xf32>
    %350 = tpu.matmul %3, %349, %cst_192 {dimension_numbers = #tpu.dot_dimension_numbers<[1], [0], [0], [1], [0, 0, 1, 1], [], []>} : vector<64x16xf32>, vector<16x128xf32>, vector<64x128xf32> -> vector<64x128xf32>
    %351 = arith.mulf %350, %37 : vector<64x128xf32>
    %352 = arith.addf %348, %351 : vector<64x128xf32>
    %c896 = arith.constant 896 : index
    %c0_193 = arith.constant 0 : index
    %353 = vector.load %arg7[%c896, %c0_193] : memref<1536x128xf32, #tpu.memory_space<vmem>>, vector<16x128xf32>
    %cst_194 = arith.constant dense<0.000000e+00> : vector<64x128xf32>
    %354 = tpu.matmul %3, %353, %cst_194 {dimension_numbers = #tpu.dot_dimension_numbers<[1], [0], [0], [1], [0, 0, 1, 1], [], []>} : vector<64x16xf32>, vector<16x128xf32>, vector<64x128xf32> -> vector<64x128xf32>
    %355 = arith.mulf %354, %44 : vector<64x128xf32>
    %356 = arith.addf %352, %355 : vector<64x128xf32>
    %c1088 = arith.constant 1088 : index
    %c0_195 = arith.constant 0 : index
    %357 = vector.load %arg7[%c1088, %c0_195] : memref<1536x128xf32, #tpu.memory_space<vmem>>, vector<16x128xf32>
    %cst_196 = arith.constant dense<0.000000e+00> : vector<64x128xf32>
    %358 = tpu.matmul %3, %357, %cst_196 {dimension_numbers = #tpu.dot_dimension_numbers<[1], [0], [0], [1], [0, 0, 1, 1], [], []>} : vector<64x16xf32>, vector<16x128xf32>, vector<64x128xf32> -> vector<64x128xf32>
    %359 = arith.mulf %358, %51 : vector<64x128xf32>
    %360 = arith.addf %356, %359 : vector<64x128xf32>
    %c1280 = arith.constant 1280 : index
    %c0_197 = arith.constant 0 : index
    %361 = vector.load %arg7[%c1280, %c0_197] : memref<1536x128xf32, #tpu.memory_space<vmem>>, vector<16x128xf32>
    %cst_198 = arith.constant dense<0.000000e+00> : vector<64x128xf32>
    %362 = tpu.matmul %3, %361, %cst_198 {dimension_numbers = #tpu.dot_dimension_numbers<[1], [0], [0], [1], [0, 0, 1, 1], [], []>} : vector<64x16xf32>, vector<16x128xf32>, vector<64x128xf32> -> vector<64x128xf32>
    %363 = arith.mulf %362, %58 : vector<64x128xf32>
    %364 = arith.addf %360, %363 : vector<64x128xf32>
    %c1472 = arith.constant 1472 : index
    %c0_199 = arith.constant 0 : index
    %365 = vector.load %arg7[%c1472, %c0_199] : memref<1536x128xf32, #tpu.memory_space<vmem>>, vector<16x128xf32>
    %cst_200 = arith.constant dense<0.000000e+00> : vector<64x128xf32>
    %366 = tpu.matmul %3, %365, %cst_200 {dimension_numbers = #tpu.dot_dimension_numbers<[1], [0], [0], [1], [0, 0, 1, 1], [], []>} : vector<64x16xf32>, vector<16x128xf32>, vector<64x128xf32> -> vector<64x128xf32>
    %367 = arith.mulf %366, %65 : vector<64x128xf32>
    %368 = arith.addf %364, %367 : vector<64x128xf32>
    %c0_201 = arith.constant 0 : index
    %c8 = arith.constant 8 : index
    %c0_202 = arith.constant 0 : index
    %c0_203 = arith.constant 0 : index
    %369 = vector.load %arg6[%c0_201, %c8, %c0_202, %c0_203] : memref<1x12x64x128xf32, #tpu.memory_space<vmem>>, vector<1x1x64x128xf32>
    %370 = vector.shape_cast %369 : vector<1x1x64x128xf32> to vector<64x128xf32>
    %371 = vector.shape_cast %368 : vector<64x128xf32> to vector<1x1x64x128xf32>
    tpu.vector_store %arg6[%c0_201, %c8, %c0_202, %c0_203], %371 {strides = array<i32>} : memref<1x12x64x128xf32, #tpu.memory_space<vmem>>, vector<1x1x64x128xf32>,
    %c144 = arith.constant 144 : index
    %c0_204 = arith.constant 0 : index
    %372 = vector.load %arg7[%c144, %c0_204] : memref<1536x128xf32, #tpu.memory_space<vmem>>, vector<16x128xf32>
    %cst_205 = arith.constant dense<0.000000e+00> : vector<64x128xf32>
    %373 = tpu.matmul %3, %372, %cst_205 {dimension_numbers = #tpu.dot_dimension_numbers<[1], [0], [0], [1], [0, 0, 1, 1], [], []>} : vector<64x16xf32>, vector<16x128xf32>, vector<64x128xf32> -> vector<64x128xf32>
    %374 = arith.mulf %373, %16 : vector<64x128xf32>
    %c336 = arith.constant 336 : index
    %c0_206 = arith.constant 0 : index
    %375 = vector.load %arg7[%c336, %c0_206] : memref<1536x128xf32, #tpu.memory_space<vmem>>, vector<16x128xf32>
    %cst_207 = arith.constant dense<0.000000e+00> : vector<64x128xf32>
    %376 = tpu.matmul %3, %375, %cst_207 {dimension_numbers = #tpu.dot_dimension_numbers<[1], [0], [0], [1], [0, 0, 1, 1], [], []>} : vector<64x16xf32>, vector<16x128xf32>, vector<64x128xf32> -> vector<64x128xf32>
    %377 = arith.mulf %376, %23 : vector<64x128xf32>
    %378 = arith.addf %374, %377 : vector<64x128xf32>
    %c528 = arith.constant 528 : index
    %c0_208 = arith.constant 0 : index
    %379 = vector.load %arg7[%c528, %c0_208] : memref<1536x128xf32, #tpu.memory_space<vmem>>, vector<16x128xf32>
    %cst_209 = arith.constant dense<0.000000e+00> : vector<64x128xf32>
    %380 = tpu.matmul %3, %379, %cst_209 {dimension_numbers = #tpu.dot_dimension_numbers<[1], [0], [0], [1], [0, 0, 1, 1], [], []>} : vector<64x16xf32>, vector<16x128xf32>, vector<64x128xf32> -> vector<64x128xf32>
    %381 = arith.mulf %380, %30 : vector<64x128xf32>
    %382 = arith.addf %378, %381 : vector<64x128xf32>
    %c720 = arith.constant 720 : index
    %c0_210 = arith.constant 0 : index
    %383 = vector.load %arg7[%c720, %c0_210] : memref<1536x128xf32, #tpu.memory_space<vmem>>, vector<16x128xf32>
    %cst_211 = arith.constant dense<0.000000e+00> : vector<64x128xf32>
    %384 = tpu.matmul %3, %383, %cst_211 {dimension_numbers = #tpu.dot_dimension_numbers<[1], [0], [0], [1], [0, 0, 1, 1], [], []>} : vector<64x16xf32>, vector<16x128xf32>, vector<64x128xf32> -> vector<64x128xf32>
    %385 = arith.mulf %384, %37 : vector<64x128xf32>
    %386 = arith.addf %382, %385 : vector<64x128xf32>
    %c912 = arith.constant 912 : index
    %c0_212 = arith.constant 0 : index
    %387 = vector.load %arg7[%c912, %c0_212] : memref<1536x128xf32, #tpu.memory_space<vmem>>, vector<16x128xf32>
    %cst_213 = arith.constant dense<0.000000e+00> : vector<64x128xf32>
    %388 = tpu.matmul %3, %387, %cst_213 {dimension_numbers = #tpu.dot_dimension_numbers<[1], [0], [0], [1], [0, 0, 1, 1], [], []>} : vector<64x16xf32>, vector<16x128xf32>, vector<64x128xf32> -> vector<64x128xf32>
    %389 = arith.mulf %388, %44 : vector<64x128xf32>
    %390 = arith.addf %386, %389 : vector<64x128xf32>
    %c1104 = arith.constant 1104 : index
    %c0_214 = arith.constant 0 : index
    %391 = vector.load %arg7[%c1104, %c0_214] : memref<1536x128xf32, #tpu.memory_space<vmem>>, vector<16x128xf32>
    %cst_215 = arith.constant dense<0.000000e+00> : vector<64x128xf32>
    %392 = tpu.matmul %3, %391, %cst_215 {dimension_numbers = #tpu.dot_dimension_numbers<[1], [0], [0], [1], [0, 0, 1, 1], [], []>} : vector<64x16xf32>, vector<16x128xf32>, vector<64x128xf32> -> vector<64x128xf32>
    %393 = arith.mulf %392, %51 : vector<64x128xf32>
    %394 = arith.addf %390, %393 : vector<64x128xf32>
    %c1296 = arith.constant 1296 : index
    %c0_216 = arith.constant 0 : index
    %395 = vector.load %arg7[%c1296, %c0_216] : memref<1536x128xf32, #tpu.memory_space<vmem>>, vector<16x128xf32>
    %cst_217 = arith.constant dense<0.000000e+00> : vector<64x128xf32>
    %396 = tpu.matmul %3, %395, %cst_217 {dimension_numbers = #tpu.dot_dimension_numbers<[1], [0], [0], [1], [0, 0, 1, 1], [], []>} : vector<64x16xf32>, vector<16x128xf32>, vector<64x128xf32> -> vector<64x128xf32>
    %397 = arith.mulf %396, %58 : vector<64x128xf32>
    %398 = arith.addf %394, %397 : vector<64x128xf32>
    %c1488 = arith.constant 1488 : index
    %c0_218 = arith.constant 0 : index
    %399 = vector.load %arg7[%c1488, %c0_218] : memref<1536x128xf32, #tpu.memory_space<vmem>>, vector<16x128xf32>
    %cst_219 = arith.constant dense<0.000000e+00> : vector<64x128xf32>
    %400 = tpu.matmul %3, %399, %cst_219 {dimension_numbers = #tpu.dot_dimension_numbers<[1], [0], [0], [1], [0, 0, 1, 1], [], []>} : vector<64x16xf32>, vector<16x128xf32>, vector<64x128xf32> -> vector<64x128xf32>
    %401 = arith.mulf %400, %65 : vector<64x128xf32>
    %402 = arith.addf %398, %401 : vector<64x128xf32>
    %c0_220 = arith.constant 0 : index
    %c9 = arith.constant 9 : index
    %c0_221 = arith.constant 0 : index
    %c0_222 = arith.constant 0 : index
    %403 = vector.load %arg6[%c0_220, %c9, %c0_221, %c0_222] : memref<1x12x64x128xf32, #tpu.memory_space<vmem>>, vector<1x1x64x128xf32>
    %404 = vector.shape_cast %403 : vector<1x1x64x128xf32> to vector<64x128xf32>
    %405 = vector.shape_cast %402 : vector<64x128xf32> to vector<1x1x64x128xf32>
    tpu.vector_store %arg6[%c0_220, %c9, %c0_221, %c0_222], %405 {strides = array<i32>} : memref<1x12x64x128xf32, #tpu.memory_space<vmem>>, vector<1x1x64x128xf32>,
    %c160 = arith.constant 160 : index
    %c0_223 = arith.constant 0 : index
    %406 = vector.load %arg7[%c160, %c0_223] : memref<1536x128xf32, #tpu.memory_space<vmem>>, vector<16x128xf32>
    %cst_224 = arith.constant dense<0.000000e+00> : vector<64x128xf32>
    %407 = tpu.matmul %3, %406, %cst_224 {dimension_numbers = #tpu.dot_dimension_numbers<[1], [0], [0], [1], [0, 0, 1, 1], [], []>} : vector<64x16xf32>, vector<16x128xf32>, vector<64x128xf32> -> vector<64x128xf32>
    %408 = arith.mulf %407, %16 : vector<64x128xf32>
    %c352 = arith.constant 352 : index
    %c0_225 = arith.constant 0 : index
    %409 = vector.load %arg7[%c352, %c0_225] : memref<1536x128xf32, #tpu.memory_space<vmem>>, vector<16x128xf32>
    %cst_226 = arith.constant dense<0.000000e+00> : vector<64x128xf32>
    %410 = tpu.matmul %3, %409, %cst_226 {dimension_numbers = #tpu.dot_dimension_numbers<[1], [0], [0], [1], [0, 0, 1, 1], [], []>} : vector<64x16xf32>, vector<16x128xf32>, vector<64x128xf32> -> vector<64x128xf32>
    %411 = arith.mulf %410, %23 : vector<64x128xf32>
    %412 = arith.addf %408, %411 : vector<64x128xf32>
    %c544 = arith.constant 544 : index
    %c0_227 = arith.constant 0 : index
    %413 = vector.load %arg7[%c544, %c0_227] : memref<1536x128xf32, #tpu.memory_space<vmem>>, vector<16x128xf32>
    %cst_228 = arith.constant dense<0.000000e+00> : vector<64x128xf32>
    %414 = tpu.matmul %3, %413, %cst_228 {dimension_numbers = #tpu.dot_dimension_numbers<[1], [0], [0], [1], [0, 0, 1, 1], [], []>} : vector<64x16xf32>, vector<16x128xf32>, vector<64x128xf32> -> vector<64x128xf32>
    %415 = arith.mulf %414, %30 : vector<64x128xf32>
    %416 = arith.addf %412, %415 : vector<64x128xf32>
    %c736 = arith.constant 736 : index
    %c0_229 = arith.constant 0 : index
    %417 = vector.load %arg7[%c736, %c0_229] : memref<1536x128xf32, #tpu.memory_space<vmem>>, vector<16x128xf32>
    %cst_230 = arith.constant dense<0.000000e+00> : vector<64x128xf32>
    %418 = tpu.matmul %3, %417, %cst_230 {dimension_numbers = #tpu.dot_dimension_numbers<[1], [0], [0], [1], [0, 0, 1, 1], [], []>} : vector<64x16xf32>, vector<16x128xf32>, vector<64x128xf32> -> vector<64x128xf32>
    %419 = arith.mulf %418, %37 : vector<64x128xf32>
    %420 = arith.addf %416, %419 : vector<64x128xf32>
    %c928 = arith.constant 928 : index
    %c0_231 = arith.constant 0 : index
    %421 = vector.load %arg7[%c928, %c0_231] : memref<1536x128xf32, #tpu.memory_space<vmem>>, vector<16x128xf32>
    %cst_232 = arith.constant dense<0.000000e+00> : vector<64x128xf32>
    %422 = tpu.matmul %3, %421, %cst_232 {dimension_numbers = #tpu.dot_dimension_numbers<[1], [0], [0], [1], [0, 0, 1, 1], [], []>} : vector<64x16xf32>, vector<16x128xf32>, vector<64x128xf32> -> vector<64x128xf32>
    %423 = arith.mulf %422, %44 : vector<64x128xf32>
    %424 = arith.addf %420, %423 : vector<64x128xf32>
    %c1120 = arith.constant 1120 : index
    %c0_233 = arith.constant 0 : index
    %425 = vector.load %arg7[%c1120, %c0_233] : memref<1536x128xf32, #tpu.memory_space<vmem>>, vector<16x128xf32>
    %cst_234 = arith.constant dense<0.000000e+00> : vector<64x128xf32>
    %426 = tpu.matmul %3, %425, %cst_234 {dimension_numbers = #tpu.dot_dimension_numbers<[1], [0], [0], [1], [0, 0, 1, 1], [], []>} : vector<64x16xf32>, vector<16x128xf32>, vector<64x128xf32> -> vector<64x128xf32>
    %427 = arith.mulf %426, %51 : vector<64x128xf32>
    %428 = arith.addf %424, %427 : vector<64x128xf32>
    %c1312 = arith.constant 1312 : index
    %c0_235 = arith.constant 0 : index
    %429 = vector.load %arg7[%c1312, %c0_235] : memref<1536x128xf32, #tpu.memory_space<vmem>>, vector<16x128xf32>
    %cst_236 = arith.constant dense<0.000000e+00> : vector<64x128xf32>
    %430 = tpu.matmul %3, %429, %cst_236 {dimension_numbers = #tpu.dot_dimension_numbers<[1], [0], [0], [1], [0, 0, 1, 1], [], []>} : vector<64x16xf32>, vector<16x128xf32>, vector<64x128xf32> -> vector<64x128xf32>
    %431 = arith.mulf %430, %58 : vector<64x128xf32>
    %432 = arith.addf %428, %431 : vector<64x128xf32>
    %c1504 = arith.constant 1504 : index
    %c0_237 = arith.constant 0 : index
    %433 = vector.load %arg7[%c1504, %c0_237] : memref<1536x128xf32, #tpu.memory_space<vmem>>, vector<16x128xf32>
    %cst_238 = arith.constant dense<0.000000e+00> : vector<64x128xf32>
    %434 = tpu.matmul %3, %433, %cst_238 {dimension_numbers = #tpu.dot_dimension_numbers<[1], [0], [0], [1], [0, 0, 1, 1], [], []>} : vector<64x16xf32>, vector<16x128xf32>, vector<64x128xf32> -> vector<64x128xf32>
    %435 = arith.mulf %434, %65 : vector<64x128xf32>
    %436 = arith.addf %432, %435 : vector<64x128xf32>
    %c0_239 = arith.constant 0 : index
    %c10 = arith.constant 10 : index
    %c0_240 = arith.constant 0 : index
    %c0_241 = arith.constant 0 : index
    %437 = vector.load %arg6[%c0_239, %c10, %c0_240, %c0_241] : memref<1x12x64x128xf32, #tpu.memory_space<vmem>>, vector<1x1x64x128xf32>
    %438 = vector.shape_cast %437 : vector<1x1x64x128xf32> to vector<64x128xf32>
    %439 = vector.shape_cast %436 : vector<64x128xf32> to vector<1x1x64x128xf32>
    tpu.vector_store %arg6[%c0_239, %c10, %c0_240, %c0_241], %439 {strides = array<i32>} : memref<1x12x64x128xf32, #tpu.memory_space<vmem>>, vector<1x1x64x128xf32>,
    %c176 = arith.constant 176 : index
    %c0_242 = arith.constant 0 : index
    %440 = vector.load %arg7[%c176, %c0_242] : memref<1536x128xf32, #tpu.memory_space<vmem>>, vector<16x128xf32>
    %cst_243 = arith.constant dense<0.000000e+00> : vector<64x128xf32>
    %441 = tpu.matmul %3, %440, %cst_243 {dimension_numbers = #tpu.dot_dimension_numbers<[1], [0], [0], [1], [0, 0, 1, 1], [], []>} : vector<64x16xf32>, vector<16x128xf32>, vector<64x128xf32> -> vector<64x128xf32>
    %442 = arith.mulf %441, %16 : vector<64x128xf32>
    %c368 = arith.constant 368 : index
    %c0_244 = arith.constant 0 : index
    %443 = vector.load %arg7[%c368, %c0_244] : memref<1536x128xf32, #tpu.memory_space<vmem>>, vector<16x128xf32>
    %cst_245 = arith.constant dense<0.000000e+00> : vector<64x128xf32>
    %444 = tpu.matmul %3, %443, %cst_245 {dimension_numbers = #tpu.dot_dimension_numbers<[1], [0], [0], [1], [0, 0, 1, 1], [], []>} : vector<64x16xf32>, vector<16x128xf32>, vector<64x128xf32> -> vector<64x128xf32>
    %445 = arith.mulf %444, %23 : vector<64x128xf32>
    %446 = arith.addf %442, %445 : vector<64x128xf32>
    %c560 = arith.constant 560 : index
    %c0_246 = arith.constant 0 : index
    %447 = vector.load %arg7[%c560, %c0_246] : memref<1536x128xf32, #tpu.memory_space<vmem>>, vector<16x128xf32>
    %cst_247 = arith.constant dense<0.000000e+00> : vector<64x128xf32>
    %448 = tpu.matmul %3, %447, %cst_247 {dimension_numbers = #tpu.dot_dimension_numbers<[1], [0], [0], [1], [0, 0, 1, 1], [], []>} : vector<64x16xf32>, vector<16x128xf32>, vector<64x128xf32> -> vector<64x128xf32>
    %449 = arith.mulf %448, %30 : vector<64x128xf32>
    %450 = arith.addf %446, %449 : vector<64x128xf32>
    %c752 = arith.constant 752 : index
    %c0_248 = arith.constant 0 : index
    %451 = vector.load %arg7[%c752, %c0_248] : memref<1536x128xf32, #tpu.memory_space<vmem>>, vector<16x128xf32>
    %cst_249 = arith.constant dense<0.000000e+00> : vector<64x128xf32>
    %452 = tpu.matmul %3, %451, %cst_249 {dimension_numbers = #tpu.dot_dimension_numbers<[1], [0], [0], [1], [0, 0, 1, 1], [], []>} : vector<64x16xf32>, vector<16x128xf32>, vector<64x128xf32> -> vector<64x128xf32>
    %453 = arith.mulf %452, %37 : vector<64x128xf32>
    %454 = arith.addf %450, %453 : vector<64x128xf32>
    %c944 = arith.constant 944 : index
    %c0_250 = arith.constant 0 : index
    %455 = vector.load %arg7[%c944, %c0_250] : memref<1536x128xf32, #tpu.memory_space<vmem>>, vector<16x128xf32>
    %cst_251 = arith.constant dense<0.000000e+00> : vector<64x128xf32>
    %456 = tpu.matmul %3, %455, %cst_251 {dimension_numbers = #tpu.dot_dimension_numbers<[1], [0], [0], [1], [0, 0, 1, 1], [], []>} : vector<64x16xf32>, vector<16x128xf32>, vector<64x128xf32> -> vector<64x128xf32>
    %457 = arith.mulf %456, %44 : vector<64x128xf32>
    %458 = arith.addf %454, %457 : vector<64x128xf32>
    %c1136 = arith.constant 1136 : index
    %c0_252 = arith.constant 0 : index
    %459 = vector.load %arg7[%c1136, %c0_252] : memref<1536x128xf32, #tpu.memory_space<vmem>>, vector<16x128xf32>
    %cst_253 = arith.constant dense<0.000000e+00> : vector<64x128xf32>
    %460 = tpu.matmul %3, %459, %cst_253 {dimension_numbers = #tpu.dot_dimension_numbers<[1], [0], [0], [1], [0, 0, 1, 1], [], []>} : vector<64x16xf32>, vector<16x128xf32>, vector<64x128xf32> -> vector<64x128xf32>
    %461 = arith.mulf %460, %51 : vector<64x128xf32>
    %462 = arith.addf %458, %461 : vector<64x128xf32>
    %c1328 = arith.constant 1328 : index
    %c0_254 = arith.constant 0 : index
    %463 = vector.load %arg7[%c1328, %c0_254] : memref<1536x128xf32, #tpu.memory_space<vmem>>, vector<16x128xf32>
    %cst_255 = arith.constant dense<0.000000e+00> : vector<64x128xf32>
    %464 = tpu.matmul %3, %463, %cst_255 {dimension_numbers = #tpu.dot_dimension_numbers<[1], [0], [0], [1], [0, 0, 1, 1], [], []>} : vector<64x16xf32>, vector<16x128xf32>, vector<64x128xf32> -> vector<64x128xf32>
    %465 = arith.mulf %464, %58 : vector<64x128xf32>
    %466 = arith.addf %462, %465 : vector<64x128xf32>
    %c1520 = arith.constant 1520 : index
    %c0_256 = arith.constant 0 : index
    %467 = vector.load %arg7[%c1520, %c0_256] : memref<1536x128xf32, #tpu.memory_space<vmem>>, vector<16x128xf32>
    %cst_257 = arith.constant dense<0.000000e+00> : vector<64x128xf32>
    %468 = tpu.matmul %3, %467, %cst_257 {dimension_numbers = #tpu.dot_dimension_numbers<[1], [0], [0], [1], [0, 0, 1, 1], [], []>} : vector<64x16xf32>, vector<16x128xf32>, vector<64x128xf32> -> vector<64x128xf32>
    %469 = arith.mulf %468, %65 : vector<64x128xf32>
    %470 = arith.addf %466, %469 : vector<64x128xf32>
    %c0_258 = arith.constant 0 : index
    %c11 = arith.constant 11 : index
    %c0_259 = arith.constant 0 : index
    %c0_260 = arith.constant 0 : index
    %471 = vector.load %arg6[%c0_258, %c11, %c0_259, %c0_260] : memref<1x12x64x128xf32, #tpu.memory_space<vmem>>, vector<1x1x64x128xf32>
    %472 = vector.shape_cast %471 : vector<1x1x64x128xf32> to vector<64x128xf32>
    %473 = vector.shape_cast %470 : vector<64x128xf32> to vector<1x1x64x128xf32>
    tpu.vector_store %arg6[%c0_258, %c11, %c0_259, %c0_260], %473 {strides = array<i32>} : memref<1x12x64x128xf32, #tpu.memory_space<vmem>>, vector<1x1x64x128xf32>,
    return
  }
  func.func @transform_0(%arg0: i32, %arg1: i32) -> (i32, i32, i32) {
    %c0_i32 = arith.constant 0 : i32
    %c0_i32_0 = arith.constant 0 : i32
    %c0_i32_1 = arith.constant 0 : i32
    return %arg0, %c0_i32, %c0_i32_0 : i32, i32, i32
  }
  func.func @transform_1(%arg0: i32, %arg1: i32) -> (i32, i32) {
    %c0_i32 = arith.constant 0 : i32
    %c0_i32_0 = arith.constant 0 : i32
    return %arg1, %c0_i32 : i32, i32
  }
  func.func @transform_2(%arg0: i32, %arg1: i32) -> (i32, i32) {
    %c0_i32 = arith.constant 0 : i32
    %c0_i32_0 = arith.constant 0 : i32
    %c0_i32_1 = arith.constant 0 : i32
    return %c0_i32, %c0_i32_0 : i32, i32
  }
  func.func @transform_3(%arg0: i32, %arg1: i32) -> (i32, i32, i32, i32) {
    %c0_i32 = arith.constant 0 : i32
    %c0_i32_0 = arith.constant 0 : i32
    %c0_i32_1 = arith.constant 0 : i32
    return %arg0, %c0_i32, %arg1, %c0_i32_0 : i32, i32, i32, i32
  }
  func.func @transform_4(%arg0: i32, %arg1: i32) -> (i32, i32, i32, i32) {
    %c0_i32 = arith.constant 0 : i32
    %c0_i32_0 = arith.constant 0 : i32
    %c0_i32_1 = arith.constant 0 : i32
    return %arg0, %c0_i32, %arg1, %c0_i32_0 : i32, i32, i32, i32
  }
}

</mosaic_0001>

<bundles_post_ra>
// kernel: tpu_custom_call.1
= control target key start
LH: loop header
LB: loop body
LE: loop exit
PB: predicated region body
PF: predicated region fallthrough
CT: control target
= control target key end

     0   :  { %s24314_s0 = inlined_call_operand.hbm [shape: f32[2,1536,16], index: 0, kind: input, shape index: {}]   ;;  %s24315_s1 = inlined_call_operand.hbm [shape: f32[64,16], index: 1, kind: input, shape index: {}]   ;;  %s24316_s2 = inlined_call_operand.hbm [shape: f32[16,128], index: 2, kind: input, shape index: {}]   ;;  %s24317_s3 = inlined_call_operand.hbm [shape: f32[2,1,64,128], index: 3, kind: input, shape index: {}]   ;;  %s24318_s4 = inlined_call_operand.hbm [shape: f32[2,12,64,128], index: 4, kind: output, shape index: {}]  }
   0x1   :  { %24579 = sst [smem:[#allocation165_spill]] %s24314_s0 }
   0x2   :  { %24580 = sst [smem:[#allocation166_spill]] %s24315_s1 }
   0x3   :  { %24581 = sst [smem:[#allocation167_spill]] %s24316_s2 }
   0x4   :  { %9 = vsyncpa [#allocation4], 0 }
   0x5   :  { %11 = vsyncpa [#allocation4 + $0x1], 0 }
   0x6   :  { %12 = vsyncpa [#allocation7], 0 }
   0x7   :  { %13 = vsyncpa [#allocation10], 0 }
   0x8   :  { %15 = vsyncpa [#allocation10 + $0x1], 0 }
   0x9   :  { %16 = vsyncpa [#allocation5], 0 }
   0xa   :  { %18 = vsyncpa [#allocation5 + $0x1], 0  ;;  %s19456_s15 = smov 0   ;;  %s19458_s16 = smov 0  }
   0xb   :  { %s19460_s17 = smov 0   ;;  %s19462_s18 = smov 0  }
   0xc   :  { %s19464_s19 = smov 0   ;;  %s19466_s20 = smov 0  }
   0xd LB: > { %s14577_s21 = sadd.s32 4294967295, %s19420_s20   ;;  %s14578_s22 = sadd.s32 4294967294, %s19420_s20   ;;  %s19420_s20 = sphi %s19466_s20, %s24_s20   ;;  %s19416_s19 = sphi %s19464_s19, %s25722_s19   ;;  %s19412_s18 = sphi %s19462_s18, %s25721_s18   ;;  %s19408_s17 = sphi %s19460_s17, %s25720_s17   ;;  %s19404_s16 = sphi %s19458_s16, %s25719_s16   ;;  %s19400_s15 = sphi %s19456_s15, %s25718_s15  }
   0xe   : > { %p50_p0 = scmp.ne.s32.totalorder %s19408_s17, %s19404_s16  ;;  %p51_p1 = scmp.eq.s32.totalorder %s19420_s20, 0 }
   0xf   : > { %p56_p2 = scmp.ne.s32.totalorder %s19404_s16, %s19400_s15  ;;  %p19494_p3 = scmp.eq.s32.totalorder %s14577_s21, 0 }
  0x10   : > { %p157_p4 = scmp.eq.s32.totalorder %s14577_s21, 1  ;;  %p19498_p5 = por %p51_p1, %p50_p0 }
  0x11   : > { %s24582_s24 = scalar_select %p19494_p3, 1, 0 }
  0x12   : > { %p163_p6 = scmp.eq.s32.totalorder %s14578_s22, 1  ;;  %p19504_p7 = por %p19494_p3, %p56_p2 }
  0x13   : > { %p19508_p8 = por %p157_p4, %p50_p0  ;;  %p14579_p10 = scmp.ge.s32.totalorder %s19420_s20, 1 }
  0x14   : > { %s24584_s26 = scalar_select %p19504_p7, 1, 0 }
  0x15   : > { %s24585_s27 = scalar_select %p19508_p8, 1, 0 }
  0x16   : > { %p19512_p9 = por %p163_p6, %p56_p2  ;;  %p170_p11 = scmp.lt.s32.totalorder %s19420_s20, 3 }
  0x17   : > { %s19422_s30 = smov [#allocation6]   ;;  %s19423_s7 = smov [#allocation8]  }
  0x18   : > { %s24586_s28 = scalar_select %p19512_p9, 1, 0 }
  0x19   : > { %p19518_p12 = pnand %p14579_p10, %p170_p11  ;;  %s185_s5 = sshll.u32 %s19422_s30, 4  ;;  %s19522_s5 = int_to_ptr.vmem [resolvable:$true] %s185_s5 }
  0x1a   : > { %s198_s8 = sshll.u32 %s19423_s7, 4  ;;  %s24589_s1 = sld [smem:[#allocation166_spill]]  ;;  %s19533_s8 = int_to_ptr.vmem [resolvable:$true] %s198_s8 }
  0x1b   : > { %p19088_p13 = pneg %p19518_p12 }
  0x1d   : > { %p19529_p1 = pnand %p19088_p13, %p19494_p3 }
  0x1f   : > { %p19216_p4 = pneg %p19529_p1 }
  0x20   : > { %s19214_s12 = scalar_lea.hbm %s24589_s1, 1024 }
  0x21   : > { %p19215_p2 = scmp.ne.s32.totalorder %s24589_s1, %s19214_s12  ;;  %p19221_p11 = scmp.lt.u32.totalorder %s19214_s12, %s24589_s1 }
  0x23   : > { %p19217_p6 = pnand %p19216_p4, %p19215_p2 }
  0x25   : > { %p19218_p10 = pneg %p19217_p6 }
  0x27   : > { %p19223_p13 = pnand %p19221_p11, %p19218_p10 }
  0x29   : > { %19226 = shalt.err (!%p19223_p13)
}
  0x2a   : > { %s19227_s30 = scalar_lea.vmem %s19522_s5, 1024  ;;  %p19235_p3 = scmp.lt.s32.totalorder %s19522_s5, %s19522_s5 }
  0x2b   : > { %p19228_p0 = scmp.ne.s32.totalorder %s19522_s5, %s19227_s30  ;;  %p19236_p2 = scmp.lt.s32.totalorder %s19227_s30, %s19227_s30 }
  0x2d   : > { %p19230_p9 = pnand %p19228_p0, %p19216_p4  ;;  %p19237_p6 = por %p19236_p2, %p19235_p3 }
  0x2f   : > { %p19231_p8 = pneg %p19230_p9 }
  0x31   : > { %p19238_p7 = pnand %p19237_p6, %p19231_p8 }
  0x33   : > { %19241 = shalt.err (!%p19238_p7)
}
  0x34   : > { %s24323_s7 = smov 128   ;;  %s19425_s10 = smov 8  }
  0x35   : > { %19091 = dma.hbm_to_vmem [thread:$0]  (!%p19529_p1), %s24589_s1, 1024, %s19522_s5, [#allocation7], %s24323_s7, %s24323_s7, %s19425_s10  }
  0x36   : > { %s24590_s2 = sld [smem:[#allocation167_spill]] }
  0x3c   : > { %s19242_s21 = scalar_lea.hbm %s24590_s2, 256 }
  0x3d   : > { %p19243_p3 = scmp.ne.s32.totalorder %s24590_s2, %s19242_s21  ;;  %p19249_p9 = scmp.lt.u32.totalorder %s19242_s21, %s24590_s2 }
  0x3f   : > { %p19245_p7 = pnand %p19243_p3, %p19216_p4 }
  0x41   : > { %p19246_p8 = pneg %p19245_p7 }
  0x43   : > { %p19251_p0 = pnand %p19249_p9, %p19246_p8 }
  0x45   : > { %19254 = shalt.err (!%p19251_p0)
}
  0x46   : > { %s19255_s5 = scalar_lea.vmem %s19533_s8, 256  ;;  %p19263_p2 = scmp.lt.s32.totalorder %s19533_s8, %s19533_s8 }
  0x47   : > { %p19256_p10 = scmp.ne.s32.totalorder %s19533_s8, %s19255_s5  ;;  %p19264_p6 = scmp.lt.s32.totalorder %s19255_s5, %s19255_s5 }
  0x49   : > { %p19258_p11 = pnand %p19256_p10, %p19216_p4  ;;  %p19265_p3 = por %p19264_p6, %p19263_p2 }
  0x4b   : > { %p19259_p13 = pneg %p19258_p11 }
  0x4d   : > { %p19266_p7 = pnand %p19265_p3, %p19259_p13 }
  0x4f   : > { %19269 = shalt.err (!%p19266_p7)
}
  0x50   : > { %19094 = dma.hbm_to_vmem [thread:$0]  (!%p19529_p1), %s24590_s2, 256, %s19533_s8, [#allocation7], %s24323_s7, %s24323_s7, %s19425_s10  }
  0x51   : > { %s24591_s11 = sadd.s32 1, %s19416_s19  ;;  %p19108_p8 = scmp.lt.s32.totalorder %s19420_s20, 2 }
  0x52   : > { %p38_p4 = scmp.ge.s32.totalorder %s24591_s11, 2  ;;  %s19598_s6 = sand.u32 1, %s19408_s17  }
  0x53   : > { %s19070_s12 = smul.u32 24576, %s19416_s19  ;;  %s24592_s13 = smov %s24591_s11 }
  0x54   : > { %s25724_s13 = smov (%p38_p4, %s24592_s13), 0  ;;  %s19069_s14 = smul.u32 1536, %s19598_s6 }
  0x55   : > { %s40_s21 = ssub.s32 %s19416_s19, %s25724_s13  ;;  %s24593_s0 = sld [smem:[#allocation165_spill]] }
  0x56   : > { %p41_p1 = scmp.eq.s32.totalorder %s40_s21, 0  ;;  %s216_s8 = scalar_lea.vmem [#allocation3], %s19069_s14 }
  0x57   : > { %s223_s23 = sshll.u32 %s216_s8, 4  ;;  %p19615_p9 = pnand %p19108_p8, %p19498_p5  ;;  %s19624_s23 = int_to_ptr.vmem [resolvable:$true] %s223_s23 }
  0x58   : > { %s24595_s11 = sadd.s32 1, %s19408_s17 }
  0x59   : > { %s19622_s7 = scalar_select %p41_p1, %s19408_s17, %s24595_s11  }
  0x5a   : > { %p19272_p10 = pneg %p19615_p9 }
  0x5b   : > { %s19611_s5 = scalar_lea.hbm %s24593_s0, %s19070_s12  ;;  %s213_s12 = scalar_lea.sflag [#allocation4], %s19598_s6 }
  0x5c   : > { %s19270_s22 = scalar_lea.hbm %s19611_s5, 24576  ;;  %s19275_s21 = scalar_lea.hbm %s24593_s0, 49152 }
  0x5d   : > { %p19271_p0 = scmp.ne.s32.totalorder %s19611_s5, %s19270_s22  ;;  %p19276_p5 = scmp.lt.u32.totalorder %s19611_s5, %s24593_s0 }
  0x5e   : > { %p19277_p2 = scmp.lt.u32.totalorder %s19275_s21, %s19270_s22  ;;  %p19279_p3 = scmp.lt.u32.totalorder %s19270_s22, %s19611_s5 }
  0x5f   : > { %p19273_p11 = pnand %p19272_p10, %p19271_p0 }
  0x60   : > { %p19278_p6 = por %p19277_p2, %p19276_p5 }
  0x61   : > { %p19274_p13 = pneg %p19273_p11 }
  0x62   : > { %p19280_p7 = por %p19279_p3, %p19278_p6 }
  0x64   : > { %p19281_p4 = pnand %p19280_p7, %p19274_p13 }
  0x66   : > { %19284 = shalt.err (!%p19281_p4)
}
  0x67   : > { %s19285_s11 = scalar_lea.vmem %s19624_s23, 24576  ;;  %s19426_s25 = smov [#allocation3]  }
  0x68   : > { %p19286_p8 = scmp.ne.s32.totalorder %s19624_s23, %s19285_s11  ;;  %s19290_s14 = sshll.u32 %s19426_s25, 4  ;;  %s19291_s14 = int_to_ptr.vmem [resolvable:$false] %s19290_s14 }
  0x69   : > { %s19292_s30 = scalar_lea.vmem %s19291_s14, 49152  ;;  %p19293_p11 = scmp.lt.s32.totalorder %s19624_s23, %s19291_s14 }
  0x6a   : > { %p19288_p1 = pnand %p19286_p8, %p19272_p10  ;;  %p19294_p5 = scmp.lt.s32.totalorder %s19292_s30, %s19285_s11 }
  0x6c   : > { %p19289_p0 = pneg %p19288_p1  ;;  %p19295_p2 = por %p19294_p5, %p19293_p11 }
  0x6e   : > { %p19296_p6 = pnand %p19295_p2, %p19289_p0 }
  0x70   : > { %19299 = shalt.err (!%p19296_p6)
}
  0x71   : > { %s24596_s22 = smov 128   ;;  %s14584_s21 = sshll.u32 %s19598_s6, 6 }
  0x72   : > { %19098 = dma.hbm_to_vmem [thread:$0]  (!%p19615_p9), %s19611_s5, 24576, %s19624_s23, %s213_s12, %s24596_s22, %s24596_s22, %s19425_s10  }
  0x73   : > { %s15698_s8 = sshll.u32 %s19416_s19, 10  ;;  %s237_s30 = scalar_lea.vmem [#allocation9], %s14584_s21 }
  0x74   : > { %s19662_s14 = scalar_lea.hbm %s24317_s3, %s15698_s8  ;;  %s246_s0 = sshll.u32 %s237_s30, 4  ;;  %s19664_s0 = int_to_ptr.vmem [resolvable:$true] %s246_s0 }
  0x75   : > { %s234_s1 = scalar_lea.sflag [#allocation10], %s19598_s6  ;;  %s19300_s2 = scalar_lea.hbm %s19662_s14, 1024 }
  0x76   : > { %p19301_p13 = scmp.ne.s32.totalorder %s19662_s14, %s19300_s2  ;;  %s19305_s12 = scalar_lea.hbm %s24317_s3, 2048 }
  0x77   : > { %p19306_p4 = scmp.lt.u32.totalorder %s19662_s14, %s24317_s3  ;;  %p19307_p8 = scmp.lt.u32.totalorder %s19305_s12, %s19300_s2 }
  0x78   : > { %p19303_p3 = pnand %p19301_p13, %p19272_p10  ;;  %p19309_p0 = scmp.lt.u32.totalorder %s19300_s2, %s19662_s14 }
  0x79   : > { %p19308_p1 = por %p19307_p8, %p19306_p4 }
  0x7a   : > { %p19304_p7 = pneg %p19303_p3 }
  0x7b   : > { %p19310_p11 = por %p19309_p0, %p19308_p1 }
  0x7d   : > { %p19311_p5 = pnand %p19310_p11, %p19304_p7 }
  0x7f   : > { %19314 = shalt.err (!%p19311_p5)
}
  0x80   : > { %s19315_s21 = scalar_lea.vmem %s19664_s0, 1024  ;;  %s19427_s25 = smov [#allocation9]  }
  0x81   : > { %p19316_p2 = scmp.ne.s32.totalorder %s19664_s0, %s19315_s21  ;;  %s19320_s30 = sshll.u32 %s19427_s25, 4  ;;  %s19321_s30 = int_to_ptr.vmem [resolvable:$false] %s19320_s30 }
  0x82   : > { %s19322_s5 = scalar_lea.vmem %s19321_s30, 2048  ;;  %p19323_p3 = scmp.lt.s32.totalorder %s19664_s0, %s19321_s30 }
  0x83   : > { %p19318_p6 = pnand %p19316_p2, %p19272_p10  ;;  %p19324_p4 = scmp.lt.s32.totalorder %s19322_s5, %s19315_s21 }
  0x85   : > { %p19319_p13 = pneg %p19318_p6  ;;  %p19325_p8 = por %p19324_p4, %p19323_p3 }
  0x87   : > { %p19326_p1 = pnand %p19325_p8, %p19319_p13 }
  0x89   : > { %19329 = shalt.err (!%p19326_p1)
}
  0x8a   : > { %19101 = dma.hbm_to_vmem [thread:$0]  (!%p19615_p9), %s19662_s14, 1024, %s19664_s0, %s234_s1, %s24596_s22, %s24596_s22, %s19425_s10  }
  0x8b   : > { %258 = sbr.rel (%p19518_p12) target bundleno = 1795 (0x703), region = 36 }
  0x92   : > { %s19698_s2 = sand.u32 1, %s19404_s16   ;;  %p24597_p10 = scmp.ne.s32.totalorder %s24584_s26, 0 }
  0x93   : > { %s19071_s23 = smul.u32 1536, %s19698_s2  ;;  %s261_s12 = scalar_lea.sflag [#allocation4], %s19698_s2 }
  0x95   : > { %s19702_s9 = scalar_lea.vmem [#allocation3], %s19071_s23 }
  0x96   : > { %19383 = dma.done.wait (%p24597_p10), %s261_s12, 24576  }
  0x97   : > { %19385 = vsyncadd (%p24597_p10), %s261_s12, 4294942720  ;;  %p24598_p9 = scmp.ne.s32.totalorder %s24582_s24, 0 }
  0x99   : > { %19387 = dma.done.wait (%p24598_p9), [#allocation7], 1280  }
  0x9a   : > { %19389 = vsyncadd (%p24598_p9), [#allocation7], 4294966016  ;;  %s14590_s0 = sshll.u32 %s19698_s2, 6  ;;  %s278_s1 = scalar_lea.sflag [#allocation10], %s19698_s2 }
  0x9b   : > { %s19714_s29 = scalar_lea.vmem [#allocation9], %s14590_s0 }
  0x9c   : > { %19391 = dma.done.wait (%p24597_p10), %s278_s1, 1024  }
  0x9d   : > { %19393 = vsyncadd (%p24597_p10), %s278_s1, 4294966272  ;;  %vm512_vm0 = vcmask 130048   ;;  %v510_v0 = vld [vmem:[#allocation8] sm:$0xff]  ;;  %v511_v1 = vld [vmem:[#allocation8 + $0x8] sm:$0xff]  ;;  %s19072_s24 = smul.u32 768, %s19698_s2  ;;  %p25715_p7 = scmp.ne.s32.totalorder %s24585_s27, 0 }
  0x9e   : > { %v318_v2 = vld [vmem:[%s19702_s9] sm:$0xff]  ;;  %v18681_v3 = vpack.c.bf16 %v511_v1, %v510_v0  ;;  %v319_v4 = vld [vmem:[%s19702_s9 + $0x8] sm:$0xff]  ;;  %v320_v5 = vld [vmem:[%s19702_s9 + $0x10] sm:$0xff]  ;;  %s19073_s10 = smul.u32 12288, %s19412_s18  ;;  %s14431_s18 = scalar_lea.sflag [#allocation5], %s19698_s2 }
  0x9f   : > { %16857 = vmatprep.mubr.msk.f32.mxu0 %vm512_vm0, %v318_v2  ;;  %v321_v6 = vld [vmem:[%s19702_s9 + $0x18] sm:$0xff]  ;;  %v322_v7 = vld [vmem:[%s19702_s9 + $0x20] sm:$0xff]  ;;  %v323_v8 = vld [vmem:[%s19702_s9 + $0x28] sm:$0xff]  ;;  %s21482_s26 = scalar_lea.vmem [#allocation11], %s19072_s24  ;;  %s19428_s21 = smov [#allocation11]  }
  0xa0   : > { %18682 = vmatprep.subr.bf16.mxu0 %v18681_v3  ;;  %v324_v9 = vld [vmem:[%s19702_s9 + $0x30] sm:$0xff]  ;;  %v325_v10 = vld [vmem:[%s19702_s9 + $0x38] sm:$0xff]  ;;  %v326_v11 = vld [vmem:[%s19702_s9 + $0x40] sm:$0xff]  ;;  %s14446_s6 = sshll.u32 %s21482_s26, 4  ;;  %s24261_s8 = scalar_lea.hbm %s24318_s4, %s19073_s10  ;;  %s24263_s6 = int_to_ptr.vmem [resolvable:$true] %s14446_s6 }
  0xa1   : > { %18684 = vmatpush3.bf16.msra.mxu0 %v18681_v3  ;;  %v327_v12 = vld [vmem:[%s19702_s9 + $0x48] sm:$0xff]  ;;  %v328_v13 = vld [vmem:[%s19702_s9 + $0x50] sm:$0xff]  ;;  %v329_v14 = vld [vmem:[%s19702_s9 + $0x58] sm:$0xff]  ;;  %s19330_s11 = scalar_lea.vmem %s24263_s6, 12288  ;;  %s19334_s25 = sshll.u32 %s19428_s21, 4  ;;  %s19335_s25 = int_to_ptr.vmem [resolvable:$false] %s19334_s25 }
  0xa2   : > { %v330_v15 = vld [vmem:[%s19702_s9 + $0x60] sm:$0xff]  ;;  %v331_v16 = vld [vmem:[%s19702_s9 + $0x68] sm:$0xff]  ;;  %v332_v17 = vld [vmem:[%s19702_s9 + $0x70] sm:$0xff]  ;;  %p19331_p12 = scmp.ne.s32.totalorder %s24263_s6, %s19330_s11  ;;  %s19336_s30 = scalar_lea.vmem %s19335_s25, 24576 }
  0xa3   : > { %v333_v18 = vld [vmem:[%s19702_s9 + $0x78] sm:$0xff]  ;;  %v334_v19 = vld [vmem:[%s19702_s9 + $0x80] sm:$0xff]  ;;  %v335_v20 = vld [vmem:[%s19702_s9 + $0x88] sm:$0xff]  ;;  %p19337_p5 = scmp.lt.s32.totalorder %s24263_s6, %s19335_s25  ;;  %p19338_p2 = scmp.lt.s32.totalorder %s19336_s30, %s19330_s11 }
  0xa4   : > { %16858 = vmatmul.mubr.msk.f32.vlgmr.msra.gmra.mrb[0].mxu0 %vm512_vm0, %v319_v4  ;;  %v336_v21 = vld [vmem:[%s19702_s9 + $0x90] sm:$0xff]  ;;  %v337_v22 = vld [vmem:[%s19702_s9 + $0x98] sm:$0xff]  ;;  %v338_v23 = vld [vmem:[%s19702_s9 + $0xa0] sm:$0xff]  ;;  %p19332_p0 = pnand %p19331_p12, %p25715_p7 }
  0xa5   : > { %16860 = vmatprep.mubr.msk.f32.mxu0 %vm512_vm0, %v320_v5  ;;  %v339_v24 = vld [vmem:[%s19702_s9 + $0xa8] sm:$0xff]  ;;  %v340_v25 = vld [vmem:[%s19702_s9 + $0xb0] sm:$0xff]  ;;  %v341_v26 = vld [vmem:[%s19702_s9 + $0xb8] sm:$0xff]  ;;  %p19339_p6 = por %p19338_p2, %p19337_p5 }
  0xa6   : > { %v342_v27 = vld [vmem:[%s19702_s9 + $0xc0] sm:$0xff]  ;;  %v343_v28 = vld [vmem:[%s19702_s9 + $0xc8] sm:$0xff]  ;;  %v344_v29 = vld [vmem:[%s19702_s9 + $0xd0] sm:$0xff]  ;;  %p19333_p11 = pneg %p19332_p0 }
  0xa7   : > { %v345_v30 = vld [vmem:[%s19702_s9 + $0xd8] sm:$0xff]  ;;  %v346_v31 = vld [vmem:[%s19702_s9 + $0xe0] sm:$0xff]  ;;  %v347_v32 = vld [vmem:[%s19702_s9 + $0xe8] sm:$0xff] }
  0xa8   : > { %16861 = vmatmul.mubr.msk.f32.gmra.mrb[2].mxu0 %vm512_vm0, %v321_v6  ;;  %v348_v33 = vld [vmem:[%s19702_s9 + $0xf0] sm:$0xff]  ;;  %v349_v34 = vld [vmem:[%s19702_s9 + $0xf8] sm:$0xff]  ;;  %v350_v35 = vld [vmem:[%s19702_s9 + $0x100] sm:$0xff]  ;;  %p19340_p13 = pnand %p19339_p6, %p19333_p11 }
  0xa9   : > { %16863 = vmatprep.mubr.msk.f32.mxu0 %vm512_vm0, %v322_v7  ;;  %v351_v36 = vld [vmem:[%s19702_s9 + $0x108] sm:$0xff]  ;;  %v352_v37 = vld [vmem:[%s19702_s9 + $0x110] sm:$0xff]  ;;  %v353_v38 = vld [vmem:[%s19702_s9 + $0x118] sm:$0xff] }
  0xaa   : > { %v354_v39 = vld [vmem:[%s19702_s9 + $0x120] sm:$0xff]  ;;  %v355_v40 = vld [vmem:[%s19702_s9 + $0x128] sm:$0xff]  ;;  %v356_v41 = vld [vmem:[%s19702_s9 + $0x130] sm:$0xff] }
  0xab   : > { %v357_v42 = vld [vmem:[%s19702_s9 + $0x138] sm:$0xff]  ;;  %v358_v43 = vld [vmem:[%s19702_s9 + $0x140] sm:$0xff]  ;;  %v359_v44 = vld [vmem:[%s19702_s9 + $0x148] sm:$0xff] }
  0xac   : > { %16864 = vmatmul.mubr.msk.f32.gmra.mrb[4].mxu0 %vm512_vm0, %v323_v8  ;;  %v360_v45 = vld [vmem:[%s19702_s9 + $0x150] sm:$0xff]  ;;  %v361_v46 = vld [vmem:[%s19702_s9 + $0x158] sm:$0xff]  ;;  %v362_v47 = vld [vmem:[%s19702_s9 + $0x160] sm:$0xff] }
  0xad   : > { %16866 = vmatprep.mubr.msk.f32.mxu0 %vm512_vm0, %v324_v9  ;;  %v363_v48 = vld [vmem:[%s19702_s9 + $0x168] sm:$0xff]  ;;  %v364_v49 = vld [vmem:[%s19702_s9 + $0x170] sm:$0xff]  ;;  %v365_v50 = vld [vmem:[%s19702_s9 + $0x178] sm:$0xff] }
  0xae   : > { %v366_v51 = vld [vmem:[%s19702_s9 + $0x180] sm:$0xff]  ;;  %v367_v52 = vld [vmem:[%s19702_s9 + $0x188] sm:$0xff]  ;;  %v368_v53 = vld [vmem:[%s19702_s9 + $0x190] sm:$0xff] }
  0xaf   : > { %v369_v54 = vld [vmem:[%s19702_s9 + $0x198] sm:$0xff]  ;;  %v370_v55 = vld [vmem:[%s19702_s9 + $0x1a0] sm:$0xff]  ;;  %v371_v56 = vld [vmem:[%s19702_s9 + $0x1a8] sm:$0xff] }
  0xb0   : > { %16867 = vmatmul.mubr.msk.f32.gmra.mrb[6].mxu0 %vm512_vm0, %v325_v10  ;;  %v372_v57 = vld [vmem:[%s19702_s9 + $0x1b0] sm:$0xff]  ;;  %v373_v58 = vld [vmem:[%s19702_s9 + $0x1b8] sm:$0xff]  ;;  %v374_v59 = vld [vmem:[%s19702_s9 + $0x1c0] sm:$0xff] }
  0xb1   : > { %16869 = vmatprep.mubr.msk.f32.mxu0 %vm512_vm0, %v326_v11  ;;  %v375_v60 = vld [vmem:[%s19702_s9 + $0x1c8] sm:$0xff]  ;;  %v376_v61 = vld [vmem:[%s19702_s9 + $0x1d0] sm:$0xff]  ;;  %v377_v62 = vld [vmem:[%s19702_s9 + $0x1d8] sm:$0xff] }
  0xb2   : > { %v378_v63 = vld [vmem:[%s19702_s9 + $0x1e0] sm:$0xff]  ;;  %v379_v0 = vld [vmem:[%s19702_s9 + $0x1e8] sm:$0xff]  ;;  %v380_v1 = vld [vmem:[%s19702_s9 + $0x1f0] sm:$0xff] }
  0xb3   : > { %v381_v2 = vld [vmem:[%s19702_s9 + $0x1f8] sm:$0xff]  ;;  %v382_v3 = vld [vmem:[%s19702_s9 + $0x200] sm:$0xff]  ;;  %v383_v4 = vld [vmem:[%s19702_s9 + $0x208] sm:$0xff] }
  0xb4   : > { %16870 = vmatmul.mubr.msk.f32.gmra.mrb[8].mxu0 %vm512_vm0, %v327_v12  ;;  %v384_v5 = vld [vmem:[%s19702_s9 + $0x210] sm:$0xff]  ;;  %v385_v6 = vld [vmem:[%s19702_s9 + $0x218] sm:$0xff]  ;;  %v386_v7 = vld [vmem:[%s19702_s9 + $0x220] sm:$0xff] }
  0xb5   : > { %16872 = vmatprep.mubr.msk.f32.mxu0 %vm512_vm0, %v328_v13  ;;  %v387_v8 = vld [vmem:[%s19702_s9 + $0x228] sm:$0xff]  ;;  %v388_v9 = vld [vmem:[%s19702_s9 + $0x230] sm:$0xff]  ;;  %v19860_v10 = vld [vmem:[#allocation6] sm:$0xff] }
  0xb6   : > { %17149 = vmatprep.mubr.msk.f32.mxu1 %vm512_vm0, %v19860_v10  ;;  %v389_v11 = vld [vmem:[%s19702_s9 + $0x238] sm:$0xff]  ;;  %v390_v12 = vld [vmem:[%s19702_s9 + $0x240] sm:$0xff]  ;;  %v391_v13 = vld [vmem:[%s19702_s9 + $0x248] sm:$0xff] }
  0xb8   : > { %16873 = vmatmul.mubr.msk.f32.gmra.mrb[10].mxu0 %vm512_vm0, %v329_v14  ;;  %v392_v14 = vld [vmem:[%s19702_s9 + $0x250] sm:$0xff] }
  0xb9   : > { %16875 = vmatprep.mubr.msk.f32.mxu0 %vm512_vm0, %v330_v15  ;;  %v393_v15 = vld [vmem:[%s19702_s9 + $0x258] sm:$0xff] }
  0xbc   : > { %16876 = vmatmul.mubr.msk.f32.gmra.mrb[12].mxu0 %vm512_vm0, %v331_v16  ;;  %v394_v16 = vld [vmem:[%s19702_s9 + $0x260] sm:$0xff] }
  0xbd   : > { %16878 = vmatprep.mubr.msk.f32.mxu0 %vm512_vm0, %v332_v17  ;;  %v395_v17 = vld [vmem:[%s19702_s9 + $0x268] sm:$0xff] }
  0xc0   : > { %16879 = vmatmul.mubr.msk.f32.gmra.mrb[14].mxu0 %vm512_vm0, %v333_v18  ;;  %v396_v18 = vld [vmem:[%s19702_s9 + $0x270] sm:$0xff] }
  0xc1   : > { %16881 = vmatprep.mubr.msk.f32.mxu0 %vm512_vm0, %v334_v19  ;;  %v397_v19 = vld [vmem:[%s19702_s9 + $0x278] sm:$0xff] }
  0xc4   : > { %16882 = vmatmul.mubr.msk.f32.gmra.mrb[16].mxu0 %vm512_vm0, %v335_v20  ;;  %v398_v20 = vld [vmem:[%s19702_s9 + $0x280] sm:$0xff] }
  0xc5   : > { %16884 = vmatprep.mubr.msk.f32.mxu0 %vm512_vm0, %v336_v21  ;;  %v399_v21 = vld [vmem:[%s19702_s9 + $0x288] sm:$0xff] }
  0xc8   : > { %16885 = vmatmul.mubr.msk.f32.gmra.mrb[18].mxu0 %vm512_vm0, %v337_v22  ;;  %v400_v22 = vld [vmem:[%s19702_s9 + $0x290] sm:$0xff] }
  0xc9   : > { %16887 = vmatprep.mubr.msk.f32.mxu0 %vm512_vm0, %v338_v23  ;;  %v401_v23 = vld [vmem:[%s19702_s9 + $0x298] sm:$0xff] }
  0xcc   : > { %16888 = vmatmul.mubr.msk.f32.gmra.mrb[20].mxu0 %vm512_vm0, %v339_v24  ;;  %v402_v24 = vld [vmem:[%s19702_s9 + $0x2a0] sm:$0xff] }
  0xcd   : > { %16890 = vmatprep.mubr.msk.f32.mxu0 %vm512_vm0, %v340_v25  ;;  %v403_v25 = vld [vmem:[%s19702_s9 + $0x2a8] sm:$0xff] }
  0xd0   : > { %16891 = vmatmul.mubr.msk.f32.gmra.mrb[22].mxu0 %vm512_vm0, %v341_v26  ;;  %v404_v26 = vld [vmem:[%s19702_s9 + $0x2b0] sm:$0xff] }
  0xd1   : > { %16893 = vmatprep.mubr.msk.f32.mxu0 %vm512_vm0, %v342_v27  ;;  %v405_v27 = vld [vmem:[%s19702_s9 + $0x2b8] sm:$0xff] }
  0xd4   : > { %16894 = vmatmul.mubr.msk.f32.gmra.mrb[24].mxu0 %vm512_vm0, %v343_v28  ;;  %v406_v28 = vld [vmem:[%s19702_s9 + $0x2c0] sm:$0xff] }
  0xd5   : > { %16896 = vmatprep.mubr.msk.f32.mxu0 %vm512_vm0, %v344_v29  ;;  %v407_v29 = vld [vmem:[%s19702_s9 + $0x2c8] sm:$0xff] }
  0xd8   : > { %16897 = vmatmul.mubr.msk.f32.gmra.mrb[26].mxu0 %vm512_vm0, %v345_v30  ;;  %v408_v30 = vld [vmem:[%s19702_s9 + $0x2d0] sm:$0xff] }
  0xd9   : > { %16899 = vmatprep.mubr.msk.f32.mxu0 %vm512_vm0, %v346_v31  ;;  %v409_v31 = vld [vmem:[%s19702_s9 + $0x2d8] sm:$0xff] }
  0xdc   : > { %16900 = vmatmul.mubr.msk.f32.gmra.mrb[28].mxu0 %vm512_vm0, %v347_v32  ;;  %v410_v32 = vld [vmem:[%s19702_s9 + $0x2e0] sm:$0xff] }
  0xdd   : > { %16902 = vmatprep.mubr.msk.f32.mxu0 %vm512_vm0, %v348_v33  ;;  %v411_v33 = vld [vmem:[%s19702_s9 + $0x2e8] sm:$0xff] }
  0xe0   : > { %16903 = vmatmul.mubr.msk.f32.gmra.mrb[30].mxu0 %vm512_vm0, %v349_v34  ;;  %v412_v34 = vld [vmem:[%s19702_s9 + $0x2f0] sm:$0xff] }
  0xe1   : > { %16905 = vmatprep.mubr.msk.f32.mxu0 %vm512_vm0, %v350_v35  ;;  %v413_v35 = vld [vmem:[%s19702_s9 + $0x2f8] sm:$0xff] }
  0xe4   : > { %16906 = vmatmul.mubr.msk.f32.gmra.mrb[32].mxu0 %vm512_vm0, %v351_v36  ;;  %v414_v36 = vld [vmem:[%s19702_s9 + $0x300] sm:$0xff] }
  0xe5   : > { %16908 = vmatprep.mubr.msk.f32.mxu0 %vm512_vm0, %v352_v37  ;;  %v415_v37 = vld [vmem:[%s19702_s9 + $0x308] sm:$0xff] }
  0xe8   : > { %16909 = vmatmul.mubr.msk.f32.gmra.mrb[34].mxu0 %vm512_vm0, %v353_v38  ;;  %v416_v38 = vld [vmem:[%s19702_s9 + $0x310] sm:$0xff] }
  0xe9   : > { %16911 = vmatprep.mubr.msk.f32.mxu0 %vm512_vm0, %v354_v39  ;;  %v417_v39 = vld [vmem:[%s19702_s9 + $0x318] sm:$0xff] }
  0xec   : > { %16912 = vmatmul.mubr.msk.f32.gmra.mrb[36].mxu0 %vm512_vm0, %v355_v40  ;;  %v418_v40 = vld [vmem:[%s19702_s9 + $0x320] sm:$0xff] }
  0xed   : > { %16914 = vmatprep.mubr.msk.f32.mxu0 %vm512_vm0, %v356_v41  ;;  %v419_v41 = vld [vmem:[%s19702_s9 + $0x328] sm:$0xff] }
  0xf0   : > { %16915 = vmatmul.mubr.msk.f32.gmra.mrb[38].mxu0 %vm512_vm0, %v357_v42  ;;  %v420_v42 = vld [vmem:[%s19702_s9 + $0x330] sm:$0xff] }
  0xf1   : > { %16917 = vmatprep.mubr.msk.f32.mxu0 %vm512_vm0, %v358_v43  ;;  %v421_v43 = vld [vmem:[%s19702_s9 + $0x338] sm:$0xff] }
  0xf4   : > { %16918 = vmatmul.mubr.msk.f32.gmra.mrb[40].mxu0 %vm512_vm0, %v359_v44  ;;  %v422_v44 = vld [vmem:[%s19702_s9 + $0x340] sm:$0xff] }
  0xf5   : > { %16920 = vmatprep.mubr.msk.f32.mxu0 %vm512_vm0, %v360_v45  ;;  %v423_v45 = vld [vmem:[%s19702_s9 + $0x348] sm:$0xff] }
  0xf8   : > { %16921 = vmatmul.mubr.msk.f32.gmra.mrb[42].mxu0 %vm512_vm0, %v361_v46  ;;  %v424_v46 = vld [vmem:[%s19702_s9 + $0x350] sm:$0xff] }
  0xf9   : > { %16923 = vmatprep.mubr.msk.f32.mxu0 %vm512_vm0, %v362_v47  ;;  %v425_v47 = vld [vmem:[%s19702_s9 + $0x358] sm:$0xff] }
  0xfc   : > { %16924 = vmatmul.mubr.msk.f32.gmra.mrb[44].mxu0 %vm512_vm0, %v363_v48  ;;  %v426_v48 = vld [vmem:[%s19702_s9 + $0x360] sm:$0xff] }
  0xfd   : > { %16926 = vmatprep.mubr.msk.f32.mxu0 %vm512_vm0, %v364_v49 }
 0x100   : > { %16927 = vmatmul.mubr.msk.f32.gmra.mrb[46].mxu0 %vm512_vm0, %v365_v50 }
 0x101   : > { %16929 = vmatprep.mubr.msk.f32.mxu0 %vm512_vm0, %v366_v51 }
 0x104   : > { %16930 = vmatmul.mubr.msk.f32.gmra.mrb[48].mxu0 %vm512_vm0, %v367_v52  ;;  %v427_v52 = vld [vmem:[%s19702_s9 + $0x368] sm:$0xff] }
 0x105   : > { %16932 = vmatprep.mubr.msk.f32.mxu0 %vm512_vm0, %v368_v53  ;;  %v428_v53 = vld [vmem:[%s19702_s9 + $0x370] sm:$0xff] }
 0x108   : > { %16933 = vmatmul.mubr.msk.f32.gmra.mrb[50].mxu0 %vm512_vm0, %v369_v54 }
 0x109   : > { %16935 = vmatprep.mubr.msk.f32.mxu0 %vm512_vm0, %v370_v55 }
 0x10c   : > { %16936 = vmatmul.mubr.msk.f32.gmra.mrb[52].mxu0 %vm512_vm0, %v371_v56  ;;  %v19945_v56 = vld [vmem:[#allocation6 + $0x8] sm:$0xff] }
 0x10d   : > { %16938 = vmatprep.mubr.msk.f32.mxu0 %vm512_vm0, %v372_v57 }
 0x110   : > { %16939 = vmatmul.mubr.msk.f32.gmra.mrb[54].mxu0 %vm512_vm0, %v373_v58  ;;  %v429_v58 = vld [vmem:[%s19702_s9 + $0x378] sm:$0xff] }
 0x111   : > { %16941 = vmatprep.mubr.msk.f32.mxu0 %vm512_vm0, %v374_v59  ;;  %v19951_v59 = vld [vmem:[#allocation6 + $0x10] sm:$0xff] }
 0x114   : > { %16942 = vmatmul.mubr.msk.f32.gmra.mrb[56].mxu0 %vm512_vm0, %v375_v60  ;;  %v430_v60 = vld [vmem:[%s19702_s9 + $0x380] sm:$0xff] }
 0x115   : > { %16944 = vmatprep.mubr.msk.f32.mxu0 %vm512_vm0, %v376_v61 }
 0x118   : > { %16945 = vmatmul.mubr.msk.f32.gmra.mrb[58].mxu0 %vm512_vm0, %v377_v62 }
 0x119   : > { %16947 = vmatprep.mubr.msk.f32.mxu0 %vm512_vm0, %v378_v63  ;;  %v19959_v63 = vld [vmem:[#allocation6 + $0x18] sm:$0xff] }
 0x11c   : > { %16948 = vmatmul.mubr.msk.f32.gmra.mrb[60].mxu0 %vm512_vm0, %v379_v0 }
 0x11d   : > { %16950 = vmatprep.mubr.msk.f32.mxu0 %vm512_vm0, %v380_v1  ;;  %v431_v1 = vld [vmem:[%s19702_s9 + $0x388] sm:$0xff] }
 0x120   : > { %16951 = vmatmul.mubr.msk.f32.gmra.mrb[62].mxu0 %vm512_vm0, %v381_v2  ;;  %v19965_v2 = vld [vmem:[#allocation6 + $0x20] sm:$0xff] }
 0x121   : > { %16953 = vmatprep.mubr.msk.f32.mxu0 %vm512_vm0, %v382_v3  ;;  %v432_v3 = vld [vmem:[%s19702_s9 + $0x390] sm:$0xff] }
 0x124   : > { %16954 = vmatmul.mubr.msk.f32.gmra.mrb[64].mxu0 %vm512_vm0, %v383_v4 }
 0x125   : > { %16956 = vmatprep.mubr.msk.f32.mxu0 %vm512_vm0, %v384_v5 }
 0x128   : > { %16957 = vmatmul.mubr.msk.f32.gmra.mrb[66].mxu0 %vm512_vm0, %v385_v6  ;;  %v19973_v6 = vld [vmem:[#allocation6 + $0x28] sm:$0xff] }
 0x129   : > { %16959 = vmatprep.mubr.msk.f32.mxu0 %vm512_vm0, %v386_v7 }
 0x12c   : > { %16960 = vmatmul.mubr.msk.f32.gmra.mrb[68].mxu0 %vm512_vm0, %v387_v8  ;;  %v433_v8 = vld [vmem:[%s19702_s9 + $0x398] sm:$0xff] }
 0x12d   : > { %16962 = vmatprep.mubr.msk.f32.mxu0 %vm512_vm0, %v388_v9  ;;  %v19977_v9 = vld [vmem:[#allocation6 + $0x30] sm:$0xff] }
 0x130   : > { %16963 = vmatmul.mubr.msk.f32.gmra.mrb[70].mxu0 %vm512_vm0, %v389_v11  ;;  %v434_v11 = vld [vmem:[%s19702_s9 + $0x3a0] sm:$0xff] }
 0x131   : > { %16965 = vmatprep.mubr.msk.f32.mxu0 %vm512_vm0, %v390_v12 }
 0x134   : > { %16966 = vmatmul.mubr.msk.f32.gmra.mrb[72].mxu0 %vm512_vm0, %v391_v13 }
 0x135   : > { %16968 = vmatprep.mubr.msk.f32.mxu0 %vm512_vm0, %v392_v14  ;;  %v19985_v14 = vld [vmem:[#allocation6 + $0x38] sm:$0xff] }
 0x138   : > { %16969 = vmatmul.mubr.msk.f32.gmra.mrb[74].mxu0 %vm512_vm0, %v393_v15 }
 0x139   : > { %16971 = vmatprep.mubr.msk.f32.mxu0 %vm512_vm0, %v394_v16  ;;  %v435_v16 = vld [vmem:[%s19702_s9 + $0x3a8] sm:$0xff] }
 0x13c   : > { %16972 = vmatmul.mubr.msk.f32.gmra.mrb[76].mxu0 %vm512_vm0, %v395_v17  ;;  %v436_v17 = vld [vmem:[%s19702_s9 + $0x3b0] sm:$0xff] }
 0x13d   : > { %16974 = vmatprep.mubr.msk.f32.mxu0 %vm512_vm0, %v396_v18 }
 0x140   : > { %16975 = vmatmul.mubr.msk.f32.gmra.mrb[78].mxu0 %vm512_vm0, %v397_v19 }
 0x141   : > { %16977 = vmatprep.mubr.msk.f32.mxu0 %vm512_vm0, %v398_v20 }
 0x144   : > { %16978 = vmatmul.mubr.msk.f32.gmra.mrb[80].mxu0 %vm512_vm0, %v399_v21  ;;  %v437_v21 = vld [vmem:[%s19702_s9 + $0x3b8] sm:$0xff] }
 0x145   : > { %16980 = vmatprep.mubr.msk.f32.mxu0 %vm512_vm0, %v400_v22  ;;  %v438_v22 = vld [vmem:[%s19702_s9 + $0x3c0] sm:$0xff] }
 0x148   : > { %16981 = vmatmul.mubr.msk.f32.gmra.mrb[82].mxu0 %vm512_vm0, %v401_v23 }
 0x149   : > { %16983 = vmatprep.mubr.msk.f32.mxu0 %vm512_vm0, %v402_v24 }
 0x14c   : > { %16984 = vmatmul.mubr.msk.f32.gmra.mrb[84].mxu0 %vm512_vm0, %v403_v25 }
 0x14d   : > { %16986 = vmatprep.mubr.msk.f32.mxu0 %vm512_vm0, %v404_v26  ;;  %v439_v26 = vld [vmem:[%s19702_s9 + $0x3c8] sm:$0xff] }
 0x150   : > { %16987 = vmatmul.mubr.msk.f32.gmra.mrb[86].mxu0 %vm512_vm0, %v405_v27  ;;  %v440_v27 = vld [vmem:[%s19702_s9 + $0x3d0] sm:$0xff] }
 0x151   : > { %16989 = vmatprep.mubr.msk.f32.mxu0 %vm512_vm0, %v406_v28 }
 0x154   : > { %16990 = vmatmul.mubr.msk.f32.gmra.mrb[88].mxu0 %vm512_vm0, %v407_v29 }
 0x155   : > { %16992 = vmatprep.mubr.msk.f32.mxu0 %vm512_vm0, %v408_v30 }
 0x158   : > { %16993 = vmatmul.mubr.msk.f32.gmra.mrb[90].mxu0 %vm512_vm0, %v409_v31  ;;  %v441_v31 = vld [vmem:[%s19702_s9 + $0x3d8] sm:$0xff] }
 0x159   : > { %16995 = vmatprep.mubr.msk.f32.mxu0 %vm512_vm0, %v410_v32  ;;  %v442_v32 = vld [vmem:[%s19702_s9 + $0x3e0] sm:$0xff] }
 0x15c   : > { %16996 = vmatmul.mubr.msk.f32.gmra.mrb[92].mxu0 %vm512_vm0, %v411_v33 }
 0x15d   : > { %16998 = vmatprep.mubr.msk.f32.mxu0 %vm512_vm0, %v412_v34 }
 0x160   : > { %16999 = vmatmul.mubr.msk.f32.gmra.mrb[94].mxu0 %vm512_vm0, %v413_v35 }
 0x161   : > { %17001 = vmatprep.mubr.msk.f32.mxu0 %vm512_vm0, %v414_v36  ;;  %v443_v36 = vld [vmem:[%s19702_s9 + $0x3e8] sm:$0xff] }
 0x164   : > { %17002 = vmatmul.mubr.msk.f32.gmra.mrb[96].mxu0 %vm512_vm0, %v415_v37  ;;  %v444_v37 = vld [vmem:[%s19702_s9 + $0x3f0] sm:$0xff] }
 0x165   : > { %17004 = vmatprep.mubr.msk.f32.mxu0 %vm512_vm0, %v416_v38 }
 0x168   : > { %17005 = vmatmul.mubr.msk.f32.gmra.mrb[98].mxu0 %vm512_vm0, %v417_v39 }
 0x169   : > { %17007 = vmatprep.mubr.msk.f32.mxu0 %vm512_vm0, %v418_v40 }
 0x16c   : > { %17008 = vmatmul.mubr.msk.f32.gmra.mrb[100].mxu0 %vm512_vm0, %v419_v41  ;;  %v445_v41 = vld [vmem:[%s19702_s9 + $0x3f8] sm:$0xff] }
 0x16d   : > { %17010 = vmatprep.mubr.msk.f32.mxu0 %vm512_vm0, %v420_v42  ;;  %v446_v42 = vld [vmem:[%s19702_s9 + $0x400] sm:$0xff] }
 0x170   : > { %17011 = vmatmul.mubr.msk.f32.gmra.mrb[102].mxu0 %vm512_vm0, %v421_v43 }
 0x171   : > { %17013 = vmatprep.mubr.msk.f32.mxu0 %vm512_vm0, %v422_v44 }
 0x174   : > { %17014 = vmatmul.mubr.msk.f32.gmra.mrb[104].mxu0 %vm512_vm0, %v423_v45 }
 0x175   : > { %17016 = vmatprep.mubr.msk.f32.mxu0 %vm512_vm0, %v424_v46  ;;  %v447_v46 = vld [vmem:[%s19702_s9 + $0x408] sm:$0xff] }
 0x177   : > { %v16859_v49 = vpop.f32.mrb[0].mxu0 }
 0x178   : > { %v1155_v50 = vpop.f32.mrb[1].mxu0  ;;  %17017 = vmatmul.mubr.msk.f32.gmra.mrb[106].mxu0 %vm512_vm0, %v425_v47  ;;  %v448_v47 = vld [vmem:[%s19702_s9 + $0x410] sm:$0xff] }
 0x179   : > { %17019 = vmatprep.mubr.msk.f32.mxu0 %vm512_vm0, %v426_v48  ;;  %v18685_v51 = vpack.c.bf16 %v16859_v49, %v1155_v50 }
 0x17b   : > { %v16862_v54 = vpop.f32.mrb[2].mxu0  ;;  %18686 = vmatprep.subr.bf16.mxu1 %v18685_v51 }
 0x17c   : > { %v1165_v55 = vpop.f32.mrb[3].mxu0  ;;  %17020 = vmatmul.mubr.msk.f32.gmra.mrb[108].mxu0 %vm512_vm0, %v427_v52  ;;  %18688 = vmatpush3.bf16.msra.mxu1 %v18685_v51  ;;  %v449_v51 = vld [vmem:[%s19702_s9 + $0x418] sm:$0xff]  ;;  %v450_v52 = vld [vmem:[%s19702_s9 + $0x420] sm:$0xff] }
 0x17d   : > { %v19947_v57 = vpack.c.bf16 %v16862_v54, %v1165_v55  ;;  %17022 = vmatprep.mubr.msk.f32.mxu0 %vm512_vm0, %v428_v53 }
 0x17f   : > { %v16865_v61 = vpop.f32.mrb[4].mxu0  ;;  %17150 = vmatmul.mubr.msk.f32.vlgmr.msra.gmra.mrb[0].mxu1 %vm512_vm0, %v19945_v56 }
 0x180   : > { %v1175_v62 = vpop.f32.mrb[5].mxu0  ;;  %17023 = vmatmul.mubr.msk.f32.gmra.mrb[110].mxu0 %vm512_vm0, %v429_v58  ;;  %17152 = vmatprep.mubr.msk.f32.mxu1 %vm512_vm0, %v19951_v59  ;;  %v451_v58 = vld [vmem:[%s19702_s9 + $0x428] sm:$0xff] }
 0x181   : > { %v19961_v0 = vpack.c.bf16 %v16865_v61, %v1175_v62  ;;  %17025 = vmatprep.mubr.msk.f32.mxu0 %vm512_vm0, %v430_v60  ;;  %v452_v60 = vld [vmem:[%s19702_s9 + $0x430] sm:$0xff] }
 0x183   : > { %24599 = vst [vmem:[#allocation16_spill] sm:$0xff] %v19961_v0  ;;  %v16868_v4 = vpop.f32.mrb[6].mxu0  ;;  %17153 = vmatmul.mubr.msk.f32.gmra.mrb[2].mxu1 %vm512_vm0, %v19959_v63 }
 0x184   : > { %v1185_v5 = vpop.f32.mrb[7].mxu0  ;;  %17026 = vmatmul.mubr.msk.f32.gmra.mrb[112].mxu0 %vm512_vm0, %v431_v1  ;;  %17155 = vmatprep.mubr.msk.f32.mxu1 %vm512_vm0, %v19965_v2 }
 0x185   : > { %v18781_v7 = vpack.c.bf16 %v16868_v4, %v1185_v5  ;;  %17028 = vmatprep.mubr.msk.f32.mxu0 %vm512_vm0, %v432_v3  ;;  %v453_v3 = vld [vmem:[%s19702_s9 + $0x438] sm:$0xff]  ;;  %v454_v4 = vld [vmem:[%s19702_s9 + $0x440] sm:$0xff] }
 0x187   : > { %v16871_v12 = vpop.f32.mrb[8].mxu0  ;;  %18782 = vmatprep.subr.bf16.mxu0 %v18781_v7  ;;  %17156 = vmatmul.mubr.msk.f32.gmra.mrb[4].mxu1 %vm512_vm0, %v19973_v6 }
 0x188   : > { %v1195_v13 = vpop.f32.mrb[9].mxu0  ;;  %17029 = vmatmul.mubr.msk.f32.gmra.mrb[114].mxu0 %vm512_vm0, %v433_v8  ;;  %17158 = vmatprep.mubr.msk.f32.mxu1 %vm512_vm0, %v19977_v9 }
 0x189   : > { %v19987_v15 = vpack.c.bf16 %v16871_v12, %v1195_v13  ;;  %18784 = vmatpush3.bf16.msra.mxu0 %v18781_v7  ;;  %17031 = vmatprep.mubr.msk.f32.mxu0 %vm512_vm0, %v434_v11  ;;  %v455_v11 = vld [vmem:[%s19702_s9 + $0x448] sm:$0xff]  ;;  %v456_v12 = vld [vmem:[%s19702_s9 + $0x450] sm:$0xff] }
 0x18b   : > { %v16874_v18 = vpop.f32.mrb[10].mxu0  ;;  %17159 = vmatmul.mubr.msk.f32.gmra.mrb[6].mxu1 %vm512_vm0, %v19985_v14 }
 0x18c   : > { %v1205_v19 = vpop.f32.mrb[11].mxu0  ;;  %17032 = vmatmul.mubr.msk.f32.gmra.mrb[116].mxu0 %vm512_vm0, %v435_v16  ;;  %17165 = vmatprep.mubr.msk.f32.mxu1 %vm512_vm0, %v19860_v10 }
 0x18d   : > { %v19997_v20 = vpack.c.bf16 %v16874_v18, %v1205_v19  ;;  %17034 = vmatprep.mubr.msk.f32.mxu0 %vm512_vm0, %v436_v17  ;;  %v457_v18 = vld [vmem:[%s19702_s9 + $0x458] sm:$0xff]  ;;  %v458_v19 = vld [vmem:[%s19702_s9 + $0x460] sm:$0xff] }
 0x18f   : > { %v16877_v23 = vpop.f32.mrb[12].mxu0 }
 0x190   : > { %v1215_v24 = vpop.f32.mrb[13].mxu0  ;;  %17035 = vmatmul.mubr.msk.f32.gmra.mrb[118].mxu0 %vm512_vm0, %v437_v21 }
 0x191   : > { %v20003_v25 = vpack.c.bf16 %v16877_v23, %v1215_v24  ;;  %17037 = vmatprep.mubr.msk.f32.mxu0 %vm512_vm0, %v438_v22  ;;  %v459_v24 = vld [vmem:[%s19702_s9 + $0x468] sm:$0xff] }
 0x193   : > { %24600 = vst [vmem:[#allocation17_spill] sm:$0xff] %v20003_v25  ;;  %v16880_v28 = vpop.f32.mrb[14].mxu0 }
 0x194   : > { %v1225_v29 = vpop.f32.mrb[15].mxu0  ;;  %17038 = vmatmul.mubr.msk.f32.gmra.mrb[120].mxu0 %vm512_vm0, %v439_v26  ;;  %v460_v26 = vld [vmem:[%s19702_s9 + $0x470] sm:$0xff] }
 0x195   : > { %v20009_v30 = vpack.c.bf16 %v16880_v28, %v1225_v29  ;;  %17040 = vmatprep.mubr.msk.f32.mxu0 %vm512_vm0, %v440_v27 }
 0x197   : > { %24601 = vst [vmem:[#allocation18_spill] sm:$0xff] %v20009_v30  ;;  %v16883_v33 = vpop.f32.mrb[16].mxu0 }
 0x198   : > { %v1235_v34 = vpop.f32.mrb[17].mxu0  ;;  %17041 = vmatmul.mubr.msk.f32.gmra.mrb[122].mxu0 %vm512_vm0, %v441_v31  ;;  %v461_v31 = vld [vmem:[%s19702_s9 + $0x478] sm:$0xff] }
 0x199   : > { %v20015_v35 = vpack.c.bf16 %v16883_v33, %v1235_v34  ;;  %17043 = vmatprep.mubr.msk.f32.mxu0 %vm512_vm0, %v442_v32  ;;  %v462_v32 = vld [vmem:[%s19702_s9 + $0x480] sm:$0xff] }
 0x19b   : > { %24602 = vst [vmem:[#allocation19_spill] sm:$0xff] %v20015_v35  ;;  %v16886_v38 = vpop.f32.mrb[18].mxu0 }
 0x19c   : > { %v1245_v39 = vpop.f32.mrb[19].mxu0  ;;  %17044 = vmatmul.mubr.msk.f32.gmra.mrb[124].mxu0 %vm512_vm0, %v443_v36 }
 0x19d   : > { %v20021_v40 = vpack.c.bf16 %v16886_v38, %v1245_v39  ;;  %17046 = vmatprep.mubr.msk.f32.mxu0 %vm512_vm0, %v444_v37  ;;  %v463_v37 = vld [vmem:[%s19702_s9 + $0x488] sm:$0xff]  ;;  %v464_v38 = vld [vmem:[%s19702_s9 + $0x490] sm:$0xff] }
 0x19f   : > { %24603 = vst [vmem:[#allocation20_spill] sm:$0xff] %v20021_v40  ;;  %v16889_v43 = vpop.f32.mrb[20].mxu0 }
 0x1a0   : > { %v1255_v44 = vpop.f32.mrb[21].mxu0  ;;  %17047 = vmatmul.mubr.msk.f32.gmra.mrb[126].mxu0 %vm512_vm0, %v445_v41 }
 0x1a1   : > { %v20027_v45 = vpack.c.bf16 %v16889_v43, %v1255_v44  ;;  %17049 = vmatprep.mubr.msk.f32.mxu0 %vm512_vm0, %v446_v42  ;;  %v465_v43 = vld [vmem:[%s19702_s9 + $0x498] sm:$0xff]  ;;  %v466_v44 = vld [vmem:[%s19702_s9 + $0x4a0] sm:$0xff] }
 0x1a3   : > { %24604 = vst [vmem:[#allocation21_spill] sm:$0xff] %v20027_v45  ;;  %v16892_v48 = vpop.f32.mrb[22].mxu0 }
 0x1a4   : > { %v1265_v49 = vpop.f32.mrb[23].mxu0  ;;  %17050 = vmatmul.mubr.msk.f32.gmra.mrb[128].mxu0 %vm512_vm0, %v447_v46 }
 0x1a5   : > { %v20033_v50 = vpack.c.bf16 %v16892_v48, %v1265_v49  ;;  %17052 = vmatprep.mubr.msk.f32.mxu0 %vm512_vm0, %v448_v47  ;;  %v467_v49 = vld [vmem:[%s19702_s9 + $0x4a8] sm:$0xff] }
 0x1a7   : > { %24605 = vst [vmem:[#allocation22_spill] sm:$0xff] %v20033_v50  ;;  %v16895_v53 = vpop.f32.mrb[24].mxu0 }
 0x1a8   : > { %v1275_v54 = vpop.f32.mrb[25].mxu0  ;;  %17053 = vmatmul.mubr.msk.f32.gmra.mrb[130].mxu0 %vm512_vm0, %v449_v51  ;;  %v468_v51 = vld [vmem:[%s19702_s9 + $0x4b0] sm:$0xff] }
 0x1a9   : > { %v18689_v55 = vpack.c.bf16 %v16895_v53, %v1275_v54  ;;  %17055 = vmatprep.mubr.msk.f32.mxu0 %vm512_vm0, %v450_v52 }
 0x1ab   : > { %v16898_v61 = vpop.f32.mrb[26].mxu0  ;;  %18690 = vmatprep.subr.bf16.mxu1 %v18689_v55 }
 0x1ac   : > { %v1285_v62 = vpop.f32.mrb[27].mxu0  ;;  %17056 = vmatmul.mubr.msk.f32.gmra.mrb[132].mxu0 %vm512_vm0, %v451_v58  ;;  %18692 = vmatpush3.bf16.msra.mxu1 %v18689_v55  ;;  %v469_v55 = vld [vmem:[%s19702_s9 + $0x4b8] sm:$0xff]  ;;  %v470_v58 = vld [vmem:[%s19702_s9 + $0x4c0] sm:$0xff] }
 0x1ad   : > { %v20043_v1 = vpack.c.bf16 %v16898_v61, %v1285_v62  ;;  %17058 = vmatprep.mubr.msk.f32.mxu0 %vm512_vm0, %v452_v60 }
 0x1af   : > { %v16901_v5 = vpop.f32.mrb[28].mxu0  ;;  %17166 = vmatmul.mubr.msk.f32.vlgmr.msra.gmra.mrb[8].mxu1 %vm512_vm0, %v19945_v56 }
 0x1b0   : > { %v1295_v7 = vpop.f32.mrb[29].mxu0  ;;  %17059 = vmatmul.mubr.msk.f32.gmra.mrb[134].mxu0 %vm512_vm0, %v453_v3  ;;  %17168 = vmatprep.mubr.msk.f32.mxu1 %vm512_vm0, %v19951_v59  ;;  %v471_v3 = vld [vmem:[%s19702_s9 + $0x4c8] sm:$0xff] }
 0x1b1   : > { %v20053_v8 = vpack.c.bf16 %v16901_v5, %v1295_v7  ;;  %17061 = vmatprep.mubr.msk.f32.mxu0 %vm512_vm0, %v454_v4  ;;  %v472_v4 = vld [vmem:[%s19702_s9 + $0x4d0] sm:$0xff] }
 0x1b3   : > { %24606 = vst [vmem:[#allocation23_spill] sm:$0xff] %v20053_v8  ;;  %v16904_v13 = vpop.f32.mrb[30].mxu0  ;;  %17169 = vmatmul.mubr.msk.f32.gmra.mrb[10].mxu1 %vm512_vm0, %v19959_v63 }
 0x1b4   : > { %v1305_v16 = vpop.f32.mrb[31].mxu0  ;;  %17062 = vmatmul.mubr.msk.f32.gmra.mrb[136].mxu0 %vm512_vm0, %v455_v11  ;;  %17171 = vmatprep.mubr.msk.f32.mxu1 %vm512_vm0, %v19965_v2 }
 0x1b5   : > { %v20063_v17 = vpack.c.bf16 %v16904_v13, %v1305_v16  ;;  %17064 = vmatprep.mubr.msk.f32.mxu0 %vm512_vm0, %v456_v12  ;;  %v473_v12 = vld [vmem:[%s19702_s9 + $0x4d8] sm:$0xff]  ;;  %v474_v13 = vld [vmem:[%s19702_s9 + $0x4e0] sm:$0xff] }
 0x1b7   : > { %24607 = vst [vmem:[#allocation24_spill] sm:$0xff] %v20063_v17  ;;  %v16907_v21 = vpop.f32.mrb[32].mxu0  ;;  %17172 = vmatmul.mubr.msk.f32.gmra.mrb[12].mxu1 %vm512_vm0, %v19973_v6 }
 0x1b8   : > { %v1315_v22 = vpop.f32.mrb[33].mxu0  ;;  %17065 = vmatmul.mubr.msk.f32.gmra.mrb[138].mxu0 %vm512_vm0, %v457_v18  ;;  %17174 = vmatprep.mubr.msk.f32.mxu1 %vm512_vm0, %v19977_v9 }
 0x1b9   : > { %v20073_v23 = vpack.c.bf16 %v16907_v21, %v1315_v22  ;;  %17067 = vmatprep.mubr.msk.f32.mxu0 %vm512_vm0, %v458_v19  ;;  %v475_v21 = vld [vmem:[%s19702_s9 + $0x4e8] sm:$0xff]  ;;  %v476_v22 = vld [vmem:[%s19702_s9 + $0x4f0] sm:$0xff] }
 0x1bb   : > { %24608 = vst [vmem:[#allocation25_spill] sm:$0xff] %v20073_v23  ;;  %v16910_v27 = vpop.f32.mrb[34].mxu0  ;;  %17175 = vmatmul.mubr.msk.f32.gmra.mrb[14].mxu1 %vm512_vm0, %v19985_v14 }
 0x1bc   : > { %v1325_v28 = vpop.f32.mrb[35].mxu0  ;;  %17068 = vmatmul.mubr.msk.f32.gmra.mrb[140].mxu0 %vm512_vm0, %v459_v24  ;;  %17181 = vmatprep.mubr.msk.f32.mxu1 %vm512_vm0, %v19860_v10 }
 0x1bd   : > { %v20083_v29 = vpack.c.bf16 %v16910_v27, %v1325_v28  ;;  %17070 = vmatprep.mubr.msk.f32.mxu0 %vm512_vm0, %v460_v26  ;;  %v477_v28 = vld [vmem:[%s19702_s9 + $0x4f8] sm:$0xff] }
 0x1bf   : > { %24609 = vst [vmem:[#allocation26_spill] sm:$0xff] %v20083_v29  ;;  %v16913_v33 = vpop.f32.mrb[36].mxu0 }
 0x1c0   : > { %v1335_v34 = vpop.f32.mrb[37].mxu0  ;;  %17071 = vmatmul.mubr.msk.f32.gmra.mrb[142].mxu0 %vm512_vm0, %v461_v31  ;;  %v478_v31 = vld [vmem:[%s19702_s9 + $0x500] sm:$0xff] }
 0x1c1   : > { %v20089_v36 = vpack.c.bf16 %v16913_v33, %v1335_v34  ;;  %17073 = vmatprep.mubr.msk.f32.mxu0 %vm512_vm0, %v462_v32 }
 0x1c3   : > { %24610 = vst [vmem:[#allocation27_spill] sm:$0xff] %v20089_v36  ;;  %v16916_v39 = vpop.f32.mrb[38].mxu0 }
 0x1c4   : > { %v1345_v41 = vpop.f32.mrb[39].mxu0  ;;  %17074 = vmatmul.mubr.msk.f32.gmra.mrb[144].mxu0 %vm512_vm0, %v463_v37  ;;  %v479_v37 = vld [vmem:[%s19702_s9 + $0x508] sm:$0xff] }
 0x1c5   : > { %v20095_v42 = vpack.c.bf16 %v16916_v39, %v1345_v41  ;;  %17076 = vmatprep.mubr.msk.f32.mxu0 %vm512_vm0, %v464_v38  ;;  %v480_v38 = vld [vmem:[%s19702_s9 + $0x510] sm:$0xff] }
 0x1c7   : > { %24611 = vst [vmem:[#allocation28_spill] sm:$0xff] %v20095_v42  ;;  %v16919_v46 = vpop.f32.mrb[40].mxu0 }
 0x1c8   : > { %v1355_v47 = vpop.f32.mrb[41].mxu0  ;;  %17077 = vmatmul.mubr.msk.f32.gmra.mrb[146].mxu0 %vm512_vm0, %v465_v43 }
 0x1c9   : > { %v20101_v48 = vpack.c.bf16 %v16919_v46, %v1355_v47  ;;  %17079 = vmatprep.mubr.msk.f32.mxu0 %vm512_vm0, %v466_v44  ;;  %v481_v44 = vld [vmem:[%s19702_s9 + $0x518] sm:$0xff]  ;;  %v482_v46 = vld [vmem:[%s19702_s9 + $0x520] sm:$0xff] }
 0x1cb   : > { %24612 = vst [vmem:[#allocation29_spill] sm:$0xff] %v20101_v48  ;;  %v16922_v52 = vpop.f32.mrb[42].mxu0 }
 0x1cc   : > { %v1365_v53 = vpop.f32.mrb[43].mxu0  ;;  %17080 = vmatmul.mubr.msk.f32.gmra.mrb[148].mxu0 %vm512_vm0, %v467_v49 }
 0x1cd   : > { %v20107_v54 = vpack.c.bf16 %v16922_v52, %v1365_v53  ;;  %17082 = vmatprep.mubr.msk.f32.mxu0 %vm512_vm0, %v468_v51  ;;  %v483_v52 = vld [vmem:[%s19702_s9 + $0x528] sm:$0xff]  ;;  %v484_v53 = vld [vmem:[%s19702_s9 + $0x530] sm:$0xff] }
 0x1cf   : > { %24613 = vst [vmem:[#allocation30_spill] sm:$0xff] %v20107_v54  ;;  %v16925_v60 = vpop.f32.mrb[44].mxu0 }
 0x1d0   : > { %v1375_v61 = vpop.f32.mrb[45].mxu0  ;;  %17083 = vmatmul.mubr.msk.f32.gmra.mrb[150].mxu0 %vm512_vm0, %v469_v55 }
 0x1d1   : > { %v20113_v62 = vpack.c.bf16 %v16925_v60, %v1375_v61  ;;  %17085 = vmatprep.mubr.msk.f32.mxu0 %vm512_vm0, %v470_v58  ;;  %v485_v61 = vld [vmem:[%s19702_s9 + $0x538] sm:$0xff] }
 0x1d3   : > { %24614 = vst [vmem:[#allocation31_spill] sm:$0xff] %v20113_v62  ;;  %v16928_v5 = vpop.f32.mrb[46].mxu0 }
 0x1d4   : > { %v1385_v7 = vpop.f32.mrb[47].mxu0  ;;  %17086 = vmatmul.mubr.msk.f32.gmra.mrb[152].mxu0 %vm512_vm0, %v471_v3  ;;  %v486_v3 = vld [vmem:[%s19702_s9 + $0x540] sm:$0xff] }
 0x1d5   : > { %v20119_v11 = vpack.c.bf16 %v16928_v5, %v1385_v7  ;;  %17088 = vmatprep.mubr.msk.f32.mxu0 %vm512_vm0, %v472_v4 }
 0x1d7   : > { %24615 = vst [vmem:[#allocation32_spill] sm:$0xff] %v20119_v11  ;;  %v16931_v16 = vpop.f32.mrb[48].mxu0 }
 0x1d8   : > { %v1395_v18 = vpop.f32.mrb[49].mxu0  ;;  %17089 = vmatmul.mubr.msk.f32.gmra.mrb[154].mxu0 %vm512_vm0, %v473_v12  ;;  %v487_v12 = vld [vmem:[%s19702_s9 + $0x548] sm:$0xff] }
 0x1d9   : > { %v18693_v19 = vpack.c.bf16 %v16931_v16, %v1395_v18  ;;  %17091 = vmatprep.mubr.msk.f32.mxu0 %vm512_vm0, %v474_v13  ;;  %v488_v13 = vld [vmem:[%s19702_s9 + $0x550] sm:$0xff] }
 0x1db   : > { %v16934_v24 = vpop.f32.mrb[50].mxu0  ;;  %18694 = vmatprep.subr.bf16.mxu1 %v18693_v19 }
 0x1dc   : > { %v1405_v26 = vpop.f32.mrb[51].mxu0  ;;  %17092 = vmatmul.mubr.msk.f32.gmra.mrb[156].mxu0 %vm512_vm0, %v475_v21  ;;  %18696 = vmatpush3.bf16.msra.mxu1 %v18693_v19  ;;  %v489_v21 = vld [vmem:[%s19702_s9 + $0x558] sm:$0xff] }
 0x1dd   : > { %v20129_v27 = vpack.c.bf16 %v16934_v24, %v1405_v26  ;;  %17094 = vmatprep.mubr.msk.f32.mxu0 %vm512_vm0, %v476_v22  ;;  %v490_v22 = vld [vmem:[%s19702_s9 + $0x560] sm:$0xff] }
 0x1df   : > { %v16937_v32 = vpop.f32.mrb[52].mxu0  ;;  %17182 = vmatmul.mubr.msk.f32.vlgmr.msra.gmra.mrb[16].mxu1 %vm512_vm0, %v19945_v56 }
 0x1e0   : > { %v1415_v33 = vpop.f32.mrb[53].mxu0  ;;  %17095 = vmatmul.mubr.msk.f32.gmra.mrb[158].mxu0 %vm512_vm0, %v477_v28  ;;  %17184 = vmatprep.mubr.msk.f32.mxu1 %vm512_vm0, %v19951_v59 }
 0x1e1   : > { %v20139_v34 = vpack.c.bf16 %v16937_v32, %v1415_v33  ;;  %17097 = vmatprep.mubr.msk.f32.mxu0 %vm512_vm0, %v478_v31  ;;  %v491_v31 = vld [vmem:[%s19702_s9 + $0x568] sm:$0xff]  ;;  %v492_v32 = vld [vmem:[%s19702_s9 + $0x570] sm:$0xff] }
 0x1e3   : > { %24616 = vst [vmem:[#allocation33_spill] sm:$0xff] %v20139_v34  ;;  %v16940_v39 = vpop.f32.mrb[54].mxu0  ;;  %17185 = vmatmul.mubr.msk.f32.gmra.mrb[18].mxu1 %vm512_vm0, %v19959_v63 }
 0x1e4   : > { %v1425_v41 = vpop.f32.mrb[55].mxu0  ;;  %17098 = vmatmul.mubr.msk.f32.gmra.mrb[160].mxu0 %vm512_vm0, %v479_v37  ;;  %17187 = vmatprep.mubr.msk.f32.mxu1 %vm512_vm0, %v19965_v2 }
 0x1e5   : > { %v20149_v43 = vpack.c.bf16 %v16940_v39, %v1425_v41  ;;  %17100 = vmatprep.mubr.msk.f32.mxu0 %vm512_vm0, %v480_v38  ;;  %v493_v39 = vld [vmem:[%s19702_s9 + $0x578] sm:$0xff]  ;;  %v494_v41 = vld [vmem:[%s19702_s9 + $0x580] sm:$0xff] }
 0x1e7   : > { %v16943_v47 = vpop.f32.mrb[56].mxu0  ;;  %18790 = vmatprep.subr.bf16.mxu0 %v20149_v43  ;;  %17188 = vmatmul.mubr.msk.f32.gmra.mrb[20].mxu1 %vm512_vm0, %v19973_v6 }
 0x1e8   : > { %v1435_v49 = vpop.f32.mrb[57].mxu0  ;;  %17101 = vmatmul.mubr.msk.f32.gmra.mrb[162].mxu0 %vm512_vm0, %v481_v44  ;;  %17190 = vmatprep.mubr.msk.f32.mxu1 %vm512_vm0, %v19977_v9 }
 0x1e9   : > { %v20160_v51 = vpack.c.bf16 %v16943_v47, %v1435_v49  ;;  %17103 = vmatprep.mubr.msk.f32.mxu0 %vm512_vm0, %v482_v46  ;;  %v495_v49 = vld [vmem:[%s19702_s9 + $0x588] sm:$0xff] }
 0x1eb   : > { %v16946_v55 = vpop.f32.mrb[58].mxu0  ;;  %17191 = vmatmul.mubr.msk.f32.gmra.mrb[22].mxu1 %vm512_vm0, %v19985_v14 }
 0x1ec   : > { %v1445_v58 = vpop.f32.mrb[59].mxu0  ;;  %17104 = vmatmul.mubr.msk.f32.gmra.mrb[164].mxu0 %vm512_vm0, %v483_v52  ;;  %17197 = vmatprep.mubr.msk.f32.mxu1 %vm512_vm0, %v19860_v10  ;;  %v496_v52 = vld [vmem:[%s19702_s9 + $0x590] sm:$0xff] }
 0x1ed   : > { %v20170_v60 = vpack.c.bf16 %v16946_v55, %v1445_v58  ;;  %17106 = vmatprep.mubr.msk.f32.mxu0 %vm512_vm0, %v484_v53 }
 0x1ef   : > { %v16949_v4 = vpop.f32.mrb[60].mxu0 }
 0x1f0   : > { %v1455_v5 = vpop.f32.mrb[61].mxu0  ;;  %17107 = vmatmul.mubr.msk.f32.gmra.mrb[166].mxu0 %vm512_vm0, %v485_v61  ;;  %v497_v61 = vld [vmem:[%s19702_s9 + $0x598] sm:$0xff] }
 0x1f1   : > { %v20176_v7 = vpack.c.bf16 %v16949_v4, %v1455_v5  ;;  %17109 = vmatprep.mubr.msk.f32.mxu0 %vm512_vm0, %v486_v3  ;;  %v498_v3 = vld [vmem:[%s19702_s9 + $0x5a0] sm:$0xff] }
 0x1f3   : > { %24617 = vst [vmem:[#allocation34_spill] sm:$0xff] %v20176_v7  ;;  %v16952_v16 = vpop.f32.mrb[62].mxu0 }
 0x1f4   : > { %v1465_v18 = vpop.f32.mrb[63].mxu0  ;;  %17110 = vmatmul.mubr.msk.f32.gmra.mrb[168].mxu0 %vm512_vm0, %v487_v12 }
 0x1f5   : > { %v20182_v19 = vpack.c.bf16 %v16952_v16, %v1465_v18  ;;  %17112 = vmatprep.mubr.msk.f32.mxu0 %vm512_vm0, %v488_v13  ;;  %v499_v13 = vld [vmem:[%s19702_s9 + $0x5a8] sm:$0xff]  ;;  %v500_v16 = vld [vmem:[%s19702_s9 + $0x5b0] sm:$0xff] }
 0x1f7   : > { %24618 = vst [vmem:[#allocation35_spill] sm:$0xff] %v20182_v19  ;;  %v16955_v24 = vpop.f32.mrb[64].mxu0 }
 0x1f8   : > { %v1475_v26 = vpop.f32.mrb[65].mxu0  ;;  %17113 = vmatmul.mubr.msk.f32.gmra.mrb[170].mxu0 %vm512_vm0, %v489_v21 }
 0x1f9   : > { %v20188_v28 = vpack.c.bf16 %v16955_v24, %v1475_v26  ;;  %17115 = vmatprep.mubr.msk.f32.mxu0 %vm512_vm0, %v490_v22  ;;  %v501_v24 = vld [vmem:[%s19702_s9 + $0x5b8] sm:$0xff]  ;;  %v502_v26 = vld [vmem:[%s19702_s9 + $0x5c0] sm:$0xff] }
 0x1fb   : > { %24619 = vst [vmem:[#allocation36_spill] sm:$0xff] %v20188_v28  ;;  %v16958_v33 = vpop.f32.mrb[66].mxu0 }
 0x1fc   : > { %v1485_v37 = vpop.f32.mrb[67].mxu0  ;;  %17116 = vmatmul.mubr.msk.f32.gmra.mrb[172].mxu0 %vm512_vm0, %v491_v31 }
 0x1fd   : > { %v20194_v38 = vpack.c.bf16 %v16958_v33, %v1485_v37  ;;  %17118 = vmatprep.mubr.msk.f32.mxu0 %vm512_vm0, %v492_v32  ;;  %v503_v37 = vld [vmem:[%s19702_s9 + $0x5c8] sm:$0xff] }
 0x1ff   : > { %24620 = vst [vmem:[#allocation37_spill] sm:$0xff] %v20194_v38  ;;  %v16961_v44 = vpop.f32.mrb[68].mxu0 }
 0x200   : > { %v1495_v46 = vpop.f32.mrb[69].mxu0  ;;  %17119 = vmatmul.mubr.msk.f32.gmra.mrb[174].mxu0 %vm512_vm0, %v493_v39  ;;  %v504_v39 = vld [vmem:[%s19702_s9 + $0x5d0] sm:$0xff] }
 0x201   : > { %v20200_v47 = vpack.c.bf16 %v16961_v44, %v1495_v46  ;;  %17121 = vmatprep.mubr.msk.f32.mxu0 %vm512_vm0, %v494_v41 }
 0x203   : > { %24621 = vst [vmem:[#allocation38_spill] sm:$0xff] %v20200_v47  ;;  %v16964_v53 = vpop.f32.mrb[70].mxu0  ;;  %v2318_v47 = vld [vmem:[%s19714_s29 + $0x20] sm:$0xff] }
 0x204   : > { %v1505_v55 = vpop.f32.mrb[71].mxu0  ;;  %17122 = vmatmul.mubr.msk.f32.gmra.mrb[176].mxu0 %vm512_vm0, %v495_v49  ;;  %v505_v49 = vld [vmem:[%s19702_s9 + $0x5d8] sm:$0xff] }
 0x205   : > { %v20206_v58 = vpack.c.bf16 %v16964_v53, %v1505_v55  ;;  %17124 = vmatprep.mubr.msk.f32.mxu0 %vm512_vm0, %v496_v52  ;;  %v506_v52 = vld [vmem:[%s19702_s9 + $0x5e0] sm:$0xff] }
 0x207   : > { %24622 = vst [vmem:[#allocation39_spill] sm:$0xff] %v20206_v58  ;;  %v16967_v4 = vpop.f32.mrb[72].mxu0 }
 0x208   : > { %v1515_v5 = vpop.f32.mrb[73].mxu0  ;;  %17125 = vmatmul.mubr.msk.f32.gmra.mrb[178].mxu0 %vm512_vm0, %v497_v61 }
 0x209   : > { %v18697_v12 = vpack.c.bf16 %v16967_v4, %v1515_v5  ;;  %17127 = vmatprep.mubr.msk.f32.mxu0 %vm512_vm0, %v498_v3  ;;  %v507_v3 = vld [vmem:[%s19702_s9 + $0x5e8] sm:$0xff]  ;;  %v508_v4 = vld [vmem:[%s19702_s9 + $0x5f0] sm:$0xff] }
 0x20b   : > { %v16970_v18 = vpop.f32.mrb[74].mxu0  ;;  %18698 = vmatprep.subr.bf16.mxu1 %v18697_v12 }
 0x20c   : > { %v1525_v21 = vpop.f32.mrb[75].mxu0  ;;  %17128 = vmatmul.mubr.msk.f32.gmra.mrb[180].mxu0 %vm512_vm0, %v499_v13  ;;  %18700 = vmatpush3.bf16.msra.mxu1 %v18697_v12 }
 0x20d   : > { %v20216_v22 = vpack.c.bf16 %v16970_v18, %v1525_v21  ;;  %17130 = vmatprep.mubr.msk.f32.mxu0 %vm512_vm0, %v500_v16  ;;  %v509_v16 = vld [vmem:[%s19702_s9 + $0x5f8] sm:$0xff] }
 0x20f   : > { %v16973_v31 = vpop.f32.mrb[76].mxu0  ;;  %17198 = vmatmul.mubr.msk.f32.vlgmr.msra.gmra.mrb[24].mxu1 %vm512_vm0, %v19945_v56 }
 0x210   : > { %v1535_v32 = vpop.f32.mrb[77].mxu0  ;;  %17131 = vmatmul.mubr.msk.f32.gmra.mrb[182].mxu0 %vm512_vm0, %v501_v24  ;;  %17200 = vmatprep.mubr.msk.f32.mxu1 %vm512_vm0, %v19951_v59 }
 0x211   : > { %v20226_v33 = vpack.c.bf16 %v16973_v31, %v1535_v32  ;;  %17133 = vmatprep.mubr.msk.f32.mxu0 %vm512_vm0, %v502_v26 }
 0x213   : > { %24623 = vst [vmem:[#allocation40_spill] sm:$0xff] %v20226_v33  ;;  %v16976_v41 = vpop.f32.mrb[78].mxu0  ;;  %17201 = vmatmul.mubr.msk.f32.gmra.mrb[26].mxu1 %vm512_vm0, %v19959_v63 }
 0x214   : > { %v1545_v44 = vpop.f32.mrb[79].mxu0  ;;  %17134 = vmatmul.mubr.msk.f32.gmra.mrb[184].mxu0 %vm512_vm0, %v503_v37  ;;  %17203 = vmatprep.mubr.msk.f32.mxu1 %vm512_vm0, %v19965_v2 }
 0x215   : > { %v20236_v46 = vpack.c.bf16 %v16976_v41, %v1545_v44  ;;  %17136 = vmatprep.mubr.msk.f32.mxu0 %vm512_vm0, %v504_v39 }
 0x217   : > { %24624 = vst [vmem:[#allocation41_spill] sm:$0xff] %v20236_v46  ;;  %v16979_v53 = vpop.f32.mrb[80].mxu0  ;;  %17204 = vmatmul.mubr.msk.f32.gmra.mrb[28].mxu1 %vm512_vm0, %v19973_v6 }
 0x218   : > { %v1555_v55 = vpop.f32.mrb[81].mxu0  ;;  %17137 = vmatmul.mubr.msk.f32.gmra.mrb[186].mxu0 %vm512_vm0, %v505_v49  ;;  %17206 = vmatprep.mubr.msk.f32.mxu1 %vm512_vm0, %v19977_v9 }
 0x219   : > { %v20246_v61 = vpack.c.bf16 %v16979_v53, %v1555_v55  ;;  %17139 = vmatprep.mubr.msk.f32.mxu0 %vm512_vm0, %v506_v52 }
 0x21b   : > { %24625 = vst [vmem:[#allocation42_spill] sm:$0xff] %v20246_v61  ;;  %v16982_v5 = vpop.f32.mrb[82].mxu0  ;;  %17207 = vmatmul.mubr.msk.f32.gmra.mrb[30].mxu1 %vm512_vm0, %v19985_v14 }
 0x21c   : > { %v1565_v12 = vpop.f32.mrb[83].mxu0  ;;  %17140 = vmatmul.mubr.msk.f32.gmra.mrb[188].mxu0 %vm512_vm0, %v507_v3  ;;  %17213 = vmatprep.mubr.msk.f32.mxu1 %vm512_vm0, %v19860_v10 }
 0x21d   : > { %v20256_v13 = vpack.c.bf16 %v16982_v5, %v1565_v12  ;;  %17142 = vmatprep.mubr.msk.f32.mxu0 %vm512_vm0, %v508_v4 }
 0x21f   : > { %24626 = vst [vmem:[#allocation43_spill] sm:$0xff] %v20256_v13  ;;  %v16985_v18 = vpop.f32.mrb[84].mxu0  ;;  %v2317_v13 = vld [vmem:[%s19714_s29 + $0x18] sm:$0xff] }
 0x220   : > { %v1575_v21 = vpop.f32.mrb[85].mxu0  ;;  %17143 = vmatmul.mubr.msk.f32.gmra.mrb[190].mxu0 %vm512_vm0, %v509_v16  ;;  %v2325_v29 = vmul.f32 4.0, %v2317_v13  ;;  %v2320_v13 = vld [vmem:[%s19714_s29 + $0x30] sm:$0xff] }
 0x221   : > { %v20261_v24 = vpack.c.bf16 %v16985_v18, %v1575_v21  ;;  %17533 = vmatprep.mubr.msk.f32.mxu0 %vm512_vm0, %v19860_v10 }
 0x222   : > { %v20442_v23 = vadd.f32 3.5, %v2325_v29 }
 0x223   : > { %24627 = vst [vmem:[#allocation44_spill] sm:$0xff] %v20261_v24  ;;  %v16988_v26 = vpop.f32.mrb[86].mxu0 }
 0x224   : > { %v1585_v31 = vpop.f32.mrb[87].mxu0  ;;  %17534 = vmatmul.mubr.msk.f32.vlgmr.msra.gmra.mrb[192].mxu0 %vm512_vm0, %v19945_v56  ;;  %v2341_v29 = vand.u32 2147483647, %v20442_v23 }
 0x225   : > { %v20267_v32 = vpack.c.bf16 %v16988_v26, %v1585_v31  ;;  %18792 = vmatpush3.bf16.msra.mxu0 %v20149_v43  ;;  %17536 = vmatprep.mubr.msk.f32.mxu0 %vm512_vm0, %v19951_v59 }
 0x227   : > { %24628 = vst [vmem:[#allocation45_spill] sm:$0xff] %v20267_v32  ;;  %v16991_v37 = vpop.f32.mrb[88].mxu0 }
 0x228   : > { %v1595_v39 = vpop.f32.mrb[89].mxu0  ;;  %17537 = vmatmul.mubr.msk.f32.gmra.mrb[194].mxu0 %vm512_vm0, %v19959_v63 }
 0x229   : > { %v20274_v41 = vpack.c.bf16 %v16991_v37, %v1595_v39  ;;  %17539 = vmatprep.mubr.msk.f32.mxu0 %vm512_vm0, %v19965_v2 }
 0x22b   : > { %24629 = vst [vmem:[#allocation46_spill] sm:$0xff] %v20274_v41  ;;  %v16994_v44 = vpop.f32.mrb[90].mxu0 }
 0x22c   : > { %v1605_v49 = vpop.f32.mrb[91].mxu0  ;;  %17540 = vmatmul.mubr.msk.f32.gmra.mrb[196].mxu0 %vm512_vm0, %v19973_v6 }
 0x22d   : > { %v20280_v52 = vpack.c.bf16 %v16994_v44, %v1605_v49  ;;  %17542 = vmatprep.mubr.msk.f32.mxu0 %vm512_vm0, %v19977_v9 }
 0x22f   : > { %24630 = vst [vmem:[#allocation47_spill] sm:$0xff] %v20280_v52  ;;  %v16997_v43 = vpop.f32.mrb[92].mxu0 }
 0x230   : > { %v1615_v53 = vpop.f32.mrb[93].mxu0  ;;  %17543 = vmatmul.mubr.msk.f32.gmra.mrb[198].mxu0 %vm512_vm0, %v19985_v14 }
 0x231   : > { %v20286_v55 = vpack.c.bf16 %v16997_v43, %v1615_v53  ;;  %17565 = vmatprep.mubr.msk.f32.mxu0 %vm512_vm0, %v19860_v10 }
 0x233   : > { %24631 = vst [vmem:[#allocation48_spill] sm:$0xff] %v20286_v55  ;;  %v17000_v3 = vpop.f32.mrb[94].mxu0 }
 0x234   : > { %v1625_v4 = vpop.f32.mrb[95].mxu0  ;;  %17566 = vmatmul.mubr.msk.f32.vlgmr.msra.gmra.mrb[200].mxu0 %vm512_vm0, %v19945_v56 }
 0x235   : > { %v20292_v5 = vpack.c.bf16 %v17000_v3, %v1625_v4  ;;  %17568 = vmatprep.mubr.msk.f32.mxu0 %vm512_vm0, %v19951_v59 }
 0x237   : > { %24632 = vst [vmem:[#allocation49_spill] sm:$0xff] %v20292_v5  ;;  %v17003_v12 = vpop.f32.mrb[96].mxu0 }
 0x238   : > { %v1635_v16 = vpop.f32.mrb[97].mxu0  ;;  %17569 = vmatmul.mubr.msk.f32.gmra.mrb[202].mxu0 %vm512_vm0, %v19959_v63 }
 0x239   : > { %v18701_v18 = vpack.c.bf16 %v17003_v12, %v1635_v16  ;;  %17571 = vmatprep.mubr.msk.f32.mxu0 %vm512_vm0, %v19965_v2 }
 0x23b   : > { %v17006_v21 = vpop.f32.mrb[98].mxu0  ;;  %18702 = vmatprep.subr.bf16.mxu1 %v18701_v18 }
 0x23c   : > { %v1645_v26 = vpop.f32.mrb[99].mxu0  ;;  %18704 = vmatpush3.bf16.msra.mxu1 %v18701_v18  ;;  %17572 = vmatmul.mubr.msk.f32.gmra.mrb[204].mxu0 %vm512_vm0, %v19973_v6 }
 0x23d   : > { %v20302_v31 = vpack.c.bf16 %v17006_v21, %v1645_v26  ;;  %17574 = vmatprep.mubr.msk.f32.mxu0 %vm512_vm0, %v19977_v9 }
 0x23f   : > { %v17009_v37 = vpop.f32.mrb[100].mxu0  ;;  %17214 = vmatmul.mubr.msk.f32.vlgmr.msra.gmra.mrb[32].mxu1 %vm512_vm0, %v19945_v56 }
 0x240   : > { %v1655_v39 = vpop.f32.mrb[101].mxu0  ;;  %17216 = vmatprep.mubr.msk.f32.mxu1 %vm512_vm0, %v19951_v59  ;;  %17575 = vmatmul.mubr.msk.f32.gmra.mrb[206].mxu0 %vm512_vm0, %v19985_v14 }
 0x241   : > { %v20312_v44 = vpack.c.bf16 %v17009_v37, %v1655_v39  ;;  %17597 = vmatprep.mubr.msk.f32.mxu0 %vm512_vm0, %v19860_v10 }
 0x243   : > { %24633 = vst [vmem:[#allocation50_spill] sm:$0xff] %v20312_v44  ;;  %v17012_v49 = vpop.f32.mrb[102].mxu0  ;;  %17217 = vmatmul.mubr.msk.f32.gmra.mrb[34].mxu1 %vm512_vm0, %v19959_v63 }
 0x244   : > { %v1665_v43 = vpop.f32.mrb[103].mxu0  ;;  %17219 = vmatprep.mubr.msk.f32.mxu1 %vm512_vm0, %v19965_v2 }
 0x245   : > { %v18797_v53 = vpack.c.bf16 %v17012_v49, %v1665_v43 }
 0x247   : > { %v17015_v3 = vpop.f32.mrb[104].mxu0  ;;  %18798 = vmatprep.subr.bf16.mxu0 %v18797_v53  ;;  %17220 = vmatmul.mubr.msk.f32.gmra.mrb[36].mxu1 %vm512_vm0, %v19973_v6 }
 0x248   : > { %v1675_v4 = vpop.f32.mrb[105].mxu0  ;;  %18800 = vmatpush3.bf16.msra.mxu0 %v18797_v53  ;;  %17222 = vmatprep.mubr.msk.f32.mxu1 %vm512_vm0, %v19977_v9 }
 0x249   : > { %v20324_v12 = vpack.c.bf16 %v17015_v3, %v1675_v4 }
 0x24b   : > { %v17018_v16 = vpop.f32.mrb[106].mxu0  ;;  %17223 = vmatmul.mubr.msk.f32.gmra.mrb[38].mxu1 %vm512_vm0, %v19985_v14  ;;  %17598 = vmatmul.mubr.msk.f32.vlgmr.msra.gmra.mrb[208].mxu0 %vm512_vm0, %v19945_v56 }
 0x24c   : > { %v1685_v18 = vpop.f32.mrb[107].mxu0  ;;  %17229 = vmatprep.mubr.msk.f32.mxu1 %vm512_vm0, %v19860_v10  ;;  %17600 = vmatprep.mubr.msk.f32.mxu0 %vm512_vm0, %v19951_v59 }
 0x24d   : > { %v20334_v21 = vpack.c.bf16 %v17018_v16, %v1685_v18 }
 0x24f   : > { %v17021_v26 = vpop.f32.mrb[108].mxu0  ;;  %17601 = vmatmul.mubr.msk.f32.gmra.mrb[210].mxu0 %vm512_vm0, %v19959_v63 }
 0x250   : > { %v1695_v37 = vpop.f32.mrb[109].mxu0  ;;  %17603 = vmatprep.mubr.msk.f32.mxu0 %vm512_vm0, %v19965_v2 }
 0x251   : > { %v20340_v39 = vpack.c.bf16 %v17021_v26, %v1695_v37 }
 0x253   : > { %24634 = vst [vmem:[#allocation51_spill] sm:$0xff] %v20340_v39  ;;  %v17024_v49 = vpop.f32.mrb[110].mxu0  ;;  %17604 = vmatmul.mubr.msk.f32.gmra.mrb[212].mxu0 %vm512_vm0, %v19973_v6 }
 0x254   : > { %v1705_v43 = vpop.f32.mrb[111].mxu0  ;;  %17606 = vmatprep.mubr.msk.f32.mxu0 %vm512_vm0, %v19977_v9 }
 0x255   : > { %v20346_v53 = vpack.c.bf16 %v17024_v49, %v1705_v43 }
 0x257   : > { %24635 = vst [vmem:[#allocation52_spill] sm:$0xff] %v20346_v53  ;;  %v17027_v3 = vpop.f32.mrb[112].mxu0  ;;  %17607 = vmatmul.mubr.msk.f32.gmra.mrb[214].mxu0 %vm512_vm0, %v19985_v14  ;;  %v20519_v53 = vld [vmem:[#allocation6 + $0x10] sm:$0xff] }
 0x258   : > { %v1715_v4 = vpop.f32.mrb[113].mxu0  ;;  %17629 = vmatprep.mubr.msk.f32.mxu0 %vm512_vm0, %v19860_v10 }
 0x259   : > { %v20352_v16 = vpack.c.bf16 %v17027_v3, %v1715_v4 }
 0x25b   : > { %24636 = vst [vmem:[#allocation53_spill] sm:$0xff] %v20352_v16  ;;  %v17030_v18 = vpop.f32.mrb[114].mxu0 }
 0x25c   : > { %v1725_v26 = vpop.f32.mrb[115].mxu0 }
 0x25d   : > { %v20354_v37 = vpack.c.bf16 %v17030_v18, %v1725_v26 }
 0x25f   : > { %24637 = vst [vmem:[#allocation54_spill] sm:$0xff] %v20354_v37  ;;  %v17033_v5 = vpop.f32.mrb[116].mxu0 }
 0x260   : > { %v1735_v11 = vpop.f32.mrb[117].mxu0 }
 0x261   : > { %v20356_v55 = vpack.c.bf16 %v17033_v5, %v1735_v11 }
 0x263   : > { %24638 = vst [vmem:[#allocation55_spill] sm:$0xff] %v20356_v55  ;;  %v17036_v49 = vpop.f32.mrb[118].mxu0  ;;  %v2316_v55 = vld [vmem:[%s19714_s29 + $0x10] sm:$0xff] }
 0x264   : > { %v1745_v43 = vpop.f32.mrb[119].mxu0 }
 0x265   : > { %v20358_v62 = vpack.c.bf16 %v17036_v49, %v1745_v43 }
 0x267   : > { %24639 = vst [vmem:[#allocation56_spill] sm:$0xff] %v20358_v62  ;;  %v17039_v52 = vpop.f32.mrb[120].mxu0 }
 0x268   : > { %v1755_v54 = vpop.f32.mrb[121].mxu0 }
 0x269   : > { %v18705_v41 = vpack.c.bf16 %v17039_v52, %v1755_v54 }
 0x26b   : > { %v17042_v48 = vpop.f32.mrb[122].mxu0  ;;  %18706 = vmatprep.subr.bf16.mxu1 %v18705_v41 }
 0x26c   : > { %v1765_v10 = vpop.f32.mrb[123].mxu0  ;;  %18708 = vmatpush3.bf16.msra.mxu1 %v18705_v41 }
 0x26d   : > { %v20360_v3 = vpack.c.bf16 %v17042_v48, %v1765_v10  ;;  %v20382_v10 = vld [vmem:[#allocation6] sm:$0xff] }
 0x26f   : > { %24640 = vst [vmem:[#allocation57_spill] sm:$0xff] %v20360_v3  ;;  %v17045_v4 = vpop.f32.mrb[124].mxu0  ;;  %17230 = vmatmul.mubr.msk.f32.vlgmr.msra.gmra.mrb[40].mxu1 %vm512_vm0, %v19945_v56 }
 0x270   : > { %v1775_v18 = vpop.f32.mrb[125].mxu0  ;;  %17232 = vmatprep.mubr.msk.f32.mxu1 %vm512_vm0, %v19951_v59 }
 0x271   : > { %v20366_v11 = vpack.c.bf16 %v17045_v4, %v1775_v18 }
 0x273   : > { %24641 = vst [vmem:[#allocation58_spill] sm:$0xff] %v20366_v11  ;;  %v17048_v5 = vpop.f32.mrb[126].mxu0  ;;  %17233 = vmatmul.mubr.msk.f32.gmra.mrb[42].mxu1 %vm512_vm0, %v19959_v63 }
 0x274   : > { %v1785_v54 = vpop.f32.mrb[127].mxu0  ;;  %17235 = vmatprep.mubr.msk.f32.mxu1 %vm512_vm0, %v19965_v2 }
 0x275   : > { %v20372_v48 = vpack.c.bf16 %v17048_v5, %v1785_v54 }
 0x277   : > { %24642 = vst [vmem:[#allocation59_spill] sm:$0xff] %v20372_v48  ;;  %v17051_v41 = vpop.f32.mrb[128].mxu0  ;;  %17236 = vmatmul.mubr.msk.f32.gmra.mrb[44].mxu1 %vm512_vm0, %v19973_v6 }
 0x278   : > { %v1795_v52 = vpop.f32.mrb[129].mxu0  ;;  %17238 = vmatprep.mubr.msk.f32.mxu1 %vm512_vm0, %v19977_v9 }
 0x279   : > { %v20378_v26 = vpack.c.bf16 %v17051_v41, %v1795_v52 }
 0x27b   : > { %24643 = vst [vmem:[#allocation60_spill] sm:$0xff] %v20378_v26  ;;  %v17054_v49 = vpop.f32.mrb[130].mxu0  ;;  %17239 = vmatmul.mubr.msk.f32.gmra.mrb[46].mxu1 %vm512_vm0, %v19985_v14 }
 0x27c   : > { %v1805_v43 = vpop.f32.mrb[131].mxu0  ;;  %17245 = vmatprep.mubr.msk.f32.mxu1 %vm512_vm0, %v20382_v10 }
 0x27d   : > { %v20386_v4 = vpack.c.bf16 %v17054_v49, %v1805_v43 }
 0x27f   : > { %24644 = vst [vmem:[#allocation61_spill] sm:$0xff] %v20386_v4  ;;  %v17057_v18 = vpop.f32.mrb[132].mxu0 }
 0x280   : > { %v1815_v5 = vpop.f32.mrb[133].mxu0 }
 0x281   : > { %v20388_v54 = vpack.c.bf16 %v17057_v18, %v1815_v5 }
 0x283   : > { %24645 = vst [vmem:[#allocation62_spill] sm:$0xff] %v20388_v54  ;;  %v17060_v32 = vpop.f32.mrb[134].mxu0 }
 0x284   : > { %v1825_v9 = vpop.f32.mrb[135].mxu0 }
 0x285   : > { %v20390_v41 = vpack.c.bf16 %v17060_v32, %v1825_v9 }
 0x287   : > { %24646 = vst [vmem:[#allocation63_spill] sm:$0xff] %v20390_v41  ;;  %v17063_v52 = vpop.f32.mrb[136].mxu0  ;;  %v20400_v41 = vpop.f32.mrb[0].mxu1 }
 0x288   : > { %v1835_v42 = vpop.f32.mrb[137].mxu0 }
 0x289   : > { %v20392_v24 = vpack.c.bf16 %v17063_v52, %v1835_v42  ;;  %v20402_v52 = vpop.f32.mrb[1].mxu1 }
 0x28b   : > { %24647 = vst [vmem:[#allocation64_spill] sm:$0xff] %v20392_v24  ;;  %v17066_v14 = vpop.f32.mrb[138].mxu0  ;;  %v20404_v24 = vpop.f32.mrb[2].mxu1 }
 0x28c   : > { %v1845_v36 = vpop.f32.mrb[139].mxu0 }
 0x28d   : > { %v20394_v62 = vpack.c.bf16 %v17066_v14, %v1845_v36  ;;  %v20406_v14 = vpop.f32.mrb[3].mxu1 }
 0x28f   : > { %24648 = vst [vmem:[#allocation65_spill] sm:$0xff] %v20394_v62  ;;  %v17069_v58 = vpop.f32.mrb[140].mxu0 }
 0x290   : > { %v1855_v50 = vpop.f32.mrb[141].mxu0 }
 0x291   : > { %v20396_v49 = vpack.c.bf16 %v17069_v58, %v1855_v50  ;;  %v20408_v58 = vpop.f32.mrb[4].mxu1 }
 0x293   : > { %24649 = vst [vmem:[#allocation66_spill] sm:$0xff] %v20396_v49  ;;  %v17072_v43 = vpop.f32.mrb[142].mxu0  ;;  %v20414_v49 = vpop.f32.mrb[5].mxu1 }
 0x294   : > { %v1865_v18 = vpop.f32.mrb[143].mxu0  ;;  %v20416_v62 = vpop.f32.mrb[6].mxu1 }
 0x295   : > { %v20398_v5 = vpack.c.bf16 %v17072_v43, %v1865_v18  ;;  %v2315_v18 = vld [vmem:[%s19714_s29 + $0x8] sm:$0xff] }
 0x297   : > { %24650 = vst [vmem:[#allocation67_spill] sm:$0xff] %v20398_v5  ;;  %v17075_v32 = vpop.f32.mrb[144].mxu0  ;;  %v2314_v5 = vld [vmem:[%s19714_s29] sm:$0xff] }
 0x298   : > { %v1875_v9 = vpop.f32.mrb[145].mxu0 }
 0x299   : > { %v18709_v42 = vpack.c.bf16 %v17075_v32, %v1875_v9  ;;  %v2323_v32 = vmul.f32 4.0, %v2315_v18  ;;  %v2322_v9 = vmul.f32 4.0, %v2314_v5 }
 0x29b   : > { %v17078_v36 = vpop.f32.mrb[146].mxu0  ;;  %18710 = vmatprep.subr.bf16.mxu1 %v18709_v42 }
 0x29c   : > { %v1885_v50 = vpop.f32.mrb[147].mxu0  ;;  %18712 = vmatpush3.bf16.msra.mxu1 %v18709_v42  ;;  %v20420_v42 = vpop.f32.mrb[7].mxu1 }
 0x29d   : > { %v20410_v43 = vpack.c.bf16 %v17078_v36, %v1885_v50  ;;  %v20424_v36 = vadd.f32 3.5, %v2323_v32  ;;  %v20426_v50 = vadd.f32 3.5, %v2322_v9  ;;  %v20429_v18 = vpop.f32.mrb[8].mxu1  ;;  %v2324_v32 = vmul.f32 4.0, %v2316_v55 }
 0x29e   : > { %v20436_v26 = vpop.f32.mrb[9].mxu1 }
 0x29f   : > { %24651 = vst [vmem:[#allocation68_spill] sm:$0xff] %v20410_v43  ;;  %v17081_v54 = vpop.f32.mrb[148].mxu0  ;;  %17246 = vmatmul.mubr.msk.f32.vlgmr.msra.gmra.mrb[48].mxu1 %vm512_vm0, %v19945_v56  ;;  %v2319_v56 = vld [vmem:[%s19714_s29 + $0x28] sm:$0xff]  ;;  %v2339_v45 = vand.u32 2147483647, %v20424_v36  ;;  %v14784_v37 = vadd.f32 -1.0, %v20424_v36 }
 0x2a0   : > { %v1895_v4 = vpop.f32.mrb[149].mxu0  ;;  %17248 = vmatprep.mubr.msk.f32.mxu1 %vm512_vm0, %v19951_v59  ;;  %v2338_v59 = vand.u32 2147483647, %v20426_v50  ;;  %v2327_v9 = vmul.f32 4.0, %v2319_v56  ;;  %v20449_v46 = vadd.f32 3.5, %v2324_v32  ;;  %v20453_v56 = vpop.f32.mrb[10].mxu1 }
 0x2a1   : > { %v20431_v5 = vpack.c.bf16 %v17081_v54, %v1895_v4  ;;  %v2326_v4 = vmul.f32 4.0, %v2318_v47  ;;  %v2321_v54 = vld [vmem:[%s19714_s29 + $0x38] sm:$0xff]  ;;  %v2347_v48 = vsub.f32 1.0, %v2339_v45  ;;  %v20458_v16 = vpop.f32.mrb[11].mxu1 }
 0x2a2   : > { %v2346_v40 = vsub.f32 1.0, %v2338_v59  ;;  %v20451_v55 = vadd.f32 3.5, %v2327_v9  ;;  %v2329_v17 = vmul.f32 4.0, %v2321_v54  ;;  %v2328_v9 = vmul.f32 4.0, %v2320_v13 }
 0x2a3   : > { %24652 = vst [vmem:[#allocation69_spill] sm:$0xff] %v20431_v5  ;;  %v17084_v61 = vpop.f32.mrb[150].mxu0  ;;  %17249 = vmatmul.mubr.msk.f32.gmra.mrb[50].mxu1 %vm512_vm0, %v19959_v63  ;;  %v20456_v47 = vadd.f32 3.5, %v2326_v4  ;;  %v20460_v28 = vmax.f32 %v2347_v48, 0.0  ;;  %v20471_v48 = vld [vmem:[#allocation6 + $0x30] sm:$0xff] }
 0x2a4   : > { %v1905_v38 = vpop.f32.mrb[151].mxu0  ;;  %17251 = vmatprep.mubr.msk.f32.mxu1 %vm512_vm0, %v19965_v2  ;;  %v20462_v5 = vmax.f32 %v2346_v40, 0.0  ;;  %v2340_v2 = vand.u32 2147483647, %v20449_v46  ;;  %v2343_v45 = vand.u32 2147483647, %v20451_v55 }
 0x2a5   : > { %v18805_v63 = vpack.c.bf16 %v17084_v61, %v1905_v38  ;;  %24653 = vst [vmem:[#allocation70_spill] sm:$0xff] %v20460_v28  ;;  %v2349_v38 = vsub.f32 1.0, %v2341_v29  ;;  %v2342_v61 = vand.u32 2147483647, %v20456_v47  ;;  %v20469_v32 = vadd.f32 3.5, %v2329_v17  ;;  %v20483_v17 = vpop.f32.mrb[12].mxu1 }
 0x2a6   : > { %24654 = vst [vmem:[#allocation71_spill] sm:$0xff] %v20462_v5  ;;  %v20477_v40 = vmul.f32 %v20400_v41, %v20460_v28  ;;  %v2348_v54 = vsub.f32 1.0, %v2340_v2  ;;  %v2351_v29 = vsub.f32 1.0, %v2343_v45  ;;  %v20491_v44 = vpop.f32.mrb[13].mxu1  ;;  %v2371_v2 = vand.u32 2147483647, %v14784_v37 }
 0x2a7   : > { %v17087_v59 = vpop.f32.mrb[152].mxu0  ;;  %17252 = vmatmul.mubr.msk.f32.gmra.mrb[52].mxu1 %vm512_vm0, %v19973_v6  ;;  %18806 = vmatprep.subr.bf16.mxu0 %v18805_v63  ;;  %v20481_v6 = vmul.f32 %v20402_v52, %v20462_v5  ;;  %v2350_v35 = vsub.f32 1.0, %v2342_v61  ;;  %v2345_v11 = vand.u32 2147483647, %v20469_v32  ;;  %v20497_v52 = vadd.f32 3.5, %v2328_v9  ;;  %v20499_v45 = vpop.f32.mrb[14].mxu1 }
 0x2a8   : > { %v1915_v4 = vpop.f32.mrb[153].mxu0  ;;  %18808 = vmatpush3.bf16.msra.mxu0 %v18805_v63  ;;  %17254 = vmatprep.mubr.msk.f32.mxu1 %vm512_vm0, %v20471_v48  ;;  %v20488_v63 = vmax.f32 %v2349_v38, 0.0  ;;  %v20493_v41 = vmax.f32 %v2348_v54, 0.0  ;;  %v20495_v28 = vmax.f32 %v2351_v29, 0.0  ;;  %v20505_v38 = vld [vmem:[#allocation6 + $0x8] sm:$0xff]  ;;  %v14783_v54 = vadd.f32 -1.0, %v20426_v50 }
 0x2a9   : > { %v20485_v13 = vpack.c.bf16 %v17087_v59, %v1915_v4  ;;  %18814 = vmatprep.subr.bf16.mxu0 %v19987_v15  ;;  %v20501_v4 = vld [vmem:[#allocation6 + $0x38] sm:$0xff]  ;;  %v20513_v9 = vmax.f32 %v2350_v35, 0.0  ;;  %v2353_v37 = vsub.f32 1.0, %v2345_v11  ;;  %v20516_v29 = vpop.f32.mrb[15].mxu1  ;;  %v2379_v11 = vsub.f32 1.0, %v2371_v2 }
 0x2aa   : > { %24655 = vst [vmem:[#allocation72_spill] sm:$0xff] %v20488_v63  ;;  %24656 = vst [vmem:[#allocation73_spill] sm:$0xff] %v20493_v41  ;;  %v20511_v61 = vmul.f32 %v20404_v24, %v20488_v63  ;;  %v20525_v33 = vmul.f32 %v20406_v14, %v20493_v41  ;;  %v20529_v35 = vmul.f32 %v20408_v58, %v20495_v28  ;;  %v2344_v24 = vand.u32 2147483647, %v20497_v52 }
 0x2ab   : > { %24657 = vst [vmem:[#allocation74_spill] sm:$0xff] %v20495_v28  ;;  %v17090_v59 = vpop.f32.mrb[154].mxu0  ;;  %17255 = vmatmul.mubr.msk.f32.gmra.mrb[54].mxu1 %vm512_vm0, %v20501_v4  ;;  %17630 = vmatmul.mubr.msk.f32.vlgmr.msra.gmra.mrb[216].mxu0 %vm512_vm0, %v20505_v38  ;;  %24658 = vst [vmem:[#allocation75_spill] sm:$0xff] %v20513_v9  ;;  %v20541_v14 = vmax.f32 %v2353_v37, 0.0  ;;  %v2370_v41 = vand.u32 2147483647, %v14783_v54 }
 0x2ac   : > { %v1925_v5 = vpop.f32.mrb[155].mxu0  ;;  %18816 = vmatpush3.bf16.msra.mxu0 %v19987_v15  ;;  %17632 = vmatprep.mubr.msk.f32.mxu0 %vm512_vm0, %v20519_v53  ;;  %v20539_v15 = vmul.f32 %v20414_v49, %v20513_v9  ;;  %v2352_v19 = vsub.f32 1.0, %v2344_v24  ;;  %v20543_v58 = vmax.f32 %v2379_v11, 0.0  ;;  %v14786_v28 = vadd.f32 -1.0, %v20442_v23  ;;  %v20557_v9 = vld [vmem:[#allocation6 + $0x20] sm:$0xff] }
 0x2ad   : > { %v20532_v63 = vpack.c.bf16 %v17090_v59, %v1925_v5  ;;  %18822 = vmatprep.subr.bf16.mxu0 %v20160_v51  ;;  %17261 = vmatprep.mubr.msk.f32.mxu1 %vm512_vm0, %v20382_v10  ;;  %24660 = vst [vmem:[#allocation77_spill] sm:$0xff] %v20541_v14  ;;  %v14785_v5 = vadd.f32 -1.0, %v20449_v46  ;;  %v20547_v59 = vld [vmem:[#allocation6 + $0x18] sm:$0xff]  ;;  %v20553_v49 = vmul.f32 %v20416_v62, %v20541_v14  ;;  %v2378_v37 = vsub.f32 1.0, %v2370_v41 }
 0x2ae   : > { %24661 = vst [vmem:[#allocation78_spill] sm:$0xff] %v20543_v58  ;;  %v14788_v54 = vadd.f32 -1.0, %v20451_v55  ;;  %v14787_v24 = vadd.f32 -1.0, %v20456_v47  ;;  %v20561_v34 = vmax.f32 %v2352_v19, 0.0  ;;  %v2834_v30 = vmul.f32 %v20429_v18, %v20543_v58  ;;  %v20576_v18 = vld [vmem:[#allocation6 + $0x28] sm:$0xff] }
 0x2af   : > { %24659 = vst [vmem:[#allocation76_spill] sm:$0xff] %v20532_v63  ;;  %v17093_v2 = vpop.f32.mrb[156].mxu0  ;;  %17633 = vmatmul.mubr.msk.f32.gmra.mrb[218].mxu0 %vm512_vm0, %v20547_v59  ;;  %v2373_v8 = vand.u32 2147483647, %v14786_v28  ;;  %v2372_v0 = vand.u32 2147483647, %v14785_v5 }
 0x2b0   : > { %v1935_v11 = vpop.f32.mrb[157].mxu0  ;;  %17635 = vmatprep.mubr.msk.f32.mxu0 %vm512_vm0, %v20557_v9  ;;  %24662 = vst [vmem:[#allocation79_spill] sm:$0xff] %v20561_v34  ;;  %v20567_v41 = vmax.f32 %v2378_v37, 0.0  ;;  %v2375_v14 = vand.u32 2147483647, %v14788_v54  ;;  %v20571_v7 = vmul.f32 %v20420_v42, %v20561_v34  ;;  %v20574_v43 = vadd.f32 %v2834_v30, %v20477_v40 }
 0x2b1   : > { %v20565_v62 = vpack.c.bf16 %v17093_v2, %v1935_v11  ;;  %v2374_v39 = vand.u32 2147483647, %v14787_v24  ;;  %v2381_v19 = vsub.f32 1.0, %v2373_v8  ;;  %v2380_v25 = vsub.f32 1.0, %v2372_v0 }
 0x2b2   : > { %24664 = vst [vmem:[#allocation81_spill] sm:$0xff] %v20567_v41  ;;  %v17183_v3 = vpop.f32.mrb[16].mxu1  ;;  %v2833_v28 = vmul.f32 %v20436_v26, %v20567_v41  ;;  %v2383_v5 = vsub.f32 1.0, %v2375_v14  ;;  %v14790_v42 = vadd.f32 -1.0, %v20469_v32  ;;  %v14789_v40 = vadd.f32 -1.0, %v20497_v52 }
 0x2b3   : > { %24663 = vst [vmem:[#allocation80_spill] sm:$0xff] %v20565_v62  ;;  %v17096_v63 = vpop.f32.mrb[158].mxu0  ;;  %17636 = vmatmul.mubr.msk.f32.gmra.mrb[220].mxu0 %vm512_vm0, %v20576_v18  ;;  %v2382_v2 = vsub.f32 1.0, %v2374_v39  ;;  %v20583_v37 = vpop.f32.mrb[17].mxu1  ;;  %v20587_v0 = vmax.f32 %v2381_v19, 0.0  ;;  %v20589_v8 = vmax.f32 %v2380_v25, 0.0 }
 0x2b4   : > { %v1945_v30 = vpop.f32.mrb[159].mxu0  ;;  %17638 = vmatprep.mubr.msk.f32.mxu0 %vm512_vm0, %v20471_v48  ;;  %v14792_v54 = vadd.f32 -2.0, %v20424_v36  ;;  %v20596_v39 = vadd.f32 %v2833_v28, %v20481_v6  ;;  %v20598_v26 = vmax.f32 %v2383_v5, 0.0  ;;  %v2377_v19 = vand.u32 2147483647, %v14790_v42 }
 0x2b5   : > { %24665 = vst [vmem:[#allocation82_spill] sm:$0xff] %v20587_v0  ;;  %24666 = vst [vmem:[#allocation83_spill] sm:$0xff] %v20589_v8  ;;  %v20593_v24 = vpack.c.bf16 %v17096_v63, %v1945_v30  ;;  %v20600_v14 = vmax.f32 %v2382_v2, 0.0  ;;  %v2836_v11 = vmul.f32 %v20453_v56, %v20587_v0  ;;  %v2835_v25 = vmul.f32 %v20458_v16, %v20589_v8 }
 0x2b6   : > { %24668 = vst [vmem:[#allocation85_spill] sm:$0xff] %v20598_v26  ;;  %v2376_v34 = vand.u32 2147483647, %v14789_v40  ;;  %v20606_v41 = vpop.f32.mrb[18].mxu1  ;;  %v2838_v6 = vmul.f32 %v20483_v17, %v20598_v26  ;;  %v2403_v28 = vand.u32 2147483647, %v14792_v54 }
 0x2b7   : > { %24667 = vst [vmem:[#allocation84_spill] sm:$0xff] %v20593_v24  ;;  %24669 = vst [vmem:[#allocation86_spill] sm:$0xff] %v20600_v14  ;;  %v17099_v58 = vpop.f32.mrb[160].mxu0  ;;  %17639 = vmatmul.mubr.msk.f32.gmra.mrb[222].mxu0 %vm512_vm0, %v20501_v4  ;;  %v2837_v63 = vmul.f32 %v20491_v44, %v20600_v14  ;;  %v14791_v56 = vadd.f32 -2.0, %v20426_v50  ;;  %v20615_v5 = vpop.f32.mrb[19].mxu1  ;;  %v20620_v2 = vadd.f32 %v2836_v11, %v20511_v61  ;;  %v2385_v30 = vsub.f32 1.0, %v2377_v19 }
 0x2b8   : > { %v1955_v16 = vpop.f32.mrb[161].mxu0  ;;  %17661 = vmatprep.mubr.msk.f32.mxu0 %vm512_vm0, %v20382_v10  ;;  %v20623_v42 = vadd.f32 %v2835_v25, %v20525_v33  ;;  %v2384_v17 = vsub.f32 1.0, %v2376_v34  ;;  %v20628_v44 = vadd.f32 %v2838_v6, %v20529_v35  ;;  %v2411_v14 = vsub.f32 1.0, %v2403_v28 }
 0x2b9   : > { %v20625_v40 = vpack.c.bf16 %v17099_v58, %v1955_v16  ;;  %v20631_v54 = vadd.f32 %v2837_v63, %v20539_v15  ;;  %v20633_v26 = vmax.f32 %v2385_v30, 0.0  ;;  %v2402_v61 = vand.u32 2147483647, %v14791_v56 }
 0x2ba   : > { %v20635_v8 = vmax.f32 %v2384_v17, 0.0  ;;  %v14794_v11 = vadd.f32 -2.0, %v20442_v23  ;;  %v17189_v33 = vpop.f32.mrb[20].mxu1  ;;  %v20640_v34 = vmax.f32 %v2411_v14, 0.0  ;;  %v14793_v35 = vadd.f32 -2.0, %v20449_v46 }
 0x2bb   : > { %24670 = vst [vmem:[#allocation87_spill] sm:$0xff] %v20625_v40  ;;  %24671 = vst [vmem:[#allocation88_spill] sm:$0xff] %v20633_v26  ;;  %v17102_v25 = vpop.f32.mrb[162].mxu0  ;;  %17662 = vmatmul.mubr.msk.f32.vlgmr.msra.gmra.mrb[224].mxu0 %vm512_vm0, %v20505_v38  ;;  %v14796_v15 = vadd.f32 -2.0, %v20451_v55  ;;  %v14795_v58 = vadd.f32 -2.0, %v20456_v47  ;;  %v2937_v19 = vpop.f32.mrb[21].mxu1  ;;  %v2840_v63 = vmul.f32 %v20499_v45, %v20633_v26 }
 0x2bc   : > { %24672 = vst [vmem:[#allocation89_spill] sm:$0xff] %v20635_v8  ;;  %24673 = vst [vmem:[#allocation90_spill] sm:$0xff] %v20640_v34  ;;  %18824 = vmatpush3.bf16.msra.mxu0 %v20160_v51  ;;  %v1965_v6 = vpop.f32.mrb[163].mxu0  ;;  %17664 = vmatprep.mubr.msk.f32.mxu0 %vm512_vm0, %v20519_v53  ;;  %v2839_v14 = vmul.f32 %v20516_v29, %v20635_v8  ;;  %v2410_v28 = vsub.f32 1.0, %v2402_v61  ;;  %v2405_v56 = vand.u32 2147483647, %v14794_v11 }
 0x2bd   : > { %v20652_v16 = vpack.c.bf16 %v17102_v25, %v1965_v6  ;;  %18830 = vmatprep.subr.bf16.mxu0 %v20324_v12  ;;  %v2957_v30 = vmul.f32 %v17183_v3, %v20640_v34  ;;  %v2404_v17 = vand.u32 2147483647, %v14793_v35  ;;  %v2407_v51 = vand.u32 2147483647, %v14796_v15 }
 0x2be   : > { %v2848_v40 = vadd.f32 %v2840_v63, %v20553_v49  ;;  %v2847_v0 = vadd.f32 %v2839_v14, %v20571_v7  ;;  %v20658_v24 = vmax.f32 %v2410_v28, 0.0  ;;  %v2413_v45 = vsub.f32 1.0, %v2405_v56  ;;  %v17192_v26 = vpop.f32.mrb[22].mxu1 }
 0x2bf   : > { %24674 = vst [vmem:[#allocation91_spill] sm:$0xff] %v20652_v16  ;;  %v17105_v62 = vpop.f32.mrb[164].mxu0  ;;  %17665 = vmatmul.mubr.msk.f32.gmra.mrb[226].mxu0 %vm512_vm0, %v20547_v59  ;;  %v20663_v29 = vadd.f32 %v2957_v30, %v20574_v43  ;;  %v2412_v61 = vsub.f32 1.0, %v2404_v17  ;;  %v2415_v11 = vsub.f32 1.0, %v2407_v51  ;;  %v2406_v3 = vand.u32 2147483647, %v14795_v58 }
 0x2c0   : > { %24675 = vst [vmem:[#allocation92_spill] sm:$0xff] %v20658_v24  ;;  %v2947_v25 = vpop.f32.mrb[23].mxu1  ;;  %v1975_v35 = vpop.f32.mrb[165].mxu0  ;;  %17667 = vmatprep.mubr.msk.f32.mxu0 %vm512_vm0, %v20557_v9  ;;  %v2956_v7 = vmul.f32 %v20583_v37, %v20658_v24  ;;  %v20669_v49 = vmax.f32 %v2413_v45, 0.0  ;;  %v14798_v15 = vadd.f32 -2.0, %v20469_v32  ;;  %v14797_v6 = vadd.f32 -2.0, %v20497_v52 }
 0x2c1   : > { %v20673_v63 = vpack.c.bf16 %v17105_v62, %v1975_v35  ;;  %v20675_v43 = vmax.f32 %v2412_v61, 0.0  ;;  %v20677_v14 = vmax.f32 %v2415_v11, 0.0  ;;  %v2414_v58 = vsub.f32 1.0, %v2406_v3 }
 0x2c2   : > { %24676 = vst [vmem:[#allocation93_spill] sm:$0xff] %v20669_v49  ;;  %v20680_v28 = vadd.f32 %v2956_v7, %v20596_v39  ;;  %v2959_v56 = vmul.f32 %v20606_v41, %v20669_v49  ;;  %v2409_v37 = vand.u32 2147483647, %v14798_v15  ;;  %v2408_v30 = vand.u32 2147483647, %v14797_v6 }
 0x2c3   : > { %24677 = vst [vmem:[#allocation94_spill] sm:$0xff] %v20673_v63  ;;  %24678 = vst [vmem:[#allocation95_spill] sm:$0xff] %v20675_v43  ;;  %v17108_v17 = vpop.f32.mrb[166].mxu0  ;;  %17668 = vmatmul.mubr.msk.f32.gmra.mrb[228].mxu0 %vm512_vm0, %v20576_v18  ;;  %v2958_v62 = vmul.f32 %v20615_v5, %v20675_v43  ;;  %v2961_v51 = vmul.f32 %v17189_v33, %v20677_v14  ;;  %v20689_v45 = vmax.f32 %v2414_v58, 0.0 }
 0x2c4   : > { %24679 = vst [vmem:[#allocation96_spill] sm:$0xff] %v20677_v14  ;;  %v1985_v61 = vpop.f32.mrb[167].mxu0  ;;  %17670 = vmatprep.mubr.msk.f32.mxu0 %vm512_vm0, %v20471_v48  ;;  %v20694_v39 = vadd.f32 %v2959_v56, %v20620_v2  ;;  %v2417_v41 = vsub.f32 1.0, %v2409_v37  ;;  %v2416_v11 = vsub.f32 1.0, %v2408_v30 }
 0x2c5   : > { %24680 = vst [vmem:[#allocation97_spill] sm:$0xff] %v20689_v45  ;;  %v20696_v3 = vpack.c.bf16 %v17108_v17, %v1985_v61  ;;  %v20699_v35 = vadd.f32 %v2958_v62, %v20623_v42  ;;  %v20702_v5 = vadd.f32 %v2961_v51, %v20628_v44  ;;  %v2960_v33 = vmul.f32 %v2937_v19, %v20689_v45 }
 0x2c6   : > { %v20705_v7 = vmax.f32 %v2417_v41, 0.0  ;;  %v20707_v15 = vmax.f32 %v2416_v11, 0.0  ;;  %v14801_v17 = vadd.f32 -3.0, %v20449_v46  ;;  %v14804_v61 = vadd.f32 -3.0, %v20451_v55 }
 0x2c7   : > { %24681 = vst [vmem:[#allocation98_spill] sm:$0xff] %v20696_v3  ;;  %v17111_v6 = vpop.f32.mrb[168].mxu0  ;;  %17671 = vmatmul.mubr.msk.f32.gmra.mrb[230].mxu0 %vm512_vm0, %v20501_v4  ;;  %v20712_v2 = vadd.f32 %v2960_v33, %v20631_v54  ;;  %v14803_v33 = vadd.f32 -3.0, %v20456_v47 }
 0x2c8   : > { %24682 = vst [vmem:[#allocation99_spill] sm:$0xff] %v20705_v7  ;;  %24683 = vst [vmem:[#allocation100_spill] sm:$0xff] %v20707_v15  ;;  %v1995_v58 = vpop.f32.mrb[169].mxu0  ;;  %17693 = vmatprep.mubr.msk.f32.mxu0 %vm512_vm0, %v20382_v10  ;;  %v2963_v42 = vmul.f32 %v17192_v26, %v20705_v7  ;;  %v2962_v44 = vmul.f32 %v2947_v25, %v20707_v15  ;;  %v2436_v11 = vand.u32 2147483647, %v14801_v17 }
 0x2c9   : > { %v18713_v19 = vpack.c.bf16 %v17111_v6, %v1995_v58  ;;  %v2439_v58 = vand.u32 2147483647, %v14804_v61 }
 0x2ca   : > { %v20718_v56 = vadd.f32 %v2963_v42, %v2848_v40  ;;  %v20720_v37 = vadd.f32 %v2962_v44, %v2847_v0  ;;  %v14802_v40 = vadd.f32 -3.0, %v20442_v23  ;;  %v14806_v42 = vadd.f32 -3.0, %v20469_v32 }
 0x2cb   : > { %18714 = vmatprep.subr.bf16.mxu1 %v18713_v19  ;;  %17694 = vmatmul.mubr.msk.f32.vlgmr.msra.gmra.mrb[232].mxu0 %vm512_vm0, %v20505_v38  ;;  %v17114_v30 = vpop.f32.mrb[170].mxu0 }
 0x2cc   : > { %18832 = vmatpush3.bf16.msra.mxu0 %v20324_v12  ;;  %18716 = vmatpush3.bf16.msra.mxu1 %v18713_v19  ;;  %v2005_v54 = vpop.f32.mrb[171].mxu0  ;;  %v14800_v12 = vadd.f32 -3.0, %v20424_v36  ;;  %v2437_v51 = vand.u32 2147483647, %v14802_v40  ;;  %v2444_v19 = vsub.f32 1.0, %v2436_v11  ;;  %v2447_v40 = vsub.f32 1.0, %v2439_v58 }
 0x2cd   : > { %18838 = vmatprep.subr.bf16.mxu0 %v20485_v13  ;;  %18718 = vmatprep.subr.bf16.mxu1 %v19947_v57  ;;  %v20727_v26 = vpack.c.bf16 %v17114_v30, %v2005_v54  ;;  %v2438_v30 = vand.u32 2147483647, %v14803_v33  ;;  %v14805_v54 = vadd.f32 -3.0, %v20497_v52 }
 0x2ce   : > { %17696 = vmatprep.mubr.msk.f32.mxu0 %vm512_vm0, %v20519_v53  ;;  %v2435_v0 = vand.u32 2147483647, %v14800_v12 }
 0x2cf   : > { %17262 = vmatmul.mubr.msk.f32.vlgmr.msra.gmra.mrb[56].mxu1 %vm512_vm0, %v20505_v38  ;;  %17697 = vmatmul.mubr.msk.f32.gmra.mrb[234].mxu0 %vm512_vm0, %v20547_v59  ;;  %v2440_v61 = vand.u32 2147483647, %v14805_v54 }
 0x2d0   : > { %18720 = vmatpush3.bf16.msra.mxu1 %v19947_v57  ;;  %17264 = vmatprep.mubr.msk.f32.mxu1 %vm512_vm0, %v20519_v53  ;;  %v14799_v57 = vadd.f32 -3.0, %v20426_v50  ;;  %v2443_v62 = vsub.f32 1.0, %v2435_v0 }
 0x2d1   : > { %18722 = vmatprep.subr.bf16.mxu1 %v20043_v1  ;;  %17699 = vmatprep.mubr.msk.f32.mxu0 %vm512_vm0, %v20557_v9 }
 0x2d2   : > { %v2434_v25 = vand.u32 2147483647, %v14799_v57  ;;  %v20777_v6 = vmax.f32 %v2443_v62, 0.0  ;;  %v20801_v62 = vmax.f32 %v2444_v19, 0.0 }
 0x2d3   : > { %17265 = vmatmul.mubr.msk.f32.gmra.mrb[58].mxu1 %vm512_vm0, %v20547_v59  ;;  %17700 = vmatmul.mubr.msk.f32.gmra.mrb[236].mxu0 %vm512_vm0, %v20576_v18 }
 0x2d4   : > { %17267 = vmatprep.mubr.msk.f32.mxu1 %vm512_vm0, %v20557_v9  ;;  %17702 = vmatprep.mubr.msk.f32.mxu0 %vm512_vm0, %v20471_v48  ;;  %v2442_v41 = vsub.f32 1.0, %v2434_v25  ;;  %24684 = vst [vmem:[#allocation101_spill] sm:$0xff] %v20777_v6  ;;  %v2441_v25 = vand.u32 2147483647, %v14806_v42  ;;  %24687 = vst [vmem:[#allocation104_spill] sm:$0xff] %v20801_v62  ;;  %v20814_v42 = vmax.f32 %v2447_v40, 0.0 }
 0x2d6   : > { %v20783_v44 = vmax.f32 %v2442_v41, 0.0  ;;  %24688 = vst [vmem:[#allocation105_spill] sm:$0xff] %v20814_v42  ;;  %v2449_v19 = vsub.f32 1.0, %v2441_v25 }
 0x2d7   : > { %17268 = vmatmul.mubr.msk.f32.gmra.mrb[60].mxu1 %vm512_vm0, %v20576_v18  ;;  %17703 = vmatmul.mubr.msk.f32.gmra.mrb[238].mxu0 %vm512_vm0, %v20501_v4 }
 0x2d8   : > { %17270 = vmatprep.mubr.msk.f32.mxu1 %vm512_vm0, %v20471_v48  ;;  %17725 = vmatprep.mubr.msk.f32.mxu0 %vm512_vm0, %v20382_v10  ;;  %24685 = vst [vmem:[#allocation102_spill] sm:$0xff] %v20783_v44  ;;  %v20834_v25 = vmax.f32 %v2449_v19, 0.0 }
 0x2da   : > { %24690 = vst [vmem:[#allocation107_spill] sm:$0xff] %v20834_v25 }
 0x2db   : > { %17271 = vmatmul.mubr.msk.f32.gmra.mrb[62].mxu1 %vm512_vm0, %v20501_v4  ;;  %17726 = vmatmul.mubr.msk.f32.vlgmr.msra.gmra.mrb[240].mxu0 %vm512_vm0, %v20505_v38 }
 0x2dc   : > { %18840 = vmatpush3.bf16.msra.mxu0 %v20485_v13  ;;  %17277 = vmatprep.mubr.msk.f32.mxu1 %vm512_vm0, %v20382_v10  ;;  %v2445_v13 = vsub.f32 1.0, %v2437_v51  ;;  %v2446_v51 = vsub.f32 1.0, %v2438_v30  ;;  %v2448_v30 = vsub.f32 1.0, %v2440_v61 }
 0x2dd   : > { %18846 = vmatprep.subr.bf16.mxu0 %v19997_v20  ;;  %17728 = vmatprep.mubr.msk.f32.mxu0 %vm512_vm0, %v20519_v53 }
 0x2de   : > { %v20794_v0 = vmax.f32 %v2445_v13, 0.0 }
 0x2df   : > { %17278 = vmatmul.mubr.msk.f32.vlgmr.msra.gmra.mrb[64].mxu1 %vm512_vm0, %v20505_v38  ;;  %17729 = vmatmul.mubr.msk.f32.gmra.mrb[242].mxu0 %vm512_vm0, %v20547_v59 }
 0x2e0   : > { %18724 = vmatpush3.bf16.msra.mxu1 %v20043_v1  ;;  %17280 = vmatprep.mubr.msk.f32.mxu1 %vm512_vm0, %v20519_v53  ;;  %24686 = vst [vmem:[#allocation103_spill] sm:$0xff] %v20794_v0 }
 0x2e1   : > { %18726 = vmatprep.subr.bf16.mxu1 %v20129_v27  ;;  %17731 = vmatprep.mubr.msk.f32.mxu0 %vm512_vm0, %v20557_v9 }
 0x2e2   : > { %v17199_v12 = vpop.f32.mrb[24].mxu1 }
 0x2e3   : > { %17281 = vmatmul.mubr.msk.f32.gmra.mrb[66].mxu1 %vm512_vm0, %v20547_v59  ;;  %17732 = vmatmul.mubr.msk.f32.gmra.mrb[244].mxu0 %vm512_vm0, %v20576_v18  ;;  %v3080_v1 = vmul.f32 %v17199_v12, %v20777_v6  ;;  %v3040_v57 = vpop.f32.mrb[25].mxu1 }
 0x2e4   : > { %17283 = vmatprep.mubr.msk.f32.mxu1 %vm512_vm0, %v20557_v9  ;;  %17734 = vmatprep.mubr.msk.f32.mxu0 %vm512_vm0, %v20471_v48  ;;  %v3079_v17 = vmul.f32 %v3040_v57, %v20783_v44 }
 0x2e5   : > { %v20804_v41 = vadd.f32 %v3080_v1, %v20663_v29 }
 0x2e6   : > { %v20807_v11 = vadd.f32 %v3079_v17, %v20680_v28  ;;  %v17202_v33 = vpop.f32.mrb[26].mxu1  ;;  %v20821_v28 = vmax.f32 %v2446_v51, 0.0 }
 0x2e7   : > { %17284 = vmatmul.mubr.msk.f32.gmra.mrb[68].mxu1 %vm512_vm0, %v20576_v18  ;;  %17735 = vmatmul.mubr.msk.f32.gmra.mrb[246].mxu0 %vm512_vm0, %v20501_v4  ;;  %v3082_v13 = vmul.f32 %v17202_v33, %v20794_v0  ;;  %v3050_v58 = vpop.f32.mrb[27].mxu1 }
 0x2e8   : > { %17286 = vmatprep.mubr.msk.f32.mxu1 %vm512_vm0, %v20471_v48  ;;  %17757 = vmatprep.mubr.msk.f32.mxu0 %vm512_vm0, %v20382_v10  ;;  %v3081_v29 = vmul.f32 %v3050_v58, %v20801_v62  ;;  %24689 = vst [vmem:[#allocation106_spill] sm:$0xff] %v20821_v28  ;;  %v14809_v58 = vadd.f32 -4.0, %v20449_v46 }
 0x2e9   : > { %v20824_v54 = vadd.f32 %v3082_v13, %v20694_v39 }
 0x2ea   : > { %v20827_v12 = vadd.f32 %v3081_v29, %v20699_v35  ;;  %v17205_v1 = vpop.f32.mrb[28].mxu1  ;;  %v20840_v35 = vmax.f32 %v2448_v30, 0.0  ;;  %v14812_v30 = vadd.f32 -4.0, %v20451_v55 }
 0x2eb   : > { %17287 = vmatmul.mubr.msk.f32.gmra.mrb[70].mxu1 %vm512_vm0, %v20501_v4  ;;  %17758 = vmatmul.mubr.msk.f32.vlgmr.msra.gmra.mrb[248].mxu0 %vm512_vm0, %v20505_v38  ;;  %v3084_v57 = vmul.f32 %v17205_v1, %v20814_v42  ;;  %v3060_v40 = vpop.f32.mrb[29].mxu1 }
 0x2ec   : > { %18848 = vmatpush3.bf16.msra.mxu0 %v19997_v20  ;;  %17293 = vmatprep.mubr.msk.f32.mxu1 %vm512_vm0, %v20382_v10  ;;  %v3083_v39 = vmul.f32 %v3060_v40, %v20821_v28  ;;  %24691 = vst [vmem:[#allocation108_spill] sm:$0xff] %v20840_v35  ;;  %v14811_v40 = vadd.f32 -4.0, %v20456_v47 }
 0x2ed   : > { %18854 = vmatprep.subr.bf16.mxu0 %v20170_v60  ;;  %17760 = vmatprep.mubr.msk.f32.mxu0 %vm512_vm0, %v20519_v53  ;;  %v20846_v17 = vadd.f32 %v3084_v57, %v20702_v5  ;;  %v2468_v57 = vand.u32 2147483647, %v14809_v58 }
 0x2ee   : > { %v20849_v51 = vadd.f32 %v3083_v39, %v20712_v2  ;;  %v17208_v61 = vpop.f32.mrb[30].mxu1  ;;  %v24692_v39 = vld [vmem:[#allocation76_spill] sm:$0xff] }
 0x2ef   : > { %17294 = vmatmul.mubr.msk.f32.vlgmr.msra.gmra.mrb[72].mxu1 %vm512_vm0, %v20505_v38  ;;  %17761 = vmatmul.mubr.msk.f32.gmra.mrb[250].mxu0 %vm512_vm0, %v20547_v59  ;;  %v3086_v20 = vmul.f32 %v17208_v61, %v20834_v25  ;;  %v3070_v33 = vpop.f32.mrb[31].mxu1 }
 0x2f0   : > { %18728 = vmatpush3.bf16.msra.mxu1 %v20129_v27  ;;  %17296 = vmatprep.mubr.msk.f32.mxu1 %vm512_vm0, %v20519_v53  ;;  %v3085_v5 = vmul.f32 %v3070_v33, %v20840_v35  ;;  %v14808_v27 = vadd.f32 -4.0, %v20424_v36  ;;  %v14814_v33 = vadd.f32 -4.0, %v20469_v32 }
 0x2f1   : > { %18730 = vmatprep.subr.bf16.mxu1 %v20216_v22  ;;  %17763 = vmatprep.mubr.msk.f32.mxu0 %vm512_vm0, %v20557_v9  ;;  %v20864_v2 = vadd.f32 %v3086_v20, %v20718_v56  ;;  %v14810_v56 = vadd.f32 -4.0, %v20442_v23  ;;  %v2471_v20 = vand.u32 2147483647, %v14812_v30 }
 0x2f2   : > { %v20867_v13 = vadd.f32 %v3085_v5, %v20720_v37  ;;  %v2473_v30 = vand.u32 2147483647, %v14814_v33 }
 0x2f3   : > { %17297 = vmatmul.mubr.msk.f32.gmra.mrb[74].mxu1 %vm512_vm0, %v20547_v59  ;;  %17764 = vmatmul.mubr.msk.f32.gmra.mrb[252].mxu0 %vm512_vm0, %v20576_v18  ;;  %v2469_v29 = vand.u32 2147483647, %v14810_v56  ;;  %v24695_v56 = vld [vmem:[#allocation57_spill] sm:$0xff] }
 0x2f4   : > { %17299 = vmatprep.mubr.msk.f32.mxu1 %vm512_vm0, %v20557_v9  ;;  %17766 = vmatprep.mubr.msk.f32.mxu0 %vm512_vm0, %v20471_v48 }
 0x2f7   : > { %17300 = vmatmul.mubr.msk.f32.gmra.mrb[76].mxu1 %vm512_vm0, %v20576_v18  ;;  %17767 = vmatmul.mubr.msk.f32.gmra.mrb[254].mxu0 %vm512_vm0, %v20501_v4 }
 0x2f8   : > { %17302 = vmatprep.mubr.msk.f32.mxu1 %vm512_vm0, %v20471_v48  ;;  %17789 = vmatprep.mubr.msk.f32.mxu0 %vm512_vm0, %v20382_v10 }
 0x2fb   : > { %17303 = vmatmul.mubr.msk.f32.gmra.mrb[78].mxu1 %vm512_vm0, %v20501_v4  ;;  %17790 = vmatmul.mubr.msk.f32.vlgmr.msra.gmra.mrb[0].mxu0 %vm512_vm0, %v20505_v38 }
 0x2fc   : > { %18856 = vmatpush3.bf16.msra.mxu0 %v20170_v60  ;;  %17309 = vmatprep.mubr.msk.f32.mxu1 %vm512_vm0, %v20382_v10  ;;  %v14807_v60 = vadd.f32 -4.0, %v20426_v50 }
 0x2fd   : > { %18862 = vmatprep.subr.bf16.mxu0 %v20334_v21  ;;  %17792 = vmatprep.mubr.msk.f32.mxu0 %vm512_vm0, %v20519_v53 }
 0x2fe   : > { %v2466_v37 = vand.u32 2147483647, %v14807_v60  ;;  %v2470_v60 = vand.u32 2147483647, %v14811_v40 }
 0x2ff   : > { %17310 = vmatmul.mubr.msk.f32.vlgmr.msra.gmra.mrb[80].mxu1 %vm512_vm0, %v20505_v38  ;;  %17793 = vmatmul.mubr.msk.f32.gmra.mrb[2].mxu0 %vm512_vm0, %v20547_v59 }
 0x300   : > { %18732 = vmatpush3.bf16.msra.mxu1 %v20216_v22  ;;  %17312 = vmatprep.mubr.msk.f32.mxu1 %vm512_vm0, %v20519_v53  ;;  %v2467_v22 = vand.u32 2147483647, %v14808_v27  ;;  %v2474_v1 = vsub.f32 1.0, %v2466_v37  ;;  %v2476_v27 = vsub.f32 1.0, %v2468_v57  ;;  %v2478_v40 = vsub.f32 1.0, %v2470_v60 }
 0x301   : > { %18734 = vmatprep.subr.bf16.mxu1 %v20302_v31  ;;  %17795 = vmatprep.mubr.msk.f32.mxu0 %vm512_vm0, %v20557_v9  ;;  %v2481_v60 = vsub.f32 1.0, %v2473_v30 }
 0x302   : > { %v2475_v19 = vsub.f32 1.0, %v2467_v22  ;;  %v20947_v5 = vmax.f32 %v2474_v1, 0.0  ;;  %v14813_v22 = vadd.f32 -4.0, %v20497_v52  ;;  %v20965_v57 = vmax.f32 %v2476_v27, 0.0 }
 0x303   : > { %17313 = vmatmul.mubr.msk.f32.gmra.mrb[82].mxu1 %vm512_vm0, %v20547_v59  ;;  %17796 = vmatmul.mubr.msk.f32.gmra.mrb[4].mxu0 %vm512_vm0, %v20576_v18 }
 0x304   : > { %17315 = vmatprep.mubr.msk.f32.mxu1 %vm512_vm0, %v20557_v9  ;;  %17798 = vmatprep.mubr.msk.f32.mxu0 %vm512_vm0, %v20471_v48  ;;  %v20941_v61 = vmax.f32 %v2475_v19, 0.0  ;;  %24694 = vst [vmem:[#allocation109_spill] sm:$0xff] %v20947_v5  ;;  %24697 = vst [vmem:[#allocation110_spill] sm:$0xff] %v20965_v57  ;;  %v2472_v3 = vand.u32 2147483647, %v14813_v22 }
 0x306   : > { %24693 = vst [vmem:[#allocation76_spill] sm:$0xff] %v20941_v61  ;;  %v2480_v22 = vsub.f32 1.0, %v2472_v3 }
 0x307   : > { %17316 = vmatmul.mubr.msk.f32.gmra.mrb[84].mxu1 %vm512_vm0, %v20576_v18  ;;  %17799 = vmatmul.mubr.msk.f32.gmra.mrb[6].mxu0 %vm512_vm0, %v20501_v4 }
 0x308   : > { %17318 = vmatprep.mubr.msk.f32.mxu1 %vm512_vm0, %v20471_v48  ;;  %17821 = vmatprep.mubr.msk.f32.mxu0 %vm512_vm0, %v20382_v10 }
 0x30b   : > { %17319 = vmatmul.mubr.msk.f32.gmra.mrb[86].mxu1 %vm512_vm0, %v20501_v4  ;;  %17822 = vmatmul.mubr.msk.f32.vlgmr.msra.gmra.mrb[8].mxu0 %vm512_vm0, %v20505_v38 }
 0x30c   : > { %18864 = vmatpush3.bf16.msra.mxu0 %v20334_v21  ;;  %17325 = vmatprep.mubr.msk.f32.mxu1 %vm512_vm0, %v20382_v10  ;;  %v2477_v21 = vsub.f32 1.0, %v2469_v29  ;;  %v2479_v29 = vsub.f32 1.0, %v2471_v20 }
 0x30d   : > { %18870 = vmatprep.subr.bf16.mxu0 %v24692_v39  ;;  %17824 = vmatprep.mubr.msk.f32.mxu0 %vm512_vm0, %v20519_v53 }
 0x30e   : > { %v20958_v19 = vmax.f32 %v2477_v21, 0.0  ;;  %v20978_v27 = vmax.f32 %v2479_v29, 0.0 }
 0x30f   : > { %17326 = vmatmul.mubr.msk.f32.vlgmr.msra.gmra.mrb[88].mxu1 %vm512_vm0, %v20505_v38  ;;  %17825 = vmatmul.mubr.msk.f32.gmra.mrb[10].mxu0 %vm512_vm0, %v20547_v59 }
 0x310   : > { %18736 = vmatpush3.bf16.msra.mxu1 %v20302_v31  ;;  %17328 = vmatprep.mubr.msk.f32.mxu1 %vm512_vm0, %v20519_v53  ;;  %24696 = vst [vmem:[#allocation57_spill] sm:$0xff] %v20958_v19  ;;  %24698 = vst [vmem:[#allocation111_spill] sm:$0xff] %v20978_v27 }
 0x311   : > { %18738 = vmatprep.subr.bf16.mxu1 %v24695_v56  ;;  %17827 = vmatprep.mubr.msk.f32.mxu0 %vm512_vm0, %v20557_v9 }
 0x312   : > { %v17215_v37 = vpop.f32.mrb[32].mxu1 }
 0x313   : > { %17329 = vmatmul.mubr.msk.f32.gmra.mrb[90].mxu1 %vm512_vm0, %v20547_v59  ;;  %17828 = vmatmul.mubr.msk.f32.gmra.mrb[12].mxu0 %vm512_vm0, %v20576_v18  ;;  %v3203_v31 = vmul.f32 %v17215_v37, %v20941_v61  ;;  %v3163_v58 = vpop.f32.mrb[33].mxu1 }
 0x314   : > { %17331 = vmatprep.mubr.msk.f32.mxu1 %vm512_vm0, %v20557_v9  ;;  %17830 = vmatprep.mubr.msk.f32.mxu0 %vm512_vm0, %v20471_v48  ;;  %v3202_v1 = vmul.f32 %v3163_v58, %v20947_v5 }
 0x315   : > { %v20968_v63 = vadd.f32 %v3203_v31, %v20804_v41 }
 0x316   : > { %v20971_v21 = vadd.f32 %v3202_v1, %v20807_v11  ;;  %v17218_v20 = vpop.f32.mrb[34].mxu1  ;;  %v20985_v11 = vmax.f32 %v2478_v40, 0.0 }
 0x317   : > { %17332 = vmatmul.mubr.msk.f32.gmra.mrb[92].mxu1 %vm512_vm0, %v20576_v18  ;;  %17831 = vmatmul.mubr.msk.f32.gmra.mrb[14].mxu0 %vm512_vm0, %v20501_v4  ;;  %v3205_v33 = vmul.f32 %v17218_v20, %v20958_v19  ;;  %v3173_v37 = vpop.f32.mrb[35].mxu1  ;;  %v20998_v20 = vmax.f32 %v2481_v60, 0.0 }
 0x318   : > { %17334 = vmatprep.mubr.msk.f32.mxu1 %vm512_vm0, %v20471_v48  ;;  %17853 = vmatprep.mubr.msk.f32.mxu0 %vm512_vm0, %v20382_v10  ;;  %v3204_v41 = vmul.f32 %v3173_v37, %v20965_v57  ;;  %24699 = vst [vmem:[#allocation112_spill] sm:$0xff] %v20985_v11 }
 0x319   : > { %v20988_v31 = vadd.f32 %v3205_v33, %v20824_v54  ;;  %24700 = vst [vmem:[#allocation113_spill] sm:$0xff] %v20998_v20  ;;  %v21004_v54 = vmax.f32 %v2480_v22, 0.0 }
 0x31a   : > { %v20991_v58 = vadd.f32 %v3204_v41, %v20827_v12  ;;  %v17221_v29 = vpop.f32.mrb[36].mxu1  ;;  %v24702_v12 = vld [vmem:[#allocation17_spill] sm:$0xff]  ;;  %v24703_v41 = vld [vmem:[#allocation68_spill] sm:$0xff] }
 0x31b   : > { %17335 = vmatmul.mubr.msk.f32.gmra.mrb[94].mxu1 %vm512_vm0, %v20501_v4  ;;  %17854 = vmatmul.mubr.msk.f32.vlgmr.msra.gmra.mrb[16].mxu0 %vm512_vm0, %v20505_v38  ;;  %v3207_v30 = vmul.f32 %v17221_v29, %v20978_v27  ;;  %v3183_v1 = vpop.f32.mrb[37].mxu1  ;;  %24701 = vst [vmem:[#allocation114_spill] sm:$0xff] %v21004_v54  ;;  %v14818_v29 = vadd.f32 -5.0, %v20442_v23 }
 0x31c   : > { %18872 = vmatpush3.bf16.msra.mxu0 %v24692_v39  ;;  %17341 = vmatprep.mubr.msk.f32.mxu1 %vm512_vm0, %v20382_v10  ;;  %v3206_v3 = vmul.f32 %v3183_v1, %v20985_v11  ;;  %v21086_v1 = vld [vmem:[#allocation6] sm:$0xff]  ;;  %v24708_v11 = vld [vmem:[#allocation16_spill] sm:$0xff] }
 0x31d   : > { %18878 = vmatprep.subr.bf16.mxu0 %v24702_v12  ;;  %17856 = vmatprep.mubr.msk.f32.mxu0 %vm512_vm0, %v20519_v53  ;;  %v21010_v40 = vadd.f32 %v3207_v30, %v20846_v17  ;;  %v17117_v30 = vpop.f32.mrb[172].mxu0 }
 0x31e   : > { %v21013_v33 = vadd.f32 %v3206_v3, %v20849_v51  ;;  %v17224_v37 = vpop.f32.mrb[38].mxu1 }
 0x31f   : > { %17342 = vmatmul.mubr.msk.f32.vlgmr.msra.gmra.mrb[96].mxu1 %vm512_vm0, %v20505_v38  ;;  %17857 = vmatmul.mubr.msk.f32.gmra.mrb[18].mxu0 %vm512_vm0, %v20547_v59  ;;  %v3209_v39 = vmul.f32 %v17224_v37, %v20998_v20  ;;  %v3193_v60 = vpop.f32.mrb[39].mxu1  ;;  %v2015_v37 = vpop.f32.mrb[173].mxu0  ;;  %v14821_v20 = vadd.f32 -5.0, %v20497_v52 }
 0x320   : > { %18740 = vmatpush3.bf16.msra.mxu1 %v24695_v56  ;;  %17344 = vmatprep.mubr.msk.f32.mxu1 %vm512_vm0, %v20519_v53  ;;  %v3208_v17 = vmul.f32 %v3193_v60, %v21004_v54 }
 0x321   : > { %18742 = vmatprep.subr.bf16.mxu1 %v24703_v41  ;;  %17859 = vmatprep.mubr.msk.f32.mxu0 %vm512_vm0, %v20557_v9  ;;  %v21028_v51 = vadd.f32 %v3209_v39, %v20864_v2  ;;  %v24704_v2 = vld [vmem:[#allocation34_spill] sm:$0xff]  ;;  %v21091_v39 = vpack.c.bf16 %v17117_v30, %v2015_v37  ;;  %v14819_v30 = vadd.f32 -5.0, %v20456_v47  ;;  %v24705_v37 = vld [vmem:[#allocation51_spill] sm:$0xff]  ;;  %v2504_v19 = vand.u32 2147483647, %v14821_v20 }
 0x322   : > { %v21031_v22 = vadd.f32 %v3208_v17, %v20867_v13  ;;  %v14815_v13 = vadd.f32 -5.0, %v20426_v50  ;;  %v2501_v17 = vand.u32 2147483647, %v14818_v29 }
 0x323   : > { %17345 = vmatmul.mubr.msk.f32.gmra.mrb[98].mxu1 %vm512_vm0, %v20547_v59  ;;  %17860 = vmatmul.mubr.msk.f32.gmra.mrb[20].mxu0 %vm512_vm0, %v20576_v18  ;;  %v2502_v54 = vand.u32 2147483647, %v14819_v30  ;;  %v2512_v20 = vsub.f32 1.0, %v2504_v19 }
 0x324   : > { %17347 = vmatprep.mubr.msk.f32.mxu1 %vm512_vm0, %v20557_v9  ;;  %17862 = vmatprep.mubr.msk.f32.mxu0 %vm512_vm0, %v20471_v48  ;;  %v2498_v3 = vand.u32 2147483647, %v14815_v13 }
 0x325   : > { %v2510_v57 = vsub.f32 1.0, %v2502_v54 }
 0x327   : > { %17348 = vmatmul.mubr.msk.f32.gmra.mrb[100].mxu1 %vm512_vm0, %v20576_v18  ;;  %17863 = vmatmul.mubr.msk.f32.gmra.mrb[22].mxu0 %vm512_vm0, %v20501_v4 }
 0x328   : > { %17350 = vmatprep.mubr.msk.f32.mxu1 %vm512_vm0, %v20471_v48  ;;  %17885 = vmatprep.mubr.msk.f32.mxu0 %vm512_vm0, %v20382_v10 }
 0x32b   : > { %17351 = vmatmul.mubr.msk.f32.gmra.mrb[102].mxu1 %vm512_vm0, %v20501_v4  ;;  %17886 = vmatmul.mubr.msk.f32.vlgmr.msra.gmra.mrb[24].mxu0 %vm512_vm0, %v20505_v38 }
 0x32c   : > { %18880 = vmatpush3.bf16.msra.mxu0 %v24702_v12  ;;  %17357 = vmatprep.mubr.msk.f32.mxu1 %vm512_vm0, %v20382_v10  ;;  %v14816_v10 = vadd.f32 -5.0, %v20424_v36  ;;  %v14817_v12 = vadd.f32 -5.0, %v20449_v46 }
 0x32d   : > { %18886 = vmatprep.subr.bf16.mxu0 %v24704_v2  ;;  %17888 = vmatprep.mubr.msk.f32.mxu0 %vm512_vm0, %v20519_v53 }
 0x32e   : > { %v2499_v56 = vand.u32 2147483647, %v14816_v10  ;;  %v2506_v10 = vsub.f32 1.0, %v2498_v3  ;;  %v2500_v13 = vand.u32 2147483647, %v14817_v12  ;;  %v14822_v3 = vadd.f32 -5.0, %v20469_v32 }
 0x32f   : > { %17358 = vmatmul.mubr.msk.f32.vlgmr.msra.gmra.mrb[104].mxu1 %vm512_vm0, %v20505_v38  ;;  %17889 = vmatmul.mubr.msk.f32.gmra.mrb[26].mxu0 %vm512_vm0, %v20547_v59 }
 0x330   : > { %18744 = vmatpush3.bf16.msra.mxu1 %v24703_v41  ;;  %17360 = vmatprep.mubr.msk.f32.mxu1 %vm512_vm0, %v20519_v53  ;;  %v2507_v60 = vsub.f32 1.0, %v2499_v56  ;;  %v14820_v41 = vadd.f32 -5.0, %v20451_v55  ;;  %v21115_v12 = vmax.f32 %v2506_v10, 0.0  ;;  %v2508_v16 = vsub.f32 1.0, %v2500_v13 }
 0x331   : > { %17891 = vmatprep.mubr.msk.f32.mxu0 %vm512_vm0, %v20557_v9  ;;  %18746 = vmatprep.subr.bf16.mxu1 %v20727_v26  ;;  %v2505_v13 = vand.u32 2147483647, %v14822_v3 }
 0x332   : > { %v21109_v56 = vmax.f32 %v2507_v60, 0.0  ;;  %v2503_v29 = vand.u32 2147483647, %v14820_v41  ;;  %24707 = vst [vmem:[#allocation68_spill] sm:$0xff] %v21115_v12  ;;  %v21133_v27 = vmax.f32 %v2508_v16, 0.0 }
 0x333   : > { %17361 = vmatmul.mubr.msk.f32.gmra.mrb[106].mxu1 %vm512_vm0, %v20547_v59  ;;  %17892 = vmatmul.mubr.msk.f32.gmra.mrb[28].mxu0 %vm512_vm0, %v20576_v18  ;;  %v2513_v54 = vsub.f32 1.0, %v2505_v13 }
 0x334   : > { %17363 = vmatprep.mubr.msk.f32.mxu1 %vm512_vm0, %v20557_v9  ;;  %17894 = vmatprep.mubr.msk.f32.mxu0 %vm512_vm0, %v20471_v48  ;;  %24706 = vst [vmem:[#allocation17_spill] sm:$0xff] %v21109_v56  ;;  %v2511_v10 = vsub.f32 1.0, %v2503_v29  ;;  %24710 = vst [vmem:[#allocation51_spill] sm:$0xff] %v21133_v27 }
 0x336   : > { %v21146_v16 = vmax.f32 %v2511_v10, 0.0 }
 0x337   : > { %17364 = vmatmul.mubr.msk.f32.gmra.mrb[108].mxu1 %vm512_vm0, %v20576_v18  ;;  %17895 = vmatmul.mubr.msk.f32.gmra.mrb[30].mxu0 %vm512_vm0, %v20501_v4 }
 0x338   : > { %17366 = vmatprep.mubr.msk.f32.mxu1 %vm512_vm0, %v20471_v48  ;;  %17917 = vmatprep.mubr.msk.f32.mxu0 %vm512_vm0, %v21086_v1  ;;  %24711 = vst [vmem:[#allocation16_spill] sm:$0xff] %v21146_v16 }
 0x33b   : > { %17367 = vmatmul.mubr.msk.f32.gmra.mrb[110].mxu1 %vm512_vm0, %v20501_v4  ;;  %17918 = vmatmul.mubr.msk.f32.vlgmr.msra.gmra.mrb[32].mxu0 %vm512_vm0, %v20505_v38 }
 0x33c   : > { %18888 = vmatpush3.bf16.msra.mxu0 %v24704_v2  ;;  %17373 = vmatprep.mubr.msk.f32.mxu1 %vm512_vm0, %v21086_v1  ;;  %v2509_v2 = vsub.f32 1.0, %v2501_v17 }
 0x33d   : > { %18894 = vmatprep.subr.bf16.mxu0 %v24705_v37  ;;  %17920 = vmatprep.mubr.msk.f32.mxu0 %vm512_vm0, %v20519_v53 }
 0x33e   : > { %v21126_v41 = vmax.f32 %v2509_v2, 0.0 }
 0x33f   : > { %17374 = vmatmul.mubr.msk.f32.vlgmr.msra.gmra.mrb[112].mxu1 %vm512_vm0, %v20505_v38  ;;  %17921 = vmatmul.mubr.msk.f32.gmra.mrb[34].mxu0 %vm512_vm0, %v20547_v59 }
 0x340   : > { %18748 = vmatpush3.bf16.msra.mxu1 %v20727_v26  ;;  %17376 = vmatprep.mubr.msk.f32.mxu1 %vm512_vm0, %v20519_v53  ;;  %24709 = vst [vmem:[#allocation34_spill] sm:$0xff] %v21126_v41 }
 0x341   : > { %18750 = vmatprep.subr.bf16.mxu1 %v24708_v11  ;;  %17923 = vmatprep.mubr.msk.f32.mxu0 %vm512_vm0, %v20557_v9 }
 0x342   : > { %v17231_v60 = vpop.f32.mrb[40].mxu1 }
 0x343   : > { %17377 = vmatmul.mubr.msk.f32.gmra.mrb[114].mxu1 %vm512_vm0, %v20547_v59  ;;  %17924 = vmatmul.mubr.msk.f32.gmra.mrb[36].mxu0 %vm512_vm0, %v20576_v18  ;;  %v3326_v26 = vmul.f32 %v17231_v60, %v21109_v56  ;;  %v3286_v17 = vpop.f32.mrb[41].mxu1 }
 0x344   : > { %17379 = vmatprep.mubr.msk.f32.mxu1 %vm512_vm0, %v20557_v9  ;;  %17926 = vmatprep.mubr.msk.f32.mxu0 %vm512_vm0, %v20471_v48  ;;  %v3325_v30 = vmul.f32 %v3286_v17, %v21115_v12 }
 0x345   : > { %v21136_v5 = vadd.f32 %v3326_v26, %v20968_v63 }
 0x346   : > { %v21139_v2 = vadd.f32 %v3325_v30, %v20971_v21  ;;  %v17234_v29 = vpop.f32.mrb[42].mxu1  ;;  %v21153_v21 = vmax.f32 %v2510_v57, 0.0  ;;  %v21166_v30 = vmax.f32 %v2513_v54, 0.0  ;;  %v21172_v57 = vmax.f32 %v2512_v20, 0.0  ;;  %v24717_v54 = vld [vmem:[#allocation18_spill] sm:$0xff]  ;;  %v24718_v20 = vld [vmem:[#allocation33_spill] sm:$0xff] }
 0x347   : > { %17380 = vmatmul.mubr.msk.f32.gmra.mrb[116].mxu1 %vm512_vm0, %v20576_v18  ;;  %17927 = vmatmul.mubr.msk.f32.gmra.mrb[38].mxu0 %vm512_vm0, %v20501_v4  ;;  %v3328_v3 = vmul.f32 %v17234_v29, %v21126_v41  ;;  %v3296_v60 = vpop.f32.mrb[43].mxu1 }
 0x348   : > { %17382 = vmatprep.mubr.msk.f32.mxu1 %vm512_vm0, %v20471_v48  ;;  %17949 = vmatprep.mubr.msk.f32.mxu0 %vm512_vm0, %v21086_v1  ;;  %v3327_v63 = vmul.f32 %v3296_v60, %v21133_v27  ;;  %24712 = vst [vmem:[#allocation115_spill] sm:$0xff] %v21153_v21  ;;  %24713 = vst [vmem:[#allocation116_spill] sm:$0xff] %v21166_v30  ;;  %v24716_v60 = vld [vmem:[#allocation23_spill] sm:$0xff] }
 0x349   : > { %v21156_v26 = vadd.f32 %v3328_v3, %v20988_v31  ;;  %24714 = vst [vmem:[#allocation117_spill] sm:$0xff] %v21172_v57  ;;  %v24715_v31 = vld [vmem:[#allocation80_spill] sm:$0xff] }
 0x34a   : > { %v21159_v17 = vadd.f32 %v3327_v63, %v20991_v58  ;;  %v17237_v10 = vpop.f32.mrb[44].mxu1  ;;  %v21238_v63 = vld [vmem:[#allocation6 + $0x10] sm:$0xff] }
 0x34b   : > { %17383 = vmatmul.mubr.msk.f32.gmra.mrb[118].mxu1 %vm512_vm0, %v20501_v4  ;;  %17950 = vmatmul.mubr.msk.f32.vlgmr.msra.gmra.mrb[40].mxu0 %vm512_vm0, %v20505_v38  ;;  %v3330_v48 = vmul.f32 %v17237_v10, %v21146_v16  ;;  %v3306_v13 = vpop.f32.mrb[45].mxu1  ;;  %v14823_v10 = vadd.f32 -6.0, %v20426_v50 }
 0x34c   : > { %18896 = vmatpush3.bf16.msra.mxu0 %v24705_v37  ;;  %17389 = vmatprep.mubr.msk.f32.mxu1 %vm512_vm0, %v21086_v1  ;;  %v3329_v19 = vmul.f32 %v3306_v13, %v21153_v21  ;;  %v14825_v13 = vadd.f32 -6.0, %v20449_v46  ;;  %v21293_v21 = vld [vmem:[#allocation6 + $0x20] sm:$0xff] }
 0x34d   : > { %18902 = vmatprep.subr.bf16.mxu0 %v24715_v31  ;;  %v21176_v4 = vadd.f32 %v3330_v48, %v21010_v40  ;;  %17952 = vmatprep.mubr.msk.f32.mxu0 %vm512_vm0, %v20519_v53  ;;  %v14826_v48 = vadd.f32 -6.0, %v20442_v23 }
 0x34e   : > { %v21181_v58 = vadd.f32 %v3329_v19, %v21013_v33  ;;  %v17240_v29 = vpop.f32.mrb[46].mxu1 }
 0x34f   : > { %17390 = vmatmul.mubr.msk.f32.vlgmr.msra.gmra.mrb[120].mxu1 %vm512_vm0, %v20505_v38  ;;  %17953 = vmatmul.mubr.msk.f32.gmra.mrb[42].mxu0 %vm512_vm0, %v20547_v59  ;;  %v3332_v37 = vmul.f32 %v17240_v29, %v21166_v30  ;;  %v3316_v3 = vpop.f32.mrb[47].mxu1  ;;  %v2533_v19 = vand.u32 2147483647, %v14826_v48  ;;  %v24722_v30 = vld [vmem:[#allocation40_spill] sm:$0xff] }
 0x350   : > { %18752 = vmatpush3.bf16.msra.mxu1 %v24708_v11  ;;  %17392 = vmatprep.mubr.msk.f32.mxu1 %vm512_vm0, %v20519_v53  ;;  %v3331_v40 = vmul.f32 %v3316_v3, %v21172_v57  ;;  %v21207_v11 = vld [vmem:[#allocation6 + $0x30] sm:$0xff]  ;;  %v14827_v3 = vadd.f32 -6.0, %v20456_v47  ;;  %v14829_v57 = vadd.f32 -6.0, %v20497_v52 }
 0x351   : > { %18754 = vmatprep.subr.bf16.mxu1 %v24716_v60  ;;  %v21194_v33 = vadd.f32 %v3332_v37, %v21028_v51  ;;  %17955 = vmatprep.mubr.msk.f32.mxu0 %vm512_vm0, %v20557_v9  ;;  %v21213_v51 = vld [vmem:[#allocation6 + $0x38] sm:$0xff]  ;;  %v2532_v37 = vand.u32 2147483647, %v14825_v13 }
 0x352   : > { %v21199_v38 = vadd.f32 %v3331_v40, %v21031_v22  ;;  %v21223_v22 = vld [vmem:[#allocation6 + $0x8] sm:$0xff]  ;;  %v2534_v13 = vand.u32 2147483647, %v14827_v3  ;;  %v2536_v27 = vand.u32 2147483647, %v14829_v57 }
 0x353   : > { %17393 = vmatmul.mubr.msk.f32.gmra.mrb[122].mxu1 %vm512_vm0, %v20547_v59  ;;  %17956 = vmatmul.mubr.msk.f32.gmra.mrb[44].mxu0 %vm512_vm0, %v20576_v18  ;;  %v24719_v40 = vld [vmem:[#allocation35_spill] sm:$0xff] }
 0x354   : > { %17395 = vmatprep.mubr.msk.f32.mxu1 %vm512_vm0, %v20557_v9  ;;  %17958 = vmatprep.mubr.msk.f32.mxu0 %vm512_vm0, %v21207_v11 }
 0x357   : > { %17396 = vmatmul.mubr.msk.f32.gmra.mrb[124].mxu1 %vm512_vm0, %v20576_v18  ;;  %17959 = vmatmul.mubr.msk.f32.gmra.mrb[46].mxu0 %vm512_vm0, %v21213_v51 }
 0x358   : > { %17398 = vmatprep.mubr.msk.f32.mxu1 %vm512_vm0, %v21207_v11  ;;  %17981 = vmatprep.mubr.msk.f32.mxu0 %vm512_vm0, %v21086_v1 }
 0x35b   : > { %17399 = vmatmul.mubr.msk.f32.gmra.mrb[126].mxu1 %vm512_vm0, %v21213_v51  ;;  %17982 = vmatmul.mubr.msk.f32.vlgmr.msra.gmra.mrb[48].mxu0 %vm512_vm0, %v21223_v22 }
 0x35c   : > { %18904 = vmatpush3.bf16.msra.mxu0 %v24715_v31  ;;  %17405 = vmatprep.mubr.msk.f32.mxu1 %vm512_vm0, %v21086_v1  ;;  %v14828_v31 = vadd.f32 -6.0, %v20451_v55 }
 0x35d   : > { %18910 = vmatprep.subr.bf16.mxu0 %v24717_v54  ;;  %17984 = vmatprep.mubr.msk.f32.mxu0 %vm512_vm0, %v20519_v53  ;;  %v14824_v53 = vadd.f32 -6.0, %v20424_v36 }
 0x35f   : > { %17406 = vmatmul.mubr.msk.f32.vlgmr.msra.gmra.mrb[128].mxu1 %vm512_vm0, %v21223_v22  ;;  %17985 = vmatmul.mubr.msk.f32.gmra.mrb[50].mxu0 %vm512_vm0, %v20547_v59 }
 0x360   : > { %18756 = vmatpush3.bf16.msra.mxu1 %v24716_v60  ;;  %17408 = vmatprep.mubr.msk.f32.mxu1 %vm512_vm0, %v21238_v63  ;;  %v21279_v60 = vld [vmem:[#allocation6 + $0x18] sm:$0xff] }
 0x361   : > { %18758 = vmatprep.subr.bf16.mxu1 %v24718_v20  ;;  %17987 = vmatprep.mubr.msk.f32.mxu0 %vm512_vm0, %v20557_v9 }
 0x363   : > { %17409 = vmatmul.mubr.msk.f32.gmra.mrb[130].mxu1 %vm512_vm0, %v20547_v59  ;;  %17988 = vmatmul.mubr.msk.f32.gmra.mrb[52].mxu0 %vm512_vm0, %v20576_v18  ;;  %v2531_v59 = vand.u32 2147483647, %v14824_v53  ;;  %v2541_v53 = vsub.f32 1.0, %v2533_v19 }
 0x364   : > { %17411 = vmatprep.mubr.msk.f32.mxu1 %vm512_vm0, %v20557_v9  ;;  %17990 = vmatprep.mubr.msk.f32.mxu0 %vm512_vm0, %v21207_v11  ;;  %v2530_v9 = vand.u32 2147483647, %v14823_v10  ;;  %v2535_v10 = vand.u32 2147483647, %v14828_v31  ;;  %v21300_v31 = vld [vmem:[#allocation6 + $0x28] sm:$0xff] }
 0x366   : > { %v2538_v29 = vsub.f32 1.0, %v2530_v9  ;;  %v2540_v9 = vsub.f32 1.0, %v2532_v37  ;;  %v2543_v37 = vsub.f32 1.0, %v2535_v10 }
 0x367   : > { %17412 = vmatmul.mubr.msk.f32.gmra.mrb[132].mxu1 %vm512_vm0, %v20576_v18  ;;  %17991 = vmatmul.mubr.msk.f32.gmra.mrb[54].mxu0 %vm512_vm0, %v21213_v51  ;;  %v2539_v18 = vsub.f32 1.0, %v2531_v59  ;;  %v14830_v59 = vadd.f32 -6.0, %v20469_v32 }
 0x368   : > { %17414 = vmatprep.mubr.msk.f32.mxu1 %vm512_vm0, %v21207_v11  ;;  %18013 = vmatprep.mubr.msk.f32.mxu0 %vm512_vm0, %v21086_v1  ;;  %v21289_v48 = vmax.f32 %v2538_v29, 0.0  ;;  %v21304_v29 = vmax.f32 %v2541_v53, 0.0 }
 0x369   : > { %v2537_v3 = vand.u32 2147483647, %v14830_v59 }
 0x36a   : > { %24721 = vst [vmem:[#allocation23_spill] sm:$0xff] %v21289_v48 }
 0x36b   : > { %17415 = vmatmul.mubr.msk.f32.gmra.mrb[134].mxu1 %vm512_vm0, %v21213_v51  ;;  %18014 = vmatmul.mubr.msk.f32.vlgmr.msra.gmra.mrb[56].mxu0 %vm512_vm0, %v21223_v22 }
 0x36c   : > { %18912 = vmatpush3.bf16.msra.mxu0 %v24717_v54  ;;  %17421 = vmatprep.mubr.msk.f32.mxu1 %vm512_vm0, %v21086_v1  ;;  %v21283_v54 = vmax.f32 %v2539_v18, 0.0 }
 0x36d   : > { %18918 = vmatprep.subr.bf16.mxu0 %v24719_v40  ;;  %18016 = vmatprep.mubr.msk.f32.mxu0 %vm512_vm0, %v21238_v63 }
 0x36e   : > { %24720 = vst [vmem:[#allocation80_spill] sm:$0xff] %v21283_v54 }
 0x36f   : > { %17422 = vmatmul.mubr.msk.f32.vlgmr.msra.gmra.mrb[136].mxu1 %vm512_vm0, %v21223_v22  ;;  %18017 = vmatmul.mubr.msk.f32.gmra.mrb[58].mxu0 %vm512_vm0, %v21279_v60 }
 0x370   : > { %18760 = vmatpush3.bf16.msra.mxu1 %v24718_v20  ;;  %17424 = vmatprep.mubr.msk.f32.mxu1 %vm512_vm0, %v21238_v63 }
 0x371   : > { %18762 = vmatprep.subr.bf16.mxu1 %v24722_v30  ;;  %18019 = vmatprep.mubr.msk.f32.mxu0 %vm512_vm0, %v21293_v21 }
 0x372   : > { %v17247_v18 = vpop.f32.mrb[48].mxu1 }
 0x373   : > { %v3449_v19 = vmul.f32 %v17247_v18, %v21283_v54  ;;  %v3409_v20 = vpop.f32.mrb[49].mxu1  ;;  %17425 = vmatmul.mubr.msk.f32.gmra.mrb[138].mxu1 %vm512_vm0, %v21279_v60  ;;  %18020 = vmatmul.mubr.msk.f32.gmra.mrb[60].mxu0 %vm512_vm0, %v21300_v31  ;;  %v21311_v18 = vmax.f32 %v2540_v9, 0.0  ;;  %v2542_v54 = vsub.f32 1.0, %v2534_v13  ;;  %v21324_v9 = vmax.f32 %v2543_v37, 0.0 }
 0x374   : > { %v3448_v16 = vmul.f32 %v3409_v20, %v21289_v48  ;;  %17427 = vmatprep.mubr.msk.f32.mxu1 %vm512_vm0, %v21293_v21  ;;  %18022 = vmatprep.mubr.msk.f32.mxu0 %vm512_vm0, %v21207_v11  ;;  %v2545_v13 = vsub.f32 1.0, %v2537_v3 }
 0x375   : > { %24723 = vst [vmem:[#allocation18_spill] sm:$0xff] %v21311_v18  ;;  %v21314_v41 = vadd.f32 %v3449_v19, %v21136_v5  ;;  %v21331_v5 = vmax.f32 %v2542_v54, 0.0 }
 0x376   : > { %v21317_v53 = vadd.f32 %v3448_v16, %v21139_v2  ;;  %v17250_v10 = vpop.f32.mrb[50].mxu1  ;;  %v2544_v2 = vsub.f32 1.0, %v2536_v27  ;;  %v21344_v54 = vmax.f32 %v2545_v13, 0.0 }
 0x377   : > { %v3451_v59 = vmul.f32 %v17250_v10, %v21304_v29  ;;  %v3419_v20 = vpop.f32.mrb[51].mxu1  ;;  %17428 = vmatmul.mubr.msk.f32.gmra.mrb[140].mxu1 %vm512_vm0, %v21300_v31  ;;  %18023 = vmatmul.mubr.msk.f32.gmra.mrb[62].mxu0 %vm512_vm0, %v21213_v51  ;;  %24724 = vst [vmem:[#allocation33_spill] sm:$0xff] %v21331_v5  ;;  %v17120_v10 = vpop.f32.mrb[174].mxu0 }
 0x378   : > { %v3450_v57 = vmul.f32 %v3419_v20, %v21311_v18  ;;  %17430 = vmatprep.mubr.msk.f32.mxu1 %vm512_vm0, %v21207_v11  ;;  %18045 = vmatprep.mubr.msk.f32.mxu0 %vm512_vm0, %v21086_v1  ;;  %24725 = vst [vmem:[#allocation35_spill] sm:$0xff] %v21344_v54 }
 0x379   : > { %v21334_v16 = vadd.f32 %v3451_v59, %v21156_v26  ;;  %v21350_v26 = vmax.f32 %v2544_v2, 0.0  ;;  %v24728_v2 = vld [vmem:[#allocation50_spill] sm:$0xff] }
 0x37a   : > { %v21337_v19 = vadd.f32 %v3450_v57, %v21159_v17  ;;  %v17253_v37 = vpop.f32.mrb[52].mxu1  ;;  %v2025_v17 = vpop.f32.mrb[175].mxu0  ;;  %v24727_v57 = vld [vmem:[#allocation52_spill] sm:$0xff] }
 0x37b   : > { %v3453_v3 = vmul.f32 %v17253_v37, %v21324_v9  ;;  %v3429_v20 = vpop.f32.mrb[53].mxu1  ;;  %17431 = vmatmul.mubr.msk.f32.gmra.mrb[142].mxu1 %vm512_vm0, %v21213_v51  ;;  %18046 = vmatmul.mubr.msk.f32.vlgmr.msra.gmra.mrb[64].mxu0 %vm512_vm0, %v21223_v22  ;;  %24726 = vst [vmem:[#allocation40_spill] sm:$0xff] %v21350_v26  ;;  %v21358_v13 = vpack.c.bf16 %v17120_v10, %v2025_v17  ;;  %v14833_v17 = vadd.f32 -7.0, %v20449_v46  ;;  %v14835_v46 = vadd.f32 -7.0, %v20456_v47 }
 0x37c   : > { %v3452_v27 = vmul.f32 %v3429_v20, %v21331_v5  ;;  %18920 = vmatpush3.bf16.msra.mxu0 %v24719_v40  ;;  %17437 = vmatprep.mubr.msk.f32.mxu1 %vm512_vm0, %v21086_v1 }
 0x37d   : > { %v21353_v59 = vadd.f32 %v3453_v3, %v21176_v4  ;;  %18926 = vmatprep.subr.bf16.mxu0 %v24727_v57  ;;  %18048 = vmatprep.mubr.msk.f32.mxu0 %vm512_vm0, %v21238_v63 }
 0x37e   : > { %v21361_v37 = vadd.f32 %v3452_v27, %v21181_v58  ;;  %v17256_v40 = vpop.f32.mrb[54].mxu1  ;;  %v14834_v27 = vadd.f32 -7.0, %v20442_v23  ;;  %v14836_v23 = vadd.f32 -7.0, %v20451_v55 }
 0x37f   : > { %v3455_v20 = vmul.f32 %v17256_v40, %v21344_v54  ;;  %v3439_v5 = vpop.f32.mrb[55].mxu1  ;;  %17438 = vmatmul.mubr.msk.f32.vlgmr.msra.gmra.mrb[144].mxu1 %vm512_vm0, %v21223_v22  ;;  %18049 = vmatmul.mubr.msk.f32.gmra.mrb[66].mxu0 %vm512_vm0, %v21279_v60 }
 0x380   : > { %v3454_v4 = vmul.f32 %v3439_v5, %v21350_v26  ;;  %18764 = vmatpush3.bf16.msra.mxu1 %v24722_v30  ;;  %17440 = vmatprep.mubr.msk.f32.mxu1 %vm512_vm0, %v21238_v63  ;;  %v24729_v30 = vld [vmem:[#allocation84_spill] sm:$0xff]  ;;  %v14831_v5 = vadd.f32 -7.0, %v20426_v50 }
 0x381   : > { %v21373_v58 = vadd.f32 %v3455_v20, %v21194_v33  ;;  %18766 = vmatprep.subr.bf16.mxu1 %v24728_v2  ;;  %18051 = vmatprep.mubr.msk.f32.mxu0 %vm512_vm0, %v21293_v21  ;;  %v24730_v33 = vld [vmem:[#allocation58_spill] sm:$0xff]  ;;  %v2564_v20 = vand.u32 2147483647, %v14833_v17 }
 0x382   : > { %v21379_v10 = vadd.f32 %v3454_v4, %v21199_v38  ;;  %v14832_v38 = vadd.f32 -7.0, %v20424_v36  ;;  %v2562_v36 = vand.u32 2147483647, %v14831_v5  ;;  %v24731_v4 = vld [vmem:[#allocation19_spill] sm:$0xff] }
 0x383   : > { %17441 = vmatmul.mubr.msk.f32.gmra.mrb[146].mxu1 %vm512_vm0, %v21279_v60  ;;  %18052 = vmatmul.mubr.msk.f32.gmra.mrb[68].mxu0 %vm512_vm0, %v21300_v31  ;;  %v2572_v5 = vsub.f32 1.0, %v2564_v20 }
 0x384   : > { %17443 = vmatprep.mubr.msk.f32.mxu1 %vm512_vm0, %v21293_v21  ;;  %18054 = vmatprep.mubr.msk.f32.mxu0 %vm512_vm0, %v21207_v11  ;;  %v2563_v3 = vand.u32 2147483647, %v14832_v38  ;;  %v2570_v40 = vsub.f32 1.0, %v2562_v36  ;;  %v14838_v38 = vadd.f32 -7.0, %v20469_v32  ;;  %v24734_v36 = vld [vmem:[#allocation69_spill] sm:$0xff] }
 0x386   : > { %v2571_v50 = vsub.f32 1.0, %v2563_v3  ;;  %v21460_v47 = vmax.f32 %v2570_v40, 0.0  ;;  %v2566_v3 = vand.u32 2147483647, %v14835_v46  ;;  %v21478_v40 = vmax.f32 %v2572_v5, 0.0 }
 0x387   : > { %17444 = vmatmul.mubr.msk.f32.gmra.mrb[148].mxu1 %vm512_vm0, %v21300_v31  ;;  %18055 = vmatmul.mubr.msk.f32.gmra.mrb[70].mxu0 %vm512_vm0, %v21213_v51 }
 0x388   : > { %17446 = vmatprep.mubr.msk.f32.mxu1 %vm512_vm0, %v21207_v11  ;;  %18077 = vmatprep.mubr.msk.f32.mxu0 %vm512_vm0, %v21086_v1  ;;  %v21453_v55 = vmax.f32 %v2571_v50, 0.0  ;;  %24733 = vst [vmem:[#allocation50_spill] sm:$0xff] %v21460_v47  ;;  %24736 = vst [vmem:[#allocation58_spill] sm:$0xff] %v21478_v40  ;;  %v2574_v20 = vsub.f32 1.0, %v2566_v3 }
 0x38a   : > { %24732 = vst [vmem:[#allocation52_spill] sm:$0xff] %v21453_v55  ;;  %v21498_v3 = vmax.f32 %v2574_v20, 0.0 }
 0x38b   : > { %17447 = vmatmul.mubr.msk.f32.gmra.mrb[150].mxu1 %vm512_vm0, %v21213_v51  ;;  %18078 = vmatmul.mubr.msk.f32.vlgmr.msra.gmra.mrb[72].mxu0 %vm512_vm0, %v21223_v22 }
 0x38c   : > { %18928 = vmatpush3.bf16.msra.mxu0 %v24727_v57  ;;  %17453 = vmatprep.mubr.msk.f32.mxu1 %vm512_vm0, %v21086_v1  ;;  %v2565_v57 = vand.u32 2147483647, %v14834_v27  ;;  %v14837_v27 = vadd.f32 -7.0, %v20497_v52  ;;  %24738 = vst [vmem:[#allocation69_spill] sm:$0xff] %v21498_v3 }
 0x38d   : > { %18934 = vmatprep.subr.bf16.mxu0 %v24729_v30  ;;  %18080 = vmatprep.mubr.msk.f32.mxu0 %vm512_vm0, %v21238_v63 }
 0x38e   : > { %v2568_v46 = vand.u32 2147483647, %v14837_v27 }
 0x38f   : > { %17454 = vmatmul.mubr.msk.f32.vlgmr.msra.gmra.mrb[152].mxu1 %vm512_vm0, %v21223_v22  ;;  %18081 = vmatmul.mubr.msk.f32.gmra.mrb[74].mxu0 %vm512_vm0, %v21279_v60 }
 0x390   : > { %18768 = vmatpush3.bf16.msra.mxu1 %v24728_v2  ;;  %17456 = vmatprep.mubr.msk.f32.mxu1 %vm512_vm0, %v21238_v63  ;;  %v2573_v2 = vsub.f32 1.0, %v2565_v57  ;;  %v2576_v27 = vsub.f32 1.0, %v2568_v46  ;;  %v24741_v46 = vld [vmem:[#allocation36_spill] sm:$0xff] }
 0x391   : > { %18770 = vmatprep.subr.bf16.mxu1 %v24730_v33  ;;  %18083 = vmatprep.mubr.msk.f32.mxu0 %vm512_vm0, %v21293_v21 }
 0x393   : > { %17457 = vmatmul.mubr.msk.f32.gmra.mrb[154].mxu1 %vm512_vm0, %v21279_v60  ;;  %18084 = vmatmul.mubr.msk.f32.gmra.mrb[76].mxu0 %vm512_vm0, %v21300_v31 }
 0x394   : > { %17459 = vmatprep.mubr.msk.f32.mxu1 %vm512_vm0, %v21293_v21  ;;  %18086 = vmatprep.mubr.msk.f32.mxu0 %vm512_vm0, %v21207_v11 }
 0x397   : > { %17460 = vmatmul.mubr.msk.f32.gmra.mrb[156].mxu1 %vm512_vm0, %v21300_v31  ;;  %18087 = vmatmul.mubr.msk.f32.gmra.mrb[78].mxu0 %vm512_vm0, %v21213_v51 }
 0x398   : > { %17462 = vmatprep.mubr.msk.f32.mxu1 %vm512_vm0, %v21207_v11  ;;  %18109 = vmatprep.mubr.msk.f32.mxu0 %vm512_vm0, %v21086_v1 }
 0x39b   : > { %17463 = vmatmul.mubr.msk.f32.gmra.mrb[158].mxu1 %vm512_vm0, %v21213_v51  ;;  %18110 = vmatmul.mubr.msk.f32.vlgmr.msra.gmra.mrb[80].mxu0 %vm512_vm0, %v21223_v22 }
 0x39c   : > { %18936 = vmatpush3.bf16.msra.mxu0 %v24729_v30  ;;  %17469 = vmatprep.mubr.msk.f32.mxu1 %vm512_vm0, %v21086_v1  ;;  %v2567_v30 = vand.u32 2147483647, %v14836_v23  ;;  %v2569_v23 = vand.u32 2147483647, %v14838_v38 }
 0x39d   : > { %18942 = vmatprep.subr.bf16.mxu0 %v24731_v4  ;;  %18112 = vmatprep.mubr.msk.f32.mxu0 %vm512_vm0, %v21238_v63 }
 0x39e   : > { %v2575_v57 = vsub.f32 1.0, %v2567_v30 }
 0x39f   : > { %17470 = vmatmul.mubr.msk.f32.vlgmr.msra.gmra.mrb[160].mxu1 %vm512_vm0, %v21223_v22  ;;  %18113 = vmatmul.mubr.msk.f32.gmra.mrb[82].mxu0 %vm512_vm0, %v21279_v60 }
 0x3a0   : > { %18772 = vmatpush3.bf16.msra.mxu1 %v24730_v33  ;;  %17472 = vmatprep.mubr.msk.f32.mxu1 %vm512_vm0, %v21238_v63  ;;  %v21471_v33 = vmax.f32 %v2573_v2, 0.0  ;;  %v21490_v5 = vmax.f32 %v2575_v57, 0.0 }
 0x3a1   : > { %18774 = vmatprep.subr.bf16.mxu1 %v24734_v36  ;;  %18115 = vmatprep.mubr.msk.f32.mxu0 %vm512_vm0, %v21293_v21 }
 0x3a2   : > { %v17263_v17 = vpop.f32.mrb[56].mxu1  ;;  %24735 = vst [vmem:[#allocation84_spill] sm:$0xff] %v21471_v33  ;;  %24737 = vst [vmem:[#allocation19_spill] sm:$0xff] %v21490_v5 }
 0x3a3   : > { %v3572_v32 = vmul.f32 %v17263_v17, %v21453_v55  ;;  %v3532_v50 = vpop.f32.mrb[57].mxu1  ;;  %17473 = vmatmul.mubr.msk.f32.gmra.mrb[162].mxu1 %vm512_vm0, %v21279_v60  ;;  %18116 = vmatmul.mubr.msk.f32.gmra.mrb[84].mxu0 %vm512_vm0, %v21300_v31 }
 0x3a4   : > { %v3571_v52 = vmul.f32 %v3532_v50, %v21460_v47  ;;  %17475 = vmatprep.mubr.msk.f32.mxu1 %vm512_vm0, %v21293_v21  ;;  %18118 = vmatprep.mubr.msk.f32.mxu0 %vm512_vm0, %v21207_v11 }
 0x3a5   : > { %v3580_v17 = vadd.f32 %v3572_v32, %v21314_v41  ;;  %v2577_v41 = vsub.f32 1.0, %v2569_v23 }
 0x3a6   : > { %v3579_v55 = vadd.f32 %v3571_v52, %v21317_v53  ;;  %v17266_v2 = vpop.f32.mrb[58].mxu1 }
 0x3a7   : > { %3588 = vst [vmem:[%s21482_s26 + $0x8] sm:$0xff] %v3580_v17  ;;  %v3574_v30 = vmul.f32 %v17266_v2, %v21471_v33  ;;  %v3542_v38 = vpop.f32.mrb[59].mxu1  ;;  %17476 = vmatmul.mubr.msk.f32.gmra.mrb[164].mxu1 %vm512_vm0, %v21300_v31  ;;  %18119 = vmatmul.mubr.msk.f32.gmra.mrb[86].mxu0 %vm512_vm0, %v21213_v51  ;;  %v21508_v52 = vmax.f32 %v2577_v41, 0.0 }
 0x3a8   : > { %3587 = vst [vmem:[%s21482_s26] sm:$0xff] %v3579_v55  ;;  %v3573_v53 = vmul.f32 %v3542_v38, %v21478_v40  ;;  %17478 = vmatprep.mubr.msk.f32.mxu1 %vm512_vm0, %v21207_v11  ;;  %18141 = vmatprep.mubr.msk.f32.mxu0 %vm512_vm0, %v21086_v1 }
 0x3a9   : > { %v3582_v32 = vadd.f32 %v3574_v30, %v21334_v16  ;;  %24739 = vst [vmem:[#allocation118_spill] sm:$0xff] %v21508_v52 }
 0x3aa   : > { %v3581_v50 = vadd.f32 %v3573_v53, %v21337_v19  ;;  %v17269_v57 = vpop.f32.mrb[60].mxu1  ;;  %v21515_v19 = vmax.f32 %v2576_v27, 0.0  ;;  %v17123_v53 = vpop.f32.mrb[176].mxu0 }
 0x3ab   : > { %3590 = vst [vmem:[%s21482_s26 + $0x18] sm:$0xff] %v3582_v32  ;;  %v3576_v55 = vmul.f32 %v17269_v57, %v21490_v5  ;;  %v3552_v23 = vpop.f32.mrb[61].mxu1  ;;  %17479 = vmatmul.mubr.msk.f32.gmra.mrb[166].mxu1 %vm512_vm0, %v21213_v51  ;;  %18142 = vmatmul.mubr.msk.f32.vlgmr.msra.gmra.mrb[88].mxu0 %vm512_vm0, %v21223_v22  ;;  %v2035_v27 = vpop.f32.mrb[177].mxu0 }
 0x3ac   : > { %3589 = vst [vmem:[%s21482_s26 + $0x10] sm:$0xff] %v3581_v50  ;;  %v3575_v16 = vmul.f32 %v3552_v23, %v21498_v3  ;;  %18944 = vmatpush3.bf16.msra.mxu0 %v24731_v4  ;;  %17485 = vmatprep.mubr.msk.f32.mxu1 %vm512_vm0, %v21086_v1  ;;  %24740 = vst [vmem:[#allocation119_spill] sm:$0xff] %v21515_v19  ;;  %v21556_v32 = vpack.c.bf16 %v17123_v53, %v2035_v27 }
 0x3ad   : > { %v3584_v20 = vadd.f32 %v3576_v55, %v21353_v59  ;;  %18950 = vmatprep.subr.bf16.mxu0 %v24741_v46  ;;  %18144 = vmatprep.mubr.msk.f32.mxu0 %vm512_vm0, %v21238_v63  ;;  %v24743_v55 = vld [vmem:[#allocation53_spill] sm:$0xff] }
 0x3ae   : > { %v3583_v17 = vadd.f32 %v3575_v16, %v21361_v37  ;;  %v17272_v2 = vpop.f32.mrb[62].mxu1  ;;  %24742 = vst [vmem:[#allocation36_spill] sm:$0xff] %v21556_v32  ;;  %v24750_v32 = vld [vmem:[#allocation82_spill] sm:$0xff] }
 0x3af   : > { %3592 = vst [vmem:[%s21482_s26 + $0x28] sm:$0xff] %v3584_v20  ;;  %v3578_v30 = vmul.f32 %v17272_v2, %v21508_v52  ;;  %v3562_v4 = vpop.f32.mrb[63].mxu1  ;;  %17486 = vmatmul.mubr.msk.f32.vlgmr.msra.gmra.mrb[168].mxu1 %vm512_vm0, %v21223_v22  ;;  %18145 = vmatmul.mubr.msk.f32.gmra.mrb[90].mxu0 %vm512_vm0, %v21279_v60  ;;  %v24744_v20 = vld [vmem:[#allocation24_spill] sm:$0xff] }
 0x3b0   : > { %3591 = vst [vmem:[%s21482_s26 + $0x20] sm:$0xff] %v3583_v17  ;;  %v3577_v59 = vmul.f32 %v3562_v4, %v21515_v19  ;;  %18776 = vmatpush3.bf16.msra.mxu1 %v24734_v36  ;;  %17488 = vmatprep.mubr.msk.f32.mxu1 %vm512_vm0, %v21238_v63  ;;  %v24745_v17 = vld [vmem:[#allocation70_spill] sm:$0xff] }
 0x3b1   : > { %v3586_v37 = vadd.f32 %v3578_v30, %v21373_v58  ;;  %18147 = vmatprep.mubr.msk.f32.mxu0 %vm512_vm0, %v21293_v21  ;;  %18778 = vmatprep.subr.bf16.mxu1 %v21091_v39  ;;  %v24746_v30 = vld [vmem:[#allocation78_spill] sm:$0xff] }
 0x3b2   : > { %v3585_v38 = vadd.f32 %v3577_v59, %v21379_v10  ;;  %v17279_v41 = vpop.f32.mrb[64].mxu1 }
 0x3b3   : > { %3594 = vst [vmem:[%s21482_s26 + $0x38] sm:$0xff] %v3586_v37  ;;  %17489 = vmatmul.mubr.msk.f32.gmra.mrb[170].mxu1 %vm512_vm0, %v21279_v60  ;;  %18148 = vmatmul.mubr.msk.f32.gmra.mrb[92].mxu0 %vm512_vm0, %v21300_v31  ;;  %v3663_v36 = vpop.f32.mrb[65].mxu1  ;;  %v3703_v2 = vmul.f32 %v17279_v41, %v24745_v17 }
 0x3b4   : > { %3593 = vst [vmem:[%s21482_s26 + $0x30] sm:$0xff] %v3585_v38  ;;  %17491 = vmatprep.mubr.msk.f32.mxu1 %vm512_vm0, %v21293_v21  ;;  %18150 = vmatprep.mubr.msk.f32.mxu0 %vm512_vm0, %v21207_v11  ;;  %v24748_v38 = vld [vmem:[#allocation81_spill] sm:$0xff] }
 0x3b6   : > { %v17282_v58 = vpop.f32.mrb[66].mxu1 }
 0x3b7   : > { %17492 = vmatmul.mubr.msk.f32.gmra.mrb[172].mxu1 %vm512_vm0, %v21300_v31  ;;  %18151 = vmatmul.mubr.msk.f32.gmra.mrb[94].mxu0 %vm512_vm0, %v21213_v51  ;;  %v3673_v10 = vpop.f32.mrb[67].mxu1 }
 0x3b8   : > { %17494 = vmatprep.mubr.msk.f32.mxu1 %vm512_vm0, %v21207_v11  ;;  %18173 = vmatprep.mubr.msk.f32.mxu0 %vm512_vm0, %v21086_v1 }
 0x3ba   : > { %v17285_v50 = vpop.f32.mrb[68].mxu1 }
 0x3bb   : > { %17495 = vmatmul.mubr.msk.f32.gmra.mrb[174].mxu1 %vm512_vm0, %v21213_v51  ;;  %18174 = vmatmul.mubr.msk.f32.vlgmr.msra.gmra.mrb[96].mxu0 %vm512_vm0, %v21223_v22  ;;  %v3683_v57 = vpop.f32.mrb[69].mxu1 }
 0x3bc   : > { %18952 = vmatpush3.bf16.msra.mxu0 %v24741_v46  ;;  %17501 = vmatprep.mubr.msk.f32.mxu1 %vm512_vm0, %v21086_v1 }
 0x3bd   : > { %18958 = vmatprep.subr.bf16.mxu0 %v24743_v55  ;;  %18176 = vmatprep.mubr.msk.f32.mxu0 %vm512_vm0, %v21238_v63 }
 0x3be   : > { %v17288_v23 = vpop.f32.mrb[70].mxu1 }
 0x3bf   : > { %17502 = vmatmul.mubr.msk.f32.vlgmr.msra.gmra.mrb[176].mxu1 %vm512_vm0, %v21223_v22  ;;  %18177 = vmatmul.mubr.msk.f32.gmra.mrb[98].mxu0 %vm512_vm0, %v21279_v60  ;;  %v3693_v16 = vpop.f32.mrb[71].mxu1 }
 0x3c0   : > { %18780 = vmatpush3.bf16.msra.mxu1 %v21091_v39  ;;  %17504 = vmatprep.mubr.msk.f32.mxu1 %vm512_vm0, %v21238_v63  ;;  %v24747_v39 = vld [vmem:[#allocation71_spill] sm:$0xff] }
 0x3c1   : > { %18786 = vmatprep.subr.bf16.mxu1 %v24744_v20  ;;  %18179 = vmatprep.mubr.msk.f32.mxu0 %vm512_vm0, %v21293_v21  ;;  %v3702_v37 = vmul.f32 %v3663_v36, %v24747_v39  ;;  %v24751_v36 = vld [vmem:[#allocation73_spill] sm:$0xff] }
 0x3c2   : > { %v17295_v46 = vpop.f32.mrb[72].mxu1 }
 0x3c3   : > { %v3818_v4 = vmul.f32 %v17295_v46, %v24746_v30  ;;  %v3778_v59 = vpop.f32.mrb[73].mxu1  ;;  %17505 = vmatmul.mubr.msk.f32.gmra.mrb[178].mxu1 %vm512_vm0, %v21279_v60  ;;  %18180 = vmatmul.mubr.msk.f32.gmra.mrb[100].mxu0 %vm512_vm0, %v21300_v31  ;;  %v24749_v30 = vld [vmem:[#allocation72_spill] sm:$0xff] }
 0x3c4   : > { %v3817_v53 = vmul.f32 %v3778_v59, %v24748_v38  ;;  %17507 = vmatprep.mubr.msk.f32.mxu1 %vm512_vm0, %v21293_v21  ;;  %18182 = vmatprep.mubr.msk.f32.mxu0 %vm512_vm0, %v21207_v11  ;;  %v3705_v17 = vmul.f32 %v17282_v58, %v24749_v30  ;;  %v3704_v59 = vmul.f32 %v3673_v10, %v24751_v36  ;;  %v24752_v38 = vld [vmem:[#allocation83_spill] sm:$0xff] }
 0x3c5   : > { %v3826_v41 = vadd.f32 %v3818_v4, %v3703_v2 }
 0x3c6   : > { %v3825_v27 = vadd.f32 %v3817_v53, %v3702_v37  ;;  %v17298_v46 = vpop.f32.mrb[74].mxu1  ;;  %v24753_v37 = vld [vmem:[#allocation74_spill] sm:$0xff] }
 0x3c7   : > { %v3820_v19 = vmul.f32 %v17298_v46, %v24750_v32  ;;  %v3788_v52 = vpop.f32.mrb[75].mxu1  ;;  %17508 = vmatmul.mubr.msk.f32.gmra.mrb[180].mxu1 %vm512_vm0, %v21300_v31  ;;  %18183 = vmatmul.mubr.msk.f32.gmra.mrb[102].mxu0 %vm512_vm0, %v21213_v51  ;;  %v3707_v53 = vmul.f32 %v17285_v50, %v24753_v37  ;;  %v24754_v46 = vld [vmem:[#allocation85_spill] sm:$0xff]  ;;  %v24757_v50 = vld [vmem:[#allocation87_spill] sm:$0xff] }
 0x3c8   : > { %v3819_v39 = vmul.f32 %v3788_v52, %v24752_v38  ;;  %17510 = vmatprep.mubr.msk.f32.mxu1 %vm512_vm0, %v21207_v11  ;;  %18205 = vmatprep.mubr.msk.f32.mxu0 %vm512_vm0, %v21086_v1  ;;  %v24755_v52 = vld [vmem:[#allocation75_spill] sm:$0xff]  ;;  %v24756_v38 = vld [vmem:[#allocation86_spill] sm:$0xff] }
 0x3c9   : > { %v3828_v58 = vadd.f32 %v3820_v19, %v3705_v17  ;;  %v3706_v10 = vmul.f32 %v3683_v57, %v24755_v52 }
 0x3ca   : > { %v3827_v2 = vadd.f32 %v3819_v39, %v3704_v59  ;;  %v17301_v4 = vpop.f32.mrb[76].mxu1  ;;  %v24758_v59 = vld [vmem:[#allocation77_spill] sm:$0xff] }
 0x3cb   : > { %v3822_v32 = vmul.f32 %v17301_v4, %v24754_v46  ;;  %v3798_v30 = vpop.f32.mrb[77].mxu1  ;;  %17511 = vmatmul.mubr.msk.f32.gmra.mrb[182].mxu1 %vm512_vm0, %v21213_v51  ;;  %18206 = vmatmul.mubr.msk.f32.vlgmr.msra.gmra.mrb[104].mxu0 %vm512_vm0, %v21223_v22  ;;  %v3709_v4 = vmul.f32 %v17288_v23, %v24758_v59  ;;  %v24759_v46 = vld [vmem:[#allocation88_spill] sm:$0xff]  ;;  %v24761_v23 = vld [vmem:[#allocation41_spill] sm:$0xff] }
 0x3cc   : > { %v3821_v36 = vmul.f32 %v3798_v30, %v24756_v38  ;;  %18960 = vmatpush3.bf16.msra.mxu0 %v24743_v55  ;;  %17517 = vmatprep.mubr.msk.f32.mxu1 %vm512_vm0, %v21086_v1  ;;  %v24760_v55 = vld [vmem:[#allocation79_spill] sm:$0xff] }
 0x3cd   : > { %v3830_v19 = vadd.f32 %v3822_v32, %v3707_v53  ;;  %18966 = vmatprep.subr.bf16.mxu0 %v24757_v50  ;;  %18208 = vmatprep.mubr.msk.f32.mxu0 %vm512_vm0, %v21238_v63  ;;  %v3708_v32 = vmul.f32 %v3693_v16, %v24760_v55 }
 0x3ce   : > { %v3829_v17 = vadd.f32 %v3821_v36, %v3706_v10  ;;  %v17304_v39 = vpop.f32.mrb[78].mxu1 }
 0x3cf   : > { %v3824_v37 = vmul.f32 %v17304_v39, %v24759_v46  ;;  %v3808_v57 = vpop.f32.mrb[79].mxu1  ;;  %17518 = vmatmul.mubr.msk.f32.vlgmr.msra.gmra.mrb[184].mxu1 %vm512_vm0, %v21223_v22  ;;  %18209 = vmatmul.mubr.msk.f32.gmra.mrb[106].mxu0 %vm512_vm0, %v21279_v60 }
 0x3d0   : > { %v3823_v30 = vmul.f32 %v3808_v57, %v20635_v8  ;;  %18788 = vmatpush3.bf16.msra.mxu1 %v24744_v20  ;;  %17520 = vmatprep.mubr.msk.f32.mxu1 %vm512_vm0, %v21238_v63 }
 0x3d1   : > { %v3832_v36 = vadd.f32 %v3824_v37, %v3709_v4  ;;  %18794 = vmatprep.subr.bf16.mxu1 %v24761_v23  ;;  %18211 = vmatprep.mubr.msk.f32.mxu0 %vm512_vm0, %v21293_v21 }
 0x3d2   : > { %v3831_v53 = vadd.f32 %v3823_v30, %v3708_v32  ;;  %v17311_v10 = vpop.f32.mrb[80].mxu1 }
 0x3d3   : > { %v3941_v39 = vmul.f32 %v17311_v10, %v20640_v34  ;;  %v3901_v46 = vpop.f32.mrb[81].mxu1  ;;  %17521 = vmatmul.mubr.msk.f32.gmra.mrb[186].mxu1 %vm512_vm0, %v21279_v60  ;;  %18212 = vmatmul.mubr.msk.f32.gmra.mrb[108].mxu0 %vm512_vm0, %v21300_v31 }
 0x3d4   : > { %v3940_v16 = vmul.f32 %v3901_v46, %v20658_v24  ;;  %17523 = vmatprep.mubr.msk.f32.mxu1 %vm512_vm0, %v21293_v21  ;;  %18214 = vmatprep.mubr.msk.f32.mxu0 %vm512_vm0, %v21207_v11 }
 0x3d5   : > { %v3949_v20 = vadd.f32 %v3941_v39, %v3826_v41 }
 0x3d6   : > { %v3948_v37 = vadd.f32 %v3940_v16, %v3825_v27  ;;  %v17314_v4 = vpop.f32.mrb[82].mxu1 }
 0x3d7   : > { %v3943_v57 = vmul.f32 %v17314_v4, %v20669_v49  ;;  %v3911_v32 = vpop.f32.mrb[83].mxu1  ;;  %17524 = vmatmul.mubr.msk.f32.gmra.mrb[188].mxu1 %vm512_vm0, %v21300_v31  ;;  %18215 = vmatmul.mubr.msk.f32.gmra.mrb[110].mxu0 %vm512_vm0, %v21213_v51 }
 0x3d8   : > { %v3942_v46 = vmul.f32 %v3911_v32, %v20675_v43  ;;  %17526 = vmatprep.mubr.msk.f32.mxu1 %vm512_vm0, %v21207_v11  ;;  %18237 = vmatprep.mubr.msk.f32.mxu0 %vm512_vm0, %v21086_v1  ;;  %v17126_v32 = vpop.f32.mrb[178].mxu0 }
 0x3d9   : > { %v3951_v41 = vadd.f32 %v3943_v57, %v3828_v58  ;;  %v24762_v58 = vld [vmem:[#allocation20_spill] sm:$0xff] }
 0x3da   : > { %v3950_v27 = vadd.f32 %v3942_v46, %v3827_v2  ;;  %v17317_v30 = vpop.f32.mrb[84].mxu1 }
 0x3db   : > { %v3945_v10 = vmul.f32 %v17317_v30, %v20677_v14  ;;  %v3921_v39 = vpop.f32.mrb[85].mxu1  ;;  %17527 = vmatmul.mubr.msk.f32.gmra.mrb[190].mxu1 %vm512_vm0, %v21213_v51  ;;  %18238 = vmatmul.mubr.msk.f32.vlgmr.msra.gmra.mrb[112].mxu0 %vm512_vm0, %v21223_v22 }
 0x3dc   : > { %v3944_v16 = vmul.f32 %v3921_v39, %v20689_v45  ;;  %18968 = vmatpush3.bf16.msra.mxu0 %v24757_v50  ;;  %17549 = vmatprep.mubr.msk.f32.mxu1 %vm512_vm0, %v21086_v1 }
 0x3dd   : > { %v3953_v4 = vadd.f32 %v3945_v10, %v3830_v19  ;;  %18974 = vmatprep.subr.bf16.mxu0 %v24762_v58  ;;  %18240 = vmatprep.mubr.msk.f32.mxu0 %vm512_vm0, %v21238_v63  ;;  %v2045_v19 = vpop.f32.mrb[179].mxu0  ;;  %v24763_v10 = vld [vmem:[#allocation59_spill] sm:$0xff] }
 0x3de   : > { %v3952_v2 = vadd.f32 %v3944_v16, %v3829_v17  ;;  %v17320_v57 = vpop.f32.mrb[86].mxu1  ;;  %v21674_v39 = vpack.c.bf16 %v17126_v32, %v2045_v19 }
 0x3df   : > { %v3947_v46 = vmul.f32 %v17320_v57, %v20705_v7  ;;  %v3931_v30 = vpop.f32.mrb[87].mxu1  ;;  %17550 = vmatmul.mubr.msk.f32.vlgmr.msra.gmra.mrb[192].mxu1 %vm512_vm0, %v21223_v22  ;;  %18241 = vmatmul.mubr.msk.f32.gmra.mrb[114].mxu0 %vm512_vm0, %v21279_v60  ;;  %v17129_v7 = vpop.f32.mrb[180].mxu0 }
 0x3e0   : > { %v3946_v50 = vmul.f32 %v3931_v30, %v20707_v15  ;;  %18796 = vmatpush3.bf16.msra.mxu1 %v24761_v23  ;;  %17552 = vmatprep.mubr.msk.f32.mxu1 %vm512_vm0, %v21238_v63  ;;  %24764 = vst [vmem:[#allocation53_spill] sm:$0xff] %v21674_v39  ;;  %v2055_v23 = vpop.f32.mrb[181].mxu0 }
 0x3e1   : > { %v3955_v17 = vadd.f32 %v3947_v46, %v3832_v36  ;;  %18802 = vmatprep.subr.bf16.mxu1 %v24763_v10  ;;  %18243 = vmatprep.mubr.msk.f32.mxu0 %vm512_vm0, %v21293_v21  ;;  %v21686_v32 = vpack.c.bf16 %v17129_v7, %v2055_v23  ;;  %v17132_v19 = vpop.f32.mrb[182].mxu0 }
 0x3e2   : > { %v3954_v16 = vadd.f32 %v3946_v50, %v3831_v53  ;;  %v17327_v57 = vpop.f32.mrb[88].mxu1 }
 0x3e3   : > { %v4064_v45 = vmul.f32 %v17327_v57, %v20777_v6  ;;  %v4024_v30 = vpop.f32.mrb[89].mxu1  ;;  %17553 = vmatmul.mubr.msk.f32.gmra.mrb[194].mxu1 %vm512_vm0, %v21279_v60  ;;  %18244 = vmatmul.mubr.msk.f32.gmra.mrb[116].mxu0 %vm512_vm0, %v21300_v31  ;;  %24765 = vst [vmem:[#allocation24_spill] sm:$0xff] %v21686_v32 }
 0x3e4   : > { %v4063_v36 = vmul.f32 %v4024_v30, %v20783_v44  ;;  %17555 = vmatprep.mubr.msk.f32.mxu1 %vm512_vm0, %v21293_v21  ;;  %18246 = vmatprep.mubr.msk.f32.mxu0 %vm512_vm0, %v21207_v11 }
 0x3e5   : > { %v4072_v53 = vadd.f32 %v4064_v45, %v3949_v20  ;;  %v2065_v45 = vpop.f32.mrb[183].mxu0 }
 0x3e6   : > { %v4071_v46 = vadd.f32 %v4063_v36, %v3948_v37  ;;  %v17330_v50 = vpop.f32.mrb[90].mxu1  ;;  %v21698_v20 = vpack.c.bf16 %v17132_v19, %v2065_v45  ;;  %v17135_v23 = vpop.f32.mrb[184].mxu0  ;;  %v24767_v19 = vld [vmem:[#allocation37_spill] sm:$0xff] }
 0x3e7   : > { %v4066_v57 = vmul.f32 %v17330_v50, %v20794_v0  ;;  %v4034_v39 = vpop.f32.mrb[91].mxu1  ;;  %17556 = vmatmul.mubr.msk.f32.gmra.mrb[196].mxu1 %vm512_vm0, %v21300_v31  ;;  %18247 = vmatmul.mubr.msk.f32.gmra.mrb[118].mxu0 %vm512_vm0, %v21213_v51 }
 0x3e8   : > { %v4065_v30 = vmul.f32 %v4034_v39, %v20801_v62  ;;  %17558 = vmatprep.mubr.msk.f32.mxu1 %vm512_vm0, %v21207_v11  ;;  %18269 = vmatprep.mubr.msk.f32.mxu0 %vm512_vm0, %v21086_v1  ;;  %24766 = vst [vmem:[#allocation87_spill] sm:$0xff] %v21698_v20 }
 0x3e9   : > { %v4074_v7 = vadd.f32 %v4066_v57, %v3951_v41  ;;  %v2075_v41 = vpop.f32.mrb[185].mxu0 }
 0x3ea   : > { %v4073_v37 = vadd.f32 %v4065_v30, %v3950_v27  ;;  %v17333_v36 = vpop.f32.mrb[92].mxu1  ;;  %v21712_v57 = vpack.c.bf16 %v17135_v23, %v2075_v41 }
 0x3eb   : > { %v4068_v50 = vmul.f32 %v17333_v36, %v20814_v42  ;;  %v4044_v32 = vpop.f32.mrb[93].mxu1  ;;  %17559 = vmatmul.mubr.msk.f32.gmra.mrb[198].mxu1 %vm512_vm0, %v21213_v51  ;;  %18270 = vmatmul.mubr.msk.f32.vlgmr.msra.gmra.mrb[120].mxu0 %vm512_vm0, %v21223_v22  ;;  %v17138_v36 = vpop.f32.mrb[186].mxu0 }
 0x3ec   : > { %v4067_v39 = vmul.f32 %v4044_v32, %v20821_v28  ;;  %18976 = vmatpush3.bf16.msra.mxu0 %v24762_v58  ;;  %17581 = vmatprep.mubr.msk.f32.mxu1 %vm512_vm0, %v21086_v1  ;;  %24768 = vst [vmem:[#allocation41_spill] sm:$0xff] %v21712_v57 }
 0x3ed   : > { %v4076_v27 = vadd.f32 %v4068_v50, %v3953_v4  ;;  %18982 = vmatprep.subr.bf16.mxu0 %v24767_v19  ;;  %18272 = vmatprep.mubr.msk.f32.mxu0 %vm512_vm0, %v21238_v63  ;;  %v2085_v4 = vpop.f32.mrb[187].mxu0 }
 0x3ee   : > { %v4075_v30 = vadd.f32 %v4067_v39, %v3952_v2  ;;  %v17336_v45 = vpop.f32.mrb[94].mxu1  ;;  %v21726_v2 = vpack.c.bf16 %v17138_v36, %v2085_v4  ;;  %v17141_v39 = vpop.f32.mrb[188].mxu0 }
 0x3ef   : > { %v4070_v20 = vmul.f32 %v17336_v45, %v20834_v25  ;;  %v4054_v32 = vpop.f32.mrb[95].mxu1  ;;  %17582 = vmatmul.mubr.msk.f32.vlgmr.msra.gmra.mrb[200].mxu1 %vm512_vm0, %v21223_v22  ;;  %18273 = vmatmul.mubr.msk.f32.gmra.mrb[122].mxu0 %vm512_vm0, %v21279_v60 }
 0x3f0   : > { %v4069_v1 = vmul.f32 %v4054_v32, %v20840_v35  ;;  %18804 = vmatpush3.bf16.msra.mxu1 %v24763_v10  ;;  %17584 = vmatprep.mubr.msk.f32.mxu1 %vm512_vm0, %v21238_v63  ;;  %24769 = vst [vmem:[#allocation20_spill] sm:$0xff] %v21726_v2 }
 0x3f1   : > { %v4078_v58 = vadd.f32 %v4070_v20, %v3955_v17  ;;  %18275 = vmatprep.mubr.msk.f32.mxu0 %vm512_vm0, %v21293_v21  ;;  %18810 = vmatprep.subr.bf16.mxu1 %v21358_v13  ;;  %v24770_v17 = vld [vmem:[#allocation109_spill] sm:$0xff] }
 0x3f2   : > { %v4077_v23 = vadd.f32 %v4069_v1, %v3954_v16  ;;  %v17343_v50 = vpop.f32.mrb[96].mxu1  ;;  %v2095_v16 = vpop.f32.mrb[189].mxu0 }
 0x3f3   : > { %v4187_v41 = vmul.f32 %v17343_v50, %v20941_v61  ;;  %v4147_v45 = vpop.f32.mrb[97].mxu1  ;;  %17585 = vmatmul.mubr.msk.f32.gmra.mrb[202].mxu1 %vm512_vm0, %v21279_v60  ;;  %18276 = vmatmul.mubr.msk.f32.gmra.mrb[124].mxu0 %vm512_vm0, %v21300_v31  ;;  %v21738_v36 = vpack.c.bf16 %v17141_v39, %v2095_v16  ;;  %v17144_v4 = vpop.f32.mrb[190].mxu0  ;;  %v24772_v50 = vld [vmem:[#allocation57_spill] sm:$0xff] }
 0x3f4   : > { %v4186_v10 = vmul.f32 %v4147_v45, %v24770_v17  ;;  %17587 = vmatprep.mubr.msk.f32.mxu1 %vm512_vm0, %v21293_v21  ;;  %18278 = vmatprep.mubr.msk.f32.mxu0 %vm512_vm0, %v21207_v11  ;;  %v24773_v45 = vld [vmem:[#allocation110_spill] sm:$0xff] }
 0x3f5   : > { %v4195_v20 = vadd.f32 %v4187_v41, %v4072_v53  ;;  %24771 = vst [vmem:[#allocation59_spill] sm:$0xff] %v21738_v36  ;;  %v21748_v53 = vld [vmem:[#allocation6] sm:$0xff] }
 0x3f6   : > { %v4194_v32 = vadd.f32 %v4186_v10, %v4071_v46  ;;  %v17346_v1 = vpop.f32.mrb[98].mxu1  ;;  %v2105_v46 = vpop.f32.mrb[191].mxu0 }
 0x3f7   : > { %v4189_v2 = vmul.f32 %v17346_v1, %v24772_v50  ;;  %v4157_v57 = vpop.f32.mrb[99].mxu1  ;;  %17588 = vmatmul.mubr.msk.f32.gmra.mrb[204].mxu1 %vm512_vm0, %v21300_v31  ;;  %18279 = vmatmul.mubr.msk.f32.gmra.mrb[126].mxu0 %vm512_vm0, %v21213_v51  ;;  %v21752_v41 = vpack.c.bf16 %v17144_v4, %v2105_v46  ;;  %v24775_v1 = vld [vmem:[#allocation111_spill] sm:$0xff]  ;;  %v24780_v46 = vld [vmem:[#allocation113_spill] sm:$0xff] }
 0x3f8   : > { %v4188_v17 = vmul.f32 %v4157_v57, %v24773_v45  ;;  %17590 = vmatprep.mubr.msk.f32.mxu1 %vm512_vm0, %v21207_v11  ;;  %18301 = vmatprep.mubr.msk.f32.mxu0 %vm512_vm0, %v21748_v53  ;;  %v21759_v57 = vpop.f32.mrb[192].mxu0  ;;  %v24777_v45 = vld [vmem:[#allocation112_spill] sm:$0xff] }
 0x3f9   : > { %v4197_v39 = vadd.f32 %v4189_v2, %v4074_v7  ;;  %24774 = vst [vmem:[#allocation37_spill] sm:$0xff] %v21752_v41  ;;  %24776 = vst [vmem:[#allocation120_spill] sm:$0xff] %v21759_v57  ;;  %v21765_v7 = vpop.f32.mrb[193].mxu0  ;;  %v24779_v2 = vld [vmem:[#allocation54_spill] sm:$0xff] }
 0x3fa   : > { %v4196_v10 = vadd.f32 %v4188_v17, %v4073_v37  ;;  %v17349_v16 = vpop.f32.mrb[100].mxu1  ;;  %24778 = vst [vmem:[#allocation121_spill] sm:$0xff] %v21765_v7 }
 0x3fb   : > { %v4191_v36 = vmul.f32 %v17349_v16, %v24775_v1  ;;  %v4167_v50 = vpop.f32.mrb[101].mxu1  ;;  %17591 = vmatmul.mubr.msk.f32.gmra.mrb[206].mxu1 %vm512_vm0, %v21213_v51  ;;  %18302 = vmatmul.mubr.msk.f32.vlgmr.msra.gmra.mrb[128].mxu0 %vm512_vm0, %v21223_v22 }
 0x3fc   : > { %v4190_v61 = vmul.f32 %v4167_v50, %v24777_v45  ;;  %18984 = vmatpush3.bf16.msra.mxu0 %v24767_v19  ;;  %17613 = vmatprep.mubr.msk.f32.mxu1 %vm512_vm0, %v21748_v53  ;;  %v21775_v19 = vpop.f32.mrb[194].mxu0  ;;  %v24782_v50 = vld [vmem:[#allocation114_spill] sm:$0xff] }
 0x3fd   : > { %v4199_v37 = vadd.f32 %v4191_v36, %v4076_v27  ;;  %18990 = vmatprep.subr.bf16.mxu0 %v24779_v2  ;;  %18304 = vmatprep.mubr.msk.f32.mxu0 %vm512_vm0, %v21238_v63  ;;  %24781 = vst [vmem:[#allocation54_spill] sm:$0xff] %v21775_v19  ;;  %v24784_v36 = vld [vmem:[#allocation25_spill] sm:$0xff] }
 0x3fe   : > { %v4198_v17 = vadd.f32 %v4190_v61, %v4075_v30  ;;  %v17352_v4 = vpop.f32.mrb[102].mxu1  ;;  %v21781_v61 = vpop.f32.mrb[195].mxu0 }
 0x3ff   : > { %v4193_v16 = vmul.f32 %v17352_v4, %v24780_v46  ;;  %v4177_v41 = vpop.f32.mrb[103].mxu1  ;;  %17614 = vmatmul.mubr.msk.f32.vlgmr.msra.gmra.mrb[208].mxu1 %vm512_vm0, %v21223_v22  ;;  %18305 = vmatmul.mubr.msk.f32.gmra.mrb[130].mxu0 %vm512_vm0, %v21279_v60  ;;  %24783 = vst [vmem:[#allocation122_spill] sm:$0xff] %v21781_v61 }
 0x400   : > { %v4192_v27 = vmul.f32 %v4177_v41, %v24782_v50  ;;  %18812 = vmatpush3.bf16.msra.mxu1 %v21358_v13  ;;  %17616 = vmatprep.mubr.msk.f32.mxu1 %vm512_vm0, %v21238_v63  ;;  %v21791_v13 = vpop.f32.mrb[196].mxu0 }
 0x401   : > { %v4201_v30 = vadd.f32 %v4193_v16, %v4078_v58  ;;  %18818 = vmatprep.subr.bf16.mxu1 %v24784_v36  ;;  %18307 = vmatprep.mubr.msk.f32.mxu0 %vm512_vm0, %v21293_v21  ;;  %24785 = vst [vmem:[#allocation25_spill] sm:$0xff] %v21791_v13  ;;  %v24789_v13 = vld [vmem:[#allocation51_spill] sm:$0xff] }
 0x402   : > { %v4200_v4 = vadd.f32 %v4192_v27, %v4077_v23  ;;  %v17359_v7 = vpop.f32.mrb[104].mxu1  ;;  %v21798_v23 = vpop.f32.mrb[197].mxu0  ;;  %v24787_v27 = vld [vmem:[#allocation34_spill] sm:$0xff] }
 0x403   : > { %v4310_v57 = vmul.f32 %v17359_v7, %v21109_v56  ;;  %v4270_v19 = vpop.f32.mrb[105].mxu1  ;;  %17617 = vmatmul.mubr.msk.f32.gmra.mrb[210].mxu1 %vm512_vm0, %v21279_v60  ;;  %18308 = vmatmul.mubr.msk.f32.gmra.mrb[132].mxu0 %vm512_vm0, %v21300_v31  ;;  %24786 = vst [vmem:[#allocation123_spill] sm:$0xff] %v21798_v23 }
 0x404   : > { %v4309_v58 = vmul.f32 %v4270_v19, %v21115_v12  ;;  %17619 = vmatprep.mubr.msk.f32.mxu1 %vm512_vm0, %v21293_v21  ;;  %18310 = vmatprep.mubr.msk.f32.mxu0 %vm512_vm0, %v21207_v11  ;;  %v21805_v19 = vpop.f32.mrb[198].mxu0 }
 0x405   : > { %v4318_v41 = vadd.f32 %v4310_v57, %v4195_v20  ;;  %24788 = vst [vmem:[#allocation124_spill] sm:$0xff] %v21805_v19  ;;  %v21812_v20 = vpop.f32.mrb[199].mxu0 }
 0x406   : > { %v4317_v7 = vadd.f32 %v4309_v58, %v4194_v32  ;;  %v17362_v16 = vpop.f32.mrb[106].mxu1  ;;  %24790 = vst [vmem:[#allocation51_spill] sm:$0xff] %v21812_v20 }
 0x407   : > { %v4312_v61 = vmul.f32 %v17362_v16, %v24787_v27  ;;  %v4280_v56 = vpop.f32.mrb[107].mxu1  ;;  %17620 = vmatmul.mubr.msk.f32.gmra.mrb[212].mxu1 %vm512_vm0, %v21300_v31  ;;  %18311 = vmatmul.mubr.msk.f32.gmra.mrb[134].mxu0 %vm512_vm0, %v21213_v51  ;;  %v24791_v16 = vld [vmem:[#allocation16_spill] sm:$0xff] }
 0x408   : > { %v4311_v12 = vmul.f32 %v4280_v56, %v24789_v13  ;;  %17622 = vmatprep.mubr.msk.f32.mxu1 %vm512_vm0, %v21207_v11  ;;  %18333 = vmatprep.mubr.msk.f32.mxu0 %vm512_vm0, %v21748_v53  ;;  %v21819_v56 = vpop.f32.mrb[200].mxu0  ;;  %v24793_v11 = vld [vmem:[#allocation115_spill] sm:$0xff] }
 0x409   : > { %v4320_v32 = vadd.f32 %v4312_v61, %v4197_v39  ;;  %24792 = vst [vmem:[#allocation125_spill] sm:$0xff] %v21819_v56  ;;  %v21831_v56 = vld [vmem:[#allocation6 + $0x8] sm:$0xff] }
 0x40a   : > { %v4319_v57 = vadd.f32 %v4311_v12, %v4196_v10  ;;  %v17365_v58 = vpop.f32.mrb[108].mxu1  ;;  %v21825_v12 = vpop.f32.mrb[201].mxu0  ;;  %v24795_v10 = vld [vmem:[#allocation91_spill] sm:$0xff] }
 0x40b   : > { %v4314_v23 = vmul.f32 %v17365_v58, %v24791_v16  ;;  %v4290_v27 = vpop.f32.mrb[109].mxu1  ;;  %17623 = vmatmul.mubr.msk.f32.gmra.mrb[214].mxu1 %vm512_vm0, %v21213_v51  ;;  %18334 = vmatmul.mubr.msk.f32.vlgmr.msra.gmra.mrb[136].mxu0 %vm512_vm0, %v21223_v22  ;;  %24794 = vst [vmem:[#allocation126_spill] sm:$0xff] %v21825_v12  ;;  %v24796_v22 = vld [vmem:[#allocation116_spill] sm:$0xff] }
 0x40c   : > { %v4313_v19 = vmul.f32 %v4290_v27, %v24793_v11  ;;  %18992 = vmatpush3.bf16.msra.mxu0 %v24779_v2  ;;  %17645 = vmatprep.mubr.msk.f32.mxu1 %vm512_vm0, %v21748_v53  ;;  %v21837_v2 = vpop.f32.mrb[202].mxu0 }
 0x40d   : > { %v4322_v39 = vadd.f32 %v4314_v23, %v4199_v37  ;;  %18998 = vmatprep.subr.bf16.mxu0 %v24795_v10  ;;  %18336 = vmatprep.mubr.msk.f32.mxu0 %vm512_vm0, %v21238_v63  ;;  %24797 = vst [vmem:[#allocation91_spill] sm:$0xff] %v21837_v2  ;;  %v24798_v37 = vld [vmem:[#allocation117_spill] sm:$0xff]  ;;  %v21841_v63 = vld [vmem:[#allocation6 + $0x10] sm:$0xff] }
 0x40e   : > { %v4321_v51 = vadd.f32 %v4313_v19, %v4198_v17  ;;  %v17368_v61 = vpop.f32.mrb[110].mxu1  ;;  %v21845_v17 = vpop.f32.mrb[203].mxu0  ;;  %v24800_v19 = vld [vmem:[#allocation42_spill] sm:$0xff]  ;;  %v24801_v2 = vld [vmem:[#allocation80_spill] sm:$0xff] }
 0x40f   : > { %v4316_v58 = vmul.f32 %v17368_v61, %v24796_v22  ;;  %v4300_v20 = vpop.f32.mrb[111].mxu1  ;;  %17646 = vmatmul.mubr.msk.f32.vlgmr.msra.gmra.mrb[216].mxu1 %vm512_vm0, %v21831_v56  ;;  %18337 = vmatmul.mubr.msk.f32.gmra.mrb[138].mxu0 %vm512_vm0, %v21279_v60  ;;  %24799 = vst [vmem:[#allocation127_spill] sm:$0xff] %v21845_v17 }
 0x410   : > { %v4315_v23 = vmul.f32 %v4300_v20, %v24798_v37  ;;  %18820 = vmatpush3.bf16.msra.mxu1 %v24784_v36  ;;  %17648 = vmatprep.mubr.msk.f32.mxu1 %vm512_vm0, %v21841_v63  ;;  %v21855_v36 = vpop.f32.mrb[204].mxu0 }
 0x411   : > { %v4324_v27 = vadd.f32 %v4316_v58, %v4201_v30  ;;  %18826 = vmatprep.subr.bf16.mxu1 %v24800_v19  ;;  %18339 = vmatprep.mubr.msk.f32.mxu0 %vm512_vm0, %v21293_v21  ;;  %24802 = vst [vmem:[#allocation42_spill] sm:$0xff] %v21855_v36  ;;  %v21860_v58 = vld [vmem:[#allocation6 + $0x30] sm:$0xff] }
 0x412   : > { %v4323_v61 = vadd.f32 %v4315_v23, %v4200_v4  ;;  %v17375_v12 = vpop.f32.mrb[112].mxu1  ;;  %v21864_v4 = vpop.f32.mrb[205].mxu0 }
 0x413   : > { %v4433_v22 = vmul.f32 %v17375_v12, %v24801_v2  ;;  %v4393_v20 = vpop.f32.mrb[113].mxu1  ;;  %17649 = vmatmul.mubr.msk.f32.gmra.mrb[218].mxu1 %vm512_vm0, %v21279_v60  ;;  %18340 = vmatmul.mubr.msk.f32.gmra.mrb[140].mxu0 %vm512_vm0, %v21300_v31  ;;  %24803 = vst [vmem:[#allocation128_spill] sm:$0xff] %v21864_v4 }
 0x414   : > { %v4432_v30 = vmul.f32 %v4393_v20, %v21289_v48  ;;  %17651 = vmatprep.mubr.msk.f32.mxu1 %vm512_vm0, %v21293_v21  ;;  %18342 = vmatprep.mubr.msk.f32.mxu0 %vm512_vm0, %v21860_v58  ;;  %v21869_v20 = vld [vmem:[#allocation6 + $0x38] sm:$0xff]  ;;  %v21873_v21 = vpop.f32.mrb[206].mxu0 }
 0x415   : > { %v4441_v12 = vadd.f32 %v4433_v22, %v4318_v41  ;;  %24804 = vst [vmem:[#allocation129_spill] sm:$0xff] %v21873_v21  ;;  %v21880_v41 = vpop.f32.mrb[207].mxu0  ;;  %v24807_v21 = vld [vmem:[#allocation33_spill] sm:$0xff] }
 0x416   : > { %v4440_v23 = vadd.f32 %v4432_v30, %v4317_v7  ;;  %v17378_v60 = vpop.f32.mrb[114].mxu1  ;;  %24805 = vst [vmem:[#allocation130_spill] sm:$0xff] %v21880_v41 }
 0x417   : > { %v4435_v17 = vmul.f32 %v17378_v60, %v21304_v29  ;;  %v4403_v2 = vpop.f32.mrb[115].mxu1  ;;  %17652 = vmatmul.mubr.msk.f32.gmra.mrb[220].mxu1 %vm512_vm0, %v21300_v31  ;;  %18343 = vmatmul.mubr.msk.f32.gmra.mrb[142].mxu0 %vm512_vm0, %v21869_v20 }
 0x418   : > { %v4434_v36 = vmul.f32 %v4403_v2, %v21311_v18  ;;  %17654 = vmatprep.mubr.msk.f32.mxu1 %vm512_vm0, %v21860_v58  ;;  %18365 = vmatprep.mubr.msk.f32.mxu0 %vm512_vm0, %v21748_v53  ;;  %v21887_v2 = vpop.f32.mrb[208].mxu0 }
 0x419   : > { %v4443_v7 = vadd.f32 %v4435_v17, %v4320_v32  ;;  %24806 = vst [vmem:[#allocation131_spill] sm:$0xff] %v21887_v2  ;;  %v21893_v32 = vpop.f32.mrb[209].mxu0  ;;  %v24809_v17 = vld [vmem:[#allocation21_spill] sm:$0xff] }
 0x41a   : > { %v4442_v22 = vadd.f32 %v4434_v36, %v4319_v57  ;;  %v17381_v31 = vpop.f32.mrb[116].mxu1  ;;  %24808 = vst [vmem:[#allocation132_spill] sm:$0xff] %v21893_v32  ;;  %v24811_v32 = vld [vmem:[#allocation52_spill] sm:$0xff] }
 0x41b   : > { %v4437_v30 = vmul.f32 %v17381_v31, %v21324_v9  ;;  %v4413_v60 = vpop.f32.mrb[117].mxu1  ;;  %17655 = vmatmul.mubr.msk.f32.gmra.mrb[222].mxu1 %vm512_vm0, %v21869_v20  ;;  %18366 = vmatmul.mubr.msk.f32.vlgmr.msra.gmra.mrb[144].mxu0 %vm512_vm0, %v21831_v56 }
 0x41c   : > { %v4436_v4 = vmul.f32 %v4413_v60, %v24807_v21  ;;  %19000 = vmatpush3.bf16.msra.mxu0 %v24795_v10  ;;  %17677 = vmatprep.mubr.msk.f32.mxu1 %vm512_vm0, %v21748_v53  ;;  %v21901_v10 = vld [vmem:[#allocation6 + $0x18] sm:$0xff] }
 0x41d   : > { %v4445_v57 = vadd.f32 %v4437_v30, %v4322_v39  ;;  %19006 = vmatprep.subr.bf16.mxu0 %v24809_v17  ;;  %18368 = vmatprep.mubr.msk.f32.mxu0 %vm512_vm0, %v21841_v63  ;;  %v21910_v30 = vld [vmem:[#allocation6 + $0x20] sm:$0xff] }
 0x41e   : > { %v4444_v36 = vadd.f32 %v4436_v4, %v4321_v51  ;;  %v17384_v31 = vpop.f32.mrb[118].mxu1  ;;  %v24810_v4 = vld [vmem:[#allocation60_spill] sm:$0xff] }
 0x41f   : > { %v4439_v41 = vmul.f32 %v17384_v31, %v21344_v54  ;;  %v4423_v2 = vpop.f32.mrb[119].mxu1  ;;  %17678 = vmatmul.mubr.msk.f32.vlgmr.msra.gmra.mrb[224].mxu1 %vm512_vm0, %v21831_v56  ;;  %18369 = vmatmul.mubr.msk.f32.gmra.mrb[146].mxu0 %vm512_vm0, %v21901_v10 }
 0x420   : > { %v4438_v39 = vmul.f32 %v4423_v2, %v21350_v26  ;;  %18828 = vmatpush3.bf16.msra.mxu1 %v24800_v19  ;;  %17680 = vmatprep.mubr.msk.f32.mxu1 %vm512_vm0, %v21841_v63  ;;  %v21917_v19 = vld [vmem:[#allocation6 + $0x28] sm:$0xff] }
 0x421   : > { %v4447_v51 = vadd.f32 %v4439_v41, %v4324_v27  ;;  %18834 = vmatprep.subr.bf16.mxu1 %v24810_v4  ;;  %18371 = vmatprep.mubr.msk.f32.mxu0 %vm512_vm0, %v21910_v30 }
 0x422   : > { %v4446_v60 = vadd.f32 %v4438_v39, %v4323_v61  ;;  %v17391_v31 = vpop.f32.mrb[120].mxu1 }
 0x423   : > { %v4556_v54 = vmul.f32 %v17391_v31, %v24811_v32  ;;  %v4516_v2 = vpop.f32.mrb[121].mxu1  ;;  %17681 = vmatmul.mubr.msk.f32.gmra.mrb[226].mxu1 %vm512_vm0, %v21901_v10  ;;  %18372 = vmatmul.mubr.msk.f32.gmra.mrb[148].mxu0 %vm512_vm0, %v21917_v19 }
 0x424   : > { %v4555_v27 = vmul.f32 %v4516_v2, %v21460_v47  ;;  %17683 = vmatprep.mubr.msk.f32.mxu1 %vm512_vm0, %v21910_v30  ;;  %18374 = vmatprep.mubr.msk.f32.mxu0 %vm512_vm0, %v21860_v58 }
 0x425   : > { %v4564_v61 = vadd.f32 %v4556_v54, %v4441_v12 }
 0x426   : > { %v4563_v41 = vadd.f32 %v4555_v27, %v4440_v23  ;;  %v17394_v39 = vpop.f32.mrb[122].mxu1 }
 0x427   : > { %14968 = vst [vmem:[%s21482_s26 + $0x48] sm:$0xff] %v4564_v61  ;;  %v4558_v31 = vmul.f32 %v17394_v39, %v21471_v33  ;;  %v4526_v32 = vpop.f32.mrb[123].mxu1  ;;  %17684 = vmatmul.mubr.msk.f32.gmra.mrb[228].mxu1 %vm512_vm0, %v21917_v19  ;;  %18375 = vmatmul.mubr.msk.f32.gmra.mrb[150].mxu0 %vm512_vm0, %v21869_v20  ;;  %v24823_v33 = vld [vmem:[#allocation82_spill] sm:$0xff] }
 0x428   : > { %14967 = vst [vmem:[%s21482_s26 + $0x40] sm:$0xff] %v4563_v41  ;;  %v4557_v2 = vmul.f32 %v4526_v32, %v21478_v40  ;;  %17686 = vmatprep.mubr.msk.f32.mxu1 %vm512_vm0, %v21860_v58  ;;  %18397 = vmatprep.mubr.msk.f32.mxu0 %vm512_vm0, %v21748_v53 }
 0x429   : > { %v4566_v54 = vadd.f32 %v4558_v31, %v4443_v7  ;;  %v24813_v31 = vld [vmem:[#allocation118_spill] sm:$0xff] }
 0x42a   : > { %v4565_v12 = vadd.f32 %v4557_v2, %v4442_v22  ;;  %v17397_v23 = vpop.f32.mrb[124].mxu1  ;;  %v24812_v22 = vld [vmem:[#allocation38_spill] sm:$0xff] }
 0x42b   : > { %14970 = vst [vmem:[%s21482_s26 + $0x58] sm:$0xff] %v4566_v54  ;;  %v4560_v27 = vmul.f32 %v17397_v23, %v21490_v5  ;;  %v4536_v61 = vpop.f32.mrb[125].mxu1  ;;  %17687 = vmatmul.mubr.msk.f32.gmra.mrb[230].mxu1 %vm512_vm0, %v21869_v20  ;;  %18398 = vmatmul.mubr.msk.f32.vlgmr.msra.gmra.mrb[152].mxu0 %vm512_vm0, %v21831_v56 }
 0x42c   : > { %14969 = vst [vmem:[%s21482_s26 + $0x50] sm:$0xff] %v4565_v12  ;;  %v4559_v32 = vmul.f32 %v4536_v61, %v21498_v3  ;;  %19008 = vmatpush3.bf16.msra.mxu0 %v24809_v17  ;;  %17709 = vmatprep.mubr.msk.f32.mxu1 %vm512_vm0, %v21748_v53  ;;  %v24815_v12 = vld [vmem:[#allocation36_spill] sm:$0xff]  ;;  %v24821_v3 = vld [vmem:[#allocation81_spill] sm:$0xff] }
 0x42d   : > { %v4568_v7 = vadd.f32 %v4560_v27, %v4445_v57  ;;  %19014 = vmatprep.subr.bf16.mxu0 %v24812_v22  ;;  %18400 = vmatprep.mubr.msk.f32.mxu0 %vm512_vm0, %v21841_v63  ;;  %v24814_v57 = vld [vmem:[#allocation119_spill] sm:$0xff] }
 0x42e   : > { %v4567_v41 = vadd.f32 %v4559_v32, %v4444_v36  ;;  %v17400_v39 = vpop.f32.mrb[126].mxu1 }
 0x42f   : > { %14972 = vst [vmem:[%s21482_s26 + $0x68] sm:$0xff] %v4568_v7  ;;  %v4562_v2 = vmul.f32 %v17400_v39, %v24813_v31  ;;  %v4546_v54 = vpop.f32.mrb[127].mxu1  ;;  %17710 = vmatmul.mubr.msk.f32.vlgmr.msra.gmra.mrb[232].mxu1 %vm512_vm0, %v21831_v56  ;;  %18401 = vmatmul.mubr.msk.f32.gmra.mrb[154].mxu0 %vm512_vm0, %v21901_v10  ;;  %v24816_v7 = vld [vmem:[#allocation55_spill] sm:$0xff] }
 0x430   : > { %14971 = vst [vmem:[%s21482_s26 + $0x60] sm:$0xff] %v4567_v41  ;;  %v4561_v17 = vmul.f32 %v4546_v54, %v24814_v57  ;;  %18836 = vmatpush3.bf16.msra.mxu1 %v24810_v4  ;;  %17712 = vmatprep.mubr.msk.f32.mxu1 %vm512_vm0, %v21841_v63  ;;  %v24818_v54 = vld [vmem:[#allocation70_spill] sm:$0xff] }
 0x431   : > { %v4570_v36 = vadd.f32 %v4562_v2, %v4447_v51  ;;  %18403 = vmatprep.mubr.msk.f32.mxu0 %vm512_vm0, %v21910_v30  ;;  %18842 = vmatprep.subr.bf16.mxu1 %v24815_v12 }
 0x432   : > { %v4569_v23 = vadd.f32 %v4561_v17, %v4446_v60  ;;  %v17407_v27 = vpop.f32.mrb[128].mxu1 }
 0x433   : > { %14974 = vst [vmem:[%s21482_s26 + $0x78] sm:$0xff] %v4570_v36  ;;  %17713 = vmatmul.mubr.msk.f32.gmra.mrb[234].mxu1 %vm512_vm0, %v21901_v10  ;;  %18404 = vmatmul.mubr.msk.f32.gmra.mrb[156].mxu0 %vm512_vm0, %v21917_v19  ;;  %v4648_v61 = vpop.f32.mrb[129].mxu1  ;;  %v4688_v17 = vmul.f32 %v17407_v27, %v24818_v54  ;;  %v24819_v36 = vld [vmem:[#allocation78_spill] sm:$0xff] }
 0x434   : > { %14973 = vst [vmem:[%s21482_s26 + $0x70] sm:$0xff] %v4569_v23  ;;  %17715 = vmatprep.mubr.msk.f32.mxu1 %vm512_vm0, %v21910_v30  ;;  %18406 = vmatprep.mubr.msk.f32.mxu0 %vm512_vm0, %v21860_v58 }
 0x436   : > { %v17410_v51 = vpop.f32.mrb[130].mxu1 }
 0x437   : > { %17716 = vmatmul.mubr.msk.f32.gmra.mrb[236].mxu1 %vm512_vm0, %v21917_v19  ;;  %18407 = vmatmul.mubr.msk.f32.gmra.mrb[158].mxu0 %vm512_vm0, %v21869_v20  ;;  %v4658_v4 = vpop.f32.mrb[131].mxu1 }
 0x438   : > { %17718 = vmatprep.mubr.msk.f32.mxu1 %vm512_vm0, %v21860_v58  ;;  %18429 = vmatprep.mubr.msk.f32.mxu0 %vm512_vm0, %v21748_v53 }
 0x43a   : > { %v17413_v60 = vpop.f32.mrb[132].mxu1 }
 0x43b   : > { %17719 = vmatmul.mubr.msk.f32.gmra.mrb[238].mxu1 %vm512_vm0, %v21869_v20  ;;  %18430 = vmatmul.mubr.msk.f32.vlgmr.msra.gmra.mrb[160].mxu0 %vm512_vm0, %v21831_v56  ;;  %v4668_v32 = vpop.f32.mrb[133].mxu1 }
 0x43c   : > { %19016 = vmatpush3.bf16.msra.mxu0 %v24812_v22  ;;  %17741 = vmatprep.mubr.msk.f32.mxu1 %vm512_vm0, %v21748_v53  ;;  %v24817_v22 = vld [vmem:[#allocation26_spill] sm:$0xff] }
 0x43d   : > { %19022 = vmatprep.subr.bf16.mxu0 %v24816_v7  ;;  %18432 = vmatprep.mubr.msk.f32.mxu0 %vm512_vm0, %v21841_v63 }
 0x43e   : > { %v17416_v41 = vpop.f32.mrb[134].mxu1 }
 0x43f   : > { %17742 = vmatmul.mubr.msk.f32.vlgmr.msra.gmra.mrb[240].mxu1 %vm512_vm0, %v21831_v56  ;;  %18433 = vmatmul.mubr.msk.f32.gmra.mrb[162].mxu0 %vm512_vm0, %v21901_v10  ;;  %v4678_v39 = vpop.f32.mrb[135].mxu1 }
 0x440   : > { %18844 = vmatpush3.bf16.msra.mxu1 %v24815_v12  ;;  %17744 = vmatprep.mubr.msk.f32.mxu1 %vm512_vm0, %v21841_v63  ;;  %v24820_v12 = vld [vmem:[#allocation71_spill] sm:$0xff] }
 0x441   : > { %18850 = vmatprep.subr.bf16.mxu1 %v24817_v22  ;;  %18435 = vmatprep.mubr.msk.f32.mxu0 %vm512_vm0, %v21910_v30  ;;  %v4687_v31 = vmul.f32 %v4648_v61, %v24820_v12 }
 0x442   : > { %v17423_v2 = vpop.f32.mrb[136].mxu1 }
 0x443   : > { %v4803_v23 = vmul.f32 %v17423_v2, %v24819_v36  ;;  %v4763_v57 = vpop.f32.mrb[137].mxu1  ;;  %17745 = vmatmul.mubr.msk.f32.gmra.mrb[242].mxu1 %vm512_vm0, %v21901_v10  ;;  %18436 = vmatmul.mubr.msk.f32.gmra.mrb[164].mxu0 %vm512_vm0, %v21917_v19  ;;  %v24822_v36 = vld [vmem:[#allocation72_spill] sm:$0xff] }
 0x444   : > { %v4802_v5 = vmul.f32 %v4763_v57, %v24821_v3  ;;  %17747 = vmatprep.mubr.msk.f32.mxu1 %vm512_vm0, %v21910_v30  ;;  %18438 = vmatprep.mubr.msk.f32.mxu0 %vm512_vm0, %v21860_v58  ;;  %v4690_v40 = vmul.f32 %v17410_v51, %v24822_v36  ;;  %v24824_v57 = vld [vmem:[#allocation73_spill] sm:$0xff]  ;;  %v24825_v3 = vld [vmem:[#allocation83_spill] sm:$0xff] }
 0x445   : > { %v4811_v27 = vadd.f32 %v4803_v23, %v4688_v17  ;;  %v4689_v61 = vmul.f32 %v4658_v4, %v24824_v57  ;;  %v24829_v36 = vld [vmem:[#allocation85_spill] sm:$0xff] }
 0x446   : > { %v4810_v54 = vadd.f32 %v4802_v5, %v4687_v31  ;;  %v17426_v2 = vpop.f32.mrb[138].mxu1  ;;  %v22028_v31 = vpop.f32.mrb[210].mxu0 }
 0x447   : > { %v4805_v47 = vmul.f32 %v17426_v2, %v24823_v33  ;;  %v4773_v26 = vpop.f32.mrb[139].mxu1  ;;  %17748 = vmatmul.mubr.msk.f32.gmra.mrb[244].mxu1 %vm512_vm0, %v21917_v19  ;;  %18439 = vmatmul.mubr.msk.f32.gmra.mrb[166].mxu0 %vm512_vm0, %v21869_v20  ;;  %24826 = vst [vmem:[#allocation21_spill] sm:$0xff] %v22028_v31  ;;  %v22030_v23 = vpop.f32.mrb[211].mxu0  ;;  %v24828_v2 = vld [vmem:[#allocation74_spill] sm:$0xff] }
 0x448   : > { %v4804_v12 = vmul.f32 %v4773_v26, %v24825_v3  ;;  %17750 = vmatprep.mubr.msk.f32.mxu1 %vm512_vm0, %v21860_v58  ;;  %18461 = vmatprep.mubr.msk.f32.mxu0 %vm512_vm0, %v21748_v53  ;;  %24827 = vst [vmem:[#allocation60_spill] sm:$0xff] %v22030_v23  ;;  %v4692_v33 = vmul.f32 %v17413_v60, %v24828_v2  ;;  %v24830_v60 = vld [vmem:[#allocation94_spill] sm:$0xff] }
 0x449   : > { %v4813_v5 = vadd.f32 %v4805_v47, %v4690_v40  ;;  %v4691_v26 = vmul.f32 %v4668_v32, %v24755_v52  ;;  %v4694_v32 = vmul.f32 %v17416_v41, %v24758_v59  ;;  %v24834_v41 = vld [vmem:[#allocation43_spill] sm:$0xff] }
 0x44a   : > { %v4812_v51 = vadd.f32 %v4804_v12, %v4689_v61  ;;  %v17429_v17 = vpop.f32.mrb[140].mxu1  ;;  %v22046_v12 = vpop.f32.mrb[212].mxu0 }
 0x44b   : > { %v4807_v21 = vmul.f32 %v17429_v17, %v24829_v36  ;;  %v4783_v4 = vpop.f32.mrb[141].mxu1  ;;  %17751 = vmatmul.mubr.msk.f32.gmra.mrb[246].mxu1 %vm512_vm0, %v21869_v20  ;;  %18462 = vmatmul.mubr.msk.f32.vlgmr.msra.gmra.mrb[168].mxu0 %vm512_vm0, %v21831_v56  ;;  %24831 = vst [vmem:[#allocation38_spill] sm:$0xff] %v22046_v12  ;;  %v22048_v23 = vpop.f32.mrb[213].mxu0 }
 0x44c   : > { %v4806_v47 = vmul.f32 %v4783_v4, %v24756_v38  ;;  %19024 = vmatpush3.bf16.msra.mxu0 %v24816_v7  ;;  %17773 = vmatprep.mubr.msk.f32.mxu1 %vm512_vm0, %v21748_v53  ;;  %24832 = vst [vmem:[#allocation36_spill] sm:$0xff] %v22048_v23  ;;  %v24833_v4 = vld [vmem:[#allocation88_spill] sm:$0xff] }
 0x44d   : > { %v4815_v40 = vadd.f32 %v4807_v21, %v4692_v33  ;;  %19030 = vmatprep.subr.bf16.mxu0 %v24830_v60  ;;  %18464 = vmatprep.mubr.msk.f32.mxu0 %vm512_vm0, %v21841_v63  ;;  %v4693_v33 = vmul.f32 %v4678_v39, %v24760_v55 }
 0x44e   : > { %v4814_v61 = vadd.f32 %v4806_v47, %v4691_v26  ;;  %v17432_v17 = vpop.f32.mrb[142].mxu1  ;;  %v22064_v47 = vpop.f32.mrb[214].mxu0 }
 0x44f   : > { %v4809_v31 = vmul.f32 %v17432_v17, %v24833_v4  ;;  %v4793_v7 = vpop.f32.mrb[143].mxu1  ;;  %17774 = vmatmul.mubr.msk.f32.vlgmr.msra.gmra.mrb[248].mxu1 %vm512_vm0, %v21831_v56  ;;  %18465 = vmatmul.mubr.msk.f32.gmra.mrb[170].mxu0 %vm512_vm0, %v21901_v10  ;;  %24835 = vst [vmem:[#allocation55_spill] sm:$0xff] %v22064_v47  ;;  %v22066_v12 = vpop.f32.mrb[215].mxu0 }
 0x450   : > { %v4808_v21 = vmul.f32 %v4793_v7, %v20635_v8  ;;  %18852 = vmatpush3.bf16.msra.mxu1 %v24817_v22  ;;  %17776 = vmatprep.mubr.msk.f32.mxu1 %vm512_vm0, %v21841_v63  ;;  %24836 = vst [vmem:[#allocation26_spill] sm:$0xff] %v22066_v12 }
 0x451   : > { %v4817_v26 = vadd.f32 %v4809_v31, %v4694_v32  ;;  %18858 = vmatprep.subr.bf16.mxu1 %v24834_v41  ;;  %18467 = vmatprep.mubr.msk.f32.mxu0 %vm512_vm0, %v21910_v30  ;;  %v22078_v32 = vpop.f32.mrb[216].mxu0 }
 0x452   : > { %v4816_v17 = vadd.f32 %v4808_v21, %v4693_v33  ;;  %v17439_v23 = vpop.f32.mrb[144].mxu1  ;;  %24837 = vst [vmem:[#allocation94_spill] sm:$0xff] %v22078_v32  ;;  %v22080_v21 = vpop.f32.mrb[217].mxu0 }
 0x453   : > { %v4926_v39 = vmul.f32 %v17439_v23, %v20640_v34  ;;  %v4886_v7 = vpop.f32.mrb[145].mxu1  ;;  %17777 = vmatmul.mubr.msk.f32.gmra.mrb[250].mxu1 %vm512_vm0, %v21901_v10  ;;  %18468 = vmatmul.mubr.msk.f32.gmra.mrb[172].mxu0 %vm512_vm0, %v21917_v19  ;;  %24838 = vst [vmem:[#allocation43_spill] sm:$0xff] %v22080_v21 }
 0x454   : > { %v4925_v22 = vmul.f32 %v4886_v7, %v20658_v24  ;;  %17779 = vmatprep.mubr.msk.f32.mxu1 %vm512_vm0, %v21910_v30  ;;  %18470 = vmatprep.mubr.msk.f32.mxu0 %vm512_vm0, %v21860_v58 }
 0x455   : > { %v4934_v31 = vadd.f32 %v4926_v39, %v4811_v27  ;;  %v22092_v27 = vpop.f32.mrb[218].mxu0 }
 0x456   : > { %v4933_v33 = vadd.f32 %v4925_v22, %v4810_v54  ;;  %v17442_v23 = vpop.f32.mrb[146].mxu1  ;;  %24839 = vst [vmem:[#allocation133_spill] sm:$0xff] %v22092_v27  ;;  %v24845_v27 = vld [vmem:[#allocation99_spill] sm:$0xff] }
 0x457   : > { %v4928_v12 = vmul.f32 %v17442_v23, %v20669_v49  ;;  %v4896_v47 = vpop.f32.mrb[147].mxu1  ;;  %17780 = vmatmul.mubr.msk.f32.gmra.mrb[252].mxu1 %vm512_vm0, %v21917_v19  ;;  %18471 = vmatmul.mubr.msk.f32.gmra.mrb[174].mxu0 %vm512_vm0, %v21869_v20  ;;  %v22094_v23 = vpop.f32.mrb[219].mxu0 }
 0x458   : > { %v4927_v7 = vmul.f32 %v4896_v47, %v20675_v43  ;;  %17782 = vmatprep.mubr.msk.f32.mxu1 %vm512_vm0, %v21860_v58  ;;  %18493 = vmatprep.mubr.msk.f32.mxu0 %vm512_vm0, %v21748_v53  ;;  %24840 = vst [vmem:[#allocation134_spill] sm:$0xff] %v22094_v23  ;;  %v24841_v47 = vld [vmem:[#allocation97_spill] sm:$0xff] }
 0x459   : > { %v4936_v54 = vadd.f32 %v4928_v12, %v4813_v5  ;;  %v22108_v12 = vpop.f32.mrb[220].mxu0 }
 0x45a   : > { %v4935_v39 = vadd.f32 %v4927_v7, %v4812_v51  ;;  %v17445_v22 = vpop.f32.mrb[148].mxu1  ;;  %v24842_v51 = vld [vmem:[#allocation22_spill] sm:$0xff]  ;;  %v22110_v23 = vpop.f32.mrb[221].mxu0 }
 0x45b   : > { %v4930_v21 = vmul.f32 %v17445_v22, %v20677_v14  ;;  %v4906_v32 = vpop.f32.mrb[149].mxu1  ;;  %17783 = vmatmul.mubr.msk.f32.gmra.mrb[254].mxu1 %vm512_vm0, %v21869_v20  ;;  %18494 = vmatmul.mubr.msk.f32.vlgmr.msra.gmra.mrb[176].mxu0 %vm512_vm0, %v21831_v56  ;;  %24843 = vst [vmem:[#allocation22_spill] sm:$0xff] %v22108_v12  ;;  %24844 = vst [vmem:[#allocation135_spill] sm:$0xff] %v22110_v23 }
 0x45c   : > { %v4929_v8 = vmul.f32 %v4906_v32, %v24841_v47  ;;  %19032 = vmatpush3.bf16.msra.mxu0 %v24830_v60  ;;  %17805 = vmatprep.mubr.msk.f32.mxu1 %vm512_vm0, %v21748_v53  ;;  %v24846_v60 = vld [vmem:[#allocation61_spill] sm:$0xff] }
 0x45d   : > { %v4938_v5 = vadd.f32 %v4930_v21, %v4815_v40  ;;  %19038 = vmatprep.subr.bf16.mxu0 %v24842_v51  ;;  %18496 = vmatprep.mubr.msk.f32.mxu0 %vm512_vm0, %v21841_v63 }
 0x45e   : > { %v4937_v7 = vadd.f32 %v4929_v8, %v4814_v61  ;;  %v17448_v22 = vpop.f32.mrb[150].mxu1  ;;  %v22124_v61 = vpop.f32.mrb[222].mxu0 }
 0x45f   : > { %v4932_v4 = vmul.f32 %v17448_v22, %v24845_v27  ;;  %v4916_v32 = vpop.f32.mrb[151].mxu1  ;;  %17806 = vmatmul.mubr.msk.f32.vlgmr.msra.gmra.mrb[0].mxu1 %vm512_vm0, %v21831_v56  ;;  %18497 = vmatmul.mubr.msk.f32.gmra.mrb[178].mxu0 %vm512_vm0, %v21901_v10  ;;  %24847 = vst [vmem:[#allocation61_spill] sm:$0xff] %v22124_v61  ;;  %v22126_v23 = vpop.f32.mrb[223].mxu0 }
 0x460   : > { %v4931_v40 = vmul.f32 %v4916_v32, %v20707_v15  ;;  %18860 = vmatpush3.bf16.msra.mxu1 %v24834_v41  ;;  %17808 = vmatprep.mubr.msk.f32.mxu1 %vm512_vm0, %v21841_v63  ;;  %24848 = vst [vmem:[#allocation136_spill] sm:$0xff] %v22126_v23 }
 0x461   : > { %v4940_v8 = vadd.f32 %v4932_v4, %v4817_v26  ;;  %18866 = vmatprep.subr.bf16.mxu1 %v24846_v60  ;;  %18499 = vmatprep.mubr.msk.f32.mxu0 %vm512_vm0, %v21910_v30 }
 0x462   : > { %v4939_v21 = vadd.f32 %v4931_v40, %v4816_v17  ;;  %v17455_v22 = vpop.f32.mrb[152].mxu1 }
 0x463   : > { %v5049_v12 = vmul.f32 %v17455_v22, %v20777_v6  ;;  %v5009_v32 = vpop.f32.mrb[153].mxu1  ;;  %17809 = vmatmul.mubr.msk.f32.gmra.mrb[2].mxu1 %vm512_vm0, %v21901_v10  ;;  %18500 = vmatmul.mubr.msk.f32.gmra.mrb[180].mxu0 %vm512_vm0, %v21917_v19 }
 0x464   : > { %v5048_v4 = vmul.f32 %v5009_v32, %v20783_v44  ;;  %17811 = vmatprep.mubr.msk.f32.mxu1 %vm512_vm0, %v21910_v30  ;;  %18502 = vmatprep.mubr.msk.f32.mxu0 %vm512_vm0, %v21860_v58 }
 0x465   : > { %v5057_v26 = vadd.f32 %v5049_v12, %v4934_v31 }
 0x466   : > { %v5056_v41 = vadd.f32 %v5048_v4, %v4933_v33  ;;  %v17458_v17 = vpop.f32.mrb[154].mxu1 }
 0x467   : > { %v5051_v40 = vmul.f32 %v17458_v17, %v20794_v0  ;;  %v5019_v22 = vpop.f32.mrb[155].mxu1  ;;  %17812 = vmatmul.mubr.msk.f32.gmra.mrb[4].mxu1 %vm512_vm0, %v21917_v19  ;;  %18503 = vmatmul.mubr.msk.f32.gmra.mrb[182].mxu0 %vm512_vm0, %v21869_v20 }
 0x468   : > { %v5050_v32 = vmul.f32 %v5019_v22, %v20801_v62  ;;  %17814 = vmatprep.mubr.msk.f32.mxu1 %vm512_vm0, %v21860_v58  ;;  %18525 = vmatprep.mubr.msk.f32.mxu0 %vm512_vm0, %v21748_v53 }
 0x469   : > { %v5059_v31 = vadd.f32 %v5051_v40, %v4936_v54  ;;  %v24849_v54 = vld [vmem:[#allocation39_spill] sm:$0xff] }
 0x46a   : > { %v5058_v33 = vadd.f32 %v5050_v32, %v4935_v39  ;;  %v17461_v12 = vpop.f32.mrb[156].mxu1  ;;  %v22160_v39 = vpop.f32.mrb[224].mxu0 }
 0x46b   : > { %v5053_v4 = vmul.f32 %v17461_v12, %v20814_v42  ;;  %v5029_v17 = vpop.f32.mrb[157].mxu1  ;;  %17815 = vmatmul.mubr.msk.f32.gmra.mrb[6].mxu1 %vm512_vm0, %v21869_v20  ;;  %18526 = vmatmul.mubr.msk.f32.vlgmr.msra.gmra.mrb[184].mxu0 %vm512_vm0, %v21831_v56  ;;  %24850 = vst [vmem:[#allocation39_spill] sm:$0xff] %v22160_v39  ;;  %v22162_v12 = vpop.f32.mrb[225].mxu0 }
 0x46c   : > { %v5052_v22 = vmul.f32 %v5029_v17, %v20821_v28  ;;  %19040 = vmatpush3.bf16.msra.mxu0 %v24842_v51  ;;  %17837 = vmatprep.mubr.msk.f32.mxu1 %vm512_vm0, %v21748_v53  ;;  %24851 = vst [vmem:[#allocation137_spill] sm:$0xff] %v22162_v12  ;;  %v24863_v28 = vld [vmem:[#allocation57_spill] sm:$0xff] }
 0x46d   : > { %v5061_v23 = vadd.f32 %v5053_v4, %v4938_v5  ;;  %19046 = vmatprep.subr.bf16.mxu0 %v24849_v54  ;;  %18528 = vmatprep.mubr.msk.f32.mxu0 %vm512_vm0, %v21841_v63  ;;  %v22169_v5 = vpop.f32.mrb[226].mxu0 }
 0x46e   : > { %v5060_v40 = vadd.f32 %v5052_v22, %v4937_v7  ;;  %v17464_v32 = vpop.f32.mrb[158].mxu1  ;;  %24852 = vst [vmem:[#allocation138_spill] sm:$0xff] %v22169_v5  ;;  %v22175_v7 = vpop.f32.mrb[227].mxu0  ;;  %v24854_v22 = vld [vmem:[#allocation53_spill] sm:$0xff] }
 0x46f   : > { %v5055_v61 = vmul.f32 %v17464_v32, %v20834_v25  ;;  %v5039_v17 = vpop.f32.mrb[159].mxu1  ;;  %17838 = vmatmul.mubr.msk.f32.vlgmr.msra.gmra.mrb[8].mxu1 %vm512_vm0, %v21831_v56  ;;  %18529 = vmatmul.mubr.msk.f32.gmra.mrb[186].mxu0 %vm512_vm0, %v21901_v10  ;;  %24853 = vst [vmem:[#allocation139_spill] sm:$0xff] %v22175_v7  ;;  %v22180_v32 = vpop.f32.mrb[228].mxu0 }
 0x470   : > { %v5054_v51 = vmul.f32 %v5039_v17, %v20840_v35  ;;  %18868 = vmatpush3.bf16.msra.mxu1 %v24846_v60  ;;  %17840 = vmatprep.mubr.msk.f32.mxu1 %vm512_vm0, %v21841_v63  ;;  %24855 = vst [vmem:[#allocation53_spill] sm:$0xff] %v22180_v32  ;;  %v22182_v5 = vpop.f32.mrb[229].mxu0  ;;  %v24857_v17 = vld [vmem:[#allocation76_spill] sm:$0xff] }
 0x471   : > { %v5063_v4 = vadd.f32 %v5055_v61, %v4940_v8  ;;  %18531 = vmatprep.mubr.msk.f32.mxu0 %vm512_vm0, %v21910_v30  ;;  %18874 = vmatprep.subr.bf16.mxu1 %v24854_v22  ;;  %24856 = vst [vmem:[#allocation140_spill] sm:$0xff] %v22182_v5  ;;  %v22189_v8 = vpop.f32.mrb[230].mxu0  ;;  %v24859_v61 = vld [vmem:[#allocation109_spill] sm:$0xff] }
 0x472   : > { %v5062_v12 = vadd.f32 %v5054_v51, %v4939_v21  ;;  %v17471_v39 = vpop.f32.mrb[160].mxu1  ;;  %24858 = vst [vmem:[#allocation141_spill] sm:$0xff] %v22189_v8  ;;  %v22196_v21 = vpop.f32.mrb[231].mxu0 }
 0x473   : > { %v5172_v35 = vmul.f32 %v17471_v39, %v24857_v17  ;;  %v5132_v60 = vpop.f32.mrb[161].mxu1  ;;  %17841 = vmatmul.mubr.msk.f32.gmra.mrb[10].mxu1 %vm512_vm0, %v21901_v10  ;;  %18532 = vmatmul.mubr.msk.f32.gmra.mrb[188].mxu0 %vm512_vm0, %v21917_v19  ;;  %24860 = vst [vmem:[#allocation142_spill] sm:$0xff] %v22196_v21  ;;  %v22198_v51 = vpop.f32.mrb[232].mxu0 }
 0x474   : > { %v5171_v7 = vmul.f32 %v5132_v60, %v24859_v61  ;;  %17843 = vmatprep.mubr.msk.f32.mxu1 %vm512_vm0, %v21910_v30  ;;  %18534 = vmatprep.mubr.msk.f32.mxu0 %vm512_vm0, %v21860_v58  ;;  %24861 = vst [vmem:[#allocation143_spill] sm:$0xff] %v22198_v51  ;;  %v22200_v25 = vpop.f32.mrb[233].mxu0  ;;  %v24864_v60 = vld [vmem:[#allocation110_spill] sm:$0xff] }
 0x475   : > { %v5180_v39 = vadd.f32 %v5172_v35, %v5057_v26  ;;  %24862 = vst [vmem:[#allocation144_spill] sm:$0xff] %v22200_v25  ;;  %v22212_v26 = vpop.f32.mrb[234].mxu0 }
 0x476   : > { %v5179_v5 = vadd.f32 %v5171_v7, %v5056_v41  ;;  %v17474_v32 = vpop.f32.mrb[162].mxu1  ;;  %24865 = vst [vmem:[#allocation57_spill] sm:$0xff] %v22212_v26 }
 0x477   : > { %v5174_v42 = vmul.f32 %v17474_v32, %v24863_v28  ;;  %v5142_v8 = vpop.f32.mrb[163].mxu1  ;;  %17844 = vmatmul.mubr.msk.f32.gmra.mrb[12].mxu1 %vm512_vm0, %v21917_v19  ;;  %18535 = vmatmul.mubr.msk.f32.gmra.mrb[190].mxu0 %vm512_vm0, %v21869_v20  ;;  %v22214_v32 = vpop.f32.mrb[235].mxu0 }
 0x478   : > { %v5173_v62 = vmul.f32 %v5142_v8, %v24864_v60  ;;  %17846 = vmatprep.mubr.msk.f32.mxu1 %vm512_vm0, %v21860_v58  ;;  %18557 = vmatprep.mubr.msk.f32.mxu0 %vm512_vm0, %v21748_v53  ;;  %24866 = vst [vmem:[#allocation145_spill] sm:$0xff] %v22214_v32 }
 0x479   : > { %v5182_v35 = vadd.f32 %v5174_v42, %v5059_v31  ;;  %v24867_v42 = vld [vmem:[#allocation56_spill] sm:$0xff]  ;;  %v22228_v31 = vpop.f32.mrb[236].mxu0 }
 0x47a   : > { %v5181_v41 = vadd.f32 %v5173_v62, %v5058_v33  ;;  %v17477_v7 = vpop.f32.mrb[164].mxu1  ;;  %24868 = vst [vmem:[#allocation56_spill] sm:$0xff] %v22228_v31  ;;  %v22230_v32 = vpop.f32.mrb[237].mxu0  ;;  %v24873_v31 = vld [vmem:[#allocation17_spill] sm:$0xff] }
 0x47b   : > { %v5176_v21 = vmul.f32 %v17477_v7, %v24775_v1  ;;  %v5152_v25 = vpop.f32.mrb[165].mxu1  ;;  %17847 = vmatmul.mubr.msk.f32.gmra.mrb[14].mxu1 %vm512_vm0, %v21869_v20  ;;  %18558 = vmatmul.mubr.msk.f32.vlgmr.msra.gmra.mrb[192].mxu0 %vm512_vm0, %v21831_v56  ;;  %24869 = vst [vmem:[#allocation146_spill] sm:$0xff] %v22230_v32 }
 0x47c   : > { %v5175_v8 = vmul.f32 %v5152_v25, %v24777_v45  ;;  %19048 = vmatpush3.bf16.msra.mxu0 %v24849_v54  ;;  %17869 = vmatprep.mubr.msk.f32.mxu1 %vm512_vm0, %v21748_v53 }
 0x47d   : > { %v5184_v62 = vadd.f32 %v5176_v21, %v5061_v23  ;;  %19054 = vmatprep.subr.bf16.mxu0 %v24867_v42  ;;  %18560 = vmatprep.mubr.msk.f32.mxu0 %vm512_vm0, %v21841_v63  ;;  %v22244_v21 = vpop.f32.mrb[238].mxu0 }
 0x47e   : > { %v5183_v33 = vadd.f32 %v5175_v8, %v5060_v40  ;;  %v17480_v7 = vpop.f32.mrb[166].mxu1  ;;  %v24870_v40 = vld [vmem:[#allocation27_spill] sm:$0xff]  ;;  %v22246_v32 = vpop.f32.mrb[239].mxu0 }
 0x47f   : > { %v5178_v26 = vmul.f32 %v17480_v7, %v24780_v46  ;;  %v5162_v25 = vpop.f32.mrb[167].mxu1  ;;  %17870 = vmatmul.mubr.msk.f32.vlgmr.msra.gmra.mrb[16].mxu1 %vm512_vm0, %v21831_v56  ;;  %18561 = vmatmul.mubr.msk.f32.gmra.mrb[194].mxu0 %vm512_vm0, %v21901_v10  ;;  %24871 = vst [vmem:[#allocation27_spill] sm:$0xff] %v22244_v21  ;;  %24872 = vst [vmem:[#allocation147_spill] sm:$0xff] %v22246_v32  ;;  %v24877_v21 = vld [vmem:[#allocation34_spill] sm:$0xff] }
 0x480   : > { %v5177_v23 = vmul.f32 %v5162_v25, %v24782_v50  ;;  %18876 = vmatpush3.bf16.msra.mxu1 %v24854_v22  ;;  %17872 = vmatprep.mubr.msk.f32.mxu1 %vm512_vm0, %v21841_v63 }
 0x481   : > { %v5186_v54 = vadd.f32 %v5178_v26, %v5063_v4  ;;  %18882 = vmatprep.subr.bf16.mxu1 %v24870_v40  ;;  %18563 = vmatprep.mubr.msk.f32.mxu0 %vm512_vm0, %v21910_v30  ;;  %v24874_v4 = vld [vmem:[#allocation68_spill] sm:$0xff]  ;;  %v22258_v26 = vpop.f32.mrb[240].mxu0 }
 0x482   : > { %v5185_v8 = vadd.f32 %v5177_v23, %v5062_v12  ;;  %v17487_v7 = vpop.f32.mrb[168].mxu1  ;;  %24875 = vst [vmem:[#allocation148_spill] sm:$0xff] %v22258_v26  ;;  %v22260_v32 = vpop.f32.mrb[241].mxu0 }
 0x483   : > { %v5295_v51 = vmul.f32 %v17487_v7, %v24873_v31  ;;  %v5255_v25 = vpop.f32.mrb[169].mxu1  ;;  %17873 = vmatmul.mubr.msk.f32.gmra.mrb[18].mxu1 %vm512_vm0, %v21901_v10  ;;  %18564 = vmatmul.mubr.msk.f32.gmra.mrb[196].mxu0 %vm512_vm0, %v21917_v19  ;;  %24876 = vst [vmem:[#allocation149_spill] sm:$0xff] %v22260_v32 }
 0x484   : > { %v5294_v22 = vmul.f32 %v5255_v25, %v24874_v4  ;;  %17875 = vmatprep.mubr.msk.f32.mxu1 %vm512_vm0, %v21910_v30  ;;  %18566 = vmatprep.mubr.msk.f32.mxu0 %vm512_vm0, %v21860_v58 }
 0x485   : > { %v5303_v12 = vadd.f32 %v5295_v51, %v5180_v39  ;;  %v22272_v39 = vpop.f32.mrb[242].mxu0 }
 0x486   : > { %v5302_v23 = vadd.f32 %v5294_v22, %v5179_v5  ;;  %v17490_v7 = vpop.f32.mrb[170].mxu1  ;;  %24878 = vst [vmem:[#allocation150_spill] sm:$0xff] %v22272_v39  ;;  %v24883_v39 = vld [vmem:[#allocation116_spill] sm:$0xff] }
 0x487   : > { %v5297_v31 = vmul.f32 %v17490_v7, %v24877_v21  ;;  %v5265_v50 = vpop.f32.mrb[171].mxu1  ;;  %17876 = vmatmul.mubr.msk.f32.gmra.mrb[20].mxu1 %vm512_vm0, %v21917_v19  ;;  %18567 = vmatmul.mubr.msk.f32.gmra.mrb[198].mxu0 %vm512_vm0, %v21869_v20  ;;  %v22274_v7 = vpop.f32.mrb[243].mxu0 }
 0x488   : > { %v5296_v25 = vmul.f32 %v5265_v50, %v24789_v13  ;;  %17878 = vmatprep.mubr.msk.f32.mxu1 %vm512_vm0, %v21860_v58  ;;  %18589 = vmatprep.mubr.msk.f32.mxu0 %vm512_vm0, %v21748_v53  ;;  %24879 = vst [vmem:[#allocation151_spill] sm:$0xff] %v22274_v7 }
 0x489   : > { %v5305_v5 = vadd.f32 %v5297_v31, %v5182_v35  ;;  %v22288_v31 = vpop.f32.mrb[244].mxu0 }
 0x48a   : > { %v5304_v51 = vadd.f32 %v5296_v25, %v5181_v41  ;;  %v17493_v22 = vpop.f32.mrb[172].mxu1  ;;  %v24880_v41 = vld [vmem:[#allocation98_spill] sm:$0xff]  ;;  %v22290_v7 = vpop.f32.mrb[245].mxu0 }
 0x48b   : > { %v5299_v32 = vmul.f32 %v17493_v22, %v24791_v16  ;;  %v5275_v26 = vpop.f32.mrb[173].mxu1  ;;  %17879 = vmatmul.mubr.msk.f32.gmra.mrb[22].mxu1 %vm512_vm0, %v21869_v20  ;;  %18590 = vmatmul.mubr.msk.f32.vlgmr.msra.gmra.mrb[200].mxu0 %vm512_vm0, %v21831_v56  ;;  %24881 = vst [vmem:[#allocation98_spill] sm:$0xff] %v22288_v31  ;;  %24882 = vst [vmem:[#allocation152_spill] sm:$0xff] %v22290_v7  ;;  %v24887_v31 = vld [vmem:[#allocation80_spill] sm:$0xff] }
 0x48c   : > { %v5298_v50 = vmul.f32 %v5275_v26, %v24793_v11  ;;  %19056 = vmatpush3.bf16.msra.mxu0 %v24867_v42  ;;  %17901 = vmatprep.mubr.msk.f32.mxu1 %vm512_vm0, %v21748_v53  ;;  %v24884_v42 = vld [vmem:[#allocation44_spill] sm:$0xff] }
 0x48d   : > { %v5307_v35 = vadd.f32 %v5299_v32, %v5184_v62  ;;  %19062 = vmatprep.subr.bf16.mxu0 %v24880_v41  ;;  %18592 = vmatprep.mubr.msk.f32.mxu0 %vm512_vm0, %v21841_v63 }
 0x48e   : > { %v5306_v25 = vadd.f32 %v5298_v50, %v5183_v33  ;;  %v17496_v22 = vpop.f32.mrb[174].mxu1  ;;  %v22304_v33 = vpop.f32.mrb[246].mxu0 }
 0x48f   : > { %v5301_v16 = vmul.f32 %v17496_v22, %v24883_v39  ;;  %v5285_v26 = vpop.f32.mrb[175].mxu1  ;;  %17902 = vmatmul.mubr.msk.f32.vlgmr.msra.gmra.mrb[24].mxu1 %vm512_vm0, %v21831_v56  ;;  %18593 = vmatmul.mubr.msk.f32.gmra.mrb[202].mxu0 %vm512_vm0, %v21901_v10  ;;  %24885 = vst [vmem:[#allocation44_spill] sm:$0xff] %v22304_v33  ;;  %v22306_v7 = vpop.f32.mrb[247].mxu0 }
 0x490   : > { %v5300_v32 = vmul.f32 %v5285_v26, %v24798_v37  ;;  %18884 = vmatpush3.bf16.msra.mxu1 %v24870_v40  ;;  %17904 = vmatprep.mubr.msk.f32.mxu1 %vm512_vm0, %v21841_v63  ;;  %24886 = vst [vmem:[#allocation153_spill] sm:$0xff] %v22306_v7  ;;  %v22318_v40 = vpop.f32.mrb[248].mxu0 }
 0x491   : > { %v5309_v62 = vadd.f32 %v5301_v16, %v5186_v54  ;;  %18890 = vmatprep.subr.bf16.mxu1 %v24884_v42  ;;  %18595 = vmatprep.mubr.msk.f32.mxu0 %vm512_vm0, %v21910_v30  ;;  %24888 = vst [vmem:[#allocation154_spill] sm:$0xff] %v22318_v40 }
 0x492   : > { %v5308_v50 = vadd.f32 %v5300_v32, %v5185_v8  ;;  %v17503_v22 = vpop.f32.mrb[176].mxu1 }
 0x493   : > { %v5418_v39 = vmul.f32 %v17503_v22, %v24887_v31  ;;  %v5378_v26 = vpop.f32.mrb[177].mxu1  ;;  %17905 = vmatmul.mubr.msk.f32.gmra.mrb[26].mxu1 %vm512_vm0, %v21901_v10  ;;  %18596 = vmatmul.mubr.msk.f32.gmra.mrb[204].mxu0 %vm512_vm0, %v21917_v19  ;;  %v22320_v22 = vpop.f32.mrb[249].mxu0 }
 0x494   : > { %v5417_v16 = vmul.f32 %v5378_v26, %v21289_v48  ;;  %17907 = vmatprep.mubr.msk.f32.mxu1 %vm512_vm0, %v21910_v30  ;;  %18598 = vmatprep.mubr.msk.f32.mxu0 %vm512_vm0, %v21860_v58  ;;  %24889 = vst [vmem:[#allocation155_spill] sm:$0xff] %v22320_v22 }
 0x495   : > { %v5426_v54 = vadd.f32 %v5418_v39, %v5303_v12 }
 0x496   : > { %v5425_v8 = vadd.f32 %v5417_v16, %v5302_v23  ;;  %v17506_v32 = vpop.f32.mrb[178].mxu1  ;;  %v22332_v23 = vpop.f32.mrb[250].mxu0 }
 0x497   : > { %v5420_v7 = vmul.f32 %v17506_v32, %v21304_v29  ;;  %v5388_v33 = vpop.f32.mrb[179].mxu1  ;;  %17908 = vmatmul.mubr.msk.f32.gmra.mrb[28].mxu1 %vm512_vm0, %v21917_v19  ;;  %18599 = vmatmul.mubr.msk.f32.gmra.mrb[206].mxu0 %vm512_vm0, %v21869_v20  ;;  %24890 = vst [vmem:[#allocation156_spill] sm:$0xff] %v22332_v23  ;;  %v22334_v32 = vpop.f32.mrb[251].mxu0 }
 0x498   : > { %v5419_v26 = vmul.f32 %v5388_v33, %v21311_v18  ;;  %17910 = vmatprep.mubr.msk.f32.mxu1 %vm512_vm0, %v21860_v58  ;;  %18621 = vmatprep.mubr.msk.f32.mxu0 %vm512_vm0, %v21748_v53  ;;  %24891 = vst [vmem:[#allocation157_spill] sm:$0xff] %v22334_v32  ;;  %v24892_v33 = vld [vmem:[#allocation33_spill] sm:$0xff]  ;;  %v22343_v53 = vld [vmem:[#allocation6] sm:$0xff]  ;;  %v24895_v32 = vld [vmem:[#allocation35_spill] sm:$0xff] }
 0x499   : > { %v5428_v12 = vadd.f32 %v5420_v7, %v5305_v5 }
 0x49a   : > { %v5427_v39 = vadd.f32 %v5419_v26, %v5304_v51  ;;  %v17509_v16 = vpop.f32.mrb[180].mxu1  ;;  %v22347_v51 = vpop.f32.mrb[252].mxu0 }
 0x49b   : > { %v5422_v22 = vmul.f32 %v17509_v16, %v21324_v9  ;;  %v5398_v40 = vpop.f32.mrb[181].mxu1  ;;  %17911 = vmatmul.mubr.msk.f32.gmra.mrb[30].mxu1 %vm512_vm0, %v21869_v20  ;;  %18622 = vmatmul.mubr.msk.f32.vlgmr.msra.gmra.mrb[208].mxu0 %vm512_vm0, %v21831_v56  ;;  %24893 = vst [vmem:[#allocation158_spill] sm:$0xff] %v22347_v51  ;;  %v22351_v16 = vpop.f32.mrb[253].mxu0 }
 0x49c   : > { %v5421_v37 = vmul.f32 %v5398_v40, %v24892_v33  ;;  %19064 = vmatpush3.bf16.msra.mxu0 %v24880_v41  ;;  %17933 = vmatprep.mubr.msk.f32.mxu1 %vm512_vm0, %v22343_v53  ;;  %24894 = vst [vmem:[#allocation159_spill] sm:$0xff] %v22351_v16  ;;  %v24896_v41 = vld [vmem:[#allocation40_spill] sm:$0xff] }
 0x49d   : > { %v5430_v5 = vadd.f32 %v5422_v22, %v5307_v35  ;;  %18624 = vmatprep.mubr.msk.f32.mxu0 %vm512_vm0, %v21841_v63  ;;  %v22363_v22 = vpop.f32.mrb[254].mxu0 }
 0x49e   : > { %v5429_v7 = vadd.f32 %v5421_v37, %v5306_v25  ;;  %v17512_v26 = vpop.f32.mrb[182].mxu1  ;;  %v24897_v25 = vld [vmem:[#allocation62_spill] sm:$0xff]  ;;  %24898 = vst [vmem:[#allocation40_spill] sm:$0xff] %v22363_v22  ;;  %v22367_v51 = vpop.f32.mrb[255].mxu0 }
 0x49f   : > { %v5424_v23 = vmul.f32 %v17512_v26, %v24895_v32  ;;  %v5408_v40 = vpop.f32.mrb[183].mxu1  ;;  %17934 = vmatmul.mubr.msk.f32.vlgmr.msra.gmra.mrb[32].mxu1 %vm512_vm0, %v21831_v56  ;;  %18625 = vmatmul.mubr.msk.f32.gmra.mrb[210].mxu0 %vm512_vm0, %v21901_v10  ;;  %24899 = vst [vmem:[#allocation62_spill] sm:$0xff] %v22367_v51  ;;  %v24900_v32 = vld [vmem:[#allocation52_spill] sm:$0xff] }
 0x4a0   : > { %v5423_v35 = vmul.f32 %v5408_v40, %v24896_v41  ;;  %18892 = vmatpush3.bf16.msra.mxu1 %v24884_v42  ;;  %17936 = vmatprep.mubr.msk.f32.mxu1 %vm512_vm0, %v21841_v63 }
 0x4a1   : > { %v5432_v37 = vadd.f32 %v5424_v23, %v5309_v62  ;;  %18898 = vmatprep.subr.bf16.mxu1 %v24897_v25  ;;  %18627 = vmatprep.mubr.msk.f32.mxu0 %vm512_vm0, %v21910_v30  ;;  %v24901_v62 = vld [vmem:[#allocation50_spill] sm:$0xff] }
 0x4a2   : > { %v5431_v26 = vadd.f32 %v5423_v35, %v5308_v50  ;;  %v17519_v16 = vpop.f32.mrb[184].mxu1 }
 0x4a3   : > { %v5541_v40 = vmul.f32 %v17519_v16, %v24900_v32  ;;  %v5501_v42 = vpop.f32.mrb[185].mxu1  ;;  %17937 = vmatmul.mubr.msk.f32.gmra.mrb[34].mxu1 %vm512_vm0, %v21901_v10  ;;  %18628 = vmatmul.mubr.msk.f32.gmra.mrb[212].mxu0 %vm512_vm0, %v21917_v19  ;;  %v24902_v16 = vld [vmem:[#allocation84_spill] sm:$0xff] }
 0x4a4   : > { %v5540_v23 = vmul.f32 %v5501_v42, %v24901_v62  ;;  %17939 = vmatprep.mubr.msk.f32.mxu1 %vm512_vm0, %v21910_v30  ;;  %18630 = vmatprep.mubr.msk.f32.mxu0 %vm512_vm0, %v21860_v58  ;;  %v24903_v42 = vld [vmem:[#allocation58_spill] sm:$0xff] }
 0x4a5   : > { %v5549_v50 = vadd.f32 %v5541_v40, %v5426_v54  ;;  %v24904_v40 = vld [vmem:[#allocation19_spill] sm:$0xff] }
 0x4a6   : > { %v5548_v35 = vadd.f32 %v5540_v23, %v5425_v8  ;;  %v17522_v51 = vpop.f32.mrb[186].mxu1 }
 0x4a7   : > { %15040 = vst [vmem:[%s21482_s26 + $0x88] sm:$0xff] %v5549_v50  ;;  %v5543_v22 = vmul.f32 %v17522_v51, %v24902_v16  ;;  %v5511_v32 = vpop.f32.mrb[187].mxu1  ;;  %17940 = vmatmul.mubr.msk.f32.gmra.mrb[36].mxu1 %vm512_vm0, %v21917_v19  ;;  %18631 = vmatmul.mubr.msk.f32.gmra.mrb[214].mxu0 %vm512_vm0, %v21869_v20 }
 0x4a8   : > { %15039 = vst [vmem:[%s21482_s26 + $0x80] sm:$0xff] %v5548_v35  ;;  %v5542_v62 = vmul.f32 %v5511_v32, %v24903_v42  ;;  %17942 = vmatprep.mubr.msk.f32.mxu1 %vm512_vm0, %v21860_v58  ;;  %18653 = vmatprep.mubr.msk.f32.mxu0 %vm512_vm0, %v22343_v53  ;;  %v24905_v32 = vld [vmem:[#allocation69_spill] sm:$0xff] }
 0x4a9   : > { %v5551_v54 = vadd.f32 %v5543_v22, %v5428_v12 }
 0x4aa   : > { %v5550_v8 = vadd.f32 %v5542_v62, %v5427_v39  ;;  %v17525_v51 = vpop.f32.mrb[188].mxu1  ;;  %v22403_v39 = vpop.f32.mrb[0].mxu0 }
 0x4ab   : > { %15042 = vst [vmem:[%s21482_s26 + $0x98] sm:$0xff] %v5551_v54  ;;  %v5545_v23 = vmul.f32 %v17525_v51, %v24904_v40  ;;  %v5521_v50 = vpop.f32.mrb[189].mxu1  ;;  %17943 = vmatmul.mubr.msk.f32.gmra.mrb[38].mxu1 %vm512_vm0, %v21869_v20  ;;  %18654 = vmatmul.mubr.msk.f32.vlgmr.msra.gmra.mrb[216].mxu0 %vm512_vm0, %v21831_v56  ;;  %24906 = vst [vmem:[#allocation160_spill] sm:$0xff] %v22403_v39  ;;  %v22405_v54 = vpop.f32.mrb[1].mxu0  ;;  %v24908_v20 = vld [vmem:[#allocation118_spill] sm:$0xff] }
 0x4ac   : > { %15041 = vst [vmem:[%s21482_s26 + $0x90] sm:$0xff] %v5550_v8  ;;  %v5544_v35 = vmul.f32 %v5521_v50, %v24905_v32  ;;  %17965 = vmatprep.mubr.msk.f32.mxu1 %vm512_vm0, %v22343_v53  ;;  %18656 = vmatprep.mubr.msk.f32.mxu0 %vm512_vm0, %v21841_v63  ;;  %24907 = vst [vmem:[#allocation161_spill] sm:$0xff] %v22405_v54  ;;  %v22411_v8 = vpop.f32.mrb[2].mxu0 }
 0x4ad   : > { %v5553_v12 = vadd.f32 %v5545_v23, %v5430_v5  ;;  %24909 = vst [vmem:[#allocation162_spill] sm:$0xff] %v22411_v8  ;;  %v24910_v5 = vld [vmem:[#allocation119_spill] sm:$0xff] }
 0x4ae   : > { %v5552_v22 = vadd.f32 %v5544_v35, %v5429_v7  ;;  %v17528_v62 = vpop.f32.mrb[190].mxu1  ;;  %v22420_v7 = vpop.f32.mrb[3].mxu0  ;;  %v24912_v35 = vld [vmem:[#allocation24_spill] sm:$0xff] }
 0x4af   : > { %15044 = vst [vmem:[%s21482_s26 + $0xa8] sm:$0xff] %v5553_v12  ;;  %v5547_v51 = vmul.f32 %v17528_v62, %v24908_v20  ;;  %v5531_v40 = vpop.f32.mrb[191].mxu1  ;;  %17966 = vmatmul.mubr.msk.f32.vlgmr.msra.gmra.mrb[40].mxu1 %vm512_vm0, %v21831_v56  ;;  %18657 = vmatmul.mubr.msk.f32.gmra.mrb[218].mxu0 %vm512_vm0, %v21901_v10  ;;  %24911 = vst [vmem:[#allocation163_spill] sm:$0xff] %v22420_v7  ;;  %v22423_v56 = vpop.f32.mrb[4].mxu0 }
 0x4b0   : > { %15043 = vst [vmem:[%s21482_s26 + $0xa0] sm:$0xff] %v5552_v22  ;;  %v5546_v23 = vmul.f32 %v5531_v40, %v24910_v5  ;;  %18900 = vmatpush3.bf16.msra.mxu1 %v24897_v25  ;;  %17968 = vmatprep.mubr.msk.f32.mxu1 %vm512_vm0, %v21841_v63  ;;  %24913 = vst [vmem:[#allocation24_spill] sm:$0xff] %v22423_v56  ;;  %v22427_v62 = vpop.f32.mrb[5].mxu0  ;;  %v24915_v40 = vld [vmem:[#allocation70_spill] sm:$0xff]  ;;  %v24916_v25 = vld [vmem:[#allocation120_spill] sm:$0xff] }
 0x4b1   : > { %v5555_v50 = vadd.f32 %v5547_v51, %v5432_v37  ;;  %18906 = vmatprep.subr.bf16.mxu1 %v24912_v35  ;;  %18659 = vmatprep.mubr.msk.f32.mxu0 %vm512_vm0, %v21910_v30  ;;  %24914 = vst [vmem:[#allocation164_spill] sm:$0xff] %v22427_v62  ;;  %v5673_v8 = vmul.f32 %v24916_v25, %v24915_v40  ;;  %v24917_v63 = vld [vmem:[#allocation125_spill] sm:$0xff]  ;;  %v24918_v37 = vld [vmem:[#allocation78_spill] sm:$0xff]  ;;  %v22437_v7 = vpop.f32.mrb[6].mxu0 }
 0x4b2   : > { %v5554_v12 = vadd.f32 %v5546_v23, %v5431_v26  ;;  %v17551_v22 = vpop.f32.mrb[192].mxu1  ;;  %v5911_v54 = vmul.f32 %v24917_v63, %v20640_v34  ;;  %24919 = vst [vmem:[#allocation120_spill] sm:$0xff] %v22437_v7  ;;  %v24920_v26 = vld [vmem:[#allocation71_spill] sm:$0xff]  ;;  %v24921_v23 = vld [vmem:[#allocation121_spill] sm:$0xff]  ;;  %v24922_v25 = vld [vmem:[#allocation126_spill] sm:$0xff]  ;;  %v22449_v63 = vpop.f32.mrb[7].mxu0 }
 0x4b3   : > { %15046 = vst [vmem:[%s21482_s26 + $0xb8] sm:$0xff] %v5555_v50  ;;  %17969 = vmatmul.mubr.msk.f32.gmra.mrb[42].mxu1 %vm512_vm0, %v21901_v10  ;;  %v5788_v51 = vmul.f32 %v17551_v22, %v24918_v37  ;;  %v5748_v56 = vpop.f32.mrb[193].mxu1  ;;  %18660 = vmatmul.mubr.msk.f32.gmra.mrb[220].mxu0 %vm512_vm0, %v21917_v19  ;;  %v5672_v62 = vmul.f32 %v24921_v23, %v24920_v26  ;;  %v24923_v50 = vld [vmem:[#allocation81_spill] sm:$0xff]  ;;  %24924 = vst [vmem:[#allocation125_spill] sm:$0xff] %v22449_v63  ;;  %v22453_v7 = vpop.f32.mrb[8].mxu0  ;;  %v24927_v26 = vld [vmem:[#allocation72_spill] sm:$0xff] }
 0x4b4   : > { %v5910_v39 = vmul.f32 %v24922_v25, %v20658_v24  ;;  %15045 = vst [vmem:[%s21482_s26 + $0xb0] sm:$0xff] %v5554_v12  ;;  %17971 = vmatprep.mubr.msk.f32.mxu1 %vm512_vm0, %v21910_v30  ;;  %v5787_v10 = vmul.f32 %v5748_v56, %v24923_v50  ;;  %18662 = vmatprep.mubr.msk.f32.mxu0 %vm512_vm0, %v21860_v58  ;;  %24925 = vst [vmem:[#allocation121_spill] sm:$0xff] %v22453_v7  ;;  %v22455_v23 = vpop.f32.mrb[9].mxu0  ;;  %v24928_v25 = vld [vmem:[#allocation54_spill] sm:$0xff]  ;;  %v24929_v24 = vld [vmem:[#allocation91_spill] sm:$0xff] }
 0x4b5   : > { %v5796_v22 = vadd.f32 %v5788_v51, %v5673_v8  ;;  %24926 = vst [vmem:[#allocation126_spill] sm:$0xff] %v22455_v23  ;;  %v5675_v12 = vmul.f32 %v24928_v25, %v24927_v26  ;;  %v5913_v30 = vmul.f32 %v24929_v24, %v20669_v49  ;;  %v24930_v56 = vld [vmem:[#allocation82_spill] sm:$0xff]  ;;  %v22468_v23 = vld [vmem:[#allocation6 + $0x30] sm:$0xff] }
 0x4b6   : > { %v5795_v34 = vadd.f32 %v5787_v10, %v5672_v62  ;;  %v17554_v37 = vpop.f32.mrb[194].mxu1  ;;  %v24931_v8 = vld [vmem:[#allocation122_spill] sm:$0xff]  ;;  %v24932_v62 = vld [vmem:[#allocation127_spill] sm:$0xff] }
 0x4b7   : > { %17972 = vmatmul.mubr.msk.f32.gmra.mrb[44].mxu1 %vm512_vm0, %v21917_v19  ;;  %v5790_v63 = vmul.f32 %v17554_v37, %v24930_v56  ;;  %v5758_v50 = vpop.f32.mrb[195].mxu1  ;;  %v5919_v58 = vadd.f32 %v5911_v54, %v5796_v22  ;;  %v5674_v51 = vmul.f32 %v24931_v8, %v24824_v57  ;;  %v5912_v10 = vmul.f32 %v24932_v62, %v20675_v43  ;;  %v22473_v19 = vpop.f32.mrb[10].mxu0  ;;  %v22475_v37 = vld [vmem:[#allocation6 + $0x38] sm:$0xff]  ;;  %v24936_v57 = vld [vmem:[#allocation42_spill] sm:$0xff] }
 0x4b8   : > { %17974 = vmatprep.mubr.msk.f32.mxu1 %vm512_vm0, %v22468_v23  ;;  %v5789_v24 = vmul.f32 %v5758_v50, %v24825_v3  ;;  %v5918_v25 = vadd.f32 %v5910_v39, %v5795_v34  ;;  %24933 = vst [vmem:[#allocation54_spill] sm:$0xff] %v22473_v19  ;;  %18663 = vmatmul.mubr.msk.f32.gmra.mrb[222].mxu0 %vm512_vm0, %v22475_v37  ;;  %v22479_v8 = vpop.f32.mrb[11].mxu0  ;;  %v24935_v62 = vld [vmem:[#allocation25_spill] sm:$0xff] }
 0x4b9   : > { %v5798_v7 = vadd.f32 %v5790_v63, %v5675_v12  ;;  %24934 = vst [vmem:[#allocation91_spill] sm:$0xff] %v22479_v8  ;;  %v5677_v43 = vmul.f32 %v24935_v62, %v24828_v2  ;;  %v5915_v49 = vmul.f32 %v24936_v57, %v20677_v14  ;;  %v24937_v63 = vld [vmem:[#allocation123_spill] sm:$0xff]  ;;  %v22495_v19 = vpop.f32.mrb[12].mxu0  ;;  %v24940_v14 = vld [vmem:[#allocation124_spill] sm:$0xff] }
 0x4ba   : > { %v5797_v54 = vadd.f32 %v5789_v24, %v5674_v51  ;;  %v17557_v22 = vpop.f32.mrb[196].mxu1  ;;  %v5676_v12 = vmul.f32 %v24937_v63, %v24755_v52  ;;  %v24938_v51 = vld [vmem:[#allocation128_spill] sm:$0xff]  ;;  %24939 = vst [vmem:[#allocation122_spill] sm:$0xff] %v22495_v19  ;;  %v24942_v63 = vld [vmem:[#allocation51_spill] sm:$0xff] }
 0x4bb   : > { %17975 = vmatmul.mubr.msk.f32.gmra.mrb[46].mxu1 %vm512_vm0, %v22475_v37  ;;  %v5792_v34 = vmul.f32 %v17557_v22, %v24829_v36  ;;  %v5768_v39 = vpop.f32.mrb[197].mxu1  ;;  %v5921_v50 = vadd.f32 %v5913_v30, %v5798_v7  ;;  %v5914_v24 = vmul.f32 %v24938_v51, %v24841_v47  ;;  %v5679_v22 = vmul.f32 %v24940_v14, %v24758_v59  ;;  %v22499_v30 = vpop.f32.mrb[13].mxu0  ;;  %v24943_v51 = vld [vmem:[#allocation129_spill] sm:$0xff]  ;;  %v22505_v2 = vld [vmem:[#allocation6 + $0x8] sm:$0xff]  ;;  %v24945_v14 = vld [vmem:[#allocation130_spill] sm:$0xff] }
 0x4bc   : > { %17997 = vmatprep.mubr.msk.f32.mxu1 %vm512_vm0, %v22343_v53  ;;  %v5791_v62 = vmul.f32 %v5768_v39, %v24756_v38  ;;  %v5920_v8 = vadd.f32 %v5912_v10, %v5797_v54  ;;  %24941 = vst [vmem:[#allocation127_spill] sm:$0xff] %v22499_v30  ;;  %v5678_v52 = vmul.f32 %v24942_v63, %v24760_v55  ;;  %v22514_v63 = vld [vmem:[#allocation6 + $0x10] sm:$0xff] }
 0x4bd   : > { %v5800_v57 = vadd.f32 %v5792_v34, %v5677_v43  ;;  %v5917_v47 = vmul.f32 %v24943_v51, %v24845_v27  ;;  %v24944_v43 = vld [vmem:[#allocation88_spill] sm:$0xff]  ;;  %v5916_v39 = vmul.f32 %v24945_v14, %v20707_v15  ;;  %v22519_v27 = vpop.f32.mrb[14].mxu0  ;;  %v24950_v14 = vld [vmem:[#allocation131_spill] sm:$0xff] }
 0x4be   : > { %v5799_v36 = vadd.f32 %v5791_v62, %v5676_v12  ;;  %v17560_v7 = vpop.f32.mrb[198].mxu1  ;;  %v24946_v12 = vld [vmem:[#allocation89_spill] sm:$0xff]  ;;  %v24947_v19 = vld [vmem:[#allocation28_spill] sm:$0xff]  ;;  %24948 = vst [vmem:[#allocation25_spill] sm:$0xff] %v22519_v27 }
 0x4bf   : > { %17998 = vmatmul.mubr.msk.f32.vlgmr.msra.gmra.mrb[48].mxu1 %vm512_vm0, %v22505_v2  ;;  %v5794_v10 = vmul.f32 %v17560_v7, %v24944_v43  ;;  %v5778_v54 = vpop.f32.mrb[199].mxu1  ;;  %v5923_v34 = vadd.f32 %v5915_v49, %v5800_v57  ;;  %v22521_v57 = vpop.f32.mrb[15].mxu0  ;;  %v24959_v43 = vld [vmem:[#allocation105_spill] sm:$0xff] }
 0x4c0   : > { %18908 = vmatpush3.bf16.msra.mxu1 %v24912_v35  ;;  %v5793_v62 = vmul.f32 %v5778_v54, %v24946_v12  ;;  %18000 = vmatprep.mubr.msk.f32.mxu1 %vm512_vm0, %v22514_v63  ;;  %v5922_v51 = vadd.f32 %v5914_v24, %v5799_v36  ;;  %24949 = vst [vmem:[#allocation42_spill] sm:$0xff] %v22521_v57  ;;  %v22526_v12 = vld [vmem:[#allocation6 + $0x18] sm:$0xff]  ;;  %v24951_v24 = vld [vmem:[#allocation132_spill] sm:$0xff] }
 0x4c1   : > { %v5802_v30 = vadd.f32 %v5794_v10, %v5679_v22  ;;  %18914 = vmatprep.subr.bf16.mxu1 %v24947_v19  ;;  %v6157_v35 = vmul.f32 %v24950_v14, %v24857_v17  ;;  %v6156_v22 = vmul.f32 %v24951_v24, %v24859_v61  ;;  %v22533_v10 = vld [vmem:[#allocation6 + $0x20] sm:$0xff] }
 0x4c2   : > { %v5801_v7 = vadd.f32 %v5793_v62, %v5678_v52  ;;  %v17583_v49 = vpop.f32.mrb[200].mxu1 }
 0x4c3   : > { %v6034_v54 = vmul.f32 %v17583_v49, %v20777_v6  ;;  %v5994_v15 = vpop.f32.mrb[201].mxu1  ;;  %18001 = vmatmul.mubr.msk.f32.gmra.mrb[50].mxu1 %vm512_vm0, %v22526_v12  ;;  %v5925_v36 = vadd.f32 %v5917_v47, %v5802_v30  ;;  %v22537_v49 = vpop.f32.mrb[16].mxu0  ;;  %v22542_v6 = vld [vmem:[#allocation6 + $0x28] sm:$0xff] }
 0x4c4   : > { %v6033_v52 = vmul.f32 %v5994_v15, %v20783_v44  ;;  %18003 = vmatprep.mubr.msk.f32.mxu1 %vm512_vm0, %v22533_v10  ;;  %v5924_v62 = vadd.f32 %v5916_v39, %v5801_v7  ;;  %24952 = vst [vmem:[#allocation123_spill] sm:$0xff] %v22537_v49  ;;  %v22539_v17 = vpop.f32.mrb[17].mxu0  ;;  %v24954_v15 = vld [vmem:[#allocation21_spill] sm:$0xff]  ;;  %v24955_v39 = vld [vmem:[#allocation104_spill] sm:$0xff] }
 0x4c5   : > { %v6042_v14 = vadd.f32 %v6034_v54, %v5919_v58  ;;  %24953 = vst [vmem:[#allocation128_spill] sm:$0xff] %v22539_v17  ;;  %v6159_v24 = vmul.f32 %v24954_v15, %v24863_v28  ;;  %v24956_v7 = vld [vmem:[#allocation60_spill] sm:$0xff] }
 0x4c6   : > { %v6041_v57 = vadd.f32 %v6033_v52, %v5918_v25  ;;  %v17586_v27 = vpop.f32.mrb[202].mxu1  ;;  %v6158_v25 = vmul.f32 %v24956_v7, %v24864_v60  ;;  %v22553_v52 = vpop.f32.mrb[18].mxu0  ;;  %v24961_v60 = vld [vmem:[#allocation106_spill] sm:$0xff] }
 0x4c7   : > { %v6036_v47 = vmul.f32 %v17586_v27, %v20794_v0  ;;  %v6004_v30 = vpop.f32.mrb[203].mxu1  ;;  %18004 = vmatmul.mubr.msk.f32.gmra.mrb[52].mxu1 %vm512_vm0, %v22542_v6  ;;  %v6165_v61 = vadd.f32 %v6157_v35, %v6042_v14  ;;  %24957 = vst [vmem:[#allocation124_spill] sm:$0xff] %v22553_v52  ;;  %v22555_v0 = vpop.f32.mrb[19].mxu0  ;;  %v24960_v14 = vld [vmem:[#allocation38_spill] sm:$0xff] }
 0x4c8   : > { %v6035_v58 = vmul.f32 %v6004_v30, %v24955_v39  ;;  %18006 = vmatprep.mubr.msk.f32.mxu1 %vm512_vm0, %v22468_v23  ;;  %v6164_v54 = vadd.f32 %v6156_v22, %v6041_v57  ;;  %24958 = vst [vmem:[#allocation51_spill] sm:$0xff] %v22555_v0  ;;  %v6161_v30 = vmul.f32 %v24960_v14, %v24775_v1  ;;  %v24965_v0 = vld [vmem:[#allocation107_spill] sm:$0xff] }
 0x4c9   : > { %v6044_v27 = vadd.f32 %v6036_v47, %v5921_v50  ;;  %v24962_v50 = vld [vmem:[#allocation36_spill] sm:$0xff]  ;;  %v22567_v47 = vpop.f32.mrb[20].mxu0 }
 0x4ca   : > { %v6043_v17 = vadd.f32 %v6035_v58, %v5920_v8  ;;  %v17589_v49 = vpop.f32.mrb[204].mxu1  ;;  %v6160_v22 = vmul.f32 %v24962_v50, %v24777_v45  ;;  %24963 = vst [vmem:[#allocation129_spill] sm:$0xff] %v22567_v47  ;;  %v22569_v58 = vpop.f32.mrb[21].mxu0  ;;  %v24967_v50 = vld [vmem:[#allocation108_spill] sm:$0xff] }
 0x4cb   : > { %v6167_v44 = vadd.f32 %v6159_v24, %v6044_v27  ;;  %v6038_v15 = vmul.f32 %v17589_v49, %v24959_v43  ;;  %v6014_v35 = vpop.f32.mrb[205].mxu1  ;;  %18007 = vmatmul.mubr.msk.f32.gmra.mrb[54].mxu1 %vm512_vm0, %v22475_v37  ;;  %24964 = vst [vmem:[#allocation130_spill] sm:$0xff] %v22569_v58 }
 0x4cc   : > { %v6166_v7 = vadd.f32 %v6158_v25, %v6043_v17  ;;  %v6037_v57 = vmul.f32 %v6014_v35, %v24961_v60  ;;  %18029 = vmatprep.mubr.msk.f32.mxu1 %vm512_vm0, %v22343_v53  ;;  %v24966_v17 = vld [vmem:[#allocation55_spill] sm:$0xff] }
 0x4cd   : > { %v6046_v8 = vadd.f32 %v6038_v15, %v5923_v34  ;;  %v6163_v25 = vmul.f32 %v24966_v17, %v24780_v46  ;;  %v24968_v34 = vld [vmem:[#allocation114_spill] sm:$0xff] }
 0x4ce   : > { %v6045_v49 = vadd.f32 %v6037_v57, %v5922_v51  ;;  %v17592_v24 = vpop.f32.mrb[206].mxu1  ;;  %v24969_v51 = vld [vmem:[#allocation26_spill] sm:$0xff]  ;;  %v24970_v57 = vld [vmem:[#allocation45_spill] sm:$0xff] }
 0x4cf   : > { %v6169_v27 = vadd.f32 %v6161_v30, %v6046_v8  ;;  %v6040_v52 = vmul.f32 %v17592_v24, %v24965_v0  ;;  %v6024_v14 = vpop.f32.mrb[207].mxu1  ;;  %18030 = vmatmul.mubr.msk.f32.vlgmr.msra.gmra.mrb[56].mxu1 %vm512_vm0, %v22505_v2  ;;  %v6162_v15 = vmul.f32 %v24969_v51, %v24968_v34  ;;  %v22583_v8 = vpop.f32.mrb[22].mxu0 }
 0x4d0   : > { %v6168_v35 = vadd.f32 %v6160_v22, %v6045_v49  ;;  %v6039_v45 = vmul.f32 %v6024_v14, %v24967_v50  ;;  %18916 = vmatpush3.bf16.msra.mxu1 %v24947_v19  ;;  %18032 = vmatprep.mubr.msk.f32.mxu1 %vm512_vm0, %v22514_v63  ;;  %24971 = vst [vmem:[#allocation28_spill] sm:$0xff] %v22583_v8  ;;  %v22585_v47 = vpop.f32.mrb[23].mxu0  ;;  %v24973_v49 = vld [vmem:[#allocation17_spill] sm:$0xff]  ;;  %v24974_v19 = vld [vmem:[#allocation94_spill] sm:$0xff] }
 0x4d1   : > { %v6048_v30 = vadd.f32 %v6040_v52, %v5925_v36  ;;  %18922 = vmatprep.subr.bf16.mxu1 %v24970_v57  ;;  %24972 = vst [vmem:[#allocation131_spill] sm:$0xff] %v22585_v47  ;;  %v6403_v51 = vmul.f32 %v24974_v19, %v24887_v31  ;;  %v24975_v52 = vld [vmem:[#allocation43_spill] sm:$0xff] }
 0x4d2   : > { %v6047_v24 = vadd.f32 %v6039_v45, %v5924_v62  ;;  %v17615_v58 = vpop.f32.mrb[208].mxu1  ;;  %v6402_v8 = vmul.f32 %v24975_v52, %v21289_v48  ;;  %v22597_v62 = vpop.f32.mrb[24].mxu0 }
 0x4d3   : > { %v6171_v22 = vadd.f32 %v6163_v25, %v6048_v30  ;;  %v6280_v14 = vmul.f32 %v17615_v58, %v24973_v49  ;;  %v6240_v17 = vpop.f32.mrb[209].mxu1  ;;  %18033 = vmatmul.mubr.msk.f32.gmra.mrb[58].mxu1 %vm512_vm0, %v22526_v12  ;;  %24976 = vst [vmem:[#allocation132_spill] sm:$0xff] %v22597_v62  ;;  %v22599_v30 = vpop.f32.mrb[25].mxu0  ;;  %v24982_v62 = vld [vmem:[#allocation16_spill] sm:$0xff] }
 0x4d4   : > { %v6170_v34 = vadd.f32 %v6162_v15, %v6047_v24  ;;  %v6279_v36 = vmul.f32 %v6240_v17, %v24874_v4  ;;  %18035 = vmatprep.mubr.msk.f32.mxu1 %vm512_vm0, %v22533_v10  ;;  %24977 = vst [vmem:[#allocation21_spill] sm:$0xff] %v22599_v30  ;;  %v24978_v15 = vld [vmem:[#allocation133_spill] sm:$0xff] }
 0x4d5   : > { %v6288_v45 = vadd.f32 %v6280_v14, %v6165_v61  ;;  %v6405_v24 = vmul.f32 %v24978_v15, %v21304_v29  ;;  %v24979_v61 = vld [vmem:[#allocation134_spill] sm:$0xff] }
 0x4d6   : > { %v6287_v58 = vadd.f32 %v6279_v36, %v6164_v54  ;;  %v17618_v25 = vpop.f32.mrb[210].mxu1  ;;  %v6404_v14 = vmul.f32 %v24979_v61, %v21311_v18 }
 0x4d7   : > { %v6411_v47 = vadd.f32 %v6403_v51, %v6288_v45  ;;  %v6282_v49 = vmul.f32 %v17618_v25, %v24877_v21  ;;  %v6250_v19 = vpop.f32.mrb[211].mxu1  ;;  %18036 = vmatmul.mubr.msk.f32.gmra.mrb[60].mxu1 %vm512_vm0, %v22542_v6  ;;  %v22611_v51 = vpop.f32.mrb[26].mxu0 }
 0x4d8   : > { %v6410_v17 = vadd.f32 %v6402_v8, %v6287_v58  ;;  %v6281_v52 = vmul.f32 %v6250_v19, %v24789_v13  ;;  %18038 = vmatprep.mubr.msk.f32.mxu1 %vm512_vm0, %v22468_v23  ;;  %24980 = vst [vmem:[#allocation60_spill] sm:$0xff] %v22611_v51  ;;  %v22613_v25 = vpop.f32.mrb[27].mxu0  ;;  %v24983_v8 = vld [vmem:[#allocation22_spill] sm:$0xff]  ;;  %v24987_v51 = vld [vmem:[#allocation116_spill] sm:$0xff] }
 0x4d9   : > { %v6290_v54 = vadd.f32 %v6282_v49, %v6167_v44  ;;  %24981 = vst [vmem:[#allocation38_spill] sm:$0xff] %v22613_v25  ;;  %v6407_v58 = vmul.f32 %v24983_v8, %v21324_v9  ;;  %v24984_v44 = vld [vmem:[#allocation135_spill] sm:$0xff] }
 0x4da   : > { %v6289_v36 = vadd.f32 %v6281_v52, %v6166_v7  ;;  %v17621_v45 = vpop.f32.mrb[212].mxu1  ;;  %v6406_v49 = vmul.f32 %v24984_v44, %v24892_v33  ;;  %v24990_v33 = vld [vmem:[#allocation117_spill] sm:$0xff] }
 0x4db   : > { %v6413_v30 = vadd.f32 %v6405_v24, %v6290_v54  ;;  %v6284_v21 = vmul.f32 %v17621_v45, %v24982_v62  ;;  %v6260_v15 = vpop.f32.mrb[213].mxu1  ;;  %18039 = vmatmul.mubr.msk.f32.gmra.mrb[62].mxu1 %vm512_vm0, %v22475_v37  ;;  %v22625_v24 = vpop.f32.mrb[28].mxu0 }
 0x4dc   : > { %v6412_v19 = vadd.f32 %v6404_v14, %v6289_v36  ;;  %v6283_v61 = vmul.f32 %v6260_v15, %v24793_v11  ;;  %18061 = vmatprep.mubr.msk.f32.mxu1 %vm512_vm0, %v22343_v53  ;;  %24985 = vst [vmem:[#allocation36_spill] sm:$0xff] %v22625_v24  ;;  %v22627_v45 = vpop.f32.mrb[29].mxu0  ;;  %v24988_v14 = vld [vmem:[#allocation35_spill] sm:$0xff]  ;;  %v24989_v36 = vld [vmem:[#allocation61_spill] sm:$0xff] }
 0x4dd   : > { %v6292_v7 = vadd.f32 %v6284_v21, %v6169_v27  ;;  %24986 = vst [vmem:[#allocation55_spill] sm:$0xff] %v22627_v45  ;;  %v6409_v15 = vmul.f32 %v24989_v36, %v24988_v14  ;;  %v24991_v21 = vld [vmem:[#allocation136_spill] sm:$0xff]  ;;  %v24996_v45 = vld [vmem:[#allocation50_spill] sm:$0xff] }
 0x4de   : > { %v6291_v52 = vadd.f32 %v6283_v61, %v6168_v35  ;;  %v17624_v54 = vpop.f32.mrb[214].mxu1  ;;  %v6408_v27 = vmul.f32 %v24991_v21, %v24896_v41  ;;  %v22641_v61 = vpop.f32.mrb[30].mxu0 }
 0x4df   : > { %v6415_v25 = vadd.f32 %v6407_v58, %v6292_v7  ;;  %v6286_v62 = vmul.f32 %v17624_v54, %v24987_v51  ;;  %v6270_v8 = vpop.f32.mrb[215].mxu1  ;;  %18062 = vmatmul.mubr.msk.f32.vlgmr.msra.gmra.mrb[64].mxu1 %vm512_vm0, %v22505_v2  ;;  %v24992_v58 = vld [vmem:[#allocation63_spill] sm:$0xff]  ;;  %24993 = vst [vmem:[#allocation26_spill] sm:$0xff] %v22641_v61 }
 0x4e0   : > { %v6414_v44 = vadd.f32 %v6406_v49, %v6291_v52  ;;  %v6285_v11 = vmul.f32 %v6270_v8, %v24990_v33  ;;  %18924 = vmatpush3.bf16.msra.mxu1 %v24970_v57  ;;  %18064 = vmatprep.mubr.msk.f32.mxu1 %vm512_vm0, %v22514_v63  ;;  %v22643_v49 = vpop.f32.mrb[31].mxu0  ;;  %v24995_v8 = vld [vmem:[#allocation52_spill] sm:$0xff] }
 0x4e1   : > { %v6294_v35 = vadd.f32 %v6286_v62, %v6171_v22  ;;  %18930 = vmatprep.subr.bf16.mxu1 %v24992_v58  ;;  %24994 = vst [vmem:[#allocation45_spill] sm:$0xff] %v22643_v49 }
 0x4e2   : > { %v6293_v7 = vadd.f32 %v6285_v11, %v6170_v34  ;;  %v17647_v54 = vpop.f32.mrb[216].mxu1 }
 0x4e3   : > { %v6417_v52 = vadd.f32 %v6409_v15, %v6294_v35  ;;  %v6526_v57 = vmul.f32 %v17647_v54, %v24995_v8  ;;  %v6486_v36 = vpop.f32.mrb[217].mxu1  ;;  %18065 = vmatmul.mubr.msk.f32.gmra.mrb[66].mxu1 %vm512_vm0, %v22526_v12 }
 0x4e4   : > { %v6416_v21 = vadd.f32 %v6408_v27, %v6293_v7  ;;  %v6525_v22 = vmul.f32 %v6486_v36, %v24996_v45  ;;  %18067 = vmatprep.mubr.msk.f32.mxu1 %vm512_vm0, %v22533_v10 }
 0x4e5   : > { %v6534_v62 = vadd.f32 %v6526_v57, %v6411_v47 }
 0x4e6   : > { %v6533_v11 = vadd.f32 %v6525_v22, %v6410_v17  ;;  %v17650_v34 = vpop.f32.mrb[218].mxu1  ;;  %v24997_v17 = vld [vmem:[#allocation19_spill] sm:$0xff] }
 0x4e7   : > { %15112 = vst [vmem:[%s21482_s26 + $0xc8] sm:$0xff] %v6534_v62  ;;  %v6528_v15 = vmul.f32 %v17650_v34, %v24902_v16  ;;  %v6496_v35 = vpop.f32.mrb[219].mxu1  ;;  %18068 = vmatmul.mubr.msk.f32.gmra.mrb[68].mxu1 %vm512_vm0, %v22542_v6 }
 0x4e8   : > { %15111 = vst [vmem:[%s21482_s26 + $0xc0] sm:$0xff] %v6533_v11  ;;  %v6527_v27 = vmul.f32 %v6496_v35, %v24903_v42  ;;  %18070 = vmatprep.mubr.msk.f32.mxu1 %vm512_vm0, %v22468_v23  ;;  %v22667_v11 = vpop.f32.mrb[32].mxu0 }
 0x4e9   : > { %v6536_v7 = vadd.f32 %v6528_v15, %v6413_v30  ;;  %24998 = vst [vmem:[#allocation94_spill] sm:$0xff] %v22667_v11  ;;  %v22669_v34 = vpop.f32.mrb[33].mxu0  ;;  %v25014_v11 = vld [vmem:[#allocation144_spill] sm:$0xff] }
 0x4ea   : > { %v6535_v54 = vadd.f32 %v6527_v27, %v6412_v19  ;;  %v17653_v47 = vpop.f32.mrb[220].mxu1  ;;  %24999 = vst [vmem:[#allocation43_spill] sm:$0xff] %v22669_v34  ;;  %v22675_v27 = vpop.f32.mrb[34].mxu0  ;;  %v25013_v34 = vld [vmem:[#allocation92_spill] sm:$0xff] }
 0x4eb   : > { %15114 = vst [vmem:[%s21482_s26 + $0xd8] sm:$0xff] %v6536_v7  ;;  %v6530_v57 = vmul.f32 %v17653_v47, %v24997_v17  ;;  %v6506_v36 = vpop.f32.mrb[221].mxu1  ;;  %18071 = vmatmul.mubr.msk.f32.gmra.mrb[70].mxu1 %vm512_vm0, %v22475_v37  ;;  %25000 = vst [vmem:[#allocation133_spill] sm:$0xff] %v22675_v27 }
 0x4ec   : > { %15113 = vst [vmem:[%s21482_s26 + $0xd0] sm:$0xff] %v6535_v54  ;;  %v6529_v22 = vmul.f32 %v6506_v36, %v24905_v32  ;;  %18093 = vmatprep.mubr.msk.f32.mxu1 %vm512_vm0, %v22343_v53  ;;  %v25002_v54 = vld [vmem:[#allocation87_spill] sm:$0xff] }
 0x4ed   : > { %v6538_v62 = vadd.f32 %v6530_v57, %v6415_v25  ;;  %v22682_v25 = vpop.f32.mrb[35].mxu0 }
 0x4ee   : > { %v6537_v30 = vadd.f32 %v6529_v22, %v6414_v44  ;;  %v17656_v19 = vpop.f32.mrb[222].mxu1  ;;  %25001 = vst [vmem:[#allocation134_spill] sm:$0xff] %v22682_v25  ;;  %v22685_v47 = vpop.f32.mrb[36].mxu0  ;;  %v25007_v25 = vld [vmem:[#allocation90_spill] sm:$0xff] }
 0x4ef   : > { %15116 = vst [vmem:[%s21482_s26 + $0xe8] sm:$0xff] %v6538_v62  ;;  %v6532_v15 = vmul.f32 %v17656_v19, %v24908_v20  ;;  %v6516_v35 = vpop.f32.mrb[223].mxu1  ;;  %18094 = vmatmul.mubr.msk.f32.vlgmr.msra.gmra.mrb[72].mxu1 %vm512_vm0, %v22505_v2  ;;  %25003 = vst [vmem:[#allocation22_spill] sm:$0xff] %v22685_v47  ;;  %v22687_v22 = vpop.f32.mrb[37].mxu0 }
 0x4f0   : > { %15115 = vst [vmem:[%s21482_s26 + $0xe0] sm:$0xff] %v6537_v30  ;;  %v6531_v7 = vmul.f32 %v6516_v35, %v24910_v5  ;;  %18932 = vmatpush3.bf16.msra.mxu1 %v24992_v58  ;;  %18096 = vmatprep.mubr.msk.f32.mxu1 %vm512_vm0, %v22514_v63  ;;  %25004 = vst [vmem:[#allocation135_spill] sm:$0xff] %v22687_v22  ;;  %v25005_v58 = vld [vmem:[#allocation39_spill] sm:$0xff]  ;;  %v25006_v30 = vld [vmem:[#allocation78_spill] sm:$0xff]  ;;  %v22697_v27 = vpop.f32.mrb[38].mxu0 }
 0x4f1   : > { %v6540_v44 = vadd.f32 %v6532_v15, %v6417_v52  ;;  %18938 = vmatprep.subr.bf16.mxu1 %v25002_v54  ;;  %v6658_v62 = vmul.f32 %v25005_v58, %v24915_v40  ;;  %v25008_v52 = vld [vmem:[#allocation143_spill] sm:$0xff]  ;;  %25009 = vst [vmem:[#allocation116_spill] sm:$0xff] %v22697_v27  ;;  %v6895_v58 = vmul.f32 %v25014_v11, %v25013_v34  ;;  %v22707_v49 = vpop.f32.mrb[39].mxu0  ;;  %v25019_v11 = vld [vmem:[#allocation93_spill] sm:$0xff] }
 0x4f2   : > { %v6539_v57 = vadd.f32 %v6531_v7, %v6416_v21  ;;  %v17679_v36 = vpop.f32.mrb[224].mxu1  ;;  %v6896_v15 = vmul.f32 %v25008_v52, %v25007_v25  ;;  %v25010_v21 = vld [vmem:[#allocation71_spill] sm:$0xff]  ;;  %v25011_v7 = vld [vmem:[#allocation137_spill] sm:$0xff]  ;;  %25015 = vst [vmem:[#allocation35_spill] sm:$0xff] %v22707_v49  ;;  %v22709_v61 = vpop.f32.mrb[40].mxu0 }
 0x4f3   : > { %15118 = vst [vmem:[%s21482_s26 + $0xf8] sm:$0xff] %v6540_v44  ;;  %18097 = vmatmul.mubr.msk.f32.gmra.mrb[74].mxu1 %vm512_vm0, %v22526_v12  ;;  %v6773_v19 = vmul.f32 %v17679_v36, %v25006_v30  ;;  %v6733_v35 = vpop.f32.mrb[225].mxu1  ;;  %v6657_v47 = vmul.f32 %v25011_v7, %v25010_v21  ;;  %v25012_v44 = vld [vmem:[#allocation81_spill] sm:$0xff]  ;;  %25016 = vst [vmem:[#allocation61_spill] sm:$0xff] %v22709_v61  ;;  %v22711_v27 = vpop.f32.mrb[41].mxu0 }
 0x4f4   : > { %15117 = vst [vmem:[%s21482_s26 + $0xf0] sm:$0xff] %v6539_v57  ;;  %18099 = vmatprep.mubr.msk.f32.mxu1 %vm512_vm0, %v22533_v10  ;;  %v6772_v22 = vmul.f32 %v6733_v35, %v25012_v44  ;;  %25017 = vst [vmem:[#allocation117_spill] sm:$0xff] %v22711_v27  ;;  %v25018_v57 = vld [vmem:[#allocation138_spill] sm:$0xff]  ;;  %v25020_v34 = vld [vmem:[#allocation57_spill] sm:$0xff]  ;;  %v22727_v30 = vpop.f32.mrb[42].mxu0 }
 0x4f5   : > { %v6781_v36 = vadd.f32 %v6773_v19, %v6658_v62  ;;  %v6660_v7 = vmul.f32 %v25018_v57, %v24927_v26  ;;  %v6898_v49 = vmul.f32 %v25020_v34, %v25019_v11  ;;  %v25021_v62 = vld [vmem:[#allocation73_spill] sm:$0xff]  ;;  %v25022_v19 = vld [vmem:[#allocation139_spill] sm:$0xff]  ;;  %25025 = vst [vmem:[#allocation136_spill] sm:$0xff] %v22727_v30  ;;  %v25027_v34 = vld [vmem:[#allocation74_spill] sm:$0xff] }
 0x4f6   : > { %v6780_v52 = vadd.f32 %v6772_v22, %v6657_v47  ;;  %v17682_v24 = vpop.f32.mrb[226].mxu1  ;;  %v6659_v61 = vmul.f32 %v25022_v19, %v25021_v62  ;;  %v25023_v57 = vld [vmem:[#allocation95_spill] sm:$0xff]  ;;  %v25024_v27 = vld [vmem:[#allocation145_spill] sm:$0xff] }
 0x4f7   : > { %18100 = vmatmul.mubr.msk.f32.gmra.mrb[76].mxu1 %vm512_vm0, %v22542_v6  ;;  %v6775_v35 = vmul.f32 %v17682_v24, %v24930_v56  ;;  %v6904_v44 = vadd.f32 %v6896_v15, %v6781_v36  ;;  %v6743_v21 = vpop.f32.mrb[227].mxu1  ;;  %v6897_v26 = vmul.f32 %v25024_v27, %v25023_v57  ;;  %v22729_v36 = vpop.f32.mrb[43].mxu0  ;;  %v25028_v11 = vld [vmem:[#allocation53_spill] sm:$0xff] }
 0x4f8   : > { %18102 = vmatprep.mubr.msk.f32.mxu1 %vm512_vm0, %v22468_v23  ;;  %v6774_v47 = vmul.f32 %v6743_v21, %v24825_v3  ;;  %v6903_v22 = vadd.f32 %v6895_v58, %v6780_v52  ;;  %25026 = vst [vmem:[#allocation63_spill] sm:$0xff] %v22729_v36  ;;  %v6662_v56 = vmul.f32 %v25028_v11, %v25027_v34  ;;  %v25029_v19 = vld [vmem:[#allocation85_spill] sm:$0xff]  ;;  %v25030_v52 = vld [vmem:[#allocation96_spill] sm:$0xff]  ;;  %v25035_v36 = vld [vmem:[#allocation146_spill] sm:$0xff]  ;;  %v22745_v40 = vpop.f32.mrb[44].mxu0 }
 0x4f9   : > { %v6783_v25 = vadd.f32 %v6775_v35, %v6660_v7  ;;  %v25031_v3 = vld [vmem:[#allocation56_spill] sm:$0xff]  ;;  %v25032_v7 = vld [vmem:[#allocation75_spill] sm:$0xff]  ;;  %v25034_v11 = vld [vmem:[#allocation97_spill] sm:$0xff]  ;;  %25036 = vst [vmem:[#allocation87_spill] sm:$0xff] %v22745_v40 }
 0x4fa   : > { %v6782_v24 = vadd.f32 %v6774_v47, %v6659_v61  ;;  %v17685_v15 = vpop.f32.mrb[228].mxu1  ;;  %v6900_v27 = vmul.f32 %v25031_v3, %v25030_v52  ;;  %v25033_v35 = vld [vmem:[#allocation140_spill] sm:$0xff]  ;;  %v6899_v34 = vmul.f32 %v25035_v36, %v25034_v11  ;;  %v22749_v52 = vpop.f32.mrb[45].mxu0  ;;  %v25046_v11 = vld [vmem:[#allocation29_spill] sm:$0xff] }
 0x4fb   : > { %18103 = vmatmul.mubr.msk.f32.gmra.mrb[78].mxu1 %vm512_vm0, %v22475_v37  ;;  %v6777_v62 = vmul.f32 %v17685_v15, %v25029_v19  ;;  %v6906_v21 = vadd.f32 %v6898_v49, %v6783_v25  ;;  %v6753_v58 = vpop.f32.mrb[229].mxu1  ;;  %v6661_v30 = vmul.f32 %v25033_v35, %v25032_v7  ;;  %v25037_v49 = vld [vmem:[#allocation141_spill] sm:$0xff]  ;;  %25038 = vst [vmem:[#allocation39_spill] sm:$0xff] %v22749_v52  ;;  %v25039_v35 = vld [vmem:[#allocation142_spill] sm:$0xff]  ;;  %v25044_v52 = vld [vmem:[#allocation100_spill] sm:$0xff] }
 0x4fc   : > { %18125 = vmatprep.mubr.msk.f32.mxu1 %vm512_vm0, %v22343_v53  ;;  %v6776_v61 = vmul.f32 %v6753_v58, %v24756_v38  ;;  %v6905_v47 = vadd.f32 %v6897_v26, %v6782_v24  ;;  %v6664_v25 = vmul.f32 %v25037_v49, %v24758_v59  ;;  %v6663_v7 = vmul.f32 %v25039_v35, %v24760_v55  ;;  %v25040_v26 = vld [vmem:[#allocation88_spill] sm:$0xff]  ;;  %v25043_v49 = vld [vmem:[#allocation89_spill] sm:$0xff]  ;;  %v25045_v35 = vld [vmem:[#allocation147_spill] sm:$0xff] }
 0x4fd   : > { %v6785_v57 = vadd.f32 %v6777_v62, %v6662_v56  ;;  %v25041_v56 = vld [vmem:[#allocation99_spill] sm:$0xff]  ;;  %v6901_v55 = vmul.f32 %v25045_v35, %v25044_v52  ;;  %v25053_v52 = vld [vmem:[#allocation109_spill] sm:$0xff] }
 0x4fe   : > { %v6784_v15 = vadd.f32 %v6776_v61, %v6661_v30  ;;  %v17688_v3 = vpop.f32.mrb[230].mxu1  ;;  %v25042_v62 = vld [vmem:[#allocation27_spill] sm:$0xff]  ;;  %v25054_v38 = vld [vmem:[#allocation149_spill] sm:$0xff] }
 0x4ff   : > { %18126 = vmatmul.mubr.msk.f32.vlgmr.msra.gmra.mrb[80].mxu1 %vm512_vm0, %v22505_v2  ;;  %v6779_v24 = vmul.f32 %v17688_v3, %v25040_v26  ;;  %v6908_v58 = vadd.f32 %v6900_v27, %v6785_v57  ;;  %v6763_v36 = vpop.f32.mrb[231].mxu1  ;;  %v6902_v40 = vmul.f32 %v25042_v62, %v25041_v56  ;;  %v22765_v3 = vpop.f32.mrb[46].mxu0 }
 0x500   : > { %18940 = vmatpush3.bf16.msra.mxu1 %v25002_v54  ;;  %v6778_v30 = vmul.f32 %v6763_v36, %v25043_v49  ;;  %v6907_v61 = vadd.f32 %v6899_v34, %v6784_v15  ;;  %18128 = vmatprep.mubr.msk.f32.mxu1 %vm512_vm0, %v22514_v63  ;;  %25047 = vst [vmem:[#allocation143_spill] sm:$0xff] %v22765_v3  ;;  %v22767_v26 = vpop.f32.mrb[47].mxu0  ;;  %v25049_v54 = vld [vmem:[#allocation101_spill] sm:$0xff]  ;;  %v25050_v34 = vld [vmem:[#allocation76_spill] sm:$0xff] }
 0x501   : > { %v6787_v59 = vadd.f32 %v6779_v24, %v6664_v25  ;;  %18946 = vmatprep.subr.bf16.mxu1 %v25046_v11  ;;  %25048 = vst [vmem:[#allocation137_spill] sm:$0xff] %v22767_v26  ;;  %v25051_v15 = vld [vmem:[#allocation148_spill] sm:$0xff]  ;;  %v25052_v25 = vld [vmem:[#allocation102_spill] sm:$0xff]  ;;  %v7141_v3 = vmul.f32 %v25054_v38, %v25053_v52 }
 0x502   : > { %v6786_v57 = vadd.f32 %v6778_v30, %v6663_v7  ;;  %v17711_v27 = vpop.f32.mrb[232].mxu1  ;;  %v7142_v49 = vmul.f32 %v25051_v15, %v25050_v34 }
 0x503   : > { %v6910_v62 = vadd.f32 %v6902_v40, %v6787_v59  ;;  %v7019_v56 = vmul.f32 %v17711_v27, %v25049_v54  ;;  %v6979_v36 = vpop.f32.mrb[233].mxu1  ;;  %18129 = vmatmul.mubr.msk.f32.gmra.mrb[82].mxu1 %vm512_vm0, %v22526_v12  ;;  %v22779_v59 = vpop.f32.mrb[48].mxu0  ;;  %v25057_v54 = vld [vmem:[#allocation103_spill] sm:$0xff] }
 0x504   : > { %v6909_v35 = vadd.f32 %v6901_v55, %v6786_v57  ;;  %v7018_v24 = vmul.f32 %v6979_v36, %v25052_v25  ;;  %18131 = vmatprep.mubr.msk.f32.mxu1 %vm512_vm0, %v22533_v10  ;;  %25055 = vst [vmem:[#allocation144_spill] sm:$0xff] %v22779_v59  ;;  %v22781_v27 = vpop.f32.mrb[49].mxu0  ;;  %v25058_v55 = vld [vmem:[#allocation150_spill] sm:$0xff] }
 0x505   : > { %v7027_v7 = vadd.f32 %v7019_v56, %v6904_v44  ;;  %25056 = vst [vmem:[#allocation138_spill] sm:$0xff] %v22781_v27  ;;  %v7144_v38 = vmul.f32 %v25058_v55, %v24863_v28  ;;  %v25059_v44 = vld [vmem:[#allocation110_spill] sm:$0xff]  ;;  %v25060_v56 = vld [vmem:[#allocation151_spill] sm:$0xff] }
 0x506   : > { %v7026_v40 = vadd.f32 %v7018_v24, %v6903_v22  ;;  %v17714_v30 = vpop.f32.mrb[234].mxu1  ;;  %v7143_v59 = vmul.f32 %v25060_v56, %v25059_v44 }
 0x507   : > { %v7150_v26 = vadd.f32 %v7142_v49, %v7027_v7  ;;  %v7021_v19 = vmul.f32 %v17714_v30, %v25057_v54  ;;  %v6989_v15 = vpop.f32.mrb[235].mxu1  ;;  %18132 = vmatmul.mubr.msk.f32.gmra.mrb[84].mxu1 %vm512_vm0, %v22542_v6  ;;  %v22793_v49 = vpop.f32.mrb[50].mxu0 }
 0x508   : > { %v7149_v57 = vadd.f32 %v7141_v3, %v7026_v40  ;;  %v7020_v36 = vmul.f32 %v6989_v15, %v24955_v39  ;;  %18134 = vmatprep.mubr.msk.f32.mxu1 %vm512_vm0, %v22468_v23  ;;  %25061 = vst [vmem:[#allocation57_spill] sm:$0xff] %v22793_v49  ;;  %v22795_v30 = vpop.f32.mrb[51].mxu0  ;;  %v25063_v3 = vld [vmem:[#allocation98_spill] sm:$0xff] }
 0x509   : > { %v7029_v22 = vadd.f32 %v7021_v19, %v6906_v21  ;;  %25062 = vst [vmem:[#allocation139_spill] sm:$0xff] %v22795_v30  ;;  %v7146_v40 = vmul.f32 %v25063_v3, %v24775_v1  ;;  %v25064_v19 = vld [vmem:[#allocation112_spill] sm:$0xff] }
 0x50a   : > { %v7028_v24 = vadd.f32 %v7020_v36, %v6905_v47  ;;  %v17717_v7 = vpop.f32.mrb[236].mxu1  ;;  %v25065_v21 = vld [vmem:[#allocation152_spill] sm:$0xff] }
 0x50b   : > { %v7152_v27 = vadd.f32 %v7144_v38, %v7029_v22  ;;  %v7023_v54 = vmul.f32 %v17717_v7, %v24959_v43  ;;  %v6999_v55 = vpop.f32.mrb[237].mxu1  ;;  %18135 = vmatmul.mubr.msk.f32.gmra.mrb[86].mxu1 %vm512_vm0, %v22475_v37  ;;  %v7145_v49 = vmul.f32 %v25065_v21, %v25064_v19  ;;  %v22807_v38 = vpop.f32.mrb[52].mxu0 }
 0x50c   : > { %v7151_v15 = vadd.f32 %v7143_v59, %v7028_v24  ;;  %v7022_v56 = vmul.f32 %v6999_v55, %v24961_v60  ;;  %18157 = vmatprep.mubr.msk.f32.mxu1 %vm512_vm0, %v22343_v53  ;;  %25066 = vst [vmem:[#allocation145_spill] sm:$0xff] %v22807_v38  ;;  %v22809_v7 = vpop.f32.mrb[53].mxu0  ;;  %v25068_v59 = vld [vmem:[#allocation44_spill] sm:$0xff] }
 0x50d   : > { %v7031_v47 = vadd.f32 %v7023_v54, %v6908_v58  ;;  %25067 = vst [vmem:[#allocation53_spill] sm:$0xff] %v22809_v7  ;;  %v7148_v24 = vmul.f32 %v25068_v59, %v24780_v46  ;;  %v25069_v58 = vld [vmem:[#allocation114_spill] sm:$0xff] }
 0x50e   : > { %v7030_v36 = vadd.f32 %v7022_v56, %v6907_v61  ;;  %v17720_v22 = vpop.f32.mrb[238].mxu1  ;;  %v25070_v61 = vld [vmem:[#allocation153_spill] sm:$0xff]  ;;  %v25071_v56 = vld [vmem:[#allocation46_spill] sm:$0xff] }
 0x50f   : > { %v7154_v30 = vadd.f32 %v7146_v40, %v7031_v47  ;;  %v7025_v43 = vmul.f32 %v17720_v22, %v24965_v0  ;;  %v7009_v3 = vpop.f32.mrb[239].mxu1  ;;  %18158 = vmatmul.mubr.msk.f32.vlgmr.msra.gmra.mrb[88].mxu1 %vm512_vm0, %v22505_v2  ;;  %v7147_v54 = vmul.f32 %v25070_v61, %v25069_v58  ;;  %v22823_v47 = vpop.f32.mrb[54].mxu0 }
 0x510   : > { %v7153_v55 = vadd.f32 %v7145_v49, %v7030_v36  ;;  %v7024_v21 = vmul.f32 %v7009_v3, %v24967_v50  ;;  %18948 = vmatpush3.bf16.msra.mxu1 %v25046_v11  ;;  %18160 = vmatprep.mubr.msk.f32.mxu1 %vm512_vm0, %v22514_v63  ;;  %25072 = vst [vmem:[#allocation56_spill] sm:$0xff] %v22823_v47  ;;  %v22825_v38 = vpop.f32.mrb[55].mxu0  ;;  %v25074_v36 = vld [vmem:[#allocation17_spill] sm:$0xff]  ;;  %v25075_v11 = vld [vmem:[#allocation154_spill] sm:$0xff] }
 0x511   : > { %v7033_v40 = vadd.f32 %v7025_v43, %v6910_v62  ;;  %18954 = vmatprep.subr.bf16.mxu1 %v25071_v56  ;;  %25073 = vst [vmem:[#allocation140_spill] sm:$0xff] %v22825_v38  ;;  %v7388_v61 = vmul.f32 %v25075_v11, %v24887_v31  ;;  %v25076_v62 = vld [vmem:[#allocation155_spill] sm:$0xff] }
 0x512   : > { %v7032_v22 = vadd.f32 %v7024_v21, %v6909_v35  ;;  %v17743_v7 = vpop.f32.mrb[240].mxu1  ;;  %v7387_v47 = vmul.f32 %v25076_v62, %v21289_v48 }
 0x513   : > { %v7156_v49 = vadd.f32 %v7148_v24, %v7033_v40  ;;  %v7265_v3 = vmul.f32 %v17743_v7, %v25074_v36  ;;  %v7225_v59 = vpop.f32.mrb[241].mxu1  ;;  %18161 = vmatmul.mubr.msk.f32.gmra.mrb[90].mxu1 %vm512_vm0, %v22526_v12  ;;  %v22837_v24 = vpop.f32.mrb[56].mxu0  ;;  %v25079_v36 = vld [vmem:[#allocation34_spill] sm:$0xff] }
 0x514   : > { %v7155_v58 = vadd.f32 %v7147_v54, %v7032_v22  ;;  %v7264_v43 = vmul.f32 %v7225_v59, %v24874_v4  ;;  %18163 = vmatprep.mubr.msk.f32.mxu1 %vm512_vm0, %v22533_v10  ;;  %25077 = vst [vmem:[#allocation146_spill] sm:$0xff] %v22837_v24  ;;  %v22839_v40 = vpop.f32.mrb[57].mxu0  ;;  %v25080_v54 = vld [vmem:[#allocation156_spill] sm:$0xff] }
 0x515   : > { %v7273_v35 = vadd.f32 %v7265_v3, %v7150_v26  ;;  %25078 = vst [vmem:[#allocation141_spill] sm:$0xff] %v22839_v40  ;;  %v7390_v22 = vmul.f32 %v25080_v54, %v21304_v29  ;;  %v25081_v26 = vld [vmem:[#allocation157_spill] sm:$0xff]  ;;  %v25084_v24 = vld [vmem:[#allocation16_spill] sm:$0xff] }
 0x516   : > { %v7272_v7 = vadd.f32 %v7264_v43, %v7149_v57  ;;  %v17746_v21 = vpop.f32.mrb[242].mxu1  ;;  %v7389_v3 = vmul.f32 %v25081_v26, %v21311_v18  ;;  %v25086_v26 = vld [vmem:[#allocation115_spill] sm:$0xff] }
 0x517   : > { %v7396_v38 = vadd.f32 %v7388_v61, %v7273_v35  ;;  %v7267_v50 = vmul.f32 %v17746_v21, %v25079_v36  ;;  %v7235_v11 = vpop.f32.mrb[243].mxu1  ;;  %18164 = vmatmul.mubr.msk.f32.gmra.mrb[92].mxu1 %vm512_vm0, %v22542_v6  ;;  %v22851_v61 = vpop.f32.mrb[58].mxu0 }
 0x518   : > { %v7395_v59 = vadd.f32 %v7387_v47, %v7272_v7  ;;  %v7266_v62 = vmul.f32 %v7235_v11, %v24789_v13  ;;  %18166 = vmatprep.mubr.msk.f32.mxu1 %vm512_vm0, %v22468_v23  ;;  %25082 = vst [vmem:[#allocation142_spill] sm:$0xff] %v22851_v61  ;;  %v22853_v21 = vpop.f32.mrb[59].mxu0  ;;  %v25085_v47 = vld [vmem:[#allocation158_spill] sm:$0xff] }
 0x519   : > { %v7275_v57 = vadd.f32 %v7267_v50, %v7152_v27  ;;  %25083 = vst [vmem:[#allocation27_spill] sm:$0xff] %v22853_v21  ;;  %v7392_v7 = vmul.f32 %v25085_v47, %v21324_v9  ;;  %v25087_v50 = vld [vmem:[#allocation33_spill] sm:$0xff]  ;;  %v25088_v27 = vld [vmem:[#allocation159_spill] sm:$0xff] }
 0x51a   : > { %v7274_v43 = vadd.f32 %v7266_v62, %v7151_v15  ;;  %v17749_v35 = vpop.f32.mrb[244].mxu1  ;;  %v7391_v61 = vmul.f32 %v25088_v27, %v25087_v50 }
 0x51b   : > { %v7398_v40 = vadd.f32 %v7390_v22, %v7275_v57  ;;  %v7269_v36 = vmul.f32 %v17749_v35, %v25084_v24  ;;  %v7245_v54 = vpop.f32.mrb[245].mxu1  ;;  %18167 = vmatmul.mubr.msk.f32.gmra.mrb[94].mxu1 %vm512_vm0, %v22475_v37  ;;  %v22865_v22 = vpop.f32.mrb[60].mxu0 }
 0x51c   : > { %v7397_v11 = vadd.f32 %v7389_v3, %v7274_v43  ;;  %v7268_v18 = vmul.f32 %v7245_v54, %v25086_v26  ;;  %18189 = vmatprep.mubr.msk.f32.mxu1 %vm512_vm0, %v22343_v53  ;;  %25089 = vst [vmem:[#allocation147_spill] sm:$0xff] %v22865_v22  ;;  %v22867_v35 = vpop.f32.mrb[61].mxu0  ;;  %v25091_v3 = vld [vmem:[#allocation40_spill] sm:$0xff]  ;;  %v25119_v22 = vld [vmem:[#allocation82_spill] sm:$0xff] }
 0x51d   : > { %v7277_v15 = vadd.f32 %v7269_v36, %v7154_v30  ;;  %25090 = vst [vmem:[#allocation29_spill] sm:$0xff] %v22867_v35  ;;  %v7394_v43 = vmul.f32 %v25091_v3, %v24988_v14  ;;  %v25093_v36 = vld [vmem:[#allocation64_spill] sm:$0xff]  ;;  %v25118_v35 = vld [vmem:[#allocation162_spill] sm:$0xff] }
 0x51e   : > { %v7276_v62 = vadd.f32 %v7268_v18, %v7153_v55  ;;  %v17752_v57 = vpop.f32.mrb[246].mxu1  ;;  %v25092_v18 = vld [vmem:[#allocation62_spill] sm:$0xff] }
 0x51f   : > { %v7400_v21 = vadd.f32 %v7392_v7, %v7277_v15  ;;  %v7271_v24 = vmul.f32 %v17752_v57, %v24987_v51  ;;  %v7255_v47 = vpop.f32.mrb[247].mxu1  ;;  %18190 = vmatmul.mubr.msk.f32.vlgmr.msra.gmra.mrb[96].mxu1 %vm512_vm0, %v22505_v2  ;;  %v7393_v30 = vmul.f32 %v25092_v18, %v24896_v41  ;;  %v22881_v7 = vpop.f32.mrb[62].mxu0 }
 0x520   : > { %v7399_v54 = vadd.f32 %v7391_v61, %v7276_v62  ;;  %v7270_v53 = vmul.f32 %v7255_v47, %v24990_v33  ;;  %18956 = vmatpush3.bf16.msra.mxu1 %v25071_v56  ;;  %18192 = vmatprep.mubr.msk.f32.mxu1 %vm512_vm0, %v22514_v63  ;;  %25094 = vst [vmem:[#allocation76_spill] sm:$0xff] %v22881_v7  ;;  %v22883_v61 = vpop.f32.mrb[63].mxu0 }
 0x521   : > { %v7279_v55 = vadd.f32 %v7271_v24, %v7156_v49  ;;  %18962 = vmatprep.subr.bf16.mxu1 %v25093_v36  ;;  %25095 = vst [vmem:[#allocation148_spill] sm:$0xff] %v22883_v61 }
 0x522   : > { %v7278_v27 = vadd.f32 %v7270_v53, %v7155_v58  ;;  %v17775_v15 = vpop.f32.mrb[248].mxu1 }
 0x523   : > { %v7402_v62 = vadd.f32 %v7394_v43, %v7279_v55  ;;  %v7511_v56 = vmul.f32 %v17775_v15, %v24995_v8  ;;  %v7471_v57 = vpop.f32.mrb[249].mxu1  ;;  %18193 = vmatmul.mubr.msk.f32.gmra.mrb[98].mxu1 %vm512_vm0, %v22526_v12 }
 0x524   : > { %v7401_v47 = vadd.f32 %v7393_v30, %v7278_v27  ;;  %v7510_v49 = vmul.f32 %v7471_v57, %v24996_v45  ;;  %18195 = vmatprep.mubr.msk.f32.mxu1 %vm512_vm0, %v22533_v10  ;;  %v22909_v57 = vpop.f32.mrb[64].mxu0 }
 0x525   : > { %v7519_v24 = vadd.f32 %v7511_v56, %v7396_v38  ;;  %v22905_v56 = vld [vmem:[#allocation6] sm:$0xff]  ;;  %25096 = vst [vmem:[#allocation149_spill] sm:$0xff] %v22909_v57 }
 0x526   : > { %v7518_v58 = vadd.f32 %v7510_v49, %v7395_v59  ;;  %v17778_v3 = vpop.f32.mrb[250].mxu1 }
 0x527   : > { %15184 = vst [vmem:[%s21482_s26 + $0x108] sm:$0xff] %v7519_v24  ;;  %v7513_v43 = vmul.f32 %v17778_v3, %v24902_v16  ;;  %v7481_v53 = vpop.f32.mrb[251].mxu1  ;;  %18196 = vmatmul.mubr.msk.f32.gmra.mrb[100].mxu1 %vm512_vm0, %v22542_v6  ;;  %v22911_v24 = vpop.f32.mrb[65].mxu0 }
 0x528   : > { %15183 = vst [vmem:[%s21482_s26 + $0x100] sm:$0xff] %v7518_v58  ;;  %v7512_v18 = vmul.f32 %v7481_v53, %v24903_v42  ;;  %18198 = vmatprep.mubr.msk.f32.mxu1 %vm512_vm0, %v22468_v23  ;;  %25097 = vst [vmem:[#allocation150_spill] sm:$0xff] %v22911_v24  ;;  %v25113_v24 = vld [vmem:[#allocation126_spill] sm:$0xff] }
 0x529   : > { %v7521_v30 = vadd.f32 %v7513_v43, %v7398_v40  ;;  %v22917_v43 = vpop.f32.mrb[66].mxu0 }
 0x52a   : > { %v7520_v55 = vadd.f32 %v7512_v18, %v7397_v11  ;;  %v17781_v38 = vpop.f32.mrb[252].mxu1  ;;  %25098 = vst [vmem:[#allocation151_spill] sm:$0xff] %v22917_v43  ;;  %v25100_v18 = vld [vmem:[#allocation41_spill] sm:$0xff]  ;;  %v25112_v43 = vld [vmem:[#allocation92_spill] sm:$0xff] }
 0x52b   : > { %15186 = vst [vmem:[%s21482_s26 + $0x118] sm:$0xff] %v7521_v30  ;;  %v7515_v59 = vmul.f32 %v17781_v38, %v24997_v17  ;;  %v7491_v27 = vpop.f32.mrb[253].mxu1  ;;  %18199 = vmatmul.mubr.msk.f32.gmra.mrb[102].mxu1 %vm512_vm0, %v22475_v37 }
 0x52c   : > { %15185 = vst [vmem:[%s21482_s26 + $0x110] sm:$0xff] %v7520_v55  ;;  %v7514_v15 = vmul.f32 %v7491_v27, %v24905_v32  ;;  %18221 = vmatprep.mubr.msk.f32.mxu1 %vm512_vm0, %v22905_v56  ;;  %v25104_v27 = vld [vmem:[#allocation160_spill] sm:$0xff] }
 0x52d   : > { %v7523_v40 = vadd.f32 %v7515_v59, %v7400_v21  ;;  %v22924_v21 = vpop.f32.mrb[67].mxu0 }
 0x52e   : > { %v7522_v11 = vadd.f32 %v7514_v15, %v7399_v54  ;;  %v17784_v49 = vpop.f32.mrb[254].mxu1  ;;  %25099 = vst [vmem:[#allocation98_spill] sm:$0xff] %v22924_v21  ;;  %v22927_v30 = vpop.f32.mrb[68].mxu0 }
 0x52f   : > { %15188 = vst [vmem:[%s21482_s26 + $0x128] sm:$0xff] %v7523_v40  ;;  %v7517_v58 = vmul.f32 %v17784_v49, %v24908_v20  ;;  %v7501_v3 = vpop.f32.mrb[255].mxu1  ;;  %18222 = vmatmul.mubr.msk.f32.vlgmr.msra.gmra.mrb[104].mxu1 %vm512_vm0, %v22505_v2  ;;  %25101 = vst [vmem:[#allocation152_spill] sm:$0xff] %v22927_v30  ;;  %v22929_v59 = vpop.f32.mrb[69].mxu0  ;;  %v25105_v40 = vld [vmem:[#allocation78_spill] sm:$0xff] }
 0x530   : > { %15187 = vst [vmem:[%s21482_s26 + $0x120] sm:$0xff] %v7522_v11  ;;  %v7516_v53 = vmul.f32 %v7501_v3, %v24910_v5  ;;  %18964 = vmatpush3.bf16.msra.mxu1 %v25093_v36  ;;  %18224 = vmatprep.mubr.msk.f32.mxu1 %vm512_vm0, %v22514_v63  ;;  %25102 = vst [vmem:[#allocation44_spill] sm:$0xff] %v22929_v59  ;;  %v25103_v36 = vld [vmem:[#allocation70_spill] sm:$0xff]  ;;  %v22939_v21 = vpop.f32.mrb[70].mxu0 }
 0x531   : > { %v7525_v54 = vadd.f32 %v7517_v58, %v7402_v62  ;;  %18970 = vmatprep.subr.bf16.mxu1 %v25100_v18  ;;  %v7643_v15 = vmul.f32 %v25104_v27, %v25103_v36  ;;  %v25106_v3 = vld [vmem:[#allocation90_spill] sm:$0xff]  ;;  %v25107_v62 = vld [vmem:[#allocation121_spill] sm:$0xff]  ;;  %25108 = vst [vmem:[#allocation153_spill] sm:$0xff] %v22939_v21  ;;  %v7880_v27 = vmul.f32 %v25113_v24, %v25112_v43  ;;  %v22949_v57 = vpop.f32.mrb[71].mxu0 }
 0x532   : > { %v7524_v55 = vadd.f32 %v7516_v53, %v7401_v47  ;;  %v17807_v38 = vpop.f32.mrb[0].mxu1  ;;  %v7881_v58 = vmul.f32 %v25107_v62, %v25106_v3  ;;  %v25109_v47 = vld [vmem:[#allocation71_spill] sm:$0xff]  ;;  %v25110_v53 = vld [vmem:[#allocation161_spill] sm:$0xff]  ;;  %25114 = vst [vmem:[#allocation46_spill] sm:$0xff] %v22949_v57  ;;  %v22951_v61 = vpop.f32.mrb[72].mxu0  ;;  %v25121_v43 = vld [vmem:[#allocation54_spill] sm:$0xff] }
 0x533   : > { %15190 = vst [vmem:[%s21482_s26 + $0x138] sm:$0xff] %v7525_v54  ;;  %18225 = vmatmul.mubr.msk.f32.gmra.mrb[106].mxu1 %vm512_vm0, %v22526_v12  ;;  %v7758_v11 = vmul.f32 %v17807_v38, %v25105_v40  ;;  %v7718_v49 = vpop.f32.mrb[1].mxu1  ;;  %v7642_v30 = vmul.f32 %v25110_v53, %v25109_v47  ;;  %v25111_v54 = vld [vmem:[#allocation81_spill] sm:$0xff]  ;;  %25115 = vst [vmem:[#allocation154_spill] sm:$0xff] %v22951_v61  ;;  %v22953_v21 = vpop.f32.mrb[73].mxu0 }
 0x534   : > { %15189 = vst [vmem:[%s21482_s26 + $0x130] sm:$0xff] %v7524_v55  ;;  %18227 = vmatprep.mubr.msk.f32.mxu1 %vm512_vm0, %v22533_v10  ;;  %v7757_v59 = vmul.f32 %v7718_v49, %v25111_v54  ;;  %25116 = vst [vmem:[#allocation155_spill] sm:$0xff] %v22953_v21  ;;  %v25117_v55 = vld [vmem:[#allocation72_spill] sm:$0xff]  ;;  %v25120_v24 = vld [vmem:[#allocation93_spill] sm:$0xff]  ;;  %v22969_v36 = vpop.f32.mrb[74].mxu0 }
 0x535   : > { %v7766_v38 = vadd.f32 %v7758_v11, %v7643_v15  ;;  %v7645_v53 = vmul.f32 %v25118_v35, %v25117_v55  ;;  %v7883_v57 = vmul.f32 %v25121_v43, %v25120_v24  ;;  %v25122_v15 = vld [vmem:[#allocation73_spill] sm:$0xff]  ;;  %v25123_v11 = vld [vmem:[#allocation163_spill] sm:$0xff]  ;;  %25127 = vst [vmem:[#allocation156_spill] sm:$0xff] %v22969_v36  ;;  %v25129_v43 = vld [vmem:[#allocation74_spill] sm:$0xff] }
 0x536   : > { %v7765_v62 = vadd.f32 %v7757_v59, %v7642_v30  ;;  %v17810_v7 = vpop.f32.mrb[2].mxu1  ;;  %v7644_v61 = vmul.f32 %v25123_v11, %v25122_v15  ;;  %v25124_v30 = vld [vmem:[#allocation83_spill] sm:$0xff]  ;;  %v25130_v24 = vld [vmem:[#allocation24_spill] sm:$0xff] }
 0x537   : > { %18228 = vmatmul.mubr.msk.f32.gmra.mrb[108].mxu1 %vm512_vm0, %v22542_v6  ;;  %v7760_v49 = vmul.f32 %v17810_v7, %v25119_v22  ;;  %v7889_v54 = vadd.f32 %v7881_v58, %v7766_v38  ;;  %v7728_v47 = vpop.f32.mrb[3].mxu1  ;;  %v25125_v35 = vld [vmem:[#allocation95_spill] sm:$0xff]  ;;  %v22971_v38 = vpop.f32.mrb[75].mxu0  ;;  %v7647_v22 = vmul.f32 %v25130_v24, %v25129_v43  ;;  %v25137_v24 = vld [vmem:[#allocation97_spill] sm:$0xff] }
 0x538   : > { %18230 = vmatprep.mubr.msk.f32.mxu1 %vm512_vm0, %v22468_v23  ;;  %v7759_v59 = vmul.f32 %v7728_v47, %v25124_v30  ;;  %v7888_v21 = vadd.f32 %v7880_v27, %v7765_v62  ;;  %v25126_v55 = vld [vmem:[#allocation91_spill] sm:$0xff]  ;;  %25128 = vst [vmem:[#allocation157_spill] sm:$0xff] %v22971_v38  ;;  %v25131_v23 = vld [vmem:[#allocation85_spill] sm:$0xff]  ;;  %v25132_v62 = vld [vmem:[#allocation96_spill] sm:$0xff]  ;;  %v22987_v15 = vpop.f32.mrb[76].mxu0 }
 0x539   : > { %v7882_v3 = vmul.f32 %v25126_v55, %v25125_v35  ;;  %v7768_v40 = vadd.f32 %v7760_v49, %v7645_v53  ;;  %v25133_v30 = vld [vmem:[#allocation122_spill] sm:$0xff]  ;;  %v25134_v53 = vld [vmem:[#allocation75_spill] sm:$0xff]  ;;  %v25135_v49 = vld [vmem:[#allocation164_spill] sm:$0xff]  ;;  %25139 = vst [vmem:[#allocation158_spill] sm:$0xff] %v22987_v15 }
 0x53a   : > { %v7767_v7 = vadd.f32 %v7759_v59, %v7644_v61  ;;  %v17813_v58 = vpop.f32.mrb[4].mxu1  ;;  %v7885_v55 = vmul.f32 %v25133_v30, %v25132_v62  ;;  %v7646_v36 = vmul.f32 %v25135_v49, %v25134_v53  ;;  %v25136_v61 = vld [vmem:[#allocation86_spill] sm:$0xff]  ;;  %v25138_v43 = vld [vmem:[#allocation127_spill] sm:$0xff]  ;;  %v22991_v62 = vpop.f32.mrb[77].mxu0  ;;  %v25144_v53 = vld [vmem:[#allocation125_spill] sm:$0xff] }
 0x53b   : > { %18231 = vmatmul.mubr.msk.f32.gmra.mrb[110].mxu1 %vm512_vm0, %v22475_v37  ;;  %v7762_v11 = vmul.f32 %v17813_v58, %v25131_v23  ;;  %v7891_v47 = vadd.f32 %v7883_v57, %v7768_v40  ;;  %v7738_v27 = vpop.f32.mrb[5].mxu1  ;;  %v7884_v35 = vmul.f32 %v25138_v43, %v25137_v24  ;;  %v25140_v57 = vld [vmem:[#allocation77_spill] sm:$0xff]  ;;  %v25141_v40 = vld [vmem:[#allocation120_spill] sm:$0xff]  ;;  %25142 = vst [vmem:[#allocation115_spill] sm:$0xff] %v22991_v62  ;;  %v25143_v49 = vld [vmem:[#allocation79_spill] sm:$0xff] }
 0x53c   : > { %18253 = vmatprep.mubr.msk.f32.mxu1 %vm512_vm0, %v22905_v56  ;;  %v7761_v59 = vmul.f32 %v7738_v27, %v25136_v61  ;;  %v7890_v38 = vadd.f32 %v7882_v3, %v7767_v7  ;;  %v7649_v58 = vmul.f32 %v25141_v40, %v25140_v57  ;;  %v7648_v5 = vmul.f32 %v25144_v53, %v25143_v49  ;;  %v25145_v3 = vld [vmem:[#allocation88_spill] sm:$0xff]  ;;  %v25148_v40 = vld [vmem:[#allocation89_spill] sm:$0xff]  ;;  %v25150_v53 = vld [vmem:[#allocation42_spill] sm:$0xff] }
 0x53d   : > { %v7770_v37 = vadd.f32 %v7762_v11, %v7647_v22  ;;  %v25146_v22 = vld [vmem:[#allocation99_spill] sm:$0xff]  ;;  %v25147_v11 = vld [vmem:[#allocation25_spill] sm:$0xff]  ;;  %v25149_v62 = vld [vmem:[#allocation100_spill] sm:$0xff] }
 0x53e   : > { %v7769_v23 = vadd.f32 %v7761_v59, %v7646_v36  ;;  %v17816_v30 = vpop.f32.mrb[6].mxu1  ;;  %v7887_v15 = vmul.f32 %v25147_v11, %v25146_v22  ;;  %v7886_v49 = vmul.f32 %v25150_v53, %v25149_v62 }
 0x53f   : > { %18254 = vmatmul.mubr.msk.f32.vlgmr.msra.gmra.mrb[112].mxu1 %vm512_vm0, %v22505_v2  ;;  %v7764_v7 = vmul.f32 %v17816_v30, %v25145_v3  ;;  %v7893_v27 = vadd.f32 %v7885_v55, %v7770_v37  ;;  %v7748_v43 = vpop.f32.mrb[7].mxu1  ;;  %v25151_v2 = vld [vmem:[#allocation30_spill] sm:$0xff]  ;;  %v23007_v30 = vpop.f32.mrb[78].mxu0 }
 0x540   : > { %18972 = vmatpush3.bf16.msra.mxu1 %v25100_v18  ;;  %v7763_v36 = vmul.f32 %v7748_v43, %v25148_v40  ;;  %v7892_v59 = vadd.f32 %v7884_v35, %v7769_v23  ;;  %18256 = vmatprep.mubr.msk.f32.mxu1 %vm512_vm0, %v22514_v63  ;;  %25152 = vst [vmem:[#allocation33_spill] sm:$0xff] %v23007_v30  ;;  %v23009_v3 = vpop.f32.mrb[79].mxu0  ;;  %v25154_v18 = vld [vmem:[#allocation101_spill] sm:$0xff]  ;;  %v25155_v63 = vld [vmem:[#allocation123_spill] sm:$0xff] }
 0x541   : > { %v7772_v57 = vadd.f32 %v7764_v7, %v7649_v58  ;;  %18978 = vmatprep.subr.bf16.mxu1 %v25151_v2  ;;  %25153 = vst [vmem:[#allocation159_spill] sm:$0xff] %v23009_v3  ;;  %v8127_v35 = vmul.f32 %v25155_v63, %v25050_v34  ;;  %v25156_v7 = vld [vmem:[#allocation128_spill] sm:$0xff]  ;;  %v25159_v3 = vld [vmem:[#allocation103_spill] sm:$0xff] }
 0x542   : > { %v7771_v55 = vadd.f32 %v7763_v36, %v7648_v5  ;;  %v17839_v37 = vpop.f32.mrb[8].mxu1  ;;  %v8126_v53 = vmul.f32 %v25156_v7, %v25053_v52 }
 0x543   : > { %v7895_v11 = vadd.f32 %v7887_v15, %v7772_v57  ;;  %v8004_v22 = vmul.f32 %v17839_v37, %v25154_v18  ;;  %v7964_v43 = vpop.f32.mrb[9].mxu1  ;;  %18257 = vmatmul.mubr.msk.f32.gmra.mrb[114].mxu1 %vm512_vm0, %v22526_v12  ;;  %v23021_v15 = vpop.f32.mrb[80].mxu0 }
 0x544   : > { %v7894_v23 = vadd.f32 %v7886_v49, %v7771_v55  ;;  %v8003_v58 = vmul.f32 %v7964_v43, %v25052_v25  ;;  %18259 = vmatprep.mubr.msk.f32.mxu1 %vm512_vm0, %v22533_v10  ;;  %25157 = vst [vmem:[#allocation40_spill] sm:$0xff] %v23021_v15  ;;  %v23023_v37 = vpop.f32.mrb[81].mxu0  ;;  %v25160_v49 = vld [vmem:[#allocation124_spill] sm:$0xff] }
 0x545   : > { %v8012_v5 = vadd.f32 %v8004_v22, %v7889_v54  ;;  %25158 = vst [vmem:[#allocation62_spill] sm:$0xff] %v23023_v37  ;;  %v8129_v55 = vmul.f32 %v25160_v49, %v24863_v28  ;;  %v25161_v54 = vld [vmem:[#allocation51_spill] sm:$0xff]  ;;  %v25164_v49 = vld [vmem:[#allocation105_spill] sm:$0xff] }
 0x546   : > { %v8011_v57 = vadd.f32 %v8003_v58, %v7888_v21  ;;  %v17842_v36 = vpop.f32.mrb[10].mxu1  ;;  %v8128_v22 = vmul.f32 %v25161_v54, %v25059_v44  ;;  %v23033_v21 = vld [vmem:[#allocation6 + $0x30] sm:$0xff]  ;;  %v23037_v58 = vpop.f32.mrb[82].mxu0  ;;  %v25165_v54 = vld [vmem:[#allocation129_spill] sm:$0xff] }
 0x547   : > { %v8135_v12 = vadd.f32 %v8127_v35, %v8012_v5  ;;  %v8006_v30 = vmul.f32 %v17842_v36, %v25159_v3  ;;  %v7974_v63 = vpop.f32.mrb[11].mxu1  ;;  %18260 = vmatmul.mubr.msk.f32.gmra.mrb[116].mxu1 %vm512_vm0, %v22542_v6  ;;  %25162 = vst [vmem:[#allocation64_spill] sm:$0xff] %v23037_v58  ;;  %v23039_v6 = vpop.f32.mrb[83].mxu0  ;;  %v8131_v37 = vmul.f32 %v25165_v54, %v24775_v1 }
 0x548   : > { %v8134_v43 = vadd.f32 %v8126_v53, %v8011_v57  ;;  %v8005_v10 = vmul.f32 %v7974_v63, %v24955_v39  ;;  %18262 = vmatprep.mubr.msk.f32.mxu1 %vm512_vm0, %v23033_v21  ;;  %25163 = vst [vmem:[#allocation41_spill] sm:$0xff] %v23039_v6  ;;  %v23042_v63 = vld [vmem:[#allocation6 + $0x38] sm:$0xff] }
 0x549   : > { %v8014_v35 = vadd.f32 %v8006_v30, %v7891_v47 }
 0x54a   : > { %v8013_v7 = vadd.f32 %v8005_v10, %v7890_v38  ;;  %v17845_v5 = vpop.f32.mrb[12].mxu1  ;;  %v25166_v38 = vld [vmem:[#allocation130_spill] sm:$0xff]  ;;  %v23053_v10 = vpop.f32.mrb[84].mxu0 }
 0x54b   : > { %v8137_v36 = vadd.f32 %v8129_v55, %v8014_v35  ;;  %v8008_v53 = vmul.f32 %v17845_v5, %v25164_v49  ;;  %v7984_v57 = vpop.f32.mrb[13].mxu1  ;;  %18263 = vmatmul.mubr.msk.f32.gmra.mrb[118].mxu1 %vm512_vm0, %v23042_v63  ;;  %v8130_v30 = vmul.f32 %v25166_v38, %v25064_v19  ;;  %25167 = vst [vmem:[#allocation160_spill] sm:$0xff] %v23053_v10  ;;  %v23055_v6 = vpop.f32.mrb[85].mxu0 }
 0x54c   : > { %v8136_v15 = vadd.f32 %v8128_v22, %v8013_v7  ;;  %v8007_v47 = vmul.f32 %v7984_v57, %v24961_v60  ;;  %18285 = vmatprep.mubr.msk.f32.mxu1 %vm512_vm0, %v22905_v56  ;;  %25168 = vst [vmem:[#allocation121_spill] sm:$0xff] %v23055_v6  ;;  %v23058_v22 = vld [vmem:[#allocation6 + $0x8] sm:$0xff]  ;;  %v25169_v7 = vld [vmem:[#allocation28_spill] sm:$0xff]  ;;  %v23073_v10 = vpop.f32.mrb[86].mxu0 }
 0x54d   : > { %v8016_v55 = vadd.f32 %v8008_v53, %v7893_v27  ;;  %v8133_v57 = vmul.f32 %v25169_v7, %v24780_v46  ;;  %v25170_v27 = vld [vmem:[#allocation108_spill] sm:$0xff]  ;;  %25174 = vst [vmem:[#allocation161_spill] sm:$0xff] %v23073_v10  ;;  %v23078_v46 = vld [vmem:[#allocation6 + $0x18] sm:$0xff]  ;;  %v23087_v10 = vld [vmem:[#allocation6 + $0x20] sm:$0xff] }
 0x54e   : > { %v8015_v35 = vadd.f32 %v8007_v47, %v7892_v59  ;;  %v17848_v5 = vpop.f32.mrb[14].mxu1  ;;  %v25171_v59 = vld [vmem:[#allocation114_spill] sm:$0xff]  ;;  %v25172_v47 = vld [vmem:[#allocation131_spill] sm:$0xff] }
 0x54f   : > { %v8139_v58 = vadd.f32 %v8131_v37, %v8016_v55  ;;  %v8010_v49 = vmul.f32 %v17848_v5, %v24965_v0  ;;  %v7994_v54 = vpop.f32.mrb[15].mxu1  ;;  %18286 = vmatmul.mubr.msk.f32.vlgmr.msra.gmra.mrb[120].mxu1 %vm512_vm0, %v23058_v22  ;;  %v8132_v6 = vmul.f32 %v25172_v47, %v25171_v59  ;;  %v23068_v37 = vld [vmem:[#allocation6 + $0x10] sm:$0xff]  ;;  %v25173_v5 = vld [vmem:[#allocation47_spill] sm:$0xff] }
 0x550   : > { %v8138_v38 = vadd.f32 %v8130_v30, %v8015_v35  ;;  %v8009_v53 = vmul.f32 %v7994_v54, %v25170_v27  ;;  %18980 = vmatpush3.bf16.msra.mxu1 %v25151_v2  ;;  %18288 = vmatprep.mubr.msk.f32.mxu1 %vm512_vm0, %v23068_v37  ;;  %v23075_v30 = vpop.f32.mrb[87].mxu0  ;;  %v25176_v54 = vld [vmem:[#allocation17_spill] sm:$0xff]  ;;  %v25177_v47 = vld [vmem:[#allocation132_spill] sm:$0xff] }
 0x551   : > { %v8018_v55 = vadd.f32 %v8010_v49, %v7895_v11  ;;  %18986 = vmatprep.subr.bf16.mxu1 %v25173_v5  ;;  %25175 = vst [vmem:[#allocation126_spill] sm:$0xff] %v23075_v30  ;;  %v8373_v11 = vmul.f32 %v25177_v47, %v24887_v31  ;;  %v25181_v47 = vld [vmem:[#allocation34_spill] sm:$0xff]  ;;  %v25187_v31 = vld [vmem:[#allocation16_spill] sm:$0xff] }
 0x552   : > { %v8017_v0 = vadd.f32 %v8009_v53, %v7894_v23  ;;  %v17871_v7 = vpop.f32.mrb[16].mxu1  ;;  %v25178_v23 = vld [vmem:[#allocation21_spill] sm:$0xff] }
 0x553   : > { %v8141_v35 = vadd.f32 %v8133_v57, %v8018_v55  ;;  %v8250_v2 = vmul.f32 %v17871_v7, %v25176_v54  ;;  %v8210_v27 = vpop.f32.mrb[17].mxu1  ;;  %18289 = vmatmul.mubr.msk.f32.gmra.mrb[122].mxu1 %vm512_vm0, %v23078_v46  ;;  %v8372_v53 = vmul.f32 %v25178_v23, %v21289_v48  ;;  %v23091_v55 = vpop.f32.mrb[88].mxu0  ;;  %v25182_v23 = vld [vmem:[#allocation60_spill] sm:$0xff] }
 0x554   : > { %v8140_v49 = vadd.f32 %v8132_v6, %v8017_v0  ;;  %v8249_v59 = vmul.f32 %v8210_v27, %v24874_v4  ;;  %18291 = vmatprep.mubr.msk.f32.mxu1 %vm512_vm0, %v23087_v10  ;;  %25179 = vst [vmem:[#allocation162_spill] sm:$0xff] %v23091_v55  ;;  %v23093_v54 = vpop.f32.mrb[89].mxu0  ;;  %v23096_v27 = vld [vmem:[#allocation6 + $0x28] sm:$0xff]  ;;  %v8375_v48 = vmul.f32 %v25182_v23, %v21304_v29 }
 0x555   : > { %v8258_v57 = vadd.f32 %v8250_v2, %v8135_v12  ;;  %25180 = vst [vmem:[#allocation54_spill] sm:$0xff] %v23093_v54  ;;  %v25183_v2 = vld [vmem:[#allocation18_spill] sm:$0xff] }
 0x556   : > { %v8257_v7 = vadd.f32 %v8249_v59, %v8134_v43  ;;  %v17874_v30 = vpop.f32.mrb[18].mxu1  ;;  %v25184_v43 = vld [vmem:[#allocation38_spill] sm:$0xff] }
 0x557   : > { %v8381_v19 = vadd.f32 %v8373_v11, %v8258_v57  ;;  %v8252_v0 = vmul.f32 %v17874_v30, %v25181_v47  ;;  %v8220_v6 = vpop.f32.mrb[19].mxu1  ;;  %18292 = vmatmul.mubr.msk.f32.gmra.mrb[124].mxu1 %vm512_vm0, %v23096_v27  ;;  %v8374_v59 = vmul.f32 %v25184_v43, %v25183_v2  ;;  %v23107_v30 = vpop.f32.mrb[90].mxu0 }
 0x558   : > { %v8380_v4 = vadd.f32 %v8372_v53, %v8257_v7  ;;  %v8251_v12 = vmul.f32 %v8220_v6, %v24789_v13  ;;  %18294 = vmatprep.mubr.msk.f32.mxu1 %vm512_vm0, %v23033_v21  ;;  %25185 = vst [vmem:[#allocation163_spill] sm:$0xff] %v23107_v30  ;;  %v23109_v55 = vpop.f32.mrb[91].mxu0  ;;  %v25188_v53 = vld [vmem:[#allocation36_spill] sm:$0xff] }
 0x559   : > { %v8260_v11 = vadd.f32 %v8252_v0, %v8137_v36  ;;  %25186 = vst [vmem:[#allocation91_spill] sm:$0xff] %v23109_v55  ;;  %v8377_v7 = vmul.f32 %v25188_v53, %v21324_v9  ;;  %v25189_v36 = vld [vmem:[#allocation55_spill] sm:$0xff] }
 0x55a   : > { %v8259_v57 = vadd.f32 %v8251_v12, %v8136_v15  ;;  %v17877_v54 = vpop.f32.mrb[20].mxu1  ;;  %v8376_v0 = vmul.f32 %v25189_v36, %v25087_v50 }
 0x55b   : > { %v8383_v47 = vadd.f32 %v8375_v48, %v8260_v11  ;;  %v8254_v60 = vmul.f32 %v17877_v54, %v25187_v31  ;;  %v8230_v23 = vpop.f32.mrb[21].mxu1  ;;  %18295 = vmatmul.mubr.msk.f32.gmra.mrb[126].mxu1 %vm512_vm0, %v23042_v63  ;;  %v23121_v48 = vpop.f32.mrb[92].mxu0 }
 0x55c   : > { %v8382_v6 = vadd.f32 %v8374_v59, %v8259_v57  ;;  %v8253_v43 = vmul.f32 %v8230_v23, %v25086_v26  ;;  %18317 = vmatprep.mubr.msk.f32.mxu1 %vm512_vm0, %v22905_v56  ;;  %25190 = vst [vmem:[#allocation24_spill] sm:$0xff] %v23121_v48  ;;  %v23123_v11 = vpop.f32.mrb[93].mxu0  ;;  %v25192_v59 = vld [vmem:[#allocation26_spill] sm:$0xff]  ;;  %v25220_v48 = vld [vmem:[#allocation133_spill] sm:$0xff] }
 0x55d   : > { %v8262_v15 = vadd.f32 %v8254_v60, %v8139_v58  ;;  %25191 = vst [vmem:[#allocation122_spill] sm:$0xff] %v23123_v11  ;;  %v8379_v57 = vmul.f32 %v25192_v59, %v24988_v14  ;;  %v25193_v60 = vld [vmem:[#allocation45_spill] sm:$0xff] }
 0x55e   : > { %v8261_v54 = vadd.f32 %v8253_v43, %v8138_v38  ;;  %v17880_v12 = vpop.f32.mrb[22].mxu1  ;;  %v8378_v58 = vmul.f32 %v25193_v60, %v24896_v41  ;;  %v23137_v43 = vpop.f32.mrb[94].mxu0 }
 0x55f   : > { %v8385_v55 = vadd.f32 %v8377_v7, %v8262_v15  ;;  %v8256_v30 = vmul.f32 %v17880_v12, %v24987_v51  ;;  %v8240_v53 = vpop.f32.mrb[23].mxu1  ;;  %18318 = vmatmul.mubr.msk.f32.vlgmr.msra.gmra.mrb[128].mxu1 %vm512_vm0, %v23058_v22  ;;  %v25194_v7 = vld [vmem:[#allocation65_spill] sm:$0xff]  ;;  %25195 = vst [vmem:[#allocation164_spill] sm:$0xff] %v23137_v43 }
 0x560   : > { %v8384_v23 = vadd.f32 %v8376_v0, %v8261_v54  ;;  %v8255_v36 = vmul.f32 %v8240_v53, %v24990_v33  ;;  %18988 = vmatpush3.bf16.msra.mxu1 %v25173_v5  ;;  %18320 = vmatprep.mubr.msk.f32.mxu1 %vm512_vm0, %v23068_v37  ;;  %v23139_v0 = vpop.f32.mrb[95].mxu0 }
 0x561   : > { %v8264_v38 = vadd.f32 %v8256_v30, %v8141_v35  ;;  %18994 = vmatprep.subr.bf16.mxu1 %v25194_v7  ;;  %25196 = vst [vmem:[#allocation127_spill] sm:$0xff] %v23139_v0 }
 0x562   : > { %v8263_v15 = vadd.f32 %v8255_v36, %v8140_v49  ;;  %v17903_v12 = vpop.f32.mrb[24].mxu1 }
 0x563   : > { %v8387_v54 = vadd.f32 %v8379_v57, %v8264_v38  ;;  %v8496_v5 = vmul.f32 %v17903_v12, %v24995_v8  ;;  %v8456_v53 = vpop.f32.mrb[25].mxu1  ;;  %18321 = vmatmul.mubr.msk.f32.gmra.mrb[130].mxu1 %vm512_vm0, %v23078_v46 }
 0x564   : > { %v8386_v59 = vadd.f32 %v8378_v58, %v8263_v15  ;;  %v8495_v35 = vmul.f32 %v8456_v53, %v24996_v45  ;;  %18323 = vmatprep.mubr.msk.f32.mxu1 %vm512_vm0, %v23087_v10 }
 0x565   : > { %v8504_v30 = vadd.f32 %v8496_v5, %v8381_v19 }
 0x566   : > { %v8503_v49 = vadd.f32 %v8495_v35, %v8380_v4  ;;  %v17906_v36 = vpop.f32.mrb[26].mxu1  ;;  %v23163_v35 = vpop.f32.mrb[96].mxu0 }
 0x567   : > { %15256 = vst [vmem:[%s21482_s26 + $0x148] sm:$0xff] %v8504_v30  ;;  %v8498_v57 = vmul.f32 %v17906_v36, %v24902_v16  ;;  %v8466_v60 = vpop.f32.mrb[27].mxu1  ;;  %18324 = vmatmul.mubr.msk.f32.gmra.mrb[132].mxu1 %vm512_vm0, %v23096_v27  ;;  %25197 = vst [vmem:[#allocation120_spill] sm:$0xff] %v23163_v35  ;;  %v23165_v30 = vpop.f32.mrb[97].mxu0  ;;  %v25215_v35 = vld [vmem:[#allocation117_spill] sm:$0xff] }
 0x568   : > { %15255 = vst [vmem:[%s21482_s26 + $0x140] sm:$0xff] %v8503_v49  ;;  %v8497_v58 = vmul.f32 %v8466_v60, %v24903_v42  ;;  %18326 = vmatprep.mubr.msk.f32.mxu1 %vm512_vm0, %v23033_v21  ;;  %25198 = vst [vmem:[#allocation125_spill] sm:$0xff] %v23165_v30  ;;  %v25200_v60 = vld [vmem:[#allocation119_spill] sm:$0xff]  ;;  %v25214_v30 = vld [vmem:[#allocation92_spill] sm:$0xff] }
 0x569   : > { %v8506_v38 = vadd.f32 %v8498_v57, %v8383_v47  ;;  %v23171_v57 = vpop.f32.mrb[98].mxu0 }
 0x56a   : > { %v8505_v15 = vadd.f32 %v8497_v58, %v8382_v6  ;;  %v17909_v19 = vpop.f32.mrb[28].mxu1  ;;  %25199 = vst [vmem:[#allocation25_spill] sm:$0xff] %v23171_v57 }
 0x56b   : > { %15258 = vst [vmem:[%s21482_s26 + $0x158] sm:$0xff] %v8506_v38  ;;  %v8500_v4 = vmul.f32 %v17909_v19, %v24997_v17  ;;  %v8476_v12 = vpop.f32.mrb[29].mxu1  ;;  %18327 = vmatmul.mubr.msk.f32.gmra.mrb[134].mxu1 %vm512_vm0, %v23042_v63  ;;  %v25202_v38 = vld [vmem:[#allocation20_spill] sm:$0xff] }
 0x56c   : > { %15257 = vst [vmem:[%s21482_s26 + $0x150] sm:$0xff] %v8505_v15  ;;  %v8499_v5 = vmul.f32 %v8476_v12, %v24905_v32  ;;  %18349 = vmatprep.mubr.msk.f32.mxu1 %vm512_vm0, %v22905_v56 }
 0x56d   : > { %v8508_v53 = vadd.f32 %v8500_v4, %v8385_v55  ;;  %v23178_v55 = vpop.f32.mrb[99].mxu0 }
 0x56e   : > { %v8507_v47 = vadd.f32 %v8499_v5, %v8384_v23  ;;  %v17912_v6 = vpop.f32.mrb[30].mxu1  ;;  %25201 = vst [vmem:[#allocation42_spill] sm:$0xff] %v23178_v55  ;;  %v23181_v15 = vpop.f32.mrb[100].mxu0  ;;  %v25206_v5 = vld [vmem:[#allocation94_spill] sm:$0xff] }
 0x56f   : > { %15260 = vst [vmem:[%s21482_s26 + $0x168] sm:$0xff] %v8508_v53  ;;  %v8502_v49 = vmul.f32 %v17912_v6, %v24908_v20  ;;  %v8486_v36 = vpop.f32.mrb[31].mxu1  ;;  %18350 = vmatmul.mubr.msk.f32.vlgmr.msra.gmra.mrb[136].mxu1 %vm512_vm0, %v23058_v22  ;;  %25203 = vst [vmem:[#allocation30_spill] sm:$0xff] %v23181_v15  ;;  %v23183_v12 = vpop.f32.mrb[101].mxu0  ;;  %v25208_v55 = vld [vmem:[#allocation90_spill] sm:$0xff] }
 0x570   : > { %15259 = vst [vmem:[%s21482_s26 + $0x160] sm:$0xff] %v8507_v47  ;;  %v8501_v58 = vmul.f32 %v8486_v36, %v25200_v60  ;;  %18996 = vmatpush3.bf16.msra.mxu1 %v25194_v7  ;;  %18352 = vmatprep.mubr.msk.f32.mxu1 %vm512_vm0, %v23068_v37  ;;  %25204 = vst [vmem:[#allocation123_spill] sm:$0xff] %v23183_v12  ;;  %v25205_v7 = vld [vmem:[#allocation70_spill] sm:$0xff]  ;;  %v23193_v57 = vpop.f32.mrb[102].mxu0 }
 0x571   : > { %v8510_v23 = vadd.f32 %v8502_v49, %v8387_v54  ;;  %19002 = vmatprep.subr.bf16.mxu1 %v25202_v38  ;;  %v8628_v53 = vmul.f32 %v25206_v5, %v25205_v7  ;;  %v25207_v47 = vld [vmem:[#allocation78_spill] sm:$0xff]  ;;  %v25209_v54 = vld [vmem:[#allocation61_spill] sm:$0xff]  ;;  %25210 = vst [vmem:[#allocation128_spill] sm:$0xff] %v23193_v57  ;;  %v8865_v5 = vmul.f32 %v25215_v35, %v25214_v30  ;;  %v23203_v0 = vpop.f32.mrb[103].mxu0  ;;  %v25223_v30 = vld [vmem:[#allocation136_spill] sm:$0xff] }
 0x572   : > { %v8509_v19 = vadd.f32 %v8501_v58, %v8386_v59  ;;  %v17935_v4 = vpop.f32.mrb[32].mxu1  ;;  %v8866_v49 = vmul.f32 %v25209_v54, %v25208_v55  ;;  %v25211_v59 = vld [vmem:[#allocation71_spill] sm:$0xff]  ;;  %25216 = vst [vmem:[#allocation124_spill] sm:$0xff] %v23203_v0  ;;  %v23205_v43 = vpop.f32.mrb[104].mxu0  ;;  %v25222_v35 = vld [vmem:[#allocation93_spill] sm:$0xff] }
 0x573   : > { %15262 = vst [vmem:[%s21482_s26 + $0x178] sm:$0xff] %v8510_v23  ;;  %18353 = vmatmul.mubr.msk.f32.gmra.mrb[138].mxu1 %vm512_vm0, %v23078_v46  ;;  %v8743_v6 = vmul.f32 %v17935_v4, %v25207_v47  ;;  %v8703_v36 = vpop.f32.mrb[33].mxu1  ;;  %v25212_v58 = vld [vmem:[#allocation43_spill] sm:$0xff]  ;;  %v25213_v23 = vld [vmem:[#allocation81_spill] sm:$0xff]  ;;  %25217 = vst [vmem:[#allocation51_spill] sm:$0xff] %v23205_v43  ;;  %v23207_v57 = vpop.f32.mrb[105].mxu0  ;;  %v8868_v0 = vmul.f32 %v25223_v30, %v25222_v35 }
 0x574   : > { %15261 = vst [vmem:[%s21482_s26 + $0x170] sm:$0xff] %v8509_v19  ;;  %v8627_v15 = vmul.f32 %v25212_v58, %v25211_v59  ;;  %18355 = vmatprep.mubr.msk.f32.mxu1 %vm512_vm0, %v23087_v10  ;;  %v8742_v12 = vmul.f32 %v8703_v36, %v25213_v23  ;;  %25218 = vst [vmem:[#allocation129_spill] sm:$0xff] %v23207_v57  ;;  %v25219_v19 = vld [vmem:[#allocation72_spill] sm:$0xff]  ;;  %v25221_v59 = vld [vmem:[#allocation82_spill] sm:$0xff]  ;;  %v23223_v60 = vpop.f32.mrb[106].mxu0 }
 0x575   : > { %v8751_v4 = vadd.f32 %v8743_v6, %v8628_v53  ;;  %v8630_v58 = vmul.f32 %v25220_v48, %v25219_v19  ;;  %v25224_v53 = vld [vmem:[#allocation73_spill] sm:$0xff]  ;;  %v25225_v6 = vld [vmem:[#allocation134_spill] sm:$0xff]  ;;  %v25227_v48 = vld [vmem:[#allocation95_spill] sm:$0xff]  ;;  %25229 = vst [vmem:[#allocation130_spill] sm:$0xff] %v23223_v60 }
 0x576   : > { %v8750_v54 = vadd.f32 %v8742_v12, %v8627_v15  ;;  %v17938_v11 = vpop.f32.mrb[34].mxu1  ;;  %v8629_v43 = vmul.f32 %v25225_v6, %v25224_v53  ;;  %v25226_v15 = vld [vmem:[#allocation83_spill] sm:$0xff]  ;;  %v25231_v30 = vld [vmem:[#allocation74_spill] sm:$0xff]  ;;  %v25233_v6 = vld [vmem:[#allocation85_spill] sm:$0xff] }
 0x577   : > { %18356 = vmatmul.mubr.msk.f32.gmra.mrb[140].mxu1 %vm512_vm0, %v23096_v27  ;;  %v8745_v36 = vmul.f32 %v17938_v11, %v25221_v59  ;;  %v8874_v23 = vadd.f32 %v8866_v49, %v8751_v4  ;;  %v8713_v55 = vpop.f32.mrb[35].mxu1  ;;  %v25228_v19 = vld [vmem:[#allocation63_spill] sm:$0xff]  ;;  %v23225_v4 = vpop.f32.mrb[107].mxu0  ;;  %v25232_v35 = vld [vmem:[#allocation22_spill] sm:$0xff] }
 0x578   : > { %18358 = vmatprep.mubr.msk.f32.mxu1 %vm512_vm0, %v23033_v21  ;;  %v8744_v12 = vmul.f32 %v8713_v55, %v25226_v15  ;;  %v8873_v57 = vadd.f32 %v8865_v5, %v8750_v54  ;;  %v8867_v47 = vmul.f32 %v25228_v19, %v25227_v48  ;;  %25230 = vst [vmem:[#allocation28_spill] sm:$0xff] %v23225_v4  ;;  %v25234_v54 = vld [vmem:[#allocation96_spill] sm:$0xff]  ;;  %v25235_v15 = vld [vmem:[#allocation87_spill] sm:$0xff]  ;;  %v23241_v48 = vpop.f32.mrb[108].mxu0 }
 0x579   : > { %v8753_v7 = vadd.f32 %v8745_v36, %v8630_v58  ;;  %v8632_v59 = vmul.f32 %v25232_v35, %v25231_v30  ;;  %v8870_v19 = vmul.f32 %v25235_v15, %v25234_v54  ;;  %v25236_v58 = vld [vmem:[#allocation75_spill] sm:$0xff]  ;;  %25239 = vst [vmem:[#allocation131_spill] sm:$0xff] %v23241_v48  ;;  %v23245_v54 = vpop.f32.mrb[109].mxu0 }
 0x57a   : > { %v8752_v11 = vadd.f32 %v8744_v12, %v8629_v43  ;;  %v17941_v49 = vpop.f32.mrb[36].mxu1  ;;  %v25237_v36 = vld [vmem:[#allocation135_spill] sm:$0xff]  ;;  %25242 = vst [vmem:[#allocation47_spill] sm:$0xff] %v23245_v54 }
 0x57b   : > { %18359 = vmatmul.mubr.msk.f32.gmra.mrb[142].mxu1 %vm512_vm0, %v23042_v63  ;;  %v8747_v53 = vmul.f32 %v17941_v49, %v25233_v6  ;;  %v8876_v55 = vadd.f32 %v8868_v0, %v8753_v7  ;;  %v8723_v5 = vpop.f32.mrb[37].mxu1  ;;  %v8631_v60 = vmul.f32 %v25237_v36, %v25236_v58  ;;  %v25238_v35 = vld [vmem:[#allocation39_spill] sm:$0xff]  ;;  %v25240_v0 = vld [vmem:[#allocation77_spill] sm:$0xff]  ;;  %v25241_v7 = vld [vmem:[#allocation116_spill] sm:$0xff] }
 0x57c   : > { %18381 = vmatprep.mubr.msk.f32.mxu1 %vm512_vm0, %v22905_v56  ;;  %v8746_v43 = vmul.f32 %v8723_v5, %v25136_v61  ;;  %v8875_v12 = vadd.f32 %v8867_v47, %v8752_v11  ;;  %v8869_v4 = vmul.f32 %v25238_v35, %v25137_v24  ;;  %v8634_v49 = vmul.f32 %v25241_v7, %v25240_v0  ;;  %v25243_v36 = vld [vmem:[#allocation79_spill] sm:$0xff]  ;;  %v25245_v47 = vld [vmem:[#allocation88_spill] sm:$0xff] }
 0x57d   : > { %v8755_v30 = vadd.f32 %v8747_v53, %v8632_v59  ;;  %v25244_v58 = vld [vmem:[#allocation35_spill] sm:$0xff] }
 0x57e   : > { %v8754_v6 = vadd.f32 %v8746_v43, %v8631_v60  ;;  %v17944_v15 = vpop.f32.mrb[38].mxu1  ;;  %v8633_v20 = vmul.f32 %v25244_v58, %v25243_v36  ;;  %v25246_v59 = vld [vmem:[#allocation99_spill] sm:$0xff]  ;;  %v25248_v58 = vld [vmem:[#allocation137_spill] sm:$0xff] }
 0x57f   : > { %18382 = vmatmul.mubr.msk.f32.vlgmr.msra.gmra.mrb[144].mxu1 %vm512_vm0, %v23058_v22  ;;  %v8749_v11 = vmul.f32 %v17944_v15, %v25245_v47  ;;  %v8878_v5 = vadd.f32 %v8870_v19, %v8755_v30  ;;  %v8733_v35 = vpop.f32.mrb[39].mxu1  ;;  %v25247_v53 = vld [vmem:[#allocation143_spill] sm:$0xff]  ;;  %v8871_v7 = vmul.f32 %v25248_v58, %v25149_v62  ;;  %v23261_v15 = vpop.f32.mrb[110].mxu0 }
 0x580   : > { %v8872_v48 = vmul.f32 %v25247_v53, %v25246_v59  ;;  %19004 = vmatpush3.bf16.msra.mxu1 %v25202_v38  ;;  %v8748_v60 = vmul.f32 %v8733_v35, %v25148_v40  ;;  %v8877_v43 = vadd.f32 %v8869_v4, %v8754_v6  ;;  %18384 = vmatprep.mubr.msk.f32.mxu1 %vm512_vm0, %v23068_v37  ;;  %v25249_v36 = vld [vmem:[#allocation31_spill] sm:$0xff]  ;;  %v23263_v47 = vpop.f32.mrb[111].mxu0  ;;  %v25252_v4 = vld [vmem:[#allocation144_spill] sm:$0xff] }
 0x581   : > { %v8757_v54 = vadd.f32 %v8749_v11, %v8634_v49  ;;  %19010 = vmatprep.subr.bf16.mxu1 %v25249_v36  ;;  %25250 = vst [vmem:[#allocation132_spill] sm:$0xff] %v23261_v15  ;;  %25251 = vst [vmem:[#allocation21_spill] sm:$0xff] %v23263_v47  ;;  %v9112_v6 = vmul.f32 %v25252_v4, %v25050_v34  ;;  %v25253_v11 = vld [vmem:[#allocation138_spill] sm:$0xff] }
 0x582   : > { %v8756_v30 = vadd.f32 %v8748_v60, %v8633_v20  ;;  %v17967_v19 = vpop.f32.mrb[40].mxu1  ;;  %v9111_v15 = vmul.f32 %v25253_v11, %v25053_v52 }
 0x583   : > { %v8880_v53 = vadd.f32 %v8872_v48, %v8757_v54  ;;  %v8989_v38 = vmul.f32 %v17967_v19, %v25154_v18  ;;  %v8949_v35 = vpop.f32.mrb[41].mxu1  ;;  %18385 = vmatmul.mubr.msk.f32.gmra.mrb[146].mxu1 %vm512_vm0, %v23078_v46  ;;  %v23275_v48 = vpop.f32.mrb[112].mxu0 }
 0x584   : > { %v8879_v58 = vadd.f32 %v8871_v7, %v8756_v30  ;;  %v8988_v49 = vmul.f32 %v8949_v35, %v25052_v25  ;;  %18387 = vmatprep.mubr.msk.f32.mxu1 %vm512_vm0, %v23087_v10  ;;  %25254 = vst [vmem:[#allocation60_spill] sm:$0xff] %v23275_v48  ;;  %v23277_v19 = vpop.f32.mrb[113].mxu0  ;;  %v25256_v7 = vld [vmem:[#allocation57_spill] sm:$0xff] }
 0x585   : > { %v8997_v20 = vadd.f32 %v8989_v38, %v8874_v23  ;;  %25255 = vst [vmem:[#allocation18_spill] sm:$0xff] %v23277_v19  ;;  %v9114_v30 = vmul.f32 %v25256_v7, %v24863_v28  ;;  %v25257_v23 = vld [vmem:[#allocation139_spill] sm:$0xff]  ;;  %v25260_v48 = vld [vmem:[#allocation105_spill] sm:$0xff] }
 0x586   : > { %v8996_v54 = vadd.f32 %v8988_v49, %v8873_v57  ;;  %v17970_v60 = vpop.f32.mrb[42].mxu1  ;;  %v9113_v38 = vmul.f32 %v25257_v23, %v25059_v44  ;;  %v25262_v23 = vld [vmem:[#allocation106_spill] sm:$0xff] }
 0x587   : > { %v9120_v47 = vadd.f32 %v9112_v6, %v8997_v20  ;;  %v8991_v18 = vmul.f32 %v17970_v60, %v25159_v3  ;;  %v8959_v4 = vpop.f32.mrb[43].mxu1  ;;  %18388 = vmatmul.mubr.msk.f32.gmra.mrb[148].mxu1 %vm512_vm0, %v23096_v27  ;;  %v23289_v6 = vpop.f32.mrb[114].mxu0 }
 0x588   : > { %v9119_v35 = vadd.f32 %v9111_v15, %v8996_v54  ;;  %v8990_v11 = vmul.f32 %v8959_v4, %v24955_v39  ;;  %18390 = vmatprep.mubr.msk.f32.mxu1 %vm512_vm0, %v23033_v21  ;;  %25258 = vst [vmem:[#allocation38_spill] sm:$0xff] %v23289_v6  ;;  %v23291_v60 = vpop.f32.mrb[115].mxu0  ;;  %v25261_v15 = vld [vmem:[#allocation145_spill] sm:$0xff] }
 0x589   : > { %v8999_v57 = vadd.f32 %v8991_v18, %v8876_v55  ;;  %25259 = vst [vmem:[#allocation16_spill] sm:$0xff] %v23291_v60  ;;  %v9116_v54 = vmul.f32 %v25261_v15, %v24775_v1  ;;  %v25263_v18 = vld [vmem:[#allocation112_spill] sm:$0xff]  ;;  %v25264_v55 = vld [vmem:[#allocation53_spill] sm:$0xff] }
 0x58a   : > { %v8998_v49 = vadd.f32 %v8990_v11, %v8875_v12  ;;  %v17973_v20 = vpop.f32.mrb[44].mxu1  ;;  %v9115_v6 = vmul.f32 %v25264_v55, %v25263_v18  ;;  %v25270_v18 = vld [vmem:[#allocation108_spill] sm:$0xff] }
 0x58b   : > { %v9122_v19 = vadd.f32 %v9114_v30, %v8999_v57  ;;  %v8993_v3 = vmul.f32 %v17973_v20, %v25260_v48  ;;  %v8969_v7 = vpop.f32.mrb[45].mxu1  ;;  %18391 = vmatmul.mubr.msk.f32.gmra.mrb[150].mxu1 %vm512_vm0, %v23042_v63  ;;  %v23303_v30 = vpop.f32.mrb[116].mxu0  ;;  %v25267_v48 = vld [vmem:[#allocation107_spill] sm:$0xff] }
 0x58c   : > { %v9121_v4 = vadd.f32 %v9113_v38, %v8998_v49  ;;  %v8992_v44 = vmul.f32 %v8969_v7, %v25262_v23  ;;  %18413 = vmatprep.mubr.msk.f32.mxu1 %vm512_vm0, %v22905_v56  ;;  %25265 = vst [vmem:[#allocation36_spill] sm:$0xff] %v23303_v30  ;;  %v23305_v20 = vpop.f32.mrb[117].mxu0  ;;  %v25268_v38 = vld [vmem:[#allocation113_spill] sm:$0xff]  ;;  %v25269_v49 = vld [vmem:[#allocation56_spill] sm:$0xff] }
 0x58d   : > { %v9001_v12 = vadd.f32 %v8993_v3, %v8878_v5  ;;  %25266 = vst [vmem:[#allocation55_spill] sm:$0xff] %v23305_v20  ;;  %v9118_v7 = vmul.f32 %v25269_v49, %v25268_v38  ;;  %v25271_v3 = vld [vmem:[#allocation114_spill] sm:$0xff]  ;;  %v25280_v38 = vld [vmem:[#allocation23_spill] sm:$0xff] }
 0x58e   : > { %v9000_v11 = vadd.f32 %v8992_v44, %v8877_v43  ;;  %v17976_v57 = vpop.f32.mrb[46].mxu1  ;;  %v25272_v44 = vld [vmem:[#allocation140_spill] sm:$0xff] }
 0x58f   : > { %v9124_v60 = vadd.f32 %v9116_v54, %v9001_v12  ;;  %v8995_v39 = vmul.f32 %v17976_v57, %v25267_v48  ;;  %v8979_v15 = vpop.f32.mrb[47].mxu1  ;;  %18414 = vmatmul.mubr.msk.f32.vlgmr.msra.gmra.mrb[152].mxu1 %vm512_vm0, %v23058_v22  ;;  %v9117_v5 = vmul.f32 %v25272_v44, %v25271_v3  ;;  %v25273_v54 = vld [vmem:[#allocation48_spill] sm:$0xff]  ;;  %v23319_v12 = vpop.f32.mrb[118].mxu0  ;;  %v25278_v44 = vld [vmem:[#allocation146_spill] sm:$0xff]  ;;  %v25281_v48 = vld [vmem:[#allocation141_spill] sm:$0xff] }
 0x590   : > { %v9123_v55 = vadd.f32 %v9115_v6, %v9000_v11  ;;  %v8994_v23 = vmul.f32 %v8979_v15, %v25270_v18  ;;  %19012 = vmatpush3.bf16.msra.mxu1 %v25249_v36  ;;  %18416 = vmatprep.mubr.msk.f32.mxu1 %vm512_vm0, %v23068_v37  ;;  %25274 = vst [vmem:[#allocation26_spill] sm:$0xff] %v23319_v12  ;;  %v23321_v30 = vpop.f32.mrb[119].mxu0  ;;  %v25276_v11 = vld [vmem:[#allocation17_spill] sm:$0xff]  ;;  %v25277_v36 = vld [vmem:[#allocation80_spill] sm:$0xff] }
 0x591   : > { %v9003_v43 = vadd.f32 %v8995_v39, %v8880_v53  ;;  %19018 = vmatprep.subr.bf16.mxu1 %v25273_v54  ;;  %25275 = vst [vmem:[#allocation45_spill] sm:$0xff] %v23321_v30  ;;  %v9358_v3 = vmul.f32 %v25278_v44, %v25277_v36  ;;  %v25279_v39 = vld [vmem:[#allocation68_spill] sm:$0xff]  ;;  %v9357_v12 = vmul.f32 %v25281_v48, %v25280_v38 }
 0x592   : > { %v9002_v57 = vadd.f32 %v8994_v23, %v8879_v58  ;;  %v17999_v20 = vpop.f32.mrb[48].mxu1  ;;  %v23333_v23 = vpop.f32.mrb[120].mxu0 }
 0x593   : > { %v9126_v6 = vadd.f32 %v9118_v7, %v9003_v43  ;;  %v9235_v15 = vmul.f32 %v17999_v20, %v25276_v11  ;;  %v9195_v49 = vpop.f32.mrb[49].mxu1  ;;  %18417 = vmatmul.mubr.msk.f32.gmra.mrb[154].mxu1 %vm512_vm0, %v23078_v46  ;;  %25282 = vst [vmem:[#allocation65_spill] sm:$0xff] %v23333_v23  ;;  %v23335_v43 = vpop.f32.mrb[121].mxu0  ;;  %v25284_v11 = vld [vmem:[#allocation34_spill] sm:$0xff] }
 0x594   : > { %v9125_v18 = vadd.f32 %v9117_v5, %v9002_v57  ;;  %v9234_v53 = vmul.f32 %v9195_v49, %v25279_v39  ;;  %18419 = vmatprep.mubr.msk.f32.mxu1 %vm512_vm0, %v23087_v10  ;;  %25283 = vst [vmem:[#allocation20_spill] sm:$0xff] %v23335_v43  ;;  %v25285_v5 = vld [vmem:[#allocation142_spill] sm:$0xff] }
 0x595   : > { %v9243_v58 = vadd.f32 %v9235_v15, %v9120_v47  ;;  %v9360_v48 = vmul.f32 %v25285_v5, %v21304_v29  ;;  %v25286_v47 = vld [vmem:[#allocation27_spill] sm:$0xff] }
 0x596   : > { %v9242_v20 = vadd.f32 %v9234_v53, %v9119_v35  ;;  %v18002_v7 = vpop.f32.mrb[50].mxu1  ;;  %v9359_v15 = vmul.f32 %v25286_v47, %v25183_v2 }
 0x597   : > { %v9366_v30 = vadd.f32 %v9358_v3, %v9243_v58  ;;  %v9237_v1 = vmul.f32 %v18002_v7, %v25284_v11  ;;  %v9205_v44 = vpop.f32.mrb[51].mxu1  ;;  %18420 = vmatmul.mubr.msk.f32.gmra.mrb[156].mxu1 %vm512_vm0, %v23096_v27  ;;  %v23347_v3 = vpop.f32.mrb[122].mxu0 }
 0x598   : > { %v9365_v57 = vadd.f32 %v9357_v12, %v9242_v20  ;;  %v9236_v49 = vmul.f32 %v9205_v44, %v24789_v13  ;;  %18422 = vmatprep.mubr.msk.f32.mxu1 %vm512_vm0, %v23033_v21  ;;  %25287 = vst [vmem:[#allocation94_spill] sm:$0xff] %v23347_v3  ;;  %v23349_v7 = vpop.f32.mrb[123].mxu0  ;;  %v25289_v12 = vld [vmem:[#allocation147_spill] sm:$0xff] }
 0x599   : > { %v9245_v35 = vadd.f32 %v9237_v1, %v9122_v19  ;;  %25288 = vst [vmem:[#allocation61_spill] sm:$0xff] %v23349_v7  ;;  %v9362_v20 = vmul.f32 %v25289_v12, %v21324_v9  ;;  %v25290_v1 = vld [vmem:[#allocation29_spill] sm:$0xff] }
 0x59a   : > { %v9244_v53 = vadd.f32 %v9236_v49, %v9121_v4  ;;  %v18005_v58 = vpop.f32.mrb[52].mxu1  ;;  %v9361_v19 = vmul.f32 %v25290_v1, %v25087_v50 }
 0x59b   : > { %v9368_v43 = vadd.f32 %v9360_v48, %v9245_v35  ;;  %v9239_v23 = vmul.f32 %v18005_v58, %v25187_v31  ;;  %v9215_v5 = vpop.f32.mrb[53].mxu1  ;;  %18423 = vmatmul.mubr.msk.f32.gmra.mrb[158].mxu1 %vm512_vm0, %v23042_v63  ;;  %v23361_v48 = vpop.f32.mrb[124].mxu0 }
 0x59c   : > { %v9367_v44 = vadd.f32 %v9359_v15, %v9244_v53  ;;  %v9238_v47 = vmul.f32 %v9215_v5, %v25086_v26  ;;  %18445 = vmatprep.mubr.msk.f32.mxu1 %vm512_vm0, %v22905_v56  ;;  %25291 = vst [vmem:[#allocation43_spill] sm:$0xff] %v23361_v48  ;;  %v23363_v58 = vpop.f32.mrb[125].mxu0  ;;  %v25293_v15 = vld [vmem:[#allocation76_spill] sm:$0xff]  ;;  %v25322_v48 = vld [vmem:[#allocation151_spill] sm:$0xff] }
 0x59d   : > { %v9247_v4 = vadd.f32 %v9239_v23, %v9124_v60  ;;  %25292 = vst [vmem:[#allocation117_spill] sm:$0xff] %v23363_v58  ;;  %v9364_v53 = vmul.f32 %v25293_v15, %v24988_v14  ;;  %v25294_v60 = vld [vmem:[#allocation148_spill] sm:$0xff] }
 0x59e   : > { %v9246_v49 = vadd.f32 %v9238_v47, %v9123_v55  ;;  %v18008_v35 = vpop.f32.mrb[54].mxu1  ;;  %v9363_v55 = vmul.f32 %v25294_v60, %v24896_v41  ;;  %v23377_v47 = vpop.f32.mrb[126].mxu0 }
 0x59f   : > { %v9370_v7 = vadd.f32 %v9362_v20, %v9247_v4  ;;  %v9241_v3 = vmul.f32 %v18008_v35, %v24987_v51  ;;  %v9225_v12 = vpop.f32.mrb[55].mxu1  ;;  %18446 = vmatmul.mubr.msk.f32.vlgmr.msra.gmra.mrb[160].mxu1 %vm512_vm0, %v23058_v22  ;;  %v25295_v20 = vld [vmem:[#allocation66_spill] sm:$0xff]  ;;  %25296 = vst [vmem:[#allocation133_spill] sm:$0xff] %v23377_v47 }
 0x5a0   : > { %v9369_v5 = vadd.f32 %v9361_v19, %v9246_v49  ;;  %v9240_v1 = vmul.f32 %v9225_v12, %v24990_v33  ;;  %19020 = vmatpush3.bf16.msra.mxu1 %v25273_v54  ;;  %18448 = vmatprep.mubr.msk.f32.mxu1 %vm512_vm0, %v23068_v37  ;;  %v23379_v19 = vpop.f32.mrb[127].mxu0 }
 0x5a1   : > { %v9249_v23 = vadd.f32 %v9241_v3, %v9126_v6  ;;  %19026 = vmatprep.subr.bf16.mxu1 %v25295_v20  ;;  %25297 = vst [vmem:[#allocation136_spill] sm:$0xff] %v23379_v19 }
 0x5a2   : > { %v9248_v4 = vadd.f32 %v9240_v1, %v9125_v18  ;;  %v18031_v35 = vpop.f32.mrb[56].mxu1 }
 0x5a3   : > { %v9372_v49 = vadd.f32 %v9364_v53, %v9249_v23  ;;  %v9481_v54 = vmul.f32 %v18031_v35, %v24995_v8  ;;  %v9441_v12 = vpop.f32.mrb[57].mxu1  ;;  %18449 = vmatmul.mubr.msk.f32.gmra.mrb[162].mxu1 %vm512_vm0, %v23078_v46 }
 0x5a4   : > { %v9371_v15 = vadd.f32 %v9363_v55, %v9248_v4  ;;  %v9480_v6 = vmul.f32 %v9441_v12, %v24996_v45  ;;  %18451 = vmatprep.mubr.msk.f32.mxu1 %vm512_vm0, %v23087_v10 }
 0x5a5   : > { %v9489_v3 = vadd.f32 %v9481_v54, %v9366_v30 }
 0x5a6   : > { %v9488_v18 = vadd.f32 %v9480_v6, %v9365_v57  ;;  %v18034_v1 = vpop.f32.mrb[58].mxu1  ;;  %v23403_v6 = vpop.f32.mrb[128].mxu0 }
 0x5a7   : > { %15328 = vst [vmem:[%s21482_s26 + $0x188] sm:$0xff] %v9489_v3  ;;  %v9483_v53 = vmul.f32 %v18034_v1, %v24902_v16  ;;  %v9451_v60 = vpop.f32.mrb[59].mxu1  ;;  %18452 = vmatmul.mubr.msk.f32.gmra.mrb[164].mxu1 %vm512_vm0, %v23096_v27  ;;  %25298 = vst [vmem:[#allocation134_spill] sm:$0xff] %v23403_v6  ;;  %v23405_v3 = vpop.f32.mrb[129].mxu0  ;;  %v25317_v6 = vld [vmem:[#allocation155_spill] sm:$0xff] }
 0x5a8   : > { %15327 = vst [vmem:[%s21482_s26 + $0x180] sm:$0xff] %v9488_v18  ;;  %v9482_v55 = vmul.f32 %v9451_v60, %v24903_v42  ;;  %18454 = vmatprep.mubr.msk.f32.mxu1 %vm512_vm0, %v23033_v21  ;;  %25299 = vst [vmem:[#allocation63_spill] sm:$0xff] %v23405_v3  ;;  %v25300_v18 = vld [vmem:[#allocation118_spill] sm:$0xff]  ;;  %v23411_v60 = vpop.f32.mrb[130].mxu0  ;;  %v25316_v3 = vld [vmem:[#allocation92_spill] sm:$0xff] }
 0x5a9   : > { %v9491_v23 = vadd.f32 %v9483_v53, %v9368_v43  ;;  %25301 = vst [vmem:[#allocation22_spill] sm:$0xff] %v23411_v60 }
 0x5aa   : > { %v9490_v4 = vadd.f32 %v9482_v55, %v9367_v44  ;;  %v18037_v30 = vpop.f32.mrb[60].mxu1  ;;  %v25302_v55 = vld [vmem:[#allocation119_spill] sm:$0xff] }
 0x5ab   : > { %15330 = vst [vmem:[%s21482_s26 + $0x198] sm:$0xff] %v9491_v23  ;;  %v9485_v57 = vmul.f32 %v18037_v30, %v24997_v17  ;;  %v9461_v35 = vpop.f32.mrb[61].mxu1  ;;  %18455 = vmatmul.mubr.msk.f32.gmra.mrb[166].mxu1 %vm512_vm0, %v23042_v63  ;;  %v25304_v23 = vld [vmem:[#allocation59_spill] sm:$0xff] }
 0x5ac   : > { %15329 = vst [vmem:[%s21482_s26 + $0x190] sm:$0xff] %v9490_v4  ;;  %v9484_v54 = vmul.f32 %v9461_v35, %v24905_v32  ;;  %18477 = vmatprep.mubr.msk.f32.mxu1 %vm512_vm0, %v22905_v56 }
 0x5ad   : > { %v9493_v12 = vadd.f32 %v9485_v57, %v9370_v7  ;;  %v23418_v7 = vpop.f32.mrb[131].mxu0 }
 0x5ae   : > { %v9492_v43 = vadd.f32 %v9484_v54, %v9369_v5  ;;  %v18040_v44 = vpop.f32.mrb[62].mxu1  ;;  %25303 = vst [vmem:[#allocation87_spill] sm:$0xff] %v23418_v7  ;;  %v23421_v4 = vpop.f32.mrb[132].mxu0  ;;  %v25308_v54 = vld [vmem:[#allocation149_spill] sm:$0xff]  ;;  %v25310_v7 = vld [vmem:[#allocation90_spill] sm:$0xff] }
 0x5af   : > { %15332 = vst [vmem:[%s21482_s26 + $0x1a8] sm:$0xff] %v9493_v12  ;;  %v9487_v1 = vmul.f32 %v18040_v44, %v25300_v18  ;;  %v9471_v53 = vpop.f32.mrb[63].mxu1  ;;  %18478 = vmatmul.mubr.msk.f32.vlgmr.msra.gmra.mrb[168].mxu1 %vm512_vm0, %v23058_v22  ;;  %25305 = vst [vmem:[#allocation135_spill] sm:$0xff] %v23421_v4  ;;  %v23423_v35 = vpop.f32.mrb[133].mxu0 }
 0x5b0   : > { %15331 = vst [vmem:[%s21482_s26 + $0x1a0] sm:$0xff] %v9492_v43  ;;  %v9486_v56 = vmul.f32 %v9471_v53, %v25302_v55  ;;  %19028 = vmatpush3.bf16.msra.mxu1 %v25295_v20  ;;  %18480 = vmatprep.mubr.msk.f32.mxu1 %vm512_vm0, %v23068_v37  ;;  %25306 = vst [vmem:[#allocation39_spill] sm:$0xff] %v23423_v35  ;;  %v25307_v20 = vld [vmem:[#allocation70_spill] sm:$0xff]  ;;  %v23433_v60 = vpop.f32.mrb[134].mxu0 }
 0x5b1   : > { %v9495_v5 = vadd.f32 %v9487_v1, %v9372_v49  ;;  %19034 = vmatprep.subr.bf16.mxu1 %v25304_v23  ;;  %v9613_v12 = vmul.f32 %v25308_v54, %v25307_v20  ;;  %v25309_v43 = vld [vmem:[#allocation78_spill] sm:$0xff]  ;;  %25312 = vst [vmem:[#allocation116_spill] sm:$0xff] %v23433_v60  ;;  %v9850_v54 = vmul.f32 %v25317_v6, %v25316_v3  ;;  %v23443_v19 = vpop.f32.mrb[135].mxu0  ;;  %v25324_v6 = vld [vmem:[#allocation93_spill] sm:$0xff]  ;;  %v25325_v3 = vld [vmem:[#allocation156_spill] sm:$0xff] }
 0x5b2   : > { %v9494_v30 = vadd.f32 %v9486_v56, %v9371_v15  ;;  %v18063_v57 = vpop.f32.mrb[64].mxu1  ;;  %v25311_v49 = vld [vmem:[#allocation154_spill] sm:$0xff]  ;;  %v25313_v15 = vld [vmem:[#allocation71_spill] sm:$0xff]  ;;  %25318 = vst [vmem:[#allocation35_spill] sm:$0xff] %v23443_v19  ;;  %v23445_v47 = vpop.f32.mrb[136].mxu0  ;;  %v9853_v19 = vmul.f32 %v25325_v3, %v25324_v6  ;;  %v25334_v6 = vld [vmem:[#allocation152_spill] sm:$0xff] }
 0x5b3   : > { %15334 = vst [vmem:[%s21482_s26 + $0x1b8] sm:$0xff] %v9495_v5  ;;  %18481 = vmatmul.mubr.msk.f32.gmra.mrb[170].mxu1 %vm512_vm0, %v23078_v46  ;;  %v9728_v44 = vmul.f32 %v18063_v57, %v25309_v43  ;;  %v9688_v53 = vpop.f32.mrb[65].mxu1  ;;  %v9851_v1 = vmul.f32 %v25311_v49, %v25310_v7  ;;  %v25314_v56 = vld [vmem:[#allocation150_spill] sm:$0xff]  ;;  %v25315_v5 = vld [vmem:[#allocation81_spill] sm:$0xff]  ;;  %25319 = vst [vmem:[#allocation143_spill] sm:$0xff] %v23445_v47  ;;  %v23447_v60 = vpop.f32.mrb[137].mxu0 }
 0x5b4   : > { %15333 = vst [vmem:[%s21482_s26 + $0x1b0] sm:$0xff] %v9494_v30  ;;  %v9612_v4 = vmul.f32 %v25314_v56, %v25313_v15  ;;  %18483 = vmatprep.mubr.msk.f32.mxu1 %vm512_vm0, %v23087_v10  ;;  %v9727_v35 = vmul.f32 %v9688_v53, %v25315_v5  ;;  %25320 = vst [vmem:[#allocation137_spill] sm:$0xff] %v23447_v60  ;;  %v25321_v30 = vld [vmem:[#allocation72_spill] sm:$0xff]  ;;  %v25323_v15 = vld [vmem:[#allocation82_spill] sm:$0xff]  ;;  %v23463_v55 = vpop.f32.mrb[138].mxu0 }
 0x5b5   : > { %v9736_v57 = vadd.f32 %v9728_v44, %v9613_v12  ;;  %v9615_v56 = vmul.f32 %v25322_v48, %v25321_v30  ;;  %v25326_v12 = vld [vmem:[#allocation73_spill] sm:$0xff]  ;;  %v25327_v44 = vld [vmem:[#allocation98_spill] sm:$0xff]  ;;  %v25329_v48 = vld [vmem:[#allocation95_spill] sm:$0xff]  ;;  %25331 = vst [vmem:[#allocation31_spill] sm:$0xff] %v23463_v55 }
 0x5b6   : > { %v9735_v49 = vadd.f32 %v9727_v35, %v9612_v4  ;;  %v18066_v58 = vpop.f32.mrb[66].mxu1  ;;  %v9614_v47 = vmul.f32 %v25327_v44, %v25326_v12  ;;  %v25328_v4 = vld [vmem:[#allocation83_spill] sm:$0xff]  ;;  %v25330_v30 = vld [vmem:[#allocation157_spill] sm:$0xff]  ;;  %v25333_v3 = vld [vmem:[#allocation74_spill] sm:$0xff] }
 0x5b7   : > { %18484 = vmatmul.mubr.msk.f32.gmra.mrb[172].mxu1 %vm512_vm0, %v23096_v27  ;;  %v9730_v53 = vmul.f32 %v18066_v58, %v25323_v15  ;;  %v9859_v5 = vadd.f32 %v9851_v1, %v9736_v57  ;;  %v9698_v7 = vpop.f32.mrb[67].mxu1  ;;  %v9852_v43 = vmul.f32 %v25330_v30, %v25329_v48  ;;  %v23465_v57 = vpop.f32.mrb[139].mxu0  ;;  %v9617_v15 = vmul.f32 %v25334_v6, %v25333_v3  ;;  %v25335_v44 = vld [vmem:[#allocation85_spill] sm:$0xff]  ;;  %v25345_v48 = vld [vmem:[#allocation46_spill] sm:$0xff] }
 0x5b8   : > { %18486 = vmatprep.mubr.msk.f32.mxu1 %vm512_vm0, %v23033_v21  ;;  %v9729_v35 = vmul.f32 %v9698_v7, %v25328_v4  ;;  %v9858_v60 = vadd.f32 %v9850_v54, %v9735_v49  ;;  %25332 = vst [vmem:[#allocation144_spill] sm:$0xff] %v23465_v57  ;;  %v25336_v49 = vld [vmem:[#allocation96_spill] sm:$0xff]  ;;  %v25337_v4 = vld [vmem:[#allocation158_spill] sm:$0xff]  ;;  %v25340_v57 = vld [vmem:[#allocation115_spill] sm:$0xff] }
 0x5b9   : > { %v9738_v20 = vadd.f32 %v9730_v53, %v9615_v56  ;;  %v9855_v30 = vmul.f32 %v25337_v4, %v25336_v49  ;;  %v25338_v56 = vld [vmem:[#allocation75_spill] sm:$0xff]  ;;  %v25339_v53 = vld [vmem:[#allocation44_spill] sm:$0xff]  ;;  %v9854_v3 = vmul.f32 %v25340_v57, %v25137_v24 }
 0x5ba   : > { %v9737_v58 = vadd.f32 %v9729_v35, %v9614_v47  ;;  %v18069_v1 = vpop.f32.mrb[68].mxu1  ;;  %v9616_v55 = vmul.f32 %v25339_v53, %v25338_v56  ;;  %v23476_v47 = vld [vmem:[#allocation6] sm:$0xff]  ;;  %v25344_v56 = vld [vmem:[#allocation79_spill] sm:$0xff] }
 0x5bb   : > { %18487 = vmatmul.mubr.msk.f32.gmra.mrb[174].mxu1 %vm512_vm0, %v23042_v63  ;;  %v9732_v12 = vmul.f32 %v18069_v1, %v25335_v44  ;;  %v9861_v7 = vadd.f32 %v9853_v19, %v9738_v20  ;;  %v9708_v54 = vpop.f32.mrb[69].mxu1  ;;  %v23483_v19 = vpop.f32.mrb[140].mxu0  ;;  %v25342_v20 = vld [vmem:[#allocation153_spill] sm:$0xff]  ;;  %v9618_v18 = vmul.f32 %v25345_v48, %v25344_v56  ;;  %v25348_v48 = vld [vmem:[#allocation159_spill] sm:$0xff] }
 0x5bc   : > { %18509 = vmatprep.mubr.msk.f32.mxu1 %vm512_vm0, %v23476_v47  ;;  %v9731_v6 = vmul.f32 %v9708_v54, %v25136_v61  ;;  %v9860_v35 = vadd.f32 %v9852_v43, %v9737_v58  ;;  %25341 = vst [vmem:[#allocation138_spill] sm:$0xff] %v23483_v19  ;;  %v9619_v4 = vmul.f32 %v25342_v20, %v25240_v0  ;;  %v23487_v53 = vpop.f32.mrb[141].mxu0  ;;  %v25346_v43 = vld [vmem:[#allocation88_spill] sm:$0xff] }
 0x5bd   : > { %v9740_v1 = vadd.f32 %v9732_v12, %v9617_v15  ;;  %25343 = vst [vmem:[#allocation57_spill] sm:$0xff] %v23487_v53  ;;  %v25347_v15 = vld [vmem:[#allocation33_spill] sm:$0xff]  ;;  %v9856_v20 = vmul.f32 %v25348_v48, %v25149_v62  ;;  %v25349_v19 = vld [vmem:[#allocation32_spill] sm:$0xff] }
 0x5be   : > { %v9739_v49 = vadd.f32 %v9731_v6, %v9616_v55  ;;  %v18072_v44 = vpop.f32.mrb[70].mxu1  ;;  %v9857_v12 = vmul.f32 %v25347_v15, %v25246_v59 }
 0x5bf   : > { %18510 = vmatmul.mubr.msk.f32.vlgmr.msra.gmra.mrb[176].mxu1 %vm512_vm0, %v23058_v22  ;;  %v9734_v58 = vmul.f32 %v18072_v44, %v25346_v43  ;;  %v9863_v54 = vadd.f32 %v9855_v30, %v9740_v1  ;;  %v9718_v57 = vpop.f32.mrb[71].mxu1  ;;  %v23503_v44 = vpop.f32.mrb[142].mxu0 }
 0x5c0   : > { %19036 = vmatpush3.bf16.msra.mxu1 %v25304_v23  ;;  %v9733_v55 = vmul.f32 %v9718_v57, %v25148_v40  ;;  %v9862_v6 = vadd.f32 %v9854_v3, %v9739_v49  ;;  %18512 = vmatprep.mubr.msk.f32.mxu1 %vm512_vm0, %v23068_v37  ;;  %25350 = vst [vmem:[#allocation139_spill] sm:$0xff] %v23503_v44  ;;  %v23505_v43 = vpop.f32.mrb[143].mxu0  ;;  %v25352_v23 = vld [vmem:[#allocation101_spill] sm:$0xff]  ;;  %v25353_v3 = vld [vmem:[#allocation40_spill] sm:$0xff] }
 0x5c1   : > { %v9742_v53 = vadd.f32 %v9734_v58, %v9619_v4  ;;  %19042 = vmatprep.subr.bf16.mxu1 %v25349_v19  ;;  %25351 = vst [vmem:[#allocation145_spill] sm:$0xff] %v23505_v43  ;;  %v10097_v49 = vmul.f32 %v25353_v3, %v25050_v34  ;;  %v25354_v58 = vld [vmem:[#allocation62_spill] sm:$0xff] }
 0x5c2   : > { %v9741_v30 = vadd.f32 %v9733_v55, %v9618_v18  ;;  %v18095_v1 = vpop.f32.mrb[72].mxu1  ;;  %v10096_v44 = vmul.f32 %v25354_v58, %v25053_v52  ;;  %v25359_v58 = vld [vmem:[#allocation104_spill] sm:$0xff] }
 0x5c3   : > { %v9865_v15 = vadd.f32 %v9857_v12, %v9742_v53  ;;  %v9974_v59 = vmul.f32 %v18095_v1, %v25352_v23  ;;  %v9934_v57 = vpop.f32.mrb[73].mxu1  ;;  %18513 = vmatmul.mubr.msk.f32.gmra.mrb[178].mxu1 %vm512_vm0, %v23078_v46  ;;  %v23517_v53 = vpop.f32.mrb[144].mxu0  ;;  %v25357_v23 = vld [vmem:[#allocation103_spill] sm:$0xff] }
 0x5c4   : > { %v9864_v48 = vadd.f32 %v9856_v20, %v9741_v30  ;;  %v9973_v4 = vmul.f32 %v9934_v57, %v25052_v25  ;;  %18515 = vmatprep.mubr.msk.f32.mxu1 %vm512_vm0, %v23087_v10  ;;  %25355 = vst [vmem:[#allocation53_spill] sm:$0xff] %v23517_v53  ;;  %v23519_v1 = vpop.f32.mrb[145].mxu0  ;;  %v25358_v20 = vld [vmem:[#allocation64_spill] sm:$0xff] }
 0x5c5   : > { %v9982_v18 = vadd.f32 %v9974_v59, %v9859_v5  ;;  %25356 = vst [vmem:[#allocation56_spill] sm:$0xff] %v23519_v1  ;;  %v10099_v30 = vmul.f32 %v25358_v20, %v24863_v28  ;;  %v25360_v59 = vld [vmem:[#allocation110_spill] sm:$0xff]  ;;  %v25361_v5 = vld [vmem:[#allocation41_spill] sm:$0xff] }
 0x5c6   : > { %v9981_v12 = vadd.f32 %v9973_v4, %v9858_v60  ;;  %v18098_v55 = vpop.f32.mrb[74].mxu1  ;;  %v10098_v53 = vmul.f32 %v25361_v5, %v25360_v59  ;;  %v25367_v59 = vld [vmem:[#allocation106_spill] sm:$0xff] }
 0x5c7   : > { %v10105_v43 = vadd.f32 %v10097_v49, %v9982_v18  ;;  %v9976_v62 = vmul.f32 %v18098_v55, %v25357_v23  ;;  %v9944_v3 = vpop.f32.mrb[75].mxu1  ;;  %18516 = vmatmul.mubr.msk.f32.gmra.mrb[180].mxu1 %vm512_vm0, %v23096_v27  ;;  %v23531_v49 = vpop.f32.mrb[146].mxu0  ;;  %v25364_v23 = vld [vmem:[#allocation105_spill] sm:$0xff] }
 0x5c8   : > { %v10104_v57 = vadd.f32 %v10096_v44, %v9981_v12  ;;  %v9975_v52 = vmul.f32 %v9944_v3, %v25359_v58  ;;  %18518 = vmatprep.mubr.msk.f32.mxu1 %vm512_vm0, %v23033_v21  ;;  %25362 = vst [vmem:[#allocation140_spill] sm:$0xff] %v23531_v49  ;;  %v23533_v55 = vpop.f32.mrb[147].mxu0  ;;  %v25365_v44 = vld [vmem:[#allocation111_spill] sm:$0xff]  ;;  %v25366_v12 = vld [vmem:[#allocation160_spill] sm:$0xff] }
 0x5c9   : > { %v9984_v60 = vadd.f32 %v9976_v62, %v9861_v7  ;;  %25363 = vst [vmem:[#allocation48_spill] sm:$0xff] %v23533_v55  ;;  %v10101_v3 = vmul.f32 %v25366_v12, %v25365_v44  ;;  %v25368_v62 = vld [vmem:[#allocation112_spill] sm:$0xff]  ;;  %v25369_v7 = vld [vmem:[#allocation121_spill] sm:$0xff]  ;;  %v25372_v55 = vld [vmem:[#allocation107_spill] sm:$0xff] }
 0x5ca   : > { %v9983_v4 = vadd.f32 %v9975_v52, %v9860_v35  ;;  %v18101_v18 = vpop.f32.mrb[76].mxu1  ;;  %v10100_v49 = vmul.f32 %v25369_v7, %v25368_v62  ;;  %v23545_v35 = vpop.f32.mrb[148].mxu0  ;;  %v25375_v62 = vld [vmem:[#allocation108_spill] sm:$0xff] }
 0x5cb   : > { %v10107_v1 = vadd.f32 %v10099_v30, %v9984_v60  ;;  %v9978_v25 = vmul.f32 %v18101_v18, %v25364_v23  ;;  %v9954_v20 = vpop.f32.mrb[77].mxu1  ;;  %18519 = vmatmul.mubr.msk.f32.gmra.mrb[182].mxu1 %vm512_vm0, %v23042_v63  ;;  %25370 = vst [vmem:[#allocation80_spill] sm:$0xff] %v23545_v35  ;;  %v23547_v18 = vpop.f32.mrb[149].mxu0  ;;  %v25417_v35 = vld [vmem:[#allocation92_spill] sm:$0xff] }
 0x5cc   : > { %v10106_v5 = vadd.f32 %v10098_v53, %v9983_v4  ;;  %v9977_v21 = vmul.f32 %v9954_v20, %v25367_v59  ;;  %18541 = vmatprep.mubr.msk.f32.mxu1 %vm512_vm0, %v23476_v47  ;;  %25371 = vst [vmem:[#allocation146_spill] sm:$0xff] %v23547_v18  ;;  %v25373_v53 = vld [vmem:[#allocation113_spill] sm:$0xff] }
 0x5cd   : > { %v9986_v52 = vadd.f32 %v9978_v25, %v9863_v54  ;;  %v25374_v4 = vld [vmem:[#allocation161_spill] sm:$0xff]  ;;  %v25376_v25 = vld [vmem:[#allocation114_spill] sm:$0xff] }
 0x5ce   : > { %v9985_v30 = vadd.f32 %v9977_v21, %v9862_v6  ;;  %v18104_v60 = vpop.f32.mrb[78].mxu1  ;;  %v10103_v20 = vmul.f32 %v25374_v4, %v25373_v53  ;;  %v25377_v54 = vld [vmem:[#allocation126_spill] sm:$0xff]  ;;  %v25378_v21 = vld [vmem:[#allocation49_spill] sm:$0xff] }
 0x5cf   : > { %v10109_v63 = vadd.f32 %v10101_v3, %v9986_v52  ;;  %v9980_v23 = vmul.f32 %v18104_v60, %v25372_v55  ;;  %v9964_v12 = vpop.f32.mrb[79].mxu1  ;;  %18542 = vmatmul.mubr.msk.f32.vlgmr.msra.gmra.mrb[184].mxu1 %vm512_vm0, %v23058_v22  ;;  %v10102_v6 = vmul.f32 %v25377_v54, %v25376_v25  ;;  %v23561_v52 = vpop.f32.mrb[150].mxu0 }
 0x5d0   : > { %v10108_v7 = vadd.f32 %v10100_v49, %v9985_v30  ;;  %v9979_v59 = vmul.f32 %v9964_v12, %v25375_v62  ;;  %19044 = vmatpush3.bf16.msra.mxu1 %v25349_v19  ;;  %18544 = vmatprep.mubr.msk.f32.mxu1 %vm512_vm0, %v23068_v37  ;;  %25379 = vst [vmem:[#allocation68_spill] sm:$0xff] %v23561_v52  ;;  %v23563_v18 = vpop.f32.mrb[151].mxu0  ;;  %v25381_v30 = vld [vmem:[#allocation17_spill] sm:$0xff]  ;;  %v25382_v19 = vld [vmem:[#allocation162_spill] sm:$0xff] }
 0x5d1   : > { %v9988_v3 = vadd.f32 %v9980_v23, %v9865_v15  ;;  %19050 = vmatprep.subr.bf16.mxu1 %v25378_v21  ;;  %25380 = vst [vmem:[#allocation23_spill] sm:$0xff] %v23563_v18  ;;  %v10343_v54 = vmul.f32 %v25382_v19, %v25277_v36  ;;  %v25383_v23 = vld [vmem:[#allocation54_spill] sm:$0xff] }
 0x5d2   : > { %v9987_v22 = vadd.f32 %v9979_v59, %v9864_v48  ;;  %v18127_v60 = vpop.f32.mrb[80].mxu1  ;;  %v10342_v52 = vmul.f32 %v25383_v23, %v25280_v38  ;;  %v23575_v59 = vpop.f32.mrb[152].mxu0 }
 0x5d3   : > { %v10111_v49 = vadd.f32 %v10103_v20, %v9988_v3  ;;  %v10220_v12 = vmul.f32 %v18127_v60, %v25381_v30  ;;  %v10180_v4 = vpop.f32.mrb[81].mxu1  ;;  %18545 = vmatmul.mubr.msk.f32.gmra.mrb[186].mxu1 %vm512_vm0, %v23078_v46  ;;  %25384 = vst [vmem:[#allocation141_spill] sm:$0xff] %v23575_v59  ;;  %v23577_v60 = vpop.f32.mrb[153].mxu0 }
 0x5d4   : > { %v10110_v37 = vadd.f32 %v10102_v6, %v9987_v22  ;;  %v10219_v15 = vmul.f32 %v10180_v4, %v25279_v39  ;;  %18547 = vmatprep.mubr.msk.f32.mxu1 %vm512_vm0, %v23087_v10  ;;  %25385 = vst [vmem:[#allocation34_spill] sm:$0xff] %v23577_v60  ;;  %v25386_v6 = vld [vmem:[#allocation163_spill] sm:$0xff] }
 0x5d5   : > { %v10228_v48 = vadd.f32 %v10220_v12, %v10105_v43  ;;  %v10345_v22 = vmul.f32 %v25386_v6, %v21304_v29  ;;  %v25387_v43 = vld [vmem:[#allocation91_spill] sm:$0xff]  ;;  %v25390_v6 = vld [vmem:[#allocation24_spill] sm:$0xff] }
 0x5d6   : > { %v10227_v20 = vadd.f32 %v10219_v15, %v10104_v57  ;;  %v18130_v3 = vpop.f32.mrb[82].mxu1  ;;  %v10344_v12 = vmul.f32 %v25387_v43, %v25183_v2  ;;  %v23587_v57 = vld [vmem:[#allocation6 + $0x30] sm:$0xff]  ;;  %v23591_v15 = vpop.f32.mrb[154].mxu0  ;;  %v10347_v43 = vmul.f32 %v25390_v6, %v21324_v9 }
 0x5d7   : > { %v10351_v46 = vadd.f32 %v10343_v54, %v10228_v48  ;;  %v10222_v18 = vmul.f32 %v18130_v3, %v25284_v11  ;;  %v10190_v19 = vpop.f32.mrb[83].mxu1  ;;  %18548 = vmatmul.mubr.msk.f32.gmra.mrb[188].mxu1 %vm512_vm0, %v23096_v27  ;;  %25388 = vst [vmem:[#allocation142_spill] sm:$0xff] %v23591_v15  ;;  %v23593_v27 = vpop.f32.mrb[155].mxu0 }
 0x5d8   : > { %v10350_v4 = vadd.f32 %v10342_v52, %v10227_v20  ;;  %v10221_v10 = vmul.f32 %v10190_v19, %v24789_v13  ;;  %18550 = vmatprep.mubr.msk.f32.mxu1 %vm512_vm0, %v23587_v57  ;;  %25389 = vst [vmem:[#allocation27_spill] sm:$0xff] %v23593_v27  ;;  %v23596_v19 = vld [vmem:[#allocation6 + $0x38] sm:$0xff] }
 0x5d9   : > { %v10230_v54 = vadd.f32 %v10222_v18, %v10107_v1 }
 0x5da   : > { %v10229_v23 = vadd.f32 %v10221_v10, %v10106_v5  ;;  %v18133_v48 = vpop.f32.mrb[84].mxu1  ;;  %v25391_v5 = vld [vmem:[#allocation122_spill] sm:$0xff]  ;;  %v23607_v10 = vpop.f32.mrb[156].mxu0 }
 0x5db   : > { %v10353_v3 = vadd.f32 %v10345_v22, %v10230_v54  ;;  %v10224_v52 = vmul.f32 %v18133_v48, %v25187_v31  ;;  %v10200_v20 = vpop.f32.mrb[85].mxu1  ;;  %18551 = vmatmul.mubr.msk.f32.gmra.mrb[190].mxu1 %vm512_vm0, %v23596_v19  ;;  %v10346_v18 = vmul.f32 %v25391_v5, %v25087_v50  ;;  %25392 = vst [vmem:[#allocation147_spill] sm:$0xff] %v23607_v10  ;;  %v23609_v27 = vpop.f32.mrb[157].mxu0  ;;  %v23637_v10 = vld [vmem:[#allocation6 + $0x20] sm:$0xff] }
 0x5dc   : > { %v10352_v60 = vadd.f32 %v10344_v12, %v10229_v23  ;;  %v10223_v1 = vmul.f32 %v10200_v20, %v25086_v26  ;;  %18573 = vmatprep.mubr.msk.f32.mxu1 %vm512_vm0, %v23476_v47  ;;  %25393 = vst [vmem:[#allocation29_spill] sm:$0xff] %v23609_v27  ;;  %v23612_v12 = vld [vmem:[#allocation6 + $0x8] sm:$0xff]  ;;  %v25394_v23 = vld [vmem:[#allocation164_spill] sm:$0xff]  ;;  %v23632_v27 = vld [vmem:[#allocation6 + $0x18] sm:$0xff] }
 0x5dd   : > { %v10232_v22 = vadd.f32 %v10224_v52, %v10109_v63  ;;  %v10349_v20 = vmul.f32 %v25394_v23, %v24988_v14 }
 0x5de   : > { %v10231_v54 = vadd.f32 %v10223_v1, %v10108_v7  ;;  %v18136_v48 = vpop.f32.mrb[86].mxu1  ;;  %v25395_v7 = vld [vmem:[#allocation127_spill] sm:$0xff] }
 0x5df   : > { %v10355_v15 = vadd.f32 %v10347_v43, %v10232_v22  ;;  %v10226_v59 = vmul.f32 %v18136_v48, %v24987_v51  ;;  %v10210_v6 = vpop.f32.mrb[87].mxu1  ;;  %18574 = vmatmul.mubr.msk.f32.vlgmr.msra.gmra.mrb[192].mxu1 %vm512_vm0, %v23612_v12  ;;  %v10348_v52 = vmul.f32 %v25395_v7, %v24896_v41  ;;  %v23622_v43 = vld [vmem:[#allocation6 + $0x10] sm:$0xff]  ;;  %v25396_v22 = vld [vmem:[#allocation67_spill] sm:$0xff]  ;;  %v23627_v48 = vpop.f32.mrb[158].mxu0 }
 0x5e0   : > { %v10354_v5 = vadd.f32 %v10346_v18, %v10231_v54  ;;  %v10225_v63 = vmul.f32 %v10210_v6, %v24990_v33  ;;  %19052 = vmatpush3.bf16.msra.mxu1 %v25378_v21  ;;  %18576 = vmatprep.mubr.msk.f32.mxu1 %vm512_vm0, %v23622_v43  ;;  %25397 = vst [vmem:[#allocation76_spill] sm:$0xff] %v23627_v48  ;;  %v23629_v54 = vpop.f32.mrb[159].mxu0 }
 0x5e1   : > { %v10234_v1 = vadd.f32 %v10226_v59, %v10111_v49  ;;  %19058 = vmatprep.subr.bf16.mxu1 %v25396_v22  ;;  %25398 = vst [vmem:[#allocation148_spill] sm:$0xff] %v23629_v54  ;;  %v23643_v54 = vld [vmem:[#allocation6 + $0x28] sm:$0xff] }
 0x5e2   : > { %v10233_v23 = vadd.f32 %v10225_v63, %v10110_v37  ;;  %v18159_v18 = vpop.f32.mrb[88].mxu1 }
 0x5e3   : > { %v10357_v6 = vadd.f32 %v10349_v20, %v10234_v1  ;;  %v10466_v21 = vmul.f32 %v18159_v18, %v24995_v8  ;;  %v10426_v7 = vpop.f32.mrb[89].mxu1  ;;  %18577 = vmatmul.mubr.msk.f32.gmra.mrb[194].mxu1 %vm512_vm0, %v23632_v27 }
 0x5e4   : > { %v10356_v49 = vadd.f32 %v10348_v52, %v10233_v23  ;;  %v10465_v59 = vmul.f32 %v10426_v7, %v24996_v45  ;;  %18579 = vmatprep.mubr.msk.f32.mxu1 %vm512_vm0, %v23637_v10 }
 0x5e5   : > { %v10474_v37 = vadd.f32 %v10466_v21, %v10351_v46 }
 0x5e6   : > { %v10473_v20 = vadd.f32 %v10465_v59, %v10350_v4  ;;  %v18162_v63 = vpop.f32.mrb[90].mxu1 }
 0x5e7   : > { %15400 = vst [vmem:[%s21482_s26 + $0x1c8] sm:$0xff] %v10474_v37  ;;  %v10468_v1 = vmul.f32 %v18162_v63, %v24902_v16  ;;  %v10436_v18 = vpop.f32.mrb[91].mxu1  ;;  %18580 = vmatmul.mubr.msk.f32.gmra.mrb[196].mxu1 %vm512_vm0, %v23643_v54 }
 0x5e8   : > { %15399 = vst [vmem:[%s21482_s26 + $0x1c0] sm:$0xff] %v10473_v20  ;;  %v10467_v52 = vmul.f32 %v10436_v18, %v24903_v42  ;;  %18582 = vmatprep.mubr.msk.f32.mxu1 %vm512_vm0, %v23587_v57  ;;  %v23659_v20 = vpop.f32.mrb[160].mxu0 }
 0x5e9   : > { %v10476_v46 = vadd.f32 %v10468_v1, %v10353_v3  ;;  %25399 = vst [vmem:[#allocation66_spill] sm:$0xff] %v23659_v20  ;;  %v23661_v63 = vpop.f32.mrb[161].mxu0  ;;  %v25401_v1 = vld [vmem:[#allocation118_spill] sm:$0xff] }
 0x5ea   : > { %v10475_v4 = vadd.f32 %v10467_v52, %v10352_v60  ;;  %v18165_v23 = vpop.f32.mrb[92].mxu1  ;;  %25400 = vst [vmem:[#allocation59_spill] sm:$0xff] %v23661_v63 }
 0x5eb   : > { %15402 = vst [vmem:[%s21482_s26 + $0x1d8] sm:$0xff] %v10476_v46  ;;  %v10470_v21 = vmul.f32 %v18165_v23, %v24997_v17  ;;  %v10446_v7 = vpop.f32.mrb[93].mxu1  ;;  %18583 = vmatmul.mubr.msk.f32.gmra.mrb[198].mxu1 %vm512_vm0, %v23596_v19  ;;  %v23667_v46 = vpop.f32.mrb[162].mxu0 }
 0x5ec   : > { %15401 = vst [vmem:[%s21482_s26 + $0x1d0] sm:$0xff] %v10475_v4  ;;  %v10469_v59 = vmul.f32 %v10446_v7, %v24905_v32  ;;  %18605 = vmatprep.mubr.msk.f32.mxu1 %vm512_vm0, %v23476_v47  ;;  %25402 = vst [vmem:[#allocation149_spill] sm:$0xff] %v23667_v46  ;;  %v25403_v4 = vld [vmem:[#allocation119_spill] sm:$0xff]  ;;  %v25410_v46 = vld [vmem:[#allocation78_spill] sm:$0xff] }
 0x5ed   : > { %v10478_v37 = vadd.f32 %v10470_v21, %v10355_v15  ;;  %v23674_v15 = vpop.f32.mrb[163].mxu0  ;;  %v25405_v21 = vld [vmem:[#allocation37_spill] sm:$0xff] }
 0x5ee   : > { %v10477_v3 = vadd.f32 %v10469_v59, %v10354_v5  ;;  %v18168_v60 = vpop.f32.mrb[94].mxu1  ;;  %25404 = vst [vmem:[#allocation154_spill] sm:$0xff] %v23674_v15  ;;  %v23677_v7 = vpop.f32.mrb[164].mxu0  ;;  %v25411_v15 = vld [vmem:[#allocation90_spill] sm:$0xff] }
 0x5ef   : > { %15404 = vst [vmem:[%s21482_s26 + $0x1e8] sm:$0xff] %v10478_v37  ;;  %v10472_v18 = vmul.f32 %v18168_v60, %v25401_v1  ;;  %v10456_v52 = vpop.f32.mrb[95].mxu1  ;;  %18606 = vmatmul.mubr.msk.f32.vlgmr.msra.gmra.mrb[200].mxu1 %vm512_vm0, %v23612_v12  ;;  %25406 = vst [vmem:[#allocation150_spill] sm:$0xff] %v23677_v7  ;;  %v23679_v60 = vpop.f32.mrb[165].mxu0  ;;  %v25423_v1 = vld [vmem:[#allocation25_spill] sm:$0xff] }
 0x5f0   : > { %15403 = vst [vmem:[%s21482_s26 + $0x1e0] sm:$0xff] %v10477_v3  ;;  %v10471_v23 = vmul.f32 %v10456_v52, %v25403_v4  ;;  %19060 = vmatpush3.bf16.msra.mxu1 %v25396_v22  ;;  %18608 = vmatprep.mubr.msk.f32.mxu1 %vm512_vm0, %v23622_v43  ;;  %25407 = vst [vmem:[#allocation155_spill] sm:$0xff] %v23679_v60  ;;  %v25408_v22 = vld [vmem:[#allocation70_spill] sm:$0xff]  ;;  %v25409_v3 = vld [vmem:[#allocation120_spill] sm:$0xff]  ;;  %v23689_v48 = vpop.f32.mrb[166].mxu0 }
 0x5f1   : > { %v10480_v5 = vadd.f32 %v10472_v18, %v10357_v6  ;;  %19066 = vmatprep.subr.bf16.mxu1 %v25405_v21  ;;  %v10598_v52 = vmul.f32 %v25409_v3, %v25408_v22  ;;  %v25412_v6 = vld [vmem:[#allocation51_spill] sm:$0xff]  ;;  %25413 = vst [vmem:[#allocation151_spill] sm:$0xff] %v23689_v48  ;;  %v25418_v4 = vld [vmem:[#allocation129_spill] sm:$0xff]  ;;  %v23699_v22 = vpop.f32.mrb[167].mxu0 }
 0x5f2   : > { %v10479_v59 = vadd.f32 %v10471_v23, %v10356_v49  ;;  %v18191_v37 = vpop.f32.mrb[96].mxu1  ;;  %v10836_v18 = vmul.f32 %v25412_v6, %v25411_v15  ;;  %v25414_v49 = vld [vmem:[#allocation71_spill] sm:$0xff]  ;;  %v25415_v23 = vld [vmem:[#allocation125_spill] sm:$0xff]  ;;  %v10835_v3 = vmul.f32 %v25418_v4, %v25417_v35  ;;  %25419 = vst [vmem:[#allocation156_spill] sm:$0xff] %v23699_v22  ;;  %v25426_v35 = vld [vmem:[#allocation130_spill] sm:$0xff] }
 0x5f3   : > { %15406 = vst [vmem:[%s21482_s26 + $0x1f8] sm:$0xff] %v10480_v5  ;;  %18609 = vmatmul.mubr.msk.f32.gmra.mrb[202].mxu1 %vm512_vm0, %v23632_v27  ;;  %v10713_v63 = vmul.f32 %v18191_v37, %v25410_v46  ;;  %v10673_v20 = vpop.f32.mrb[97].mxu1  ;;  %v10597_v7 = vmul.f32 %v25415_v23, %v25414_v49  ;;  %v25416_v5 = vld [vmem:[#allocation81_spill] sm:$0xff]  ;;  %v23701_v46 = vpop.f32.mrb[168].mxu0  ;;  %v25424_v49 = vld [vmem:[#allocation82_spill] sm:$0xff] }
 0x5f4   : > { %15405 = vst [vmem:[%s21482_s26 + $0x1f0] sm:$0xff] %v10479_v59  ;;  %18611 = vmatprep.mubr.msk.f32.mxu1 %vm512_vm0, %v23637_v10  ;;  %v10712_v60 = vmul.f32 %v10673_v20, %v25416_v5  ;;  %25420 = vst [vmem:[#allocation98_spill] sm:$0xff] %v23701_v46  ;;  %v23703_v48 = vpop.f32.mrb[169].mxu0  ;;  %v25422_v59 = vld [vmem:[#allocation72_spill] sm:$0xff]  ;;  %v25425_v4 = vld [vmem:[#allocation93_spill] sm:$0xff] }
 0x5f5   : > { %v10721_v37 = vadd.f32 %v10713_v63, %v10598_v52  ;;  %25421 = vst [vmem:[#allocation157_spill] sm:$0xff] %v23703_v48  ;;  %v10600_v23 = vmul.f32 %v25423_v1, %v25422_v59  ;;  %v10838_v22 = vmul.f32 %v25426_v35, %v25425_v4  ;;  %v25427_v63 = vld [vmem:[#allocation73_spill] sm:$0xff]  ;;  %v25428_v52 = vld [vmem:[#allocation42_spill] sm:$0xff]  ;;  %v25430_v1 = vld [vmem:[#allocation95_spill] sm:$0xff]  ;;  %v23719_v16 = vpop.f32.mrb[170].mxu0 }
 0x5f6   : > { %v10720_v6 = vadd.f32 %v10712_v60, %v10597_v7  ;;  %v18194_v15 = vpop.f32.mrb[98].mxu1  ;;  %v10599_v46 = vmul.f32 %v25428_v52, %v25427_v63  ;;  %v25429_v7 = vld [vmem:[#allocation83_spill] sm:$0xff]  ;;  %v25431_v59 = vld [vmem:[#allocation28_spill] sm:$0xff]  ;;  %25432 = vst [vmem:[#allocation152_spill] sm:$0xff] %v23719_v16  ;;  %v25434_v35 = vld [vmem:[#allocation74_spill] sm:$0xff] }
 0x5f7   : > { %18612 = vmatmul.mubr.msk.f32.gmra.mrb[204].mxu1 %vm512_vm0, %v23643_v54  ;;  %v10715_v20 = vmul.f32 %v18194_v15, %v25424_v49  ;;  %v10844_v5 = vadd.f32 %v10836_v18, %v10721_v37  ;;  %v10683_v32 = vpop.f32.mrb[99].mxu1  ;;  %v10837_v17 = vmul.f32 %v25431_v59, %v25430_v1  ;;  %v23721_v37 = vpop.f32.mrb[171].mxu0  ;;  %v25435_v4 = vld [vmem:[#allocation30_spill] sm:$0xff]  ;;  %v25436_v52 = vld [vmem:[#allocation85_spill] sm:$0xff] }
 0x5f8   : > { %18614 = vmatprep.mubr.msk.f32.mxu1 %vm512_vm0, %v23587_v57  ;;  %v10714_v60 = vmul.f32 %v10683_v32, %v25429_v7  ;;  %v10843_v48 = vadd.f32 %v10835_v3, %v10720_v6  ;;  %25433 = vst [vmem:[#allocation158_spill] sm:$0xff] %v23721_v37  ;;  %v10602_v49 = vmul.f32 %v25435_v4, %v25434_v35  ;;  %v25437_v6 = vld [vmem:[#allocation96_spill] sm:$0xff]  ;;  %v25438_v7 = vld [vmem:[#allocation131_spill] sm:$0xff]  ;;  %v23737_v1 = vpop.f32.mrb[172].mxu0 }
 0x5f9   : > { %v10723_v42 = vadd.f32 %v10715_v20, %v10600_v23  ;;  %v10840_v59 = vmul.f32 %v25438_v7, %v25437_v6  ;;  %v25439_v23 = vld [vmem:[#allocation75_spill] sm:$0xff]  ;;  %25442 = vst [vmem:[#allocation44_spill] sm:$0xff] %v23737_v1  ;;  %v23741_v6 = vpop.f32.mrb[173].mxu0 }
 0x5fa   : > { %v10722_v15 = vadd.f32 %v10714_v60, %v10599_v46  ;;  %v18197_v18 = vpop.f32.mrb[100].mxu1  ;;  %v25440_v20 = vld [vmem:[#allocation123_spill] sm:$0xff]  ;;  %25444 = vst [vmem:[#allocation115_spill] sm:$0xff] %v23741_v6 }
 0x5fb   : > { %18615 = vmatmul.mubr.msk.f32.gmra.mrb[206].mxu1 %vm512_vm0, %v23596_v19  ;;  %v10717_v63 = vmul.f32 %v18197_v18, %v25436_v52  ;;  %v10846_v32 = vadd.f32 %v10838_v22, %v10723_v42  ;;  %v10693_v3 = vpop.f32.mrb[101].mxu1  ;;  %v10601_v16 = vmul.f32 %v25440_v20, %v25439_v23  ;;  %v25441_v4 = vld [vmem:[#allocation47_spill] sm:$0xff]  ;;  %v25443_v42 = vld [vmem:[#allocation128_spill] sm:$0xff] }
 0x5fc   : > { %18637 = vmatprep.mubr.msk.f32.mxu1 %vm512_vm0, %v23476_v47  ;;  %v10716_v46 = vmul.f32 %v10693_v3, %v25136_v61  ;;  %v10845_v60 = vadd.f32 %v10837_v17, %v10722_v15  ;;  %v10839_v37 = vmul.f32 %v25441_v4, %v25137_v24  ;;  %v10604_v22 = vmul.f32 %v25443_v42, %v25240_v0  ;;  %v25445_v20 = vld [vmem:[#allocation124_spill] sm:$0xff]  ;;  %v23756_v0 = vpop.f32.mrb[174].mxu0 }
 0x5fd   : > { %v10725_v35 = vadd.f32 %v10717_v63, %v10602_v49  ;;  %v10603_v23 = vmul.f32 %v25445_v20, %v25344_v56  ;;  %v25446_v17 = vld [vmem:[#allocation88_spill] sm:$0xff]  ;;  %v25447_v49 = vld [vmem:[#allocation99_spill] sm:$0xff]  ;;  %v25450_v20 = vld [vmem:[#allocation21_spill] sm:$0xff]  ;;  %25451 = vst [vmem:[#allocation153_spill] sm:$0xff] %v23756_v0 }
 0x5fe   : > { %v10724_v18 = vadd.f32 %v10716_v46, %v10601_v16  ;;  %v18200_v7 = vpop.f32.mrb[102].mxu1  ;;  %v25448_v63 = vld [vmem:[#allocation132_spill] sm:$0xff] }
 0x5ff   : > { %18638 = vmatmul.mubr.msk.f32.vlgmr.msra.gmra.mrb[208].mxu1 %vm512_vm0, %v23612_v12  ;;  %v10719_v15 = vmul.f32 %v18200_v7, %v25446_v17  ;;  %v10848_v3 = vadd.f32 %v10840_v59, %v10725_v35  ;;  %v10703_v4 = vpop.f32.mrb[103].mxu1  ;;  %v10842_v1 = vmul.f32 %v25448_v63, %v25447_v49  ;;  %v25449_v42 = vld [vmem:[#allocation100_spill] sm:$0xff]  ;;  %v23758_v59 = vpop.f32.mrb[175].mxu0  ;;  %v25453_v63 = vld [vmem:[#allocation101_spill] sm:$0xff] }
 0x600   : > { %19068 = vmatpush3.bf16.msra.mxu1 %v25405_v21  ;;  %v10718_v16 = vmul.f32 %v10703_v4, %v25148_v40  ;;  %v10847_v46 = vadd.f32 %v10839_v37, %v10724_v18  ;;  %18640 = vmatprep.mubr.msk.f32.mxu1 %vm512_vm0, %v23622_v43  ;;  %v10841_v6 = vmul.f32 %v25450_v20, %v25449_v42  ;;  %v25454_v37 = vld [vmem:[#allocation60_spill] sm:$0xff]  ;;  %v25455_v40 = vld [vmem:[#allocation102_spill] sm:$0xff] }
 0x601   : > { %v10727_v56 = vadd.f32 %v10719_v15, %v10604_v22  ;;  %25452 = vst [vmem:[#allocation46_spill] sm:$0xff] %v23758_v59  ;;  %v11082_v18 = vmul.f32 %v25454_v37, %v25050_v34  ;;  %v25456_v22 = vld [vmem:[#allocation109_spill] sm:$0xff]  ;;  %v25457_v15 = vld [vmem:[#allocation18_spill] sm:$0xff] }
 0x602   : > { %v10726_v7 = vadd.f32 %v10718_v16, %v10603_v23  ;;  %v18223_v35 = vpop.f32.mrb[104].mxu1  ;;  %v11081_v0 = vmul.f32 %v25457_v15, %v25456_v22 }
 0x603   : > { %v10850_v17 = vadd.f32 %v10842_v1, %v10727_v56  ;;  %v10959_v49 = vmul.f32 %v18223_v35, %v25453_v63  ;;  %v10919_v21 = vpop.f32.mrb[105].mxu1  ;;  %18641 = vmatmul.mubr.msk.f32.gmra.mrb[210].mxu1 %vm512_vm0, %v23632_v27  ;;  %v23770_v56 = vpop.f32.mrb[176].mxu0  ;;  %v25460_v63 = vld [vmem:[#allocation103_spill] sm:$0xff] }
 0x604   : > { %v10849_v4 = vadd.f32 %v10841_v6, %v10726_v7  ;;  %v10958_v20 = vmul.f32 %v10919_v21, %v25455_v40  ;;  %18643 = vmatprep.mubr.msk.f32.mxu1 %vm512_vm0, %v23637_v10  ;;  %25458 = vst [vmem:[#allocation33_spill] sm:$0xff] %v23770_v56  ;;  %v23772_v35 = vpop.f32.mrb[177].mxu0  ;;  %v25461_v6 = vld [vmem:[#allocation38_spill] sm:$0xff] }
 0x605   : > { %v10967_v23 = vadd.f32 %v10959_v49, %v10844_v5  ;;  %25459 = vst [vmem:[#allocation159_spill] sm:$0xff] %v23772_v35  ;;  %v11084_v7 = vmul.f32 %v25461_v6, %v24863_v28  ;;  %v25462_v5 = vld [vmem:[#allocation110_spill] sm:$0xff]  ;;  %v25463_v49 = vld [vmem:[#allocation16_spill] sm:$0xff] }
 0x606   : > { %v10966_v1 = vadd.f32 %v10958_v20, %v10843_v48  ;;  %v18226_v16 = vpop.f32.mrb[106].mxu1  ;;  %v11083_v56 = vmul.f32 %v25463_v49, %v25462_v5  ;;  %v25468_v49 = vld [vmem:[#allocation106_spill] sm:$0xff] }
 0x607   : > { %v11090_v59 = vadd.f32 %v11082_v18, %v10967_v23  ;;  %v10961_v42 = vmul.f32 %v18226_v16, %v25460_v63  ;;  %v10929_v37 = vpop.f32.mrb[107].mxu1  ;;  %18644 = vmatmul.mubr.msk.f32.gmra.mrb[212].mxu1 %vm512_vm0, %v23643_v54  ;;  %v23784_v18 = vpop.f32.mrb[178].mxu0  ;;  %v25466_v63 = vld [vmem:[#allocation105_spill] sm:$0xff] }
 0x608   : > { %v11089_v21 = vadd.f32 %v11081_v0, %v10966_v1  ;;  %v10960_v15 = vmul.f32 %v10929_v37, %v25359_v58  ;;  %18646 = vmatprep.mubr.msk.f32.mxu1 %vm512_vm0, %v23587_v57  ;;  %25464 = vst [vmem:[#allocation32_spill] sm:$0xff] %v23784_v18  ;;  %v23786_v16 = vpop.f32.mrb[179].mxu0  ;;  %v25467_v0 = vld [vmem:[#allocation36_spill] sm:$0xff] }
 0x609   : > { %v10969_v48 = vadd.f32 %v10961_v42, %v10846_v32  ;;  %25465 = vst [vmem:[#allocation40_spill] sm:$0xff] %v23786_v16  ;;  %v11086_v1 = vmul.f32 %v25467_v0, %v25365_v44  ;;  %v25469_v32 = vld [vmem:[#allocation112_spill] sm:$0xff]  ;;  %v25470_v42 = vld [vmem:[#allocation55_spill] sm:$0xff] }
 0x60a   : > { %v10968_v20 = vadd.f32 %v10960_v15, %v10845_v60  ;;  %v18229_v23 = vpop.f32.mrb[108].mxu1  ;;  %v11085_v18 = vmul.f32 %v25470_v42, %v25469_v32 }
 0x60b   : > { %v11092_v35 = vadd.f32 %v11084_v7, %v10969_v48  ;;  %v10963_v22 = vmul.f32 %v18229_v23, %v25466_v63  ;;  %v10939_v6 = vpop.f32.mrb[109].mxu1  ;;  %18647 = vmatmul.mubr.msk.f32.gmra.mrb[214].mxu1 %vm512_vm0, %v23596_v19  ;;  %v23798_v7 = vpop.f32.mrb[180].mxu0 }
 0x60c   : > { %v11091_v37 = vadd.f32 %v11083_v56, %v10968_v20  ;;  %v10962_v5 = vmul.f32 %v10939_v6, %v25468_v49  ;;  %18669 = vmatprep.mubr.msk.f32.mxu1 %vm512_vm0, %v23476_v47  ;;  %25471 = vst [vmem:[#allocation62_spill] sm:$0xff] %v23798_v7  ;;  %v23800_v23 = vpop.f32.mrb[181].mxu0  ;;  %v25473_v56 = vld [vmem:[#allocation26_spill] sm:$0xff] }
 0x60d   : > { %v10971_v60 = vadd.f32 %v10963_v22, %v10848_v3  ;;  %25472 = vst [vmem:[#allocation64_spill] sm:$0xff] %v23800_v23  ;;  %v11088_v20 = vmul.f32 %v25473_v56, %v25373_v53  ;;  %v25474_v3 = vld [vmem:[#allocation45_spill] sm:$0xff]  ;;  %v25521_v23 = vld [vmem:[#allocation82_spill] sm:$0xff] }
 0x60e   : > { %v10970_v15 = vadd.f32 %v10962_v5, %v10847_v46  ;;  %v18232_v48 = vpop.f32.mrb[110].mxu1  ;;  %v11087_v22 = vmul.f32 %v25474_v3, %v25376_v25  ;;  %v23812_v5 = vpop.f32.mrb[182].mxu0 }
 0x60f   : > { %v11094_v16 = vadd.f32 %v11086_v1, %v10971_v60  ;;  %v10965_v63 = vmul.f32 %v18232_v48, %v25372_v55  ;;  %v10949_v0 = vpop.f32.mrb[111].mxu1  ;;  %18670 = vmatmul.mubr.msk.f32.vlgmr.msra.gmra.mrb[216].mxu1 %vm512_vm0, %v23612_v12  ;;  %25475 = vst [vmem:[#allocation104_spill] sm:$0xff] %v23812_v5  ;;  %v23814_v60 = vpop.f32.mrb[183].mxu0 }
 0x610   : > { %v11093_v6 = vadd.f32 %v11085_v18, %v10970_v15  ;;  %v10964_v47 = vmul.f32 %v10949_v0, %v25375_v62  ;;  %18672 = vmatprep.mubr.msk.f32.mxu1 %vm512_vm0, %v23622_v43  ;;  %25476 = vst [vmem:[#allocation41_spill] sm:$0xff] %v23814_v60  ;;  %v25477_v18 = vld [vmem:[#allocation65_spill] sm:$0xff] }
 0x611   : > { %v10973_v46 = vadd.f32 %v10965_v63, %v10850_v17  ;;  %v11328_v15 = vmul.f32 %v25477_v18, %v25277_v36  ;;  %v25478_v17 = vld [vmem:[#allocation20_spill] sm:$0xff] }
 0x612   : > { %v10972_v1 = vadd.f32 %v10964_v47, %v10849_v4  ;;  %v18255_v42 = vpop.f32.mrb[112].mxu1  ;;  %v11327_v63 = vmul.f32 %v25478_v17, %v25280_v38 }
 0x613   : > { %v11096_v12 = vadd.f32 %v11088_v20, %v10973_v46  ;;  %v11205_v48 = vmul.f32 %v18255_v42, %v25381_v30  ;;  %v11165_v56 = vpop.f32.mrb[113].mxu1  ;;  %18673 = vmatmul.mubr.msk.f32.gmra.mrb[218].mxu1 %vm512_vm0, %v23632_v27  ;;  %v23826_v20 = vpop.f32.mrb[184].mxu0 }
 0x614   : > { %v11095_v0 = vadd.f32 %v11087_v22, %v10972_v1  ;;  %v11204_v43 = vmul.f32 %v11165_v56, %v25279_v39  ;;  %18675 = vmatprep.mubr.msk.f32.mxu1 %vm512_vm0, %v23637_v10  ;;  %25479 = vst [vmem:[#allocation111_spill] sm:$0xff] %v23826_v20  ;;  %v23828_v46 = vpop.f32.mrb[185].mxu0  ;;  %v25481_v22 = vld [vmem:[#allocation94_spill] sm:$0xff] }
 0x615   : > { %v11213_v4 = vadd.f32 %v11205_v48, %v11090_v59  ;;  %25480 = vst [vmem:[#allocation160_spill] sm:$0xff] %v23828_v46  ;;  %v11330_v1 = vmul.f32 %v25481_v22, %v21304_v29  ;;  %v25482_v59 = vld [vmem:[#allocation61_spill] sm:$0xff] }
 0x616   : > { %v11212_v47 = vadd.f32 %v11204_v43, %v11089_v21  ;;  %v18258_v3 = vpop.f32.mrb[114].mxu1  ;;  %v11329_v48 = vmul.f32 %v25482_v59, %v25183_v2 }
 0x617   : > { %v11336_v27 = vadd.f32 %v11328_v15, %v11213_v4  ;;  %v11207_v42 = vmul.f32 %v18258_v3, %v25284_v11  ;;  %v11175_v18 = vpop.f32.mrb[115].mxu1  ;;  %18676 = vmatmul.mubr.msk.f32.gmra.mrb[220].mxu1 %vm512_vm0, %v23643_v54  ;;  %v23840_v15 = vpop.f32.mrb[186].mxu0 }
 0x618   : > { %v11335_v56 = vadd.f32 %v11327_v63, %v11212_v47  ;;  %v11206_v10 = vmul.f32 %v11175_v18, %v24789_v13  ;;  %18678 = vmatprep.mubr.msk.f32.mxu1 %vm512_vm0, %v23587_v57  ;;  %25483 = vst [vmem:[#allocation121_spill] sm:$0xff] %v23840_v15  ;;  %v23842_v4 = vpop.f32.mrb[187].mxu0  ;;  %v25485_v63 = vld [vmem:[#allocation43_spill] sm:$0xff]  ;;  %v25489_v15 = vld [vmem:[#allocation133_spill] sm:$0xff] }
 0x619   : > { %v11215_v21 = vadd.f32 %v11207_v42, %v11092_v35  ;;  %25484 = vst [vmem:[#allocation107_spill] sm:$0xff] %v23842_v4  ;;  %v11332_v47 = vmul.f32 %v25485_v63, %v21324_v9  ;;  %v25486_v35 = vld [vmem:[#allocation117_spill] sm:$0xff]  ;;  %v11334_v63 = vmul.f32 %v25489_v15, %v24988_v14 }
 0x61a   : > { %v11214_v43 = vadd.f32 %v11206_v10, %v11091_v37  ;;  %v18261_v17 = vpop.f32.mrb[116].mxu1  ;;  %v11331_v42 = vmul.f32 %v25486_v35, %v25087_v50  ;;  %v23852_v10 = vpop.f32.mrb[188].mxu0 }
 0x61b   : > { %v11338_v54 = vadd.f32 %v11330_v1, %v11215_v21  ;;  %v11209_v3 = vmul.f32 %v18261_v17, %v25187_v31  ;;  %v11185_v22 = vpop.f32.mrb[117].mxu1  ;;  %18679 = vmatmul.mubr.msk.f32.gmra.mrb[222].mxu1 %vm512_vm0, %v23596_v19  ;;  %25487 = vst [vmem:[#allocation113_spill] sm:$0xff] %v23852_v10  ;;  %v23854_v21 = vpop.f32.mrb[189].mxu0 }
 0x61c   : > { %v11337_v18 = vadd.f32 %v11329_v48, %v11214_v43  ;;  %v11208_v57 = vmul.f32 %v11185_v22, %v25086_v26  ;;  %25488 = vst [vmem:[#allocation161_spill] sm:$0xff] %v23854_v21  ;;  %v25490_v22 = vld [vmem:[#allocation136_spill] sm:$0xff] }
 0x61d   : > { %v11217_v37 = vadd.f32 %v11209_v3, %v11094_v16  ;;  %v11333_v16 = vmul.f32 %v25490_v22, %v24896_v41 }
 0x61e   : > { %v11216_v59 = vadd.f32 %v11208_v57, %v11093_v6  ;;  %v18264_v1 = vpop.f32.mrb[118].mxu1  ;;  %v23862_v6 = vpop.f32.mrb[190].mxu0 }
 0x61f   : > { %v11340_v17 = vadd.f32 %v11332_v47, %v11217_v37  ;;  %v11211_v4 = vmul.f32 %v18264_v1, %v24987_v51  ;;  %v11195_v19 = vpop.f32.mrb[119].mxu1  ;;  %25491 = vst [vmem:[#allocation108_spill] sm:$0xff] %v23862_v6  ;;  %v23864_v47 = vpop.f32.mrb[191].mxu0 }
 0x620   : > { %v11339_v48 = vadd.f32 %v11331_v42, %v11216_v59  ;;  %v11210_v43 = vmul.f32 %v11195_v19, %v24990_v33  ;;  %25492 = vst [vmem:[#allocation114_spill] sm:$0xff] %v23864_v47 }
 0x621   : > { %v11219_v3 = vadd.f32 %v11211_v4, %v11096_v12  ;;  %v25493_v12 = vld [vmem:[#allocation84_spill] sm:$0xff] }
 0x622   : > { %v11218_v57 = vadd.f32 %v11210_v43, %v11095_v0  ;;  %v18287_v35 = vpop.f32.mrb[120].mxu1  ;;  %v25494_v0 = vld [vmem:[#allocation58_spill] sm:$0xff] }
 0x623   : > { %v11342_v37 = vadd.f32 %v11334_v63, %v11219_v3  ;;  %v11451_v1 = vmul.f32 %v18287_v35, %v24995_v8  ;;  %v11411_v15 = vpop.f32.mrb[121].mxu1 }
 0x624   : > { %v11341_v42 = vadd.f32 %v11333_v16, %v11218_v57  ;;  %v11450_v59 = vmul.f32 %v11411_v15, %v24996_v45  ;;  %v25495_v16 = vld [vmem:[#allocation19_spill] sm:$0xff]  ;;  %v23876_v15 = vpop.f32.mrb[192].mxu0 }
 0x625   : > { %v11459_v19 = vadd.f32 %v11451_v1, %v11336_v27  ;;  %v25496_v27 = vld [vmem:[#allocation69_spill] sm:$0xff]  ;;  %25497 = vst [vmem:[#allocation126_spill] sm:$0xff] %v23876_v15 }
 0x626   : > { %v11458_v21 = vadd.f32 %v11450_v59, %v11335_v56  ;;  %v18290_v22 = vpop.f32.mrb[122].mxu1 }
 0x627   : > { %15472 = vst [vmem:[%s21482_s26 + $0x208] sm:$0xff] %v11459_v19  ;;  %v11453_v4 = vmul.f32 %v18290_v22, %v25493_v12  ;;  %v11421_v6 = vpop.f32.mrb[123].mxu1 }
 0x628   : > { %15471 = vst [vmem:[%s21482_s26 + $0x200] sm:$0xff] %v11458_v21  ;;  %v11452_v43 = vmul.f32 %v11421_v6, %v25494_v0  ;;  %v23878_v21 = vpop.f32.mrb[193].mxu0 }
 0x629   : > { %v11461_v63 = vadd.f32 %v11453_v4, %v11338_v54  ;;  %25498 = vst [vmem:[#allocation49_spill] sm:$0xff] %v23878_v21  ;;  %v25499_v54 = vld [vmem:[#allocation118_spill] sm:$0xff]  ;;  %v23882_v22 = vpop.f32.mrb[194].mxu0  ;;  %v25501_v4 = vld [vmem:[#allocation119_spill] sm:$0xff] }
 0x62a   : > { %v11460_v3 = vadd.f32 %v11452_v43, %v11337_v18  ;;  %v18293_v35 = vpop.f32.mrb[124].mxu1  ;;  %25500 = vst [vmem:[#allocation17_spill] sm:$0xff] %v23882_v22  ;;  %v25508_v22 = vld [vmem:[#allocation90_spill] sm:$0xff] }
 0x62b   : > { %15474 = vst [vmem:[%s21482_s26 + $0x218] sm:$0xff] %v11461_v63  ;;  %v11455_v57 = vmul.f32 %v18293_v35, %v25495_v16  ;;  %v11431_v47 = vpop.f32.mrb[125].mxu1  ;;  %v23886_v63 = vpop.f32.mrb[195].mxu0 }
 0x62c   : > { %15473 = vst [vmem:[%s21482_s26 + $0x210] sm:$0xff] %v11460_v3  ;;  %v11454_v56 = vmul.f32 %v11431_v47, %v25496_v27  ;;  %25502 = vst [vmem:[#allocation162_spill] sm:$0xff] %v23886_v63  ;;  %v23888_v47 = vpop.f32.mrb[196].mxu0  ;;  %v25514_v63 = vld [vmem:[#allocation92_spill] sm:$0xff] }
 0x62d   : > { %v11463_v1 = vadd.f32 %v11455_v57, %v11340_v17  ;;  %25503 = vst [vmem:[#allocation54_spill] sm:$0xff] %v23888_v47  ;;  %v23890_v35 = vpop.f32.mrb[197].mxu0  ;;  %v25505_v57 = vld [vmem:[#allocation70_spill] sm:$0xff] }
 0x62e   : > { %v11462_v59 = vadd.f32 %v11454_v56, %v11339_v48  ;;  %v18296_v19 = vpop.f32.mrb[126].mxu1  ;;  %25504 = vst [vmem:[#allocation163_spill] sm:$0xff] %v23890_v35  ;;  %v25506_v56 = vld [vmem:[#allocation134_spill] sm:$0xff]  ;;  %v25515_v35 = vld [vmem:[#allocation137_spill] sm:$0xff] }
 0x62f   : > { %15476 = vst [vmem:[%s21482_s26 + $0x228] sm:$0xff] %v11463_v1  ;;  %v11457_v18 = vmul.f32 %v18296_v19, %v25499_v54  ;;  %v11441_v6 = vpop.f32.mrb[127].mxu1  ;;  %v11583_v1 = vmul.f32 %v25506_v56, %v25505_v57  ;;  %v25507_v19 = vld [vmem:[#allocation78_spill] sm:$0xff] }
 0x630   : > { %15475 = vst [vmem:[%s21482_s26 + $0x220] sm:$0xff] %v11462_v59  ;;  %v11456_v43 = vmul.f32 %v11441_v6, %v25501_v4  ;;  %v25509_v59 = vld [vmem:[#allocation143_spill] sm:$0xff]  ;;  %v23898_v6 = vpop.f32.mrb[198].mxu0 }
 0x631   : > { %v11465_v17 = vadd.f32 %v11457_v18, %v11342_v37  ;;  %v11821_v10 = vmul.f32 %v25509_v59, %v25508_v22  ;;  %25510 = vst [vmem:[#allocation91_spill] sm:$0xff] %v23898_v6  ;;  %v25511_v37 = vld [vmem:[#allocation71_spill] sm:$0xff]  ;;  %v23906_v46 = vpop.f32.mrb[199].mxu0  ;;  %v25519_v59 = vld [vmem:[#allocation72_spill] sm:$0xff]  ;;  %v25520_v6 = vld [vmem:[#allocation22_spill] sm:$0xff] }
 0x632   : > { %v11464_v3 = vadd.f32 %v11456_v43, %v11341_v42  ;;  %v18319_v48 = vpop.f32.mrb[128].mxu1  ;;  %v25512_v18 = vld [vmem:[#allocation63_spill] sm:$0xff]  ;;  %v25513_v42 = vld [vmem:[#allocation81_spill] sm:$0xff]  ;;  %25516 = vst [vmem:[#allocation24_spill] sm:$0xff] %v23906_v46  ;;  %v23908_v20 = vpop.f32.mrb[200].mxu0 }
 0x633   : > { %15478 = vst [vmem:[%s21482_s26 + $0x238] sm:$0xff] %v11465_v17  ;;  %v11698_v21 = vmul.f32 %v18319_v48, %v25507_v19  ;;  %v11658_v15 = vpop.f32.mrb[129].mxu1  ;;  %v11582_v47 = vmul.f32 %v25512_v18, %v25511_v37  ;;  %v11820_v17 = vmul.f32 %v25515_v35, %v25514_v63  ;;  %25517 = vst [vmem:[#allocation122_spill] sm:$0xff] %v23908_v20  ;;  %v23910_v5 = vpop.f32.mrb[201].mxu0  ;;  %v25524_v35 = vld [vmem:[#allocation73_spill] sm:$0xff]  ;;  %v25525_v63 = vld [vmem:[#allocation87_spill] sm:$0xff] }
 0x634   : > { %15477 = vst [vmem:[%s21482_s26 + $0x230] sm:$0xff] %v11464_v3  ;;  %v11697_v43 = vmul.f32 %v11658_v15, %v25513_v42  ;;  %25518 = vst [vmem:[#allocation164_spill] sm:$0xff] %v23910_v5  ;;  %v11585_v3 = vmul.f32 %v25520_v6, %v25519_v59  ;;  %v25522_v15 = vld [vmem:[#allocation93_spill] sm:$0xff]  ;;  %v25523_v42 = vld [vmem:[#allocation31_spill] sm:$0xff]  ;;  %v11584_v46 = vmul.f32 %v25525_v63, %v25524_v35  ;;  %v23922_v57 = vpop.f32.mrb[202].mxu0 }
 0x635   : > { %v11706_v56 = vadd.f32 %v11698_v21, %v11583_v1  ;;  %v11823_v22 = vmul.f32 %v25523_v42, %v25522_v15  ;;  %v25526_v21 = vld [vmem:[#allocation83_spill] sm:$0xff]  ;;  %25529 = vst [vmem:[#allocation127_spill] sm:$0xff] %v23922_v57  ;;  %v25533_v35 = vld [vmem:[#allocation96_spill] sm:$0xff] }
 0x636   : > { %v11705_v48 = vadd.f32 %v11697_v43, %v11582_v47  ;;  %v18322_v60 = vpop.f32.mrb[130].mxu1  ;;  %v25527_v47 = vld [vmem:[#allocation95_spill] sm:$0xff]  ;;  %v25528_v43 = vld [vmem:[#allocation144_spill] sm:$0xff] }
 0x637   : > { %v11700_v7 = vmul.f32 %v18322_v60, %v25521_v23  ;;  %v11829_v18 = vadd.f32 %v11821_v10, %v11706_v56  ;;  %v11668_v37 = vpop.f32.mrb[131].mxu1  ;;  %v11822_v19 = vmul.f32 %v25528_v43, %v25527_v47  ;;  %v23924_v60 = vpop.f32.mrb[203].mxu0  ;;  %v25531_v10 = vld [vmem:[#allocation74_spill] sm:$0xff]  ;;  %v25532_v56 = vld [vmem:[#allocation135_spill] sm:$0xff] }
 0x638   : > { %v11699_v1 = vmul.f32 %v11668_v37, %v25526_v21  ;;  %v11828_v20 = vadd.f32 %v11820_v17, %v11705_v48  ;;  %25530 = vst [vmem:[#allocation67_spill] sm:$0xff] %v23924_v60  ;;  %v11587_v23 = vmul.f32 %v25532_v56, %v25531_v10  ;;  %v25534_v37 = vld [vmem:[#allocation138_spill] sm:$0xff]  ;;  %v25535_v48 = vld [vmem:[#allocation75_spill] sm:$0xff]  ;;  %v23936_v57 = vpop.f32.mrb[204].mxu0 }
 0x639   : > { %v11708_v5 = vadd.f32 %v11700_v7, %v11585_v3  ;;  %v11825_v17 = vmul.f32 %v25534_v37, %v25533_v35  ;;  %v25536_v21 = vld [vmem:[#allocation39_spill] sm:$0xff]  ;;  %25538 = vst [vmem:[#allocation37_spill] sm:$0xff] %v23936_v57  ;;  %v25542_v37 = vld [vmem:[#allocation88_spill] sm:$0xff] }
 0x63a   : > { %v11707_v6 = vadd.f32 %v11699_v1, %v11584_v46  ;;  %v18325_v59 = vpop.f32.mrb[132].mxu1  ;;  %v11586_v43 = vmul.f32 %v25536_v21, %v25535_v48  ;;  %v25537_v46 = vld [vmem:[#allocation57_spill] sm:$0xff]  ;;  %v25543_v48 = vld [vmem:[#allocation99_spill] sm:$0xff] }
 0x63b   : > { %v11702_v42 = vmul.f32 %v18325_v59, %v25436_v52  ;;  %v11831_v15 = vadd.f32 %v11823_v22, %v11708_v5  ;;  %v11678_v63 = vpop.f32.mrb[133].mxu1  ;;  %v11824_v1 = vmul.f32 %v25537_v46, %v25137_v24  ;;  %v23938_v59 = vpop.f32.mrb[205].mxu0  ;;  %v25540_v5 = vld [vmem:[#allocation77_spill] sm:$0xff]  ;;  %v25541_v22 = vld [vmem:[#allocation116_spill] sm:$0xff] }
 0x63c   : > { %v11701_v7 = vmul.f32 %v11678_v63, %v25136_v61  ;;  %v11830_v3 = vadd.f32 %v11822_v19, %v11707_v6  ;;  %25539 = vst [vmem:[#allocation120_spill] sm:$0xff] %v23938_v59  ;;  %v11589_v52 = vmul.f32 %v25541_v22, %v25540_v5  ;;  %v25544_v63 = vld [vmem:[#allocation139_spill] sm:$0xff]  ;;  %v23950_v4 = vpop.f32.mrb[206].mxu0 }
 0x63d   : > { %v11710_v60 = vadd.f32 %v11702_v42, %v11587_v23  ;;  %v11827_v19 = vmul.f32 %v25544_v63, %v25543_v48  ;;  %v25545_v6 = vld [vmem:[#allocation79_spill] sm:$0xff]  ;;  %v25547_v23 = vld [vmem:[#allocation89_spill] sm:$0xff]  ;;  %25550 = vst [vmem:[#allocation51_spill] sm:$0xff] %v23950_v4 }
 0x63e   : > { %v11709_v56 = vadd.f32 %v11701_v7, %v11586_v43  ;;  %v18328_v10 = vpop.f32.mrb[134].mxu1  ;;  %v25546_v61 = vld [vmem:[#allocation35_spill] sm:$0xff]  ;;  %v25548_v43 = vld [vmem:[#allocation100_spill] sm:$0xff]  ;;  %v25549_v7 = vld [vmem:[#allocation145_spill] sm:$0xff] }
 0x63f   : > { %v11704_v35 = vmul.f32 %v18328_v10, %v25542_v37  ;;  %v11833_v47 = vadd.f32 %v11825_v17, %v11710_v60  ;;  %v11688_v21 = vpop.f32.mrb[135].mxu1  ;;  %v11588_v46 = vmul.f32 %v25546_v61, %v25545_v6  ;;  %v11826_v24 = vmul.f32 %v25549_v7, %v25548_v43  ;;  %v23952_v10 = vpop.f32.mrb[207].mxu0  ;;  %v25552_v17 = vld [vmem:[#allocation101_spill] sm:$0xff] }
 0x640   : > { %v11703_v42 = vmul.f32 %v11688_v21, %v25547_v23  ;;  %v11832_v57 = vadd.f32 %v11824_v1, %v11709_v56  ;;  %25551 = vst [vmem:[#allocation125_spill] sm:$0xff] %v23952_v10  ;;  %v25553_v48 = vld [vmem:[#allocation53_spill] sm:$0xff]  ;;  %v25555_v21 = vld [vmem:[#allocation56_spill] sm:$0xff] }
 0x641   : > { %v11712_v59 = vadd.f32 %v11704_v35, %v11589_v52  ;;  %v12067_v61 = vmul.f32 %v25553_v48, %v25050_v34  ;;  %v25554_v56 = vld [vmem:[#allocation109_spill] sm:$0xff]  ;;  %v23960_v35 = vpop.f32.mrb[208].mxu0 }
 0x642   : > { %v11711_v22 = vadd.f32 %v11703_v42, %v11588_v46  ;;  %v18351_v5 = vpop.f32.mrb[136].mxu1  ;;  %v12066_v7 = vmul.f32 %v25555_v21, %v25554_v56  ;;  %25556 = vst [vmem:[#allocation129_spill] sm:$0xff] %v23960_v35  ;;  %v23962_v4 = vpop.f32.mrb[209].mxu0 }
 0x643   : > { %v11835_v60 = vadd.f32 %v11827_v19, %v11712_v59  ;;  %v11944_v37 = vmul.f32 %v18351_v5, %v25552_v17  ;;  %v11904_v63 = vpop.f32.mrb[137].mxu1  ;;  %25557 = vst [vmem:[#allocation25_spill] sm:$0xff] %v23962_v4  ;;  %v25558_v19 = vld [vmem:[#allocation103_spill] sm:$0xff]  ;;  %v25559_v17 = vld [vmem:[#allocation140_spill] sm:$0xff] }
 0x644   : > { %v11834_v6 = vadd.f32 %v11826_v24, %v11711_v22  ;;  %v11943_v1 = vmul.f32 %v11904_v63, %v25455_v40  ;;  %v12069_v48 = vmul.f32 %v25559_v17, %v24863_v28  ;;  %v25560_v63 = vld [vmem:[#allocation110_spill] sm:$0xff]  ;;  %v25561_v40 = vld [vmem:[#allocation48_spill] sm:$0xff] }
 0x645   : > { %v11952_v52 = vadd.f32 %v11944_v37, %v11829_v18  ;;  %v12068_v21 = vmul.f32 %v25561_v40, %v25560_v63  ;;  %v23970_v37 = vpop.f32.mrb[210].mxu0 }
 0x646   : > { %v11951_v46 = vadd.f32 %v11943_v1, %v11828_v20  ;;  %v18354_v42 = vpop.f32.mrb[138].mxu1  ;;  %25562 = vst [vmem:[#allocation130_spill] sm:$0xff] %v23970_v37  ;;  %v23972_v35 = vpop.f32.mrb[211].mxu0 }
 0x647   : > { %v12075_v59 = vadd.f32 %v12067_v61, %v11952_v52  ;;  %v11946_v5 = vmul.f32 %v18354_v42, %v25558_v19  ;;  %v11914_v10 = vpop.f32.mrb[139].mxu1  ;;  %25563 = vst [vmem:[#allocation42_spill] sm:$0xff] %v23972_v35  ;;  %v25564_v52 = vld [vmem:[#allocation105_spill] sm:$0xff]  ;;  %v25565_v19 = vld [vmem:[#allocation80_spill] sm:$0xff] }
 0x648   : > { %v12074_v24 = vadd.f32 %v12066_v7, %v11951_v46  ;;  %v11945_v22 = vmul.f32 %v11914_v10, %v25359_v58  ;;  %v12071_v17 = vmul.f32 %v25565_v19, %v25365_v44  ;;  %v25566_v46 = vld [vmem:[#allocation146_spill] sm:$0xff]  ;;  %v25569_v35 = vld [vmem:[#allocation68_spill] sm:$0xff] }
 0x649   : > { %v11954_v18 = vadd.f32 %v11946_v5, %v11831_v15  ;;  %v12070_v40 = vmul.f32 %v25566_v46, %v25469_v32  ;;  %v23980_v5 = vpop.f32.mrb[212].mxu0  ;;  %v12073_v19 = vmul.f32 %v25569_v35, %v25373_v53 }
 0x64a   : > { %v11953_v20 = vadd.f32 %v11945_v22, %v11830_v3  ;;  %v18357_v1 = vpop.f32.mrb[140].mxu1  ;;  %25567 = vst [vmem:[#allocation28_spill] sm:$0xff] %v23980_v5  ;;  %v23982_v37 = vpop.f32.mrb[213].mxu0 }
 0x64b   : > { %v12077_v61 = vadd.f32 %v12069_v48, %v11954_v18  ;;  %v11948_v42 = vmul.f32 %v18357_v1, %v25564_v52  ;;  %v11924_v4 = vpop.f32.mrb[141].mxu1  ;;  %25568 = vst [vmem:[#allocation30_spill] sm:$0xff] %v23982_v37  ;;  %v25573_v37 = vld [vmem:[#allocation141_spill] sm:$0xff] }
 0x64c   : > { %v12076_v7 = vadd.f32 %v12068_v21, %v11953_v20  ;;  %v11947_v10 = vmul.f32 %v11924_v4, %v25468_v49  ;;  %v25570_v20 = vld [vmem:[#allocation23_spill] sm:$0xff]  ;;  %v12313_v35 = vmul.f32 %v25573_v37, %v25277_v36 }
 0x64d   : > { %v11956_v15 = vadd.f32 %v11948_v42, %v11833_v47  ;;  %v12072_v46 = vmul.f32 %v25570_v20, %v25376_v25  ;;  %v23990_v42 = vpop.f32.mrb[214].mxu0 }
 0x64e   : > { %v11955_v3 = vadd.f32 %v11947_v10, %v11832_v57  ;;  %v18360_v22 = vpop.f32.mrb[142].mxu1  ;;  %25571 = vst [vmem:[#allocation131_spill] sm:$0xff] %v23990_v42  ;;  %v23992_v5 = vpop.f32.mrb[215].mxu0 }
 0x64f   : > { %v12079_v48 = vadd.f32 %v12071_v17, %v11956_v15  ;;  %v11950_v18 = vmul.f32 %v18360_v22, %v25372_v55  ;;  %v11934_v1 = vpop.f32.mrb[143].mxu1  ;;  %25572 = vst [vmem:[#allocation123_spill] sm:$0xff] %v23992_v5  ;;  %v25577_v5 = vld [vmem:[#allocation142_spill] sm:$0xff] }
 0x650   : > { %v12078_v21 = vadd.f32 %v12070_v40, %v11955_v3  ;;  %v11949_v4 = vmul.f32 %v11934_v1, %v25375_v62  ;;  %v25574_v1 = vld [vmem:[#allocation34_spill] sm:$0xff]  ;;  %v12315_v37 = vmul.f32 %v25577_v5, %v21304_v29 }
 0x651   : > { %v11958_v47 = vadd.f32 %v11950_v18, %v11835_v60  ;;  %v12312_v20 = vmul.f32 %v25574_v1, %v25280_v38  ;;  %v24000_v18 = vpop.f32.mrb[216].mxu0 }
 0x652   : > { %v11957_v57 = vadd.f32 %v11949_v4, %v11834_v6  ;;  %v18383_v10 = vpop.f32.mrb[144].mxu1  ;;  %25575 = vst [vmem:[#allocation47_spill] sm:$0xff] %v24000_v18  ;;  %v24002_v42 = vpop.f32.mrb[217].mxu0 }
 0x653   : > { %v12081_v17 = vadd.f32 %v12073_v19, %v11958_v47  ;;  %v12190_v15 = vmul.f32 %v18383_v10, %v25381_v30  ;;  %v12150_v22 = vpop.f32.mrb[145].mxu1  ;;  %25576 = vst [vmem:[#allocation128_spill] sm:$0xff] %v24002_v42  ;;  %v25581_v42 = vld [vmem:[#allocation147_spill] sm:$0xff] }
 0x654   : > { %v12080_v40 = vadd.f32 %v12072_v46, %v11957_v57  ;;  %v12189_v3 = vmul.f32 %v12150_v22, %v25279_v39  ;;  %v25578_v22 = vld [vmem:[#allocation27_spill] sm:$0xff]  ;;  %v12317_v5 = vmul.f32 %v25581_v42, %v21324_v9 }
 0x655   : > { %v12198_v60 = vadd.f32 %v12190_v15, %v12075_v59  ;;  %v12314_v1 = vmul.f32 %v25578_v22, %v25183_v2  ;;  %v24010_v15 = vpop.f32.mrb[218].mxu0 }
 0x656   : > { %v12197_v6 = vadd.f32 %v12189_v3, %v12074_v24  ;;  %v18386_v4 = vpop.f32.mrb[146].mxu1  ;;  %25579 = vst [vmem:[#allocation124_spill] sm:$0xff] %v24010_v15  ;;  %v24012_v18 = vpop.f32.mrb[219].mxu0 }
 0x657   : > { %v12321_v19 = vadd.f32 %v12313_v35, %v12198_v60  ;;  %v12192_v47 = vmul.f32 %v18386_v4, %v25284_v11  ;;  %v12160_v10 = vpop.f32.mrb[147].mxu1  ;;  %25580 = vst [vmem:[#allocation132_spill] sm:$0xff] %v24012_v18  ;;  %v25585_v18 = vld [vmem:[#allocation76_spill] sm:$0xff] }
 0x658   : > { %v12320_v46 = vadd.f32 %v12312_v20, %v12197_v6  ;;  %v12191_v57 = vmul.f32 %v12160_v10, %v24789_v13  ;;  %v25582_v10 = vld [vmem:[#allocation29_spill] sm:$0xff]  ;;  %v12319_v42 = vmul.f32 %v25585_v18, %v24988_v14 }
 0x659   : > { %v12200_v59 = vadd.f32 %v12192_v47, %v12077_v61  ;;  %v12316_v22 = vmul.f32 %v25582_v10, %v25087_v50  ;;  %v24020_v47 = vpop.f32.mrb[220].mxu0 }
 0x65a   : > { %v12199_v24 = vadd.f32 %v12191_v57, %v12076_v7  ;;  %v18389_v3 = vpop.f32.mrb[148].mxu1  ;;  %25583 = vst [vmem:[#allocation21_spill] sm:$0xff] %v24020_v47  ;;  %v24022_v15 = vpop.f32.mrb[221].mxu0 }
 0x65b   : > { %v12323_v35 = vadd.f32 %v12315_v37, %v12200_v59  ;;  %v12194_v60 = vmul.f32 %v18389_v3, %v25187_v31  ;;  %v12170_v4 = vpop.f32.mrb[149].mxu1  ;;  %25584 = vst [vmem:[#allocation60_spill] sm:$0xff] %v24022_v15 }
 0x65c   : > { %v12322_v20 = vadd.f32 %v12314_v1, %v12199_v24  ;;  %v12193_v6 = vmul.f32 %v12170_v4, %v25086_v26  ;;  %v25586_v4 = vld [vmem:[#allocation148_spill] sm:$0xff] }
 0x65d   : > { %v12202_v61 = vadd.f32 %v12194_v60, %v12079_v48  ;;  %v12318_v48 = vmul.f32 %v25586_v4, %v24896_v41 }
 0x65e   : > { %v12201_v7 = vadd.f32 %v12193_v6, %v12078_v21  ;;  %v18392_v57 = vpop.f32.mrb[150].mxu1  ;;  %v24030_v21 = vpop.f32.mrb[222].mxu0 }
 0x65f   : > { %v12325_v37 = vadd.f32 %v12317_v5, %v12202_v61  ;;  %v12196_v59 = vmul.f32 %v18392_v57, %v24987_v51  ;;  %v12180_v3 = vpop.f32.mrb[151].mxu1  ;;  %25587 = vst [vmem:[#allocation18_spill] sm:$0xff] %v24030_v21  ;;  %v24032_v5 = vpop.f32.mrb[223].mxu0 }
 0x660   : > { %v12324_v1 = vadd.f32 %v12316_v22, %v12201_v7  ;;  %v12195_v24 = vmul.f32 %v12180_v3, %v24990_v33  ;;  %25588 = vst [vmem:[#allocation38_spill] sm:$0xff] %v24032_v5  ;;  %v25600_v5 = vld [vmem:[#allocation72_spill] sm:$0xff] }
 0x661   : > { %v12204_v60 = vadd.f32 %v12196_v59, %v12081_v17 }
 0x662   : > { %v12203_v6 = vadd.f32 %v12195_v24, %v12080_v40  ;;  %v18415_v10 = vpop.f32.mrb[152].mxu1 }
 0x663   : > { %v12327_v61 = vadd.f32 %v12319_v42, %v12204_v60  ;;  %v12436_v57 = vmul.f32 %v18415_v10, %v24995_v8  ;;  %v12396_v18 = vpop.f32.mrb[153].mxu1 }
 0x664   : > { %v12326_v22 = vadd.f32 %v12318_v48, %v12203_v6  ;;  %v12435_v7 = vmul.f32 %v12396_v18, %v24996_v45 }
 0x665   : > { %v12444_v3 = vadd.f32 %v12436_v57, %v12321_v19 }
 0x666   : > { %v12443_v15 = vadd.f32 %v12435_v7, %v12320_v46  ;;  %v18418_v4 = vpop.f32.mrb[154].mxu1 }
 0x667   : > { %15544 = vst [vmem:[%s21482_s26 + $0x248] sm:$0xff] %v12444_v3  ;;  %v12438_v17 = vmul.f32 %v18418_v4, %v25493_v12  ;;  %v12406_v40 = vpop.f32.mrb[155].mxu1 }
 0x668   : > { %15543 = vst [vmem:[%s21482_s26 + $0x240] sm:$0xff] %v12443_v15  ;;  %v12437_v59 = vmul.f32 %v12406_v40, %v25494_v0  ;;  %v25591_v40 = vld [vmem:[#allocation66_spill] sm:$0xff] }
 0x669   : > { %v12446_v42 = vadd.f32 %v12438_v17, %v12323_v35  ;;  %v25589_v35 = vld [vmem:[#allocation119_spill] sm:$0xff]  ;;  %v25590_v17 = vld [vmem:[#allocation70_spill] sm:$0xff] }
 0x66a   : > { %v12445_v24 = vadd.f32 %v12437_v59, %v12322_v20  ;;  %v18421_v60 = vpop.f32.mrb[156].mxu1  ;;  %v12568_v59 = vmul.f32 %v25591_v40, %v25590_v17  ;;  %v25601_v40 = vld [vmem:[#allocation149_spill] sm:$0xff] }
 0x66b   : > { %15546 = vst [vmem:[%s21482_s26 + $0x258] sm:$0xff] %v12446_v42  ;;  %v12440_v48 = vmul.f32 %v18421_v60, %v25495_v16  ;;  %v12416_v6 = vpop.f32.mrb[157].mxu1  ;;  %v25592_v42 = vld [vmem:[#allocation78_spill] sm:$0xff]  ;;  %v12570_v21 = vmul.f32 %v25601_v40, %v25600_v5 }
 0x66c   : > { %15545 = vst [vmem:[%s21482_s26 + $0x250] sm:$0xff] %v12445_v24  ;;  %v12439_v19 = vmul.f32 %v12416_v6, %v25496_v27  ;;  %v25593_v60 = vld [vmem:[#allocation90_spill] sm:$0xff]  ;;  %v25595_v6 = vld [vmem:[#allocation71_spill] sm:$0xff] }
 0x66d   : > { %v12448_v46 = vadd.f32 %v12440_v48, %v12325_v37  ;;  %v25610_v40 = vld [vmem:[#allocation74_spill] sm:$0xff] }
 0x66e   : > { %v12447_v10 = vadd.f32 %v12439_v19, %v12324_v1  ;;  %v18424_v57 = vpop.f32.mrb[158].mxu1  ;;  %v25594_v1 = vld [vmem:[#allocation98_spill] sm:$0xff]  ;;  %v25596_v19 = vld [vmem:[#allocation59_spill] sm:$0xff] }
 0x66f   : > { %15548 = vst [vmem:[%s21482_s26 + $0x268] sm:$0xff] %v12448_v46  ;;  %v12442_v15 = vmul.f32 %v18424_v57, %v25499_v54  ;;  %v12426_v18 = vpop.f32.mrb[159].mxu1  ;;  %v12806_v48 = vmul.f32 %v25594_v1, %v25593_v60  ;;  %v12567_v46 = vmul.f32 %v25596_v19, %v25595_v6  ;;  %v25603_v1 = vld [vmem:[#allocation93_spill] sm:$0xff]  ;;  %v25606_v19 = vld [vmem:[#allocation154_spill] sm:$0xff] }
 0x670   : > { %15547 = vst [vmem:[%s21482_s26 + $0x260] sm:$0xff] %v12447_v10  ;;  %v12441_v20 = vmul.f32 %v12426_v18, %v25589_v35  ;;  %v25597_v10 = vld [vmem:[#allocation81_spill] sm:$0xff]  ;;  %v25598_v18 = vld [vmem:[#allocation92_spill] sm:$0xff]  ;;  %v25611_v5 = vld [vmem:[#allocation150_spill] sm:$0xff] }
 0x671   : > { %v12450_v7 = vadd.f32 %v12442_v15, %v12327_v61  ;;  %v25599_v61 = vld [vmem:[#allocation157_spill] sm:$0xff] }
 0x672   : > { %v12449_v3 = vadd.f32 %v12441_v20, %v12326_v22  ;;  %v18447_v4 = vpop.f32.mrb[160].mxu1  ;;  %v12805_v22 = vmul.f32 %v25599_v61, %v25598_v18  ;;  %v25605_v35 = vld [vmem:[#allocation73_spill] sm:$0xff]  ;;  %v25608_v61 = vld [vmem:[#allocation95_spill] sm:$0xff] }
 0x673   : > { %15550 = vst [vmem:[%s21482_s26 + $0x278] sm:$0xff] %v12450_v7  ;;  %v12683_v24 = vmul.f32 %v18447_v4, %v25592_v42  ;;  %v12643_v37 = vpop.f32.mrb[161].mxu1  ;;  %v25602_v4 = vld [vmem:[#allocation82_spill] sm:$0xff]  ;;  %v12569_v6 = vmul.f32 %v25606_v19, %v25605_v35  ;;  %v25615_v19 = vld [vmem:[#allocation75_spill] sm:$0xff] }
 0x674   : > { %15549 = vst [vmem:[%s21482_s26 + $0x270] sm:$0xff] %v12449_v3  ;;  %v12682_v57 = vmul.f32 %v12643_v37, %v25597_v10  ;;  %v25604_v3 = vld [vmem:[#allocation152_spill] sm:$0xff]  ;;  %v25607_v37 = vld [vmem:[#allocation83_spill] sm:$0xff] }
 0x675   : > { %v12691_v15 = vadd.f32 %v12683_v24, %v12568_v59  ;;  %v12808_v60 = vmul.f32 %v25604_v3, %v25603_v1  ;;  %v25609_v59 = vld [vmem:[#allocation158_spill] sm:$0xff]  ;;  %v25613_v3 = vld [vmem:[#allocation96_spill] sm:$0xff]  ;;  %v25616_v35 = vld [vmem:[#allocation155_spill] sm:$0xff] }
 0x676   : > { %v12690_v20 = vadd.f32 %v12682_v57, %v12567_v46  ;;  %v18450_v7 = vpop.f32.mrb[162].mxu1  ;;  %v12807_v24 = vmul.f32 %v25609_v59, %v25608_v61  ;;  %v25614_v1 = vld [vmem:[#allocation44_spill] sm:$0xff]  ;;  %v25618_v59 = vld [vmem:[#allocation97_spill] sm:$0xff] }
 0x677   : > { %v12685_v47 = vmul.f32 %v18450_v7, %v25602_v4  ;;  %v12814_v42 = vadd.f32 %v12806_v48, %v12691_v15  ;;  %v12653_v17 = vpop.f32.mrb[163].mxu1  ;;  %v12572_v7 = vmul.f32 %v25611_v5, %v25610_v40  ;;  %v25612_v48 = vld [vmem:[#allocation85_spill] sm:$0xff]  ;;  %v12810_v16 = vmul.f32 %v25614_v1, %v25613_v3  ;;  %v25621_v40 = vld [vmem:[#allocation151_spill] sm:$0xff] }
 0x678   : > { %v12684_v10 = vmul.f32 %v12653_v17, %v25607_v37  ;;  %v12813_v54 = vadd.f32 %v12805_v22, %v12690_v20  ;;  %v12571_v17 = vmul.f32 %v25616_v35, %v25615_v19  ;;  %v25617_v22 = vld [vmem:[#allocation86_spill] sm:$0xff]  ;;  %v25620_v5 = vld [vmem:[#allocation77_spill] sm:$0xff]  ;;  %v25623_v1 = vld [vmem:[#allocation99_spill] sm:$0xff] }
 0x679   : > { %v12693_v46 = vadd.f32 %v12685_v47, %v12570_v21  ;;  %v25619_v47 = vld [vmem:[#allocation115_spill] sm:$0xff]  ;;  %v25624_v3 = vld [vmem:[#allocation153_spill] sm:$0xff]  ;;  %v25626_v19 = vld [vmem:[#allocation156_spill] sm:$0xff] }
 0x67a   : > { %v12692_v57 = vadd.f32 %v12684_v10, %v12569_v6  ;;  %v18453_v18 = vpop.f32.mrb[164].mxu1  ;;  %v12809_v21 = vmul.f32 %v25619_v47, %v25618_v59  ;;  %v12812_v12 = vmul.f32 %v25624_v3, %v25623_v1  ;;  %v25625_v35 = vld [vmem:[#allocation79_spill] sm:$0xff]  ;;  %v25630_v1 = vld [vmem:[#allocation102_spill] sm:$0xff] }
 0x67b   : > { %v12687_v15 = vmul.f32 %v18453_v18, %v25612_v48  ;;  %v12816_v4 = vadd.f32 %v12808_v60, %v12693_v46  ;;  %v12663_v27 = vpop.f32.mrb[165].mxu1  ;;  %v12574_v18 = vmul.f32 %v25621_v40, %v25620_v5  ;;  %v25622_v60 = vld [vmem:[#allocation88_spill] sm:$0xff]  ;;  %v25628_v5 = vld [vmem:[#allocation101_spill] sm:$0xff] }
 0x67c   : > { %v12686_v20 = vmul.f32 %v12663_v27, %v25617_v22  ;;  %v12815_v37 = vadd.f32 %v12807_v24, %v12692_v57  ;;  %v12573_v27 = vmul.f32 %v25626_v19, %v25625_v35  ;;  %v25631_v19 = vld [vmem:[#allocation159_spill] sm:$0xff] }
 0x67d   : > { %v12695_v6 = vadd.f32 %v12687_v15, %v12572_v7  ;;  %v25627_v7 = vld [vmem:[#allocation46_spill] sm:$0xff] }
 0x67e   : > { %v12694_v10 = vadd.f32 %v12686_v20, %v12571_v17  ;;  %v18456_v61 = vpop.f32.mrb[166].mxu1  ;;  %v12811_v15 = vmul.f32 %v25627_v7, %v25548_v43 }
 0x67f   : > { %v12689_v46 = vmul.f32 %v18456_v61, %v25622_v60  ;;  %v12818_v48 = vadd.f32 %v12810_v16, %v12695_v6  ;;  %v12673_v0 = vpop.f32.mrb[167].mxu1  ;;  %v25629_v6 = vld [vmem:[#allocation33_spill] sm:$0xff] }
 0x680   : > { %v12688_v24 = vmul.f32 %v12673_v0, %v25547_v23  ;;  %v12817_v57 = vadd.f32 %v12809_v21, %v12694_v10  ;;  %v13052_v60 = vmul.f32 %v25629_v6, %v25050_v34  ;;  %v13051_v0 = vmul.f32 %v25631_v19, %v25554_v56 }
 0x681   : > { %v12697_v17 = vadd.f32 %v12689_v46, %v12574_v18  ;;  %v25632_v18 = vld [vmem:[#allocation103_spill] sm:$0xff] }
 0x682   : > { %v12696_v20 = vadd.f32 %v12688_v24, %v12573_v27  ;;  %v18479_v47 = vpop.f32.mrb[168].mxu1 }
 0x683   : > { %v12820_v40 = vadd.f32 %v12812_v12, %v12697_v17  ;;  %v12929_v61 = vmul.f32 %v18479_v47, %v25628_v5  ;;  %v12889_v16 = vpop.f32.mrb[169].mxu1  ;;  %v25633_v12 = vld [vmem:[#allocation32_spill] sm:$0xff] }
 0x684   : > { %v12819_v3 = vadd.f32 %v12811_v15, %v12696_v20  ;;  %v12928_v59 = vmul.f32 %v12889_v16, %v25630_v1  ;;  %v13054_v24 = vmul.f32 %v25633_v12, %v24863_v28  ;;  %v25634_v15 = vld [vmem:[#allocation40_spill] sm:$0xff] }
 0x685   : > { %v12937_v21 = vadd.f32 %v12929_v61, %v12814_v42  ;;  %v13053_v20 = vmul.f32 %v25634_v15, %v25560_v63 }
 0x686   : > { %v12936_v10 = vadd.f32 %v12928_v59, %v12813_v54  ;;  %v18482_v23 = vpop.f32.mrb[170].mxu1  ;;  %v25635_v59 = vld [vmem:[#allocation62_spill] sm:$0xff] }
 0x687   : > { %v13060_v7 = vadd.f32 %v13052_v60, %v12937_v21  ;;  %v12931_v46 = vmul.f32 %v18482_v23, %v25632_v18  ;;  %v12899_v27 = vpop.f32.mrb[171].mxu1  ;;  %v13056_v23 = vmul.f32 %v25635_v59, %v25365_v44 }
 0x688   : > { %v13059_v17 = vadd.f32 %v13051_v0, %v12936_v10  ;;  %v12930_v47 = vmul.f32 %v12899_v27, %v25359_v58  ;;  %v25636_v0 = vld [vmem:[#allocation64_spill] sm:$0xff] }
 0x689   : > { %v12939_v16 = vadd.f32 %v12931_v46, %v12816_v4  ;;  %v13055_v21 = vmul.f32 %v25636_v0, %v25469_v32  ;;  %v25637_v46 = vld [vmem:[#allocation104_spill] sm:$0xff] }
 0x68a   : > { %v12938_v6 = vadd.f32 %v12930_v47, %v12815_v37  ;;  %v18485_v1 = vpop.f32.mrb[172].mxu1 }
 0x68b   : > { %v13062_v19 = vadd.f32 %v13054_v24, %v12939_v16  ;;  %v12933_v54 = vmul.f32 %v18485_v1, %v25564_v52  ;;  %v12909_v42 = vpop.f32.mrb[173].mxu1  ;;  %v13058_v1 = vmul.f32 %v25637_v46, %v25373_v53 }
 0x68c   : > { %v13061_v60 = vadd.f32 %v13053_v20, %v12938_v6  ;;  %v12932_v61 = vmul.f32 %v12909_v42, %v25468_v49  ;;  %v25638_v20 = vld [vmem:[#allocation41_spill] sm:$0xff] }
 0x68d   : > { %v12941_v10 = vadd.f32 %v12933_v54, %v12818_v48  ;;  %v13057_v16 = vmul.f32 %v25638_v20, %v25376_v25  ;;  %v25639_v54 = vld [vmem:[#allocation111_spill] sm:$0xff] }
 0x68e   : > { %v12940_v27 = vadd.f32 %v12932_v61, %v12817_v57  ;;  %v18488_v12 = vpop.f32.mrb[174].mxu1 }
 0x68f   : > { %v13064_v15 = vadd.f32 %v13056_v23, %v12941_v10  ;;  %v12935_v4 = vmul.f32 %v18488_v12, %v25372_v55  ;;  %v12919_v37 = vpop.f32.mrb[175].mxu1  ;;  %v13298_v23 = vmul.f32 %v25639_v54, %v25277_v36 }
 0x690   : > { %v13063_v24 = vadd.f32 %v13055_v21, %v12940_v27  ;;  %v12934_v47 = vmul.f32 %v12919_v37, %v25375_v62  ;;  %v25640_v21 = vld [vmem:[#allocation160_spill] sm:$0xff] }
 0x691   : > { %v12943_v6 = vadd.f32 %v12935_v4, %v12820_v40  ;;  %v13297_v27 = vmul.f32 %v25640_v21, %v25280_v38  ;;  %v25641_v4 = vld [vmem:[#allocation121_spill] sm:$0xff] }
 0x692   : > { %v12942_v42 = vadd.f32 %v12934_v47, %v12819_v3  ;;  %v18511_v59 = vpop.f32.mrb[176].mxu1 }
 0x693   : > { %v13066_v0 = vadd.f32 %v13058_v1, %v12943_v6  ;;  %v13175_v48 = vmul.f32 %v18511_v59, %v25381_v30  ;;  %v13135_v57 = vpop.f32.mrb[177].mxu1  ;;  %v13300_v1 = vmul.f32 %v25641_v4, %v21304_v29 }
 0x694   : > { %v13065_v61 = vadd.f32 %v13057_v16, %v12942_v42  ;;  %v13174_v10 = vmul.f32 %v13135_v57, %v25279_v39  ;;  %v25642_v16 = vld [vmem:[#allocation107_spill] sm:$0xff] }
 0x695   : > { %v13183_v12 = vadd.f32 %v13175_v48, %v13060_v7  ;;  %v13299_v42 = vmul.f32 %v25642_v16, %v25183_v2  ;;  %v25643_v48 = vld [vmem:[#allocation113_spill] sm:$0xff] }
 0x696   : > { %v13182_v37 = vadd.f32 %v13174_v10, %v13059_v17  ;;  %v18514_v46 = vpop.f32.mrb[178].mxu1 }
 0x697   : > { %v13306_v20 = vadd.f32 %v13298_v23, %v13183_v12  ;;  %v13177_v40 = vmul.f32 %v18514_v46, %v25284_v11  ;;  %v13145_v3 = vpop.f32.mrb[179].mxu1  ;;  %v13302_v23 = vmul.f32 %v25643_v48, %v21324_v9 }
 0x698   : > { %v13305_v47 = vadd.f32 %v13297_v27, %v13182_v37  ;;  %v13176_v6 = vmul.f32 %v13145_v3, %v24789_v13  ;;  %v25644_v27 = vld [vmem:[#allocation161_spill] sm:$0xff] }
 0x699   : > { %v13185_v59 = vadd.f32 %v13177_v40, %v13062_v19  ;;  %v13301_v37 = vmul.f32 %v25644_v27, %v25087_v50  ;;  %v25645_v40 = vld [vmem:[#allocation108_spill] sm:$0xff] }
 0x69a   : > { %v13184_v57 = vadd.f32 %v13176_v6, %v13061_v60  ;;  %v18517_v54 = vpop.f32.mrb[180].mxu1 }
 0x69b   : > { %v13308_v21 = vadd.f32 %v13300_v1, %v13185_v59  ;;  %v13179_v7 = vmul.f32 %v18517_v54, %v25187_v31  ;;  %v13155_v17 = vpop.f32.mrb[181].mxu1  ;;  %v13304_v1 = vmul.f32 %v25645_v40, %v24988_v14 }
 0x69c   : > { %v13307_v10 = vadd.f32 %v13299_v42, %v13184_v57  ;;  %v13178_v12 = vmul.f32 %v13155_v17, %v25086_v26  ;;  %v25646_v42 = vld [vmem:[#allocation114_spill] sm:$0xff] }
 0x69d   : > { %v13187_v46 = vadd.f32 %v13179_v7, %v13064_v15  ;;  %v13303_v57 = vmul.f32 %v25646_v42, %v24896_v41 }
 0x69e   : > { %v13186_v3 = vadd.f32 %v13178_v12, %v13063_v24  ;;  %v18520_v4 = vpop.f32.mrb[182].mxu1 }
 0x69f   : > { %v13310_v16 = vadd.f32 %v13302_v23, %v13187_v46  ;;  %v13181_v19 = vmul.f32 %v18520_v4, %v24987_v51  ;;  %v13165_v60 = vpop.f32.mrb[183].mxu1 }
 0x6a0   : > { %v13309_v6 = vadd.f32 %v13301_v37, %v13186_v3  ;;  %v13180_v59 = vmul.f32 %v13165_v60, %v24990_v33  ;;  %v25647_v3 = vld [vmem:[#allocation84_spill] sm:$0xff] }
 0x6a1   : > { %v13189_v54 = vadd.f32 %v13181_v19, %v13066_v0  ;;  %v25648_v0 = vld [vmem:[#allocation58_spill] sm:$0xff] }
 0x6a2   : > { %v13188_v17 = vadd.f32 %v13180_v59, %v13065_v61  ;;  %v18543_v15 = vpop.f32.mrb[184].mxu1  ;;  %v25649_v59 = vld [vmem:[#allocation19_spill] sm:$0xff] }
 0x6a3   : > { %v13312_v24 = vadd.f32 %v13304_v1, %v13189_v54  ;;  %v13421_v7 = vmul.f32 %v18543_v15, %v24995_v8  ;;  %v13381_v48 = vpop.f32.mrb[185].mxu1 }
 0x6a4   : > { %v13311_v23 = vadd.f32 %v13303_v57, %v13188_v17  ;;  %v13420_v12 = vmul.f32 %v13381_v48, %v24996_v45 }
 0x6a5   : > { %v13429_v27 = vadd.f32 %v13421_v7, %v13306_v20  ;;  %v25650_v20 = vld [vmem:[#allocation69_spill] sm:$0xff]  ;;  %v25651_v7 = vld [vmem:[#allocation118_spill] sm:$0xff] }
 0x6a6   : > { %v13428_v37 = vadd.f32 %v13420_v12, %v13305_v47  ;;  %v18546_v46 = vpop.f32.mrb[186].mxu1 }
 0x6a7   : > { %15616 = vst [vmem:[%s21482_s26 + $0x288] sm:$0xff] %v13429_v27  ;;  %v13423_v4 = vmul.f32 %v18546_v46, %v25647_v3  ;;  %v13391_v60 = vpop.f32.mrb[187].mxu1 }
 0x6a8   : > { %15615 = vst [vmem:[%s21482_s26 + $0x280] sm:$0xff] %v13428_v37  ;;  %v13422_v61 = vmul.f32 %v13391_v60, %v25648_v0  ;;  %v25654_v60 = vld [vmem:[#allocation126_spill] sm:$0xff] }
 0x6a9   : > { %v13431_v19 = vadd.f32 %v13423_v4, %v13308_v21  ;;  %v25652_v21 = vld [vmem:[#allocation119_spill] sm:$0xff]  ;;  %v25653_v4 = vld [vmem:[#allocation70_spill] sm:$0xff] }
 0x6aa   : > { %v13430_v40 = vadd.f32 %v13422_v61, %v13307_v10  ;;  %v18549_v1 = vpop.f32.mrb[188].mxu1  ;;  %v13553_v61 = vmul.f32 %v25654_v60, %v25653_v4  ;;  %v25664_v4 = vld [vmem:[#allocation17_spill] sm:$0xff] }
 0x6ab   : > { %15618 = vst [vmem:[%s21482_s26 + $0x298] sm:$0xff] %v13431_v19  ;;  %v13425_v42 = vmul.f32 %v18549_v1, %v25649_v59  ;;  %v13401_v57 = vpop.f32.mrb[189].mxu1  ;;  %v25655_v19 = vld [vmem:[#allocation78_spill] sm:$0xff]  ;;  %v25668_v59 = vld [vmem:[#allocation73_spill] sm:$0xff] }
 0x6ac   : > { %15617 = vst [vmem:[%s21482_s26 + $0x290] sm:$0xff] %v13430_v40  ;;  %v13424_v47 = vmul.f32 %v13401_v57, %v25650_v20  ;;  %v25656_v1 = vld [vmem:[#allocation90_spill] sm:$0xff]  ;;  %v25658_v57 = vld [vmem:[#allocation71_spill] sm:$0xff] }
 0x6ad   : > { %v13433_v54 = vadd.f32 %v13425_v42, %v13310_v16 }
 0x6ae   : > { %v13432_v17 = vadd.f32 %v13424_v47, %v13309_v6  ;;  %v18552_v15 = vpop.f32.mrb[190].mxu1  ;;  %v25657_v6 = vld [vmem:[#allocation122_spill] sm:$0xff]  ;;  %v25659_v47 = vld [vmem:[#allocation49_spill] sm:$0xff] }
 0x6af   : > { %15620 = vst [vmem:[%s21482_s26 + $0x2a8] sm:$0xff] %v13433_v54  ;;  %v13427_v48 = vmul.f32 %v18552_v15, %v25651_v7  ;;  %v13411_v12 = vpop.f32.mrb[191].mxu1  ;;  %v13791_v42 = vmul.f32 %v25657_v6, %v25656_v1  ;;  %v13552_v54 = vmul.f32 %v25659_v47, %v25658_v57  ;;  %v25666_v1 = vld [vmem:[#allocation93_spill] sm:$0xff]  ;;  %v25669_v57 = vld [vmem:[#allocation162_spill] sm:$0xff] }
 0x6b0   : > { %15619 = vst [vmem:[%s21482_s26 + $0x2a0] sm:$0xff] %v13432_v17  ;;  %v13426_v10 = vmul.f32 %v13411_v12, %v25652_v21  ;;  %v25660_v17 = vld [vmem:[#allocation81_spill] sm:$0xff]  ;;  %v25661_v12 = vld [vmem:[#allocation92_spill] sm:$0xff]  ;;  %v13554_v47 = vmul.f32 %v25669_v57, %v25668_v59  ;;  %v25678_v59 = vld [vmem:[#allocation75_spill] sm:$0xff] }
 0x6b1   : > { %v13435_v27 = vadd.f32 %v13427_v48, %v13312_v24  ;;  %v25662_v24 = vld [vmem:[#allocation164_spill] sm:$0xff]  ;;  %v25679_v57 = vld [vmem:[#allocation163_spill] sm:$0xff] }
 0x6b2   : > { %v13434_v37 = vadd.f32 %v13426_v10, %v13311_v23  ;;  %v18575_v46 = vpop.f32.mrb[192].mxu1  ;;  %v13790_v23 = vmul.f32 %v25662_v24, %v25661_v12  ;;  %v25663_v21 = vld [vmem:[#allocation72_spill] sm:$0xff]  ;;  %v25671_v12 = vld [vmem:[#allocation95_spill] sm:$0xff] }
 0x6b3   : > { %15622 = vst [vmem:[%s21482_s26 + $0x2b8] sm:$0xff] %v13435_v27  ;;  %v13668_v40 = vmul.f32 %v18575_v46, %v25655_v19  ;;  %v13628_v16 = vpop.f32.mrb[193].mxu1  ;;  %v13555_v60 = vmul.f32 %v25664_v4, %v25663_v21  ;;  %v25665_v46 = vld [vmem:[#allocation82_spill] sm:$0xff] }
 0x6b4   : > { %15621 = vst [vmem:[%s21482_s26 + $0x2b0] sm:$0xff] %v13434_v37  ;;  %v13667_v15 = vmul.f32 %v13628_v16, %v25660_v17  ;;  %v25667_v37 = vld [vmem:[#allocation127_spill] sm:$0xff]  ;;  %v25673_v21 = vld [vmem:[#allocation74_spill] sm:$0xff] }
 0x6b5   : > { %v13676_v48 = vadd.f32 %v13668_v40, %v13553_v61  ;;  %v13793_v6 = vmul.f32 %v25667_v37, %v25666_v1  ;;  %v25670_v16 = vld [vmem:[#allocation83_spill] sm:$0xff]  ;;  %v25674_v4 = vld [vmem:[#allocation54_spill] sm:$0xff]  ;;  %v25676_v1 = vld [vmem:[#allocation96_spill] sm:$0xff] }
 0x6b6   : > { %v13675_v10 = vadd.f32 %v13667_v15, %v13552_v54  ;;  %v18578_v27 = vpop.f32.mrb[194].mxu1  ;;  %v25672_v61 = vld [vmem:[#allocation67_spill] sm:$0xff]  ;;  %v25677_v37 = vld [vmem:[#allocation37_spill] sm:$0xff] }
 0x6b7   : > { %v13670_v19 = vmul.f32 %v18578_v27, %v25665_v46  ;;  %v13799_v7 = vadd.f32 %v13791_v42, %v13676_v48  ;;  %v13638_v20 = vpop.f32.mrb[195].mxu1  ;;  %v13792_v40 = vmul.f32 %v25672_v61, %v25671_v12  ;;  %v13557_v27 = vmul.f32 %v25674_v4, %v25673_v21  ;;  %v25675_v42 = vld [vmem:[#allocation85_spill] sm:$0xff]  ;;  %v25683_v21 = vld [vmem:[#allocation91_spill] sm:$0xff] }
 0x6b8   : > { %v13669_v17 = vmul.f32 %v13638_v20, %v25670_v16  ;;  %v13798_v0 = vadd.f32 %v13790_v23, %v13675_v10  ;;  %v13795_v45 = vmul.f32 %v25677_v37, %v25676_v1  ;;  %v13556_v20 = vmul.f32 %v25679_v57, %v25678_v59  ;;  %v25680_v16 = vld [vmem:[#allocation97_spill] sm:$0xff]  ;;  %v25685_v1 = vld [vmem:[#allocation99_spill] sm:$0xff]  ;;  %v25687_v59 = vld [vmem:[#allocation24_spill] sm:$0xff] }
 0x6b9   : > { %v13678_v54 = vadd.f32 %v13670_v19, %v13555_v60  ;;  %v25681_v60 = vld [vmem:[#allocation120_spill] sm:$0xff]  ;;  %v25682_v61 = vld [vmem:[#allocation77_spill] sm:$0xff]  ;;  %v25686_v37 = vld [vmem:[#allocation51_spill] sm:$0xff] }
 0x6ba   : > { %v13677_v15 = vadd.f32 %v13669_v17, %v13554_v47  ;;  %v18581_v24 = vpop.f32.mrb[196].mxu1  ;;  %v13794_v19 = vmul.f32 %v25681_v60, %v25680_v16  ;;  %v13797_v8 = vmul.f32 %v25686_v37, %v25685_v1 }
 0x6bb   : > { %v13672_v48 = vmul.f32 %v18581_v24, %v25675_v42  ;;  %v13801_v46 = vadd.f32 %v13793_v6, %v13678_v54  ;;  %v13648_v3 = vpop.f32.mrb[197].mxu1  ;;  %v13559_v24 = vmul.f32 %v25683_v21, %v25682_v61  ;;  %v25684_v6 = vld [vmem:[#allocation88_spill] sm:$0xff]  ;;  %v25691_v21 = vld [vmem:[#allocation102_spill] sm:$0xff] }
 0x6bc   : > { %v13671_v23 = vmul.f32 %v13648_v3, %v25617_v22  ;;  %v13800_v10 = vadd.f32 %v13792_v40, %v13677_v15  ;;  %v13558_v22 = vmul.f32 %v25687_v59, %v25625_v35  ;;  %v25688_v3 = vld [vmem:[#allocation89_spill] sm:$0xff] }
 0x6bd   : > { %v13680_v47 = vadd.f32 %v13672_v48, %v13557_v27  ;;  %v25689_v27 = vld [vmem:[#allocation125_spill] sm:$0xff] }
 0x6be   : > { %v13679_v17 = vadd.f32 %v13671_v23, %v13556_v20  ;;  %v18584_v12 = vpop.f32.mrb[198].mxu1  ;;  %v13796_v48 = vmul.f32 %v25689_v27, %v25548_v43  ;;  %v25692_v35 = vld [vmem:[#allocation25_spill] sm:$0xff] }
 0x6bf   : > { %v13674_v54 = vmul.f32 %v18584_v12, %v25684_v6  ;;  %v13803_v4 = vadd.f32 %v13795_v45, %v13680_v47  ;;  %v13658_v42 = vpop.f32.mrb[199].mxu1  ;;  %v25690_v47 = vld [vmem:[#allocation129_spill] sm:$0xff] }
 0x6c0   : > { %v13673_v40 = vmul.f32 %v13658_v42, %v25688_v3  ;;  %v13802_v15 = vadd.f32 %v13794_v19, %v13679_v17  ;;  %v14037_v12 = vmul.f32 %v25690_v47, %v25050_v34  ;;  %v14036_v42 = vmul.f32 %v25692_v35, %v25554_v56  ;;  %v25694_v34 = vld [vmem:[#allocation42_spill] sm:$0xff]  ;;  %v25697_v47 = vld [vmem:[#allocation131_spill] sm:$0xff] }
 0x6c1   : > { %v13682_v57 = vadd.f32 %v13674_v54, %v13559_v24 }
 0x6c2   : > { %v13681_v20 = vadd.f32 %v13673_v40, %v13558_v22  ;;  %v18607_v23 = vpop.f32.mrb[200].mxu1  ;;  %v14038_v22 = vmul.f32 %v25694_v34, %v25560_v63 }
 0x6c3   : > { %v13805_v16 = vadd.f32 %v13797_v8, %v13682_v57  ;;  %v13914_v60 = vmul.f32 %v18607_v23, %v25628_v5  ;;  %v13874_v45 = vpop.f32.mrb[201].mxu1  ;;  %v25693_v8 = vld [vmem:[#allocation130_spill] sm:$0xff] }
 0x6c4   : > { %v13804_v61 = vadd.f32 %v13796_v48, %v13681_v20  ;;  %v13913_v6 = vmul.f32 %v13874_v45, %v25691_v21  ;;  %v14039_v5 = vmul.f32 %v25693_v8, %v24863_v28  ;;  %v25695_v48 = vld [vmem:[#allocation28_spill] sm:$0xff]  ;;  %v25696_v28 = vld [vmem:[#allocation30_spill] sm:$0xff] }
 0x6c5   : > { %v13922_v19 = vadd.f32 %v13914_v60, %v13799_v7  ;;  %v14040_v23 = vmul.f32 %v25696_v28, %v25469_v32  ;;  %v25705_v28 = vld [vmem:[#allocation18_spill] sm:$0xff] }
 0x6c6   : > { %v13921_v17 = vadd.f32 %v13913_v6, %v13798_v0  ;;  %v18610_v1 = vpop.f32.mrb[202].mxu1 }
 0x6c7   : > { %v14045_v43 = vadd.f32 %v14037_v12, %v13922_v19  ;;  %v13916_v24 = vmul.f32 %v18610_v1, %v25632_v18  ;;  %v13884_v54 = vpop.f32.mrb[203].mxu1  ;;  %v14041_v18 = vmul.f32 %v25695_v48, %v25365_v44  ;;  %v25698_v44 = vld [vmem:[#allocation123_spill] sm:$0xff] }
 0x6c8   : > { %v14044_v37 = vadd.f32 %v14036_v42, %v13921_v17  ;;  %v13915_v59 = vmul.f32 %v13884_v54, %v25359_v58  ;;  %v14042_v6 = vmul.f32 %v25698_v44, %v25376_v25  ;;  %v25699_v19 = vld [vmem:[#allocation47_spill] sm:$0xff]  ;;  %v25709_v44 = vld [vmem:[#allocation84_spill] sm:$0xff] }
 0x6c9   : > { %v13924_v3 = vadd.f32 %v13916_v24, %v13801_v46 }
 0x6ca   : > { %v13923_v40 = vadd.f32 %v13915_v59, %v13800_v10  ;;  %v18613_v27 = vpop.f32.mrb[204].mxu1 }
 0x6cb   : > { %v14047_v56 = vadd.f32 %v14039_v5, %v13924_v3  ;;  %v13918_v0 = vmul.f32 %v18613_v27, %v25564_v52  ;;  %v13894_v7 = vpop.f32.mrb[205].mxu1  ;;  %v14043_v52 = vmul.f32 %v25697_v47, %v25373_v53  ;;  %v25700_v53 = vld [vmem:[#allocation128_spill] sm:$0xff]  ;;  %v25703_v27 = vld [vmem:[#allocation21_spill] sm:$0xff] }
 0x6cc   : > { %v14046_v57 = vadd.f32 %v14038_v22, %v13923_v40  ;;  %v13917_v20 = vmul.f32 %v13894_v7, %v25468_v49  ;;  %v14282_v24 = vmul.f32 %v25700_v53, %v25280_v38  ;;  %v25701_v5 = vld [vmem:[#allocation124_spill] sm:$0xff] }
 0x6cd   : > { %v13926_v58 = vadd.f32 %v13918_v0, %v13803_v4 }
 0x6ce   : > { %v13925_v60 = vadd.f32 %v13917_v20, %v13802_v15  ;;  %v18616_v45 = vpop.f32.mrb[206].mxu1 }
 0x6cf   : > { %v14049_v63 = vadd.f32 %v14041_v18, %v13926_v58  ;;  %v13920_v46 = vmul.f32 %v18616_v45, %v25372_v55  ;;  %v13904_v10 = vpop.f32.mrb[207].mxu1  ;;  %v14283_v55 = vmul.f32 %v25699_v19, %v25277_v36  ;;  %v25702_v36 = vld [vmem:[#allocation132_spill] sm:$0xff]  ;;  %v25706_v58 = vld [vmem:[#allocation38_spill] sm:$0xff] }
 0x6d0   : > { %v14048_v12 = vadd.f32 %v14040_v23, %v13925_v60  ;;  %v13919_v21 = vmul.f32 %v13904_v10, %v25375_v62  ;;  %v14284_v22 = vmul.f32 %v25702_v36, %v25183_v2 }
 0x6d1   : > { %v13928_v49 = vadd.f32 %v13920_v46, %v13805_v16  ;;  %v25707_v46 = vld [vmem:[#allocation52_spill] sm:$0xff] }
 0x6d2   : > { %v13927_v35 = vadd.f32 %v13919_v21, %v13804_v61  ;;  %v18639_v42 = vpop.f32.mrb[208].mxu1 }
 0x6d3   : > { %v14051_v32 = vadd.f32 %v14043_v52, %v13928_v49  ;;  %v14160_v4 = vmul.f32 %v18639_v42, %v25381_v30  ;;  %v14120_v15 = vpop.f32.mrb[209].mxu1  ;;  %v14285_v30 = vmul.f32 %v25701_v5, %v21304_v29  ;;  %v25704_v29 = vld [vmem:[#allocation60_spill] sm:$0xff]  ;;  %v25708_v52 = vld [vmem:[#allocation50_spill] sm:$0xff] }
 0x6d4   : > { %v14050_v17 = vadd.f32 %v14042_v6, %v13927_v35  ;;  %v14159_v1 = vmul.f32 %v14120_v15, %v25279_v39  ;;  %v14286_v48 = vmul.f32 %v25704_v29, %v25087_v50  ;;  %v25710_v49 = vld [vmem:[#allocation58_spill] sm:$0xff]  ;;  %v25711_v15 = vld [vmem:[#allocation19_spill] sm:$0xff] }
 0x6d5   : > { %v14168_v62 = vadd.f32 %v14160_v4, %v14045_v43 }
 0x6d6   : > { %v14167_v54 = vadd.f32 %v14159_v1, %v14044_v37  ;;  %v18642_v8 = vpop.f32.mrb[210].mxu1 }
 0x6d7   : > { %v14291_v25 = vadd.f32 %v14283_v55, %v14168_v62  ;;  %v14162_v16 = vmul.f32 %v18642_v8, %v25284_v11  ;;  %v14130_v61 = vpop.f32.mrb[211].mxu1  ;;  %v14287_v11 = vmul.f32 %v25703_v27, %v21324_v9 }
 0x6d8   : > { %v14290_v59 = vadd.f32 %v14282_v24, %v14167_v54  ;;  %v14161_v34 = vmul.f32 %v14130_v61, %v24789_v13  ;;  %v25713_v54 = vld [vmem:[#allocation118_spill] sm:$0xff] }
 0x6d9   : > { %v14170_v39 = vadd.f32 %v14162_v16, %v14047_v56  ;;  %v25714_v16 = vld [vmem:[#allocation119_spill] sm:$0xff] }
 0x6da   : > { %v14169_v3 = vadd.f32 %v14161_v34, %v14046_v57  ;;  %v18645_v40 = vpop.f32.mrb[212].mxu1 }
 0x6db   : > { %v14293_v38 = vadd.f32 %v14285_v30, %v14170_v39  ;;  %v14164_v43 = vmul.f32 %v18645_v40, %v25187_v31  ;;  %v14140_v37 = vpop.f32.mrb[213].mxu1  ;;  %v14289_v31 = vmul.f32 %v25705_v28, %v24988_v14 }
 0x6dc   : > { %v14292_v0 = vadd.f32 %v14284_v22, %v14169_v3  ;;  %v14163_v7 = vmul.f32 %v14140_v37, %v25086_v26  ;;  %v14288_v26 = vmul.f32 %v25706_v58, %v24896_v41 }
 0x6dd   : > { %v14172_v13 = vadd.f32 %v14164_v43, %v14049_v63 }
 0x6de   : > { %v14171_v18 = vadd.f32 %v14163_v7, %v14048_v12  ;;  %v18648_v20 = vpop.f32.mrb[214].mxu1 }
 0x6df   : > { %v14295_v2 = vadd.f32 %v14287_v11, %v14172_v13  ;;  %v14166_v56 = vmul.f32 %v18648_v20, %v24987_v51  ;;  %v14150_v57 = vpop.f32.mrb[215].mxu1 }
 0x6e0   : > { %v14294_v23 = vadd.f32 %v14286_v48, %v14171_v18  ;;  %v14165_v9 = vmul.f32 %v14150_v57, %v24990_v33 }
 0x6e1   : > { %v14174_v60 = vadd.f32 %v14166_v56, %v14051_v32 }
 0x6e2   : > { %v14173_v50 = vadd.f32 %v14165_v9, %v14050_v17  ;;  %v18671_v45 = vpop.f32.mrb[216].mxu1  ;;  %v25712_v17 = vld [vmem:[#allocation69_spill] sm:$0xff] }
 0x6e3   : > { %v14297_v63 = vadd.f32 %v14289_v31, %v14174_v60  ;;  %v14406_v10 = vmul.f32 %v18671_v45, %v25707_v46  ;;  %v14366_v51 = vpop.f32.mrb[217].mxu1 }
 0x6e4   : > { %v14296_v47 = vadd.f32 %v14288_v26, %v14173_v50  ;;  %v14405_v12 = vmul.f32 %v14366_v51, %v25708_v52 }
 0x6e5   : > { %v14414_v14 = vadd.f32 %v14406_v10, %v14291_v25 }
 0x6e6   : > { %v14413_v21 = vadd.f32 %v14405_v12, %v14290_v59  ;;  %v18674_v33 = vpop.f32.mrb[218].mxu1 }
 0x6e7   : > { %15688 = vst [vmem:[%s21482_s26 + $0x2c8] sm:$0xff] %v14414_v14  ;;  %v14408_v6 = vmul.f32 %v18674_v33, %v25709_v44  ;;  %v14376_v41 = vpop.f32.mrb[219].mxu1 }
 0x6e8   : > { %15687 = vst [vmem:[%s21482_s26 + $0x2c0] sm:$0xff] %v14413_v21  ;;  %v14407_v35 = vmul.f32 %v14376_v41, %v25710_v49 }
 0x6e9   : > { %v14416_v42 = vadd.f32 %v14408_v6, %v14293_v38 }
 0x6ea   : > { %v14415_v32 = vadd.f32 %v14407_v35, %v14292_v0  ;;  %v18677_v4 = vpop.f32.mrb[220].mxu1 }
 0x6eb   : > { %15690 = vst [vmem:[%s21482_s26 + $0x2d8] sm:$0xff] %v14416_v42  ;;  %v14410_v19 = vmul.f32 %v18677_v4, %v25711_v15  ;;  %v14386_v55 = vpop.f32.mrb[221].mxu1 }
 0x6ec   : > { %15689 = vst [vmem:[%s21482_s26 + $0x2d0] sm:$0xff] %v14415_v32  ;;  %v14409_v1 = vmul.f32 %v14386_v55, %v25712_v17 }
 0x6ed   : > { %v14418_v53 = vadd.f32 %v14410_v19, %v14295_v2 }
 0x6ee   : > { %v14417_v24 = vadd.f32 %v14409_v1, %v14294_v23  ;;  %v18680_v62 = vpop.f32.mrb[222].mxu1 }
 0x6ef   : > { %15692 = vst [vmem:[%s21482_s26 + $0x2e8] sm:$0xff] %v14418_v53  ;;  %v14412_v8 = vmul.f32 %v18680_v62, %v25713_v54  ;;  %v14396_v25 = vpop.f32.mrb[223].mxu1 }
 0x6f0   : > { %15691 = vst [vmem:[%s21482_s26 + $0x2e0] sm:$0xff] %v14417_v24  ;;  %v14411_v61 = vmul.f32 %v14396_v25, %v25714_v16 }
 0x6f1   : > { %v14420_v5 = vadd.f32 %v14412_v8, %v14297_v63 }
 0x6f2   : > { %v14419_v30 = vadd.f32 %v14411_v61, %v14296_v47 }
 0x6f3   : > { %15694 = vst [vmem:[%s21482_s26 + $0x2f8] sm:$0xff] %v14420_v5 }
 0x6f4   : > { %15693 = vst [vmem:[%s21482_s26 + $0x2f0] sm:$0xff] %v14419_v30 }
 0x6f5   : > { %19343 = shalt.err (!%p19340_p13)
}
 0x6f6   : > { %s19344_s5 = scalar_lea.hbm %s24261_s8, 12288  ;;  %s19348_s9 = scalar_lea.hbm %s24318_s4, 24576 }
 0x6f7   : > { %p19345_p3 = scmp.ne.s32.totalorder %s24261_s8, %s19344_s5  ;;  %p19349_p1 = scmp.lt.u32.totalorder %s24261_s8, %s24318_s4 }
 0x6f8   : > { %p19350_p10 = scmp.lt.u32.totalorder %s19348_s9, %s19344_s5  ;;  %p19352_p12 = scmp.lt.u32.totalorder %s19344_s5, %s24261_s8 }
 0x6f9   : > { %p19346_p4 = pnand %p19345_p3, %p25715_p7 }
 0x6fa   : > { %p19351_p9 = por %p19350_p10, %p19349_p1 }
 0x6fb   : > { %p19347_p8 = pneg %p19346_p4 }
 0x6fc   : > { %p19353_p0 = por %p19352_p12, %p19351_p9 }
 0x6fe   : > { %p19354_p11 = pnand %p19353_p0, %p19347_p8 }
 0x700   : > { %19357 = shalt.err (!%p19354_p11)
}
 0x701   : > { %s19429_s29 = smov 128   ;;  %s19430_s24 = smov 8  }
 0x702   : > { %19086 = dma.vmem_to_hbm [thread:$0]  (%p25715_p7), %s24263_s6, 12288, %s24261_s8, %s14431_s18, %s19429_s29, %s19429_s29, %s19430_s24  }
 0x703 PF: > { %s14461_s26 = sand.u32 1, %s19400_s15   ;;  %p25716_p5 = scmp.ne.s32.totalorder %s24586_s28, 0 }
 0x704   : > { %p25717_p2 = scmp.ge.s32.totalorder %s19420_s20, 2  ;;  %s14462_s10 = scalar_lea.sflag [#allocation5], %s14461_s26 }
 0x706   : > { %p19103_p6 = pnand %p25717_p2, %p25716_p5 }
 0x708   : > { %19395 = dma.done.wait (!%p19103_p6), %s14462_s10, 12288  }
 0x709   : > { %19397 = vsyncadd (!%p19103_p6), %s14462_s10, 4294955008  ;;  %s24_s20 = sadd.s32 1, %s19420_s20   ;;  %s25718_s15 = smov %s19404_s16 }
 0x70a   : > { %p21_p13 = scmp.ge.s32.totalorder %s24_s20, 4   ;;  %s25719_s16 = smov %s19408_s17 }
 0x70b   : > { %s25720_s17 = smov %s19622_s7  ;;  %s25721_s18 = smov %s19416_s19 }
 0x70c   : > { %s25722_s19 = smov %s25724_s13  ;;  %23 = sbr.rel (!%p21_p13) target bundleno = 13 (0xd), region = 118 }
 0x713   :  { %14467 = vsyncpa [#allocation4], 1 }
 0x714   :  { %14469 = vsyncpa [#allocation4 + $0x1], 1 }
 0x715   :  { %14470 = vsyncpa [#allocation7], 1 }
 0x716   :  { %14471 = vsyncpa [#allocation10], 1 }
 0x717   :  { %14473 = vsyncpa [#allocation10 + $0x1], 1 }
 0x718   :  { %14474 = vsyncpa [#allocation5], 1 }
 0x719   :  { %14476 = vsyncpa [#allocation5 + $0x1], 1 }

</bundles_post_ra>
